<compile_context>
chip_gen: v6e
topology: v6e:2x2x1
jax: 0.10.0
libtpu: 0.0.40
codegen_flags: <defaults>
</compile_context>

<pallas_src>
import jax
import jax.numpy as jnp
from jax.experimental import pallas as pl
from jax.experimental.pallas import tpu as pltpu

LANE = 128
HID = 1024          # hidden width of every fc block in the module
RES_F = 2048        # resnet feature width
VGG_F = 4096        # vgg feature width
FEAT = RES_F + VGG_F
TKR = 512           # per-step reduction tile over the resnet features
TKV = 1024          # per-step reduction tile over the vgg features
N_KSTEPS = RES_F // TKR  # == VGG_F // TKV == 4


def _round_up(x, m):
    return ((x + m - 1) // m) * m


def _softmax_rows(h):
    m = jnp.max(h, axis=-1, keepdims=True)
    e = jnp.exp(h - m)
    return e / jnp.sum(e, axis=-1, keepdims=True)


# ----------------------------------------------------------------------------
# The fused kernel: backbone stand-in + full ensemble head + L2 normalize.
# ----------------------------------------------------------------------------
def _imcec_kernel(x_ref, wbbr_ref, bbbr_ref, wbbv_ref, bbbv_ref,
                  wr_ref, wv_ref, br_ref, bv_ref,
                  w2r_ref, b2r_ref, w2v_ref, b2v_ref,
                  wf1_ref, bf1_ref, wf2_ref, bf2_ref,
                  o_ref,
                  acc_r, acc_v, stk):
    f32, bf16 = jnp.float32, jnp.bfloat16
    k = pl.program_id(0)

    @pl.when(k == 0)
    def _():
        # Fold the first-layer / pca biases straight into the accumulators.
        acc_r[...] = jnp.zeros_like(acc_r) + br_ref[...]
        acc_v[...] = jnp.zeros_like(acc_v) + bv_ref[...]

    x = x_ref[...]  # (B, IN_F) bf16, fully resident

    # Backbone stand-in: this step's feature column blocks (bf16 x bf16 -> f32).
    fr = jnp.dot(x, wbbr_ref[...], preferred_element_type=f32) + bbbr_ref[...]
    fv = jnp.dot(x, wbbv_ref[...], preferred_element_type=f32) + bbbv_ref[...]

    # Merged per-stream head dots:
    #   acc_r cols = [fc_resnet_1 hidden | pca_resnet50 | pca_hstack (resnet part)]
    #   acc_v cols = [fc_vgg_1 hidden    | pca_vgg16    | pca_hstack (vgg part)]
    acc_r[...] += jnp.dot(fr.astype(bf16), wr_ref[...], preferred_element_type=f32)
    acc_v[...] += jnp.dot(fv.astype(bf16), wv_ref[...], preferred_element_type=f32)

    @pl.when(k == pl.num_programs(0) - 1)
    def _():
        cpad = o_ref.shape[-1]
        ar = acc_r[...]
        av = acc_v[...]

        # fc_resnet / fc_vgg16: Linear -> Softmax -> (Dropout=id) -> Linear
        p_r = _softmax_rows(ar[:, :HID])
        p_v = _softmax_rows(av[:, :HID])
        res_fc = jnp.dot(p_r.astype(bf16), w2r_ref[...],
                         preferred_element_type=f32) + b2r_ref[...]
        vgg_fc = jnp.dot(p_v.astype(bf16), w2v_ref[...],
                         preferred_element_type=f32) + b2v_ref[...]

        # stacked = [hstack_vgg16, hstack_resnet50, hstack, resnet_fc, vgg16_fc]
        # (each block lane-padded to cpad; padded lanes are exactly zero).
        stk[:, 0 * cpad:1 * cpad] = av[:, HID:HID + cpad]
        stk[:, 1 * cpad:2 * cpad] = ar[:, HID:HID + cpad]
        stk[:, 2 * cpad:3 * cpad] = ar[:, HID + cpad:] + av[:, HID + cpad:]
        stk[:, 3 * cpad:4 * cpad] = res_fc
        stk[:, 4 * cpad:5 * cpad] = vgg_fc

        # Final fc block.
        pf = _softmax_rows(
            jnp.dot(stk[...].astype(bf16), wf1_ref[...],
                    preferred_element_type=f32) + bf1_ref[...])
        out = jnp.dot(pf.astype(bf16), wf2_ref[...],
                      preferred_element_type=f32) + bf2_ref[...]

        # F.normalize(p=2, dim=1); padded lanes of `out` are exactly zero so
        # the cpad-lane norm equals the num_classes norm.
        ss = jnp.sum(out * out, axis=-1, keepdims=True)
        o_ref[...] = out * jax.lax.rsqrt(jnp.maximum(ss, 1e-24))


def imcec_fused(x_flat_bf16, kp):
    B, in_f = x_flat_bf16.shape
    cpad = kp["cpad"]
    stream_n = HID + 2 * cpad
    return pl.pallas_call(
        _imcec_kernel,
        out_shape=jax.ShapeDtypeStruct((B, cpad), jnp.float32),
        grid_spec=pltpu.PrefetchScalarGridSpec(
            num_scalar_prefetch=0,
            grid=(N_KSTEPS,),
            in_specs=[
                pl.BlockSpec((B, in_f), lambda k: (0, 0)),        # x (resident)
                pl.BlockSpec((in_f, TKR), lambda k: (0, k)),      # backbone W (res cols)
                pl.BlockSpec((1, TKR), lambda k: (0, k)),         # backbone b (res cols)
                pl.BlockSpec((in_f, TKV), lambda k: (0, k)),      # backbone W (vgg cols)
                pl.BlockSpec((1, TKV), lambda k: (0, k)),         # backbone b (vgg cols)
                pl.BlockSpec((TKR, stream_n), lambda k: (k, 0)),  # merged resnet-stream W
                pl.BlockSpec((TKV, stream_n), lambda k: (k, 0)),  # merged vgg-stream W
                pl.BlockSpec((1, stream_n), lambda k: (0, 0)),    # merged resnet-stream b
                pl.BlockSpec((1, stream_n), lambda k: (0, 0)),    # merged vgg-stream b
                pl.BlockSpec((HID, cpad), lambda k: (0, 0)),      # fc_resnet_2 W
                pl.BlockSpec((1, cpad), lambda k: (0, 0)),        # fc_resnet_2 b
                pl.BlockSpec((HID, cpad), lambda k: (0, 0)),      # fc_vgg_2 W
                pl.BlockSpec((1, cpad), lambda k: (0, 0)),        # fc_vgg_2 b
                pl.BlockSpec((5 * cpad, HID), lambda k: (0, 0)),  # fc_1 W (padded rows)
                pl.BlockSpec((1, HID), lambda k: (0, 0)),         # fc_1 b
                pl.BlockSpec((HID, cpad), lambda k: (0, 0)),      # fc_2 W
                pl.BlockSpec((1, cpad), lambda k: (0, 0)),        # fc_2 b
            ],
            out_specs=pl.BlockSpec((B, cpad), lambda k: (0, 0)),
            scratch_shapes=[
                pltpu.VMEM((B, stream_n), jnp.float32),   # resnet-stream accumulator
                pltpu.VMEM((B, stream_n), jnp.float32),   # vgg-stream accumulator
                pltpu.VMEM((B, 5 * cpad), jnp.float32),   # stacked (lane padded)
            ],
        ),
        compiler_params=pltpu.CompilerParams(
            dimension_semantics=("arbitrary",),
            vmem_limit_bytes=40 << 20),
    )(x_flat_bf16,
      kp["wbb_r"], kp["bbb_r"], kp["wbb_v"], kp["bbb_v"],
      kp["w_r"], kp["w_v"], kp["b_r"], kp["b_v"],
      kp["w2r"], kp["b2r"], kp["w2v"], kp["b2v"],
      kp["wf1"], kp["bf1"], kp["wf2"], kp["bf2"])


# ----------------------------------------------------------------------------
# Parameter construction (deterministic, synthetic) in "natural" module shapes.
# ----------------------------------------------------------------------------
def make_params(key, in_feat, num_classes):
    def lin(k, fan_in, fan_out, scale=0.02):
        kw, kb = jax.random.split(k)
        w = jax.random.normal(kw, (fan_in, fan_out), jnp.float32) * scale
        b = jax.random.normal(kb, (fan_out,), jnp.float32) * scale
        return w, b

    keys = jax.random.split(key, 11)
    p = {}
    # backbone stand-ins (see TODO at top of file)
    p["resnet_feat"] = lin(keys[0], in_feat, RES_F)
    p["vgg_feat"] = lin(keys[1], in_feat, VGG_F)
    # head (exact shapes from the PyTorch module)
    p["pca_hstack_resnet50"] = lin(keys[2], RES_F, num_classes)
    p["pca_hstack_vgg16"] = lin(keys[3], VGG_F, num_classes)
    p["pca_hstack"] = lin(keys[4], FEAT, num_classes)
    p["fc_resnet_1"] = lin(keys[5], RES_F, HID)
    p["fc_resnet_2"] = lin(keys[6], HID, num_classes)
    p["fc_vgg_1"] = lin(keys[7], VGG_F, HID)
    p["fc_vgg_2"] = lin(keys[8], HID, num_classes)
    p["fc_1"] = lin(keys[9], 5 * num_classes, HID)
    p["fc_2"] = lin(keys[10], HID, num_classes)
    return p


# ----------------------------------------------------------------------------
# Convert natural params into the fused / padded / bf16 layout the kernel uses.
# ----------------------------------------------------------------------------
def prepare_kernel_params(p, num_classes):
    f32, bf16 = jnp.float32, jnp.bfloat16
    cpad = _round_up(num_classes, LANE)

    def padw(w):          # (K, C) -> (K, cpad), zero-padded, f32
        K, C = w.shape
        return jnp.zeros((K, cpad), f32).at[:, :C].set(w)

    def padb(b):          # (C,) -> (1, cpad), zero-padded, f32
        return jnp.zeros((1, cpad), f32).at[0, :b.shape[0]].set(b)

    kp = {"cpad": cpad}

    # backbone stand-in, split by stream; weights bf16, biases f32
    w_r, b_r = p["resnet_feat"]
    w_v, b_v = p["vgg_feat"]
    kp["wbb_r"] = w_r.astype(bf16)
    kp["bbb_r"] = b_r.reshape(1, -1).astype(f32)
    kp["wbb_v"] = w_v.astype(bf16)
    kp["bbb_v"] = b_v.reshape(1, -1).astype(f32)

    # merged per-stream first-layer weights: [fc_*_1 | pca_stream | pca_hstack rows]
    w1r, b1r = p["fc_resnet_1"]
    w1v, b1v = p["fc_vgg_1"]
    wpr, bpr = p["pca_hstack_resnet50"]
    wpv, bpv = p["pca_hstack_vgg16"]
    wph, bph = p["pca_hstack"]
    kp["w_r"] = jnp.concatenate([w1r, padw(wpr), padw(wph[:RES_F])],
                                axis=1).astype(bf16)
    kp["w_v"] = jnp.concatenate([w1v, padw(wpv), padw(wph[RES_F:])],
                                axis=1).astype(bf16)
    # biases folded into the k==0 accumulator init; pca_hstack bias rides with R.
    kp["b_r"] = jnp.concatenate(
        [b1r.reshape(1, -1), padb(bpr), padb(bph)], axis=1).astype(f32)
    kp["b_v"] = jnp.concatenate(
        [b1v.reshape(1, -1), padb(bpv), jnp.zeros((1, cpad), f32)], axis=1).astype(f32)

    # second layers (lane padded)
    w2r, b2r = p["fc_resnet_2"]
    kp["w2r"], kp["b2r"] = padw(w2r).astype(bf16), padb(b2r)
    w2v, b2v = p["fc_vgg_2"]
    kp["w2v"], kp["b2v"] = padw(w2v).astype(bf16), padb(b2v)

    # fc_1: scatter the 5*num_classes real input rows into 5 cpad-wide blocks
    # (padded rows are zero, matching the zero-padded lanes of `stacked`).
    wf1, bf1 = p["fc_1"]
    wf1p = jnp.zeros((5 * cpad, HID), f32)
    for j in range(5):
        wf1p = wf1p.at[j * cpad:j * cpad + num_classes].set(
            wf1[j * num_classes:(j + 1) * num_classes])
    kp["wf1"] = wf1p.astype(bf16)
    kp["bf1"] = bf1.reshape(1, -1).astype(f32)

    wf2, bf2 = p["fc_2"]
    kp["wf2"], kp["bf2"] = padw(wf2).astype(bf16), padb(bf2)
    return kp


# ----------------------------------------------------------------------------
# Forward pass: exactly one Pallas launch + a final (tiny) slice in JAX.
# ----------------------------------------------------------------------------
def imcec_forward(kparams, x, num_classes):
    B = x.shape[0]
    x_flat = x.reshape(B, -1).astype(jnp.bfloat16)
    out_pad = imcec_fused(x_flat, kparams)           # (B, cpad)
    return out_pad[:, :num_classes]


# ----------------------------------------------------------------------------
# Pure-JAX reference with the SAME numerics (bf16 inputs, f32 accumulation).
# ----------------------------------------------------------------------------
def _bdot(x, w):
    return jnp.dot(x.astype(jnp.bfloat16), w.astype(jnp.bfloat16),
                   preferred_element_type=jnp.float32)


def _ref_fc_block(x, w1, b1, w2, b2):
    h = _bdot(x, w1) + b1
    return _bdot(jax.nn.softmax(h, axis=1), w2) + b2


def imcec_forward_ref(p, x):
    B = x.shape[0]
    x_flat = x.reshape(B, -1).astype(jnp.float32)
    feat_r = _bdot(x_flat, p["resnet_feat"][0]) + p["resnet_feat"][1]
    feat_v = _bdot(x_flat, p["vgg_feat"][0]) + p["vgg_feat"][1]
    hstack_resnet50 = _bdot(feat_r, p["pca_hstack_resnet50"][0]) + p["pca_hstack_resnet50"][1]
    hstack_vgg16 = _bdot(feat_v, p["pca_hstack_vgg16"][0]) + p["pca_hstack_vgg16"][1]
    feat = jnp.concatenate([feat_r, feat_v], axis=1)
    hstack = _bdot(feat, p["pca_hstack"][0]) + p["pca_hstack"][1]
    resnet_fc = _ref_fc_block(feat_r, *p["fc_resnet_1"], *p["fc_resnet_2"])
    vgg16_fc = _ref_fc_block(feat_v, *p["fc_vgg_1"], *p["fc_vgg_2"])
    stacked = jnp.concatenate(
        [hstack_vgg16, hstack_resnet50, hstack, resnet_fc, vgg16_fc], axis=1)
    out = _ref_fc_block(stacked, *p["fc_1"], *p["fc_2"])
    n = jnp.sqrt(jnp.sum(out * out, axis=1, keepdims=True))
    return out / jnp.maximum(n, 1e-12)


if __name__ == "__main__":
    B, C, H, W = 2, 3, 16, 16          # small NCHW image batch
    num_classes = 10

    key = jax.random.PRNGKey(0)
    k_x, k_p = jax.random.split(key)
    x = jax.random.normal(k_x, (B, C, H, W), jnp.float32)

    params = make_params(k_p, C * H * W, num_classes)
    kparams = prepare_kernel_params(params, num_classes)

    out = imcec_forward(kparams, x, num_classes)
    out = jax.block_until_ready(out)

    ref = imcec_forward_ref(params, x)
    assert out.shape == (B, num_classes)
    max_diff = float(jnp.max(jnp.abs(out - ref)))
    assert jnp.allclose(out, ref, atol=2e-3, rtol=2e-3), (
        f"max abs diff {max_diff}")

    print("KERNEL_OK")
</pallas_src>

<mosaic_0001>
module attributes {stable_mosaic.version = 11 : i64} {
  func.func @_imcec_kernel(%arg0: i32, %arg1: memref<2x768xbf16, #tpu.memory_space<vmem>>, %arg2: memref<768x512xbf16, #tpu.memory_space<vmem>>, %arg3: memref<1x512xf32, #tpu.memory_space<vmem>>, %arg4: memref<768x1024xbf16, #tpu.memory_space<vmem>>, %arg5: memref<1x1024xf32, #tpu.memory_space<vmem>>, %arg6: memref<512x1280xbf16, #tpu.memory_space<vmem>>, %arg7: memref<1024x1280xbf16, #tpu.memory_space<vmem>>, %arg8: memref<1x1280xf32, #tpu.memory_space<vmem>>, %arg9: memref<1x1280xf32, #tpu.memory_space<vmem>>, %arg10: memref<1024x128xbf16, #tpu.memory_space<vmem>>, %arg11: memref<1x128xf32, #tpu.memory_space<vmem>>, %arg12: memref<1024x128xbf16, #tpu.memory_space<vmem>>, %arg13: memref<1x128xf32, #tpu.memory_space<vmem>>, %arg14: memref<640x1024xbf16, #tpu.memory_space<vmem>>, %arg15: memref<1x1024xf32, #tpu.memory_space<vmem>>, %arg16: memref<1024x128xbf16, #tpu.memory_space<vmem>>, %arg17: memref<1x128xf32, #tpu.memory_space<vmem>>, %arg18: memref<2x128xf32, #tpu.memory_space<vmem>>, %arg19: memref<2x1280xf32, #tpu.memory_space<vmem>>, %arg20: memref<2x1280xf32, #tpu.memory_space<vmem>>, %arg21: memref<2x640xf32, #tpu.memory_space<vmem>>) attributes {dimension_semantics = [#tpu.dimension_semantics<arbitrary>], iteration_bounds = array<i64: 4>, scalar_prefetch = 0 : i64, scratch_operands = 3 : i64, tpu.core_type = #tpu.core_type<tc>, window_params = [{pipeline_mode = #tpu.pipeline_mode<synchronous>, transform_indices = @transform_0, window_bounds = array<i64: 2, 768>}, {transform_indices = @transform_1, window_bounds = array<i64: 768, 512>}, {transform_indices = @transform_2, window_bounds = array<i64: 1, 512>}, {transform_indices = @transform_3, window_bounds = array<i64: 768, 1024>}, {transform_indices = @transform_4, window_bounds = array<i64: 1, 1024>}, {transform_indices = @transform_5, window_bounds = array<i64: 512, 1280>}, {transform_indices = @transform_6, window_bounds = array<i64: 1024, 1280>}, {pipeline_mode = #tpu.pipeline_mode<synchronous>, transform_indices = @transform_7, window_bounds = array<i64: 1, 1280>}, {pipeline_mode = #tpu.pipeline_mode<synchronous>, transform_indices = @transform_8, window_bounds = array<i64: 1, 1280>}, {pipeline_mode = #tpu.pipeline_mode<synchronous>, transform_indices = @transform_9, window_bounds = array<i64: 1024, 128>}, {pipeline_mode = #tpu.pipeline_mode<synchronous>, transform_indices = @transform_10, window_bounds = array<i64: 1, 128>}, {pipeline_mode = #tpu.pipeline_mode<synchronous>, transform_indices = @transform_11, window_bounds = array<i64: 1024, 128>}, {pipeline_mode = #tpu.pipeline_mode<synchronous>, transform_indices = @transform_12, window_bounds = array<i64: 1, 128>}, {pipeline_mode = #tpu.pipeline_mode<synchronous>, transform_indices = @transform_13, window_bounds = array<i64: 640, 1024>}, {pipeline_mode = #tpu.pipeline_mode<synchronous>, transform_indices = @transform_14, window_bounds = array<i64: 1, 1024>}, {pipeline_mode = #tpu.pipeline_mode<synchronous>, transform_indices = @transform_15, window_bounds = array<i64: 1024, 128>}, {pipeline_mode = #tpu.pipeline_mode<synchronous>, transform_indices = @transform_16, window_bounds = array<i64: 1, 128>}, {pipeline_mode = #tpu.pipeline_mode<synchronous>, transform_indices = @transform_17, window_bounds = array<i64: 2, 128>}]} {
    %c0_i32 = arith.constant 0 : i32
    %0 = arith.cmpi eq, %arg0, %c0_i32 : i32
    %1 = arith.extui %0 : i1 to i32
    %c0_i32_0 = arith.constant 0 : i32
    %2 = arith.cmpi ne, %1, %c0_i32_0 : i32
    scf.if %2 {
      %cst_26 = arith.constant 0.000000e+00 : f32
      %29 = vector.broadcast %cst_26 : f32 to vector<2x1280xf32>
      %c0_27 = arith.constant 0 : index
      %c0_28 = arith.constant 0 : index
      %30 = vector.load %arg8[%c0_27, %c0_28] : memref<1x1280xf32, #tpu.memory_space<vmem>>, vector<1x1280xf32>
      %31 = vector.broadcast %30 : vector<1x1280xf32> to vector<2x1280xf32>
      %32 = arith.addf %29, %31 : vector<2x1280xf32>
      %c0_29 = arith.constant 0 : index
      %c0_30 = arith.constant 0 : index
      %33 = vector.load %arg19[%c0_29, %c0_30] : memref<2x1280xf32, #tpu.memory_space<vmem>>, vector<2x1280xf32>
      tpu.vector_store %arg19[%c0_29, %c0_30], %32 {strides = array<i32>} : memref<2x1280xf32, #tpu.memory_space<vmem>>, vector<2x1280xf32>,
      %cst_31 = arith.constant 0.000000e+00 : f32
      %34 = vector.broadcast %cst_31 : f32 to vector<2x1280xf32>
      %c0_32 = arith.constant 0 : index
      %c0_33 = arith.constant 0 : index
      %35 = vector.load %arg9[%c0_32, %c0_33] : memref<1x1280xf32, #tpu.memory_space<vmem>>, vector<1x1280xf32>
      %36 = vector.broadcast %35 : vector<1x1280xf32> to vector<2x1280xf32>
      %37 = arith.addf %34, %36 : vector<2x1280xf32>
      %c0_34 = arith.constant 0 : index
      %c0_35 = arith.constant 0 : index
      %38 = vector.load %arg20[%c0_34, %c0_35] : memref<2x1280xf32, #tpu.memory_space<vmem>>, vector<2x1280xf32>
      tpu.vector_store %arg20[%c0_34, %c0_35], %37 {strides = array<i32>} : memref<2x1280xf32, #tpu.memory_space<vmem>>, vector<2x1280xf32>,
    } else {
    }
    %c0 = arith.constant 0 : index
    %c0_1 = arith.constant 0 : index
    %3 = vector.load %arg1[%c0, %c0_1] : memref<2x768xbf16, #tpu.memory_space<vmem>>, vector<2x768xbf16>
    %c0_2 = arith.constant 0 : index
    %c0_3 = arith.constant 0 : index
    %4 = vector.load %arg2[%c0_2, %c0_3] : memref<768x512xbf16, #tpu.memory_space<vmem>>, vector<768x512xbf16>
    %cst = arith.constant dense<0.000000e+00> : vector<2x512xf32>
    %5 = tpu.matmul %3, %4, %cst {dimension_numbers = #tpu.dot_dimension_numbers<[1], [0], [0], [1], [0, 0, 1, 1], [], []>} : vector<2x768xbf16>, vector<768x512xbf16>, vector<2x512xf32> -> vector<2x512xf32>
    %c0_4 = arith.constant 0 : index
    %c0_5 = arith.constant 0 : index
    %6 = vector.load %arg3[%c0_4, %c0_5] : memref<1x512xf32, #tpu.memory_space<vmem>>, vector<1x512xf32>
    %7 = vector.broadcast %6 : vector<1x512xf32> to vector<2x512xf32>
    %8 = arith.addf %5, %7 : vector<2x512xf32>
    %c0_6 = arith.constant 0 : index
    %c0_7 = arith.constant 0 : index
    %9 = vector.load %arg4[%c0_6, %c0_7] : memref<768x1024xbf16, #tpu.memory_space<vmem>>, vector<768x1024xbf16>
    %cst_8 = arith.constant dense<0.000000e+00> : vector<2x1024xf32>
    %10 = tpu.matmul %3, %9, %cst_8 {dimension_numbers = #tpu.dot_dimension_numbers<[1], [0], [0], [1], [0, 0, 1, 1], [], []>} : vector<2x768xbf16>, vector<768x1024xbf16>, vector<2x1024xf32> -> vector<2x1024xf32>
    %c0_9 = arith.constant 0 : index
    %c0_10 = arith.constant 0 : index
    %11 = vector.load %arg5[%c0_9, %c0_10] : memref<1x1024xf32, #tpu.memory_space<vmem>>, vector<1x1024xf32>
    %12 = vector.broadcast %11 : vector<1x1024xf32> to vector<2x1024xf32>
    %13 = arith.addf %10, %12 : vector<2x1024xf32>
    %c0_11 = arith.constant 0 : index
    %c0_12 = arith.constant 0 : index
    %14 = vector.load %arg19[%c0_11, %c0_12] : memref<2x1280xf32, #tpu.memory_space<vmem>>, vector<2x1280xf32>
    %15 = arith.truncf %8 : vector<2x512xf32> to vector<2x512xbf16>
    %c0_13 = arith.constant 0 : index
    %c0_14 = arith.constant 0 : index
    %16 = vector.load %arg6[%c0_13, %c0_14] : memref<512x1280xbf16, #tpu.memory_space<vmem>>, vector<512x1280xbf16>
    %cst_15 = arith.constant dense<0.000000e+00> : vector<2x1280xf32>
    %17 = tpu.matmul %15, %16, %cst_15 {dimension_numbers = #tpu.dot_dimension_numbers<[1], [0], [0], [1], [0, 0, 1, 1], [], []>} : vector<2x512xbf16>, vector<512x1280xbf16>, vector<2x1280xf32> -> vector<2x1280xf32>
    %18 = arith.addf %14, %17 : vector<2x1280xf32>
    %c0_16 = arith.constant 0 : index
    %c0_17 = arith.constant 0 : index
    %19 = vector.load %arg19[%c0_16, %c0_17] : memref<2x1280xf32, #tpu.memory_space<vmem>>, vector<2x1280xf32>
    tpu.vector_store %arg19[%c0_16, %c0_17], %18 {strides = array<i32>} : memref<2x1280xf32, #tpu.memory_space<vmem>>, vector<2x1280xf32>,
    %c0_18 = arith.constant 0 : index
    %c0_19 = arith.constant 0 : index
    %20 = vector.load %arg20[%c0_18, %c0_19] : memref<2x1280xf32, #tpu.memory_space<vmem>>, vector<2x1280xf32>
    %21 = arith.truncf %13 : vector<2x1024xf32> to vector<2x1024xbf16>
    %c0_20 = arith.constant 0 : index
    %c0_21 = arith.constant 0 : index
    %22 = vector.load %arg7[%c0_20, %c0_21] : memref<1024x1280xbf16, #tpu.memory_space<vmem>>, vector<1024x1280xbf16>
    %cst_22 = arith.constant dense<0.000000e+00> : vector<2x1280xf32>
    %23 = tpu.matmul %21, %22, %cst_22 {dimension_numbers = #tpu.dot_dimension_numbers<[1], [0], [0], [1], [0, 0, 1, 1], [], []>} : vector<2x1024xbf16>, vector<1024x1280xbf16>, vector<2x1280xf32> -> vector<2x1280xf32>
    %24 = arith.addf %20, %23 : vector<2x1280xf32>
    %c0_23 = arith.constant 0 : index
    %c0_24 = arith.constant 0 : index
    %25 = vector.load %arg20[%c0_23, %c0_24] : memref<2x1280xf32, #tpu.memory_space<vmem>>, vector<2x1280xf32>
    tpu.vector_store %arg20[%c0_23, %c0_24], %24 {strides = array<i32>} : memref<2x1280xf32, #tpu.memory_space<vmem>>, vector<2x1280xf32>,
    %c3_i32 = arith.constant 3 : i32
    %26 = arith.cmpi eq, %arg0, %c3_i32 : i32
    %27 = arith.extui %26 : i1 to i32
    %c0_i32_25 = arith.constant 0 : i32
    %28 = arith.cmpi ne, %27, %c0_i32_25 : i32
    scf.if %28 {
      %c0_26 = arith.constant 0 : index
      %c0_27 = arith.constant 0 : index
      %29 = vector.load %arg19[%c0_26, %c0_27] : memref<2x1280xf32, #tpu.memory_space<vmem>>, vector<2x1280xf32>
      %c0_28 = arith.constant 0 : index
      %c0_29 = arith.constant 0 : index
      %30 = vector.load %arg20[%c0_28, %c0_29] : memref<2x1280xf32, #tpu.memory_space<vmem>>, vector<2x1280xf32>
      %31 = vector.extract_strided_slice %29 {offsets = [0, 0], sizes = [2, 1024], strides = [1, 1]} : vector<2x1280xf32> to vector<2x1024xf32>
      %cst_30 = arith.constant dense<0xFF800000> : vector<2xf32>
      %32 = vector.multi_reduction <maximumf>, %31, %cst_30 [1] : vector<2x1024xf32> to vector<2xf32>
      %33 = vector.shape_cast %32 : vector<2xf32> to vector<2x1xf32>
      %34 = vector.broadcast %33 : vector<2x1xf32> to vector<2x1024xf32>
      %35 = arith.subf %31, %34 : vector<2x1024xf32>
      %36 = math.exp %35 : vector<2x1024xf32>
      %cst_31 = arith.constant dense<0.000000e+00> : vector<2xf32>
      %37 = vector.multi_reduction <add>, %36, %cst_31 [1] : vector<2x1024xf32> to vector<2xf32>
      %38 = vector.shape_cast %37 : vector<2xf32> to vector<2x1xf32>
      %39 = vector.broadcast %38 : vector<2x1xf32> to vector<2x1024xf32>
      %40 = arith.divf %36, %39 : vector<2x1024xf32>
      %41 = vector.extract_strided_slice %30 {offsets = [0, 0], sizes = [2, 1024], strides = [1, 1]} : vector<2x1280xf32> to vector<2x1024xf32>
      %cst_32 = arith.constant dense<0xFF800000> : vector<2xf32>
      %42 = vector.multi_reduction <maximumf>, %41, %cst_32 [1] : vector<2x1024xf32> to vector<2xf32>
      %43 = vector.shape_cast %42 : vector<2xf32> to vector<2x1xf32>
      %44 = vector.broadcast %43 : vector<2x1xf32> to vector<2x1024xf32>
      %45 = arith.subf %41, %44 : vector<2x1024xf32>
      %46 = math.exp %45 : vector<2x1024xf32>
      %cst_33 = arith.constant dense<0.000000e+00> : vector<2xf32>
      %47 = vector.multi_reduction <add>, %46, %cst_33 [1] : vector<2x1024xf32> to vector<2xf32>
      %48 = vector.shape_cast %47 : vector<2xf32> to vector<2x1xf32>
      %49 = vector.broadcast %48 : vector<2x1xf32> to vector<2x1024xf32>
      %50 = arith.divf %46, %49 : vector<2x1024xf32>
      %51 = arith.truncf %40 : vector<2x1024xf32> to vector<2x1024xbf16>
      %c0_34 = arith.constant 0 : index
      %c0_35 = arith.constant 0 : index
      %52 = vector.load %arg10[%c0_34, %c0_35] : memref<1024x128xbf16, #tpu.memory_space<vmem>>, vector<1024x128xbf16>
      %cst_36 = arith.constant dense<0.000000e+00> : vector<2x128xf32>
      %53 = tpu.matmul %51, %52, %cst_36 {dimension_numbers = #tpu.dot_dimension_numbers<[1], [0], [0], [1], [0, 0, 1, 1], [], []>} : vector<2x1024xbf16>, vector<1024x128xbf16>, vector<2x128xf32> -> vector<2x128xf32>
      %c0_37 = arith.constant 0 : index
      %c0_38 = arith.constant 0 : index
      %54 = vector.load %arg11[%c0_37, %c0_38] : memref<1x128xf32, #tpu.memory_space<vmem>>, vector<1x128xf32>
      %55 = vector.broadcast %54 : vector<1x128xf32> to vector<2x128xf32>
      %56 = arith.addf %53, %55 : vector<2x128xf32>
      %57 = arith.truncf %50 : vector<2x1024xf32> to vector<2x1024xbf16>
      %c0_39 = arith.constant 0 : index
      %c0_40 = arith.constant 0 : index
      %58 = vector.load %arg12[%c0_39, %c0_40] : memref<1024x128xbf16, #tpu.memory_space<vmem>>, vector<1024x128xbf16>
      %cst_41 = arith.constant dense<0.000000e+00> : vector<2x128xf32>
      %59 = tpu.matmul %57, %58, %cst_41 {dimension_numbers = #tpu.dot_dimension_numbers<[1], [0], [0], [1], [0, 0, 1, 1], [], []>} : vector<2x1024xbf16>, vector<1024x128xbf16>, vector<2x128xf32> -> vector<2x128xf32>
      %c0_42 = arith.constant 0 : index
      %c0_43 = arith.constant 0 : index
      %60 = vector.load %arg13[%c0_42, %c0_43] : memref<1x128xf32, #tpu.memory_space<vmem>>, vector<1x128xf32>
      %61 = vector.broadcast %60 : vector<1x128xf32> to vector<2x128xf32>
      %62 = arith.addf %59, %61 : vector<2x128xf32>
      %63 = vector.extract_strided_slice %30 {offsets = [0, 1024], sizes = [2, 128], strides = [1, 1]} : vector<2x1280xf32> to vector<2x128xf32>
      %c0_44 = arith.constant 0 : index
      %c0_45 = arith.constant 0 : index
      %64 = vector.load %arg21[%c0_44, %c0_45] : memref<2x640xf32, #tpu.memory_space<vmem>>, vector<2x128xf32>
      tpu.vector_store %arg21[%c0_44, %c0_45], %63 {strides = array<i32>} : memref<2x640xf32, #tpu.memory_space<vmem>>, vector<2x128xf32>,
      %65 = vector.extract_strided_slice %29 {offsets = [0, 1024], sizes = [2, 128], strides = [1, 1]} : vector<2x1280xf32> to vector<2x128xf32>
      %c0_46 = arith.constant 0 : index
      %c128 = arith.constant 128 : index
      %66 = vector.load %arg21[%c0_46, %c128] : memref<2x640xf32, #tpu.memory_space<vmem>>, vector<2x128xf32>
      tpu.vector_store %arg21[%c0_46, %c128], %65 {strides = array<i32>} : memref<2x640xf32, #tpu.memory_space<vmem>>, vector<2x128xf32>,
      %67 = vector.extract_strided_slice %29 {offsets = [0, 1152], sizes = [2, 128], strides = [1, 1]} : vector<2x1280xf32> to vector<2x128xf32>
      %68 = vector.extract_strided_slice %30 {offsets = [0, 1152], sizes = [2, 128], strides = [1, 1]} : vector<2x1280xf32> to vector<2x128xf32>
      %69 = arith.addf %67, %68 : vector<2x128xf32>
      %c0_47 = arith.constant 0 : index
      %c256 = arith.constant 256 : index
      %70 = vector.load %arg21[%c0_47, %c256] : memref<2x640xf32, #tpu.memory_space<vmem>>, vector<2x128xf32>
      tpu.vector_store %arg21[%c0_47, %c256], %69 {strides = array<i32>} : memref<2x640xf32, #tpu.memory_space<vmem>>, vector<2x128xf32>,
      %c0_48 = arith.constant 0 : index
      %c384 = arith.constant 384 : index
      %71 = vector.load %arg21[%c0_48, %c384] : memref<2x640xf32, #tpu.memory_space<vmem>>, vector<2x128xf32>
      tpu.vector_store %arg21[%c0_48, %c384], %56 {strides = array<i32>} : memref<2x640xf32, #tpu.memory_space<vmem>>, vector<2x128xf32>,
      %c0_49 = arith.constant 0 : index
      %c512 = arith.constant 512 : index
      %72 = vector.load %arg21[%c0_49, %c512] : memref<2x640xf32, #tpu.memory_space<vmem>>, vector<2x128xf32>
      tpu.vector_store %arg21[%c0_49, %c512], %62 {strides = array<i32>} : memref<2x640xf32, #tpu.memory_space<vmem>>, vector<2x128xf32>,
      %c0_50 = arith.constant 0 : index
      %c0_51 = arith.constant 0 : index
      %73 = vector.load %arg21[%c0_50, %c0_51] : memref<2x640xf32, #tpu.memory_space<vmem>>, vector<2x640xf32>
      %74 = arith.truncf %73 : vector<2x640xf32> to vector<2x640xbf16>
      %c0_52 = arith.constant 0 : index
      %c0_53 = arith.constant 0 : index
      %75 = vector.load %arg14[%c0_52, %c0_53] : memref<640x1024xbf16, #tpu.memory_space<vmem>>, vector<640x1024xbf16>
      %cst_54 = arith.constant dense<0.000000e+00> : vector<2x1024xf32>
      %76 = tpu.matmul %74, %75, %cst_54 {dimension_numbers = #tpu.dot_dimension_numbers<[1], [0], [0], [1], [0, 0, 1, 1], [], []>} : vector<2x640xbf16>, vector<640x1024xbf16>, vector<2x1024xf32> -> vector<2x1024xf32>
      %c0_55 = arith.constant 0 : index
      %c0_56 = arith.constant 0 : index
      %77 = vector.load %arg15[%c0_55, %c0_56] : memref<1x1024xf32, #tpu.memory_space<vmem>>, vector<1x1024xf32>
      %78 = vector.broadcast %77 : vector<1x1024xf32> to vector<2x1024xf32>
      %79 = arith.addf %76, %78 : vector<2x1024xf32>
      %cst_57 = arith.constant dense<0xFF800000> : vector<2xf32>
      %80 = vector.multi_reduction <maximumf>, %79, %cst_57 [1] : vector<2x1024xf32> to vector<2xf32>
      %81 = vector.shape_cast %80 : vector<2xf32> to vector<2x1xf32>
      %82 = vector.broadcast %81 : vector<2x1xf32> to vector<2x1024xf32>
      %83 = arith.subf %79, %82 : vector<2x1024xf32>
      %84 = math.exp %83 : vector<2x1024xf32>
      %cst_58 = arith.constant dense<0.000000e+00> : vector<2xf32>
      %85 = vector.multi_reduction <add>, %84, %cst_58 [1] : vector<2x1024xf32> to vector<2xf32>
      %86 = vector.shape_cast %85 : vector<2xf32> to vector<2x1xf32>
      %87 = vector.broadcast %86 : vector<2x1xf32> to vector<2x1024xf32>
      %88 = arith.divf %84, %87 : vector<2x1024xf32>
      %89 = arith.truncf %88 : vector<2x1024xf32> to vector<2x1024xbf16>
      %c0_59 = arith.constant 0 : index
      %c0_60 = arith.constant 0 : index
      %90 = vector.load %arg16[%c0_59, %c0_60] : memref<1024x128xbf16, #tpu.memory_space<vmem>>, vector<1024x128xbf16>
      %cst_61 = arith.constant dense<0.000000e+00> : vector<2x128xf32>
      %91 = tpu.matmul %89, %90, %cst_61 {dimension_numbers = #tpu.dot_dimension_numbers<[1], [0], [0], [1], [0, 0, 1, 1], [], []>} : vector<2x1024xbf16>, vector<1024x128xbf16>, vector<2x128xf32> -> vector<2x128xf32>
      %c0_62 = arith.constant 0 : index
      %c0_63 = arith.constant 0 : index
      %92 = vector.load %arg17[%c0_62, %c0_63] : memref<1x128xf32, #tpu.memory_space<vmem>>, vector<1x128xf32>
      %93 = vector.broadcast %92 : vector<1x128xf32> to vector<2x128xf32>
      %94 = arith.addf %91, %93 : vector<2x128xf32>
      %95 = arith.mulf %94, %94 : vector<2x128xf32>
      %cst_64 = arith.constant dense<0.000000e+00> : vector<2xf32>
      %96 = vector.multi_reduction <add>, %95, %cst_64 [1] : vector<2x128xf32> to vector<2xf32>
      %97 = vector.shape_cast %96 : vector<2xf32> to vector<2x1xf32>
      %cst_65 = arith.constant 1.000000e-24 : f32
      %98 = vector.broadcast %cst_65 : f32 to vector<2x1xf32>
      %99 = arith.maximumf %97, %98 : vector<2x1xf32>
      %100 = math.rsqrt %99 : vector<2x1xf32>
      %101 = vector.broadcast %100 : vector<2x1xf32> to vector<2x128xf32>
      %102 = arith.mulf %94, %101 : vector<2x128xf32>
      %c0_66 = arith.constant 0 : index
      %c0_67 = arith.constant 0 : index
      %103 = vector.load %arg18[%c0_66, %c0_67] : memref<2x128xf32, #tpu.memory_space<vmem>>, vector<2x128xf32>
      tpu.vector_store %arg18[%c0_66, %c0_67], %102 {strides = array<i32>} : memref<2x128xf32, #tpu.memory_space<vmem>>, vector<2x128xf32>,
    } else {
    }
    return
  }
  func.func @transform_0(%arg0: i32) -> (i32, i32) {
    %c0_i32 = arith.constant 0 : i32
    %c0_i32_0 = arith.constant 0 : i32
    %c0_i32_1 = arith.constant 0 : i32
    return %c0_i32, %c0_i32_0 : i32, i32
  }
  func.func @transform_1(%arg0: i32) -> (i32, i32) {
    %c0_i32 = arith.constant 0 : i32
    %c0_i32_0 = arith.constant 0 : i32
    return %c0_i32, %arg0 : i32, i32
  }
  func.func @transform_2(%arg0: i32) -> (i32, i32) {
    %c0_i32 = arith.constant 0 : i32
    %c0_i32_0 = arith.constant 0 : i32
    return %c0_i32, %arg0 : i32, i32
  }
  func.func @transform_3(%arg0: i32) -> (i32, i32) {
    %c0_i32 = arith.constant 0 : i32
    %c0_i32_0 = arith.constant 0 : i32
    return %c0_i32, %arg0 : i32, i32
  }
  func.func @transform_4(%arg0: i32) -> (i32, i32) {
    %c0_i32 = arith.constant 0 : i32
    %c0_i32_0 = arith.constant 0 : i32
    return %c0_i32, %arg0 : i32, i32
  }
  func.func @transform_5(%arg0: i32) -> (i32, i32) {
    %c0_i32 = arith.constant 0 : i32
    %c0_i32_0 = arith.constant 0 : i32
    return %arg0, %c0_i32 : i32, i32
  }
  func.func @transform_6(%arg0: i32) -> (i32, i32) {
    %c0_i32 = arith.constant 0 : i32
    %c0_i32_0 = arith.constant 0 : i32
    return %arg0, %c0_i32 : i32, i32
  }
  func.func @transform_7(%arg0: i32) -> (i32, i32) {
    %c0_i32 = arith.constant 0 : i32
    %c0_i32_0 = arith.constant 0 : i32
    %c0_i32_1 = arith.constant 0 : i32
    return %c0_i32, %c0_i32_0 : i32, i32
  }
  func.func @transform_8(%arg0: i32) -> (i32, i32) {
    %c0_i32 = arith.constant 0 : i32
    %c0_i32_0 = arith.constant 0 : i32
    %c0_i32_1 = arith.constant 0 : i32
    return %c0_i32, %c0_i32_0 : i32, i32
  }
  func.func @transform_9(%arg0: i32) -> (i32, i32) {
    %c0_i32 = arith.constant 0 : i32
    %c0_i32_0 = arith.constant 0 : i32
    %c0_i32_1 = arith.constant 0 : i32
    return %c0_i32, %c0_i32_0 : i32, i32
  }
  func.func @transform_10(%arg0: i32) -> (i32, i32) {
    %c0_i32 = arith.constant 0 : i32
    %c0_i32_0 = arith.constant 0 : i32
    %c0_i32_1 = arith.constant 0 : i32
    return %c0_i32, %c0_i32_0 : i32, i32
  }
  func.func @transform_11(%arg0: i32) -> (i32, i32) {
    %c0_i32 = arith.constant 0 : i32
    %c0_i32_0 = arith.constant 0 : i32
    %c0_i32_1 = arith.constant 0 : i32
    return %c0_i32, %c0_i32_0 : i32, i32
  }
  func.func @transform_12(%arg0: i32) -> (i32, i32) {
    %c0_i32 = arith.constant 0 : i32
    %c0_i32_0 = arith.constant 0 : i32
    %c0_i32_1 = arith.constant 0 : i32
    return %c0_i32, %c0_i32_0 : i32, i32
  }
  func.func @transform_13(%arg0: i32) -> (i32, i32) {
    %c0_i32 = arith.constant 0 : i32
    %c0_i32_0 = arith.constant 0 : i32
    %c0_i32_1 = arith.constant 0 : i32
    return %c0_i32, %c0_i32_0 : i32, i32
  }
  func.func @transform_14(%arg0: i32) -> (i32, i32) {
    %c0_i32 = arith.constant 0 : i32
    %c0_i32_0 = arith.constant 0 : i32
    %c0_i32_1 = arith.constant 0 : i32
    return %c0_i32, %c0_i32_0 : i32, i32
  }
  func.func @transform_15(%arg0: i32) -> (i32, i32) {
    %c0_i32 = arith.constant 0 : i32
    %c0_i32_0 = arith.constant 0 : i32
    %c0_i32_1 = arith.constant 0 : i32
    return %c0_i32, %c0_i32_0 : i32, i32
  }
  func.func @transform_16(%arg0: i32) -> (i32, i32) {
    %c0_i32 = arith.constant 0 : i32
    %c0_i32_0 = arith.constant 0 : i32
    %c0_i32_1 = arith.constant 0 : i32
    return %c0_i32, %c0_i32_0 : i32, i32
  }
  func.func @transform_17(%arg0: i32) -> (i32, i32) {
    %c0_i32 = arith.constant 0 : i32
    %c0_i32_0 = arith.constant 0 : i32
    %c0_i32_1 = arith.constant 0 : i32
    return %c0_i32, %c0_i32_0 : i32, i32
  }
}

</mosaic_0001>

<bundles_post_ra>
// kernel: tpu_custom_call.1
= control target key start
LH: loop header
LB: loop body
LE: loop exit
PB: predicated region body
PF: predicated region fallthrough
CT: control target
= control target key end

     0   :  { %s25770_s0 = inlined_call_operand.hbm [shape: bf16[2,768], index: 0, kind: input, shape index: {}]   ;;  %s25771_s1 = inlined_call_operand.hbm [shape: bf16[768,2048], index: 1, kind: input, shape index: {}]   ;;  %s25772_s2 = inlined_call_operand.hbm [shape: f32[1,2048], index: 2, kind: input, shape index: {}]   ;;  %s25773_s3 = inlined_call_operand.hbm [shape: bf16[768,4096], index: 3, kind: input, shape index: {}]   ;;  %s25774_s4 = inlined_call_operand.hbm [shape: f32[1,4096], index: 4, kind: input, shape index: {}]   ;;  %s25775_s5 = inlined_call_operand.hbm [shape: bf16[2048,1280], index: 5, kind: input, shape index: {}]   ;;  %s25776_s6 = inlined_call_operand.hbm [shape: bf16[4096,1280], index: 6, kind: input, shape index: {}]   ;;  %s25777_s7 = inlined_call_operand.hbm [shape: f32[1,1280], index: 7, kind: input, shape index: {}]   ;;  %s25778_s8 = inlined_call_operand.hbm [shape: f32[1,1280], index: 8, kind: input, shape index: {}]   ;;  %s25779_s9 = inlined_call_operand.hbm [shape: bf16[1024,128], index: 9, kind: input, shape index: {}]   ;;  %s25780_s10 = inlined_call_operand.hbm [shape: f32[1,128], index: 10, kind: input, shape index: {}]   ;;  %s25781_s11 = inlined_call_operand.hbm [shape: bf16[1024,128], index: 11, kind: input, shape index: {}]   ;;  %s25782_s12 = inlined_call_operand.hbm [shape: f32[1,128], index: 12, kind: input, shape index: {}]   ;;  %s25783_s13 = inlined_call_operand.hbm [shape: bf16[640,1024], index: 13, kind: input, shape index: {}]   ;;  %s25784_s14 = inlined_call_operand.hbm [shape: f32[1,1024], index: 14, kind: input, shape index: {}]   ;;  %s25785_s15 = inlined_call_operand.hbm [shape: bf16[1024,128], index: 15, kind: input, shape index: {}]   ;;  %s25786_s16 = inlined_call_operand.hbm [shape: f32[1,128], index: 16, kind: input, shape index: {}]   ;;  %s25787_s17 = inlined_call_operand.hbm [shape: f32[2,128], index: 17, kind: output, shape index: {}]  }
   0x1   :  { %25820 = sst [smem:[#allocation50_spill]] %s25770_s0 }
   0x2   :  { %25821 = sst [smem:[#allocation51_spill]] %s25771_s1 }
   0x3   :  { %25822 = sst [smem:[#allocation52_spill]] %s25772_s2 }
   0x4   :  { %25823 = sst [smem:[#allocation53_spill]] %s25774_s4 }
   0x5   :  { %25824 = sst [smem:[#allocation54_spill]] %s25776_s6 }
   0x6   :  { %25825 = sst [smem:[#allocation55_spill]] %s25777_s7 }
   0x7   :  { %25826 = sst [smem:[#allocation56_spill]] %s25779_s9 }
   0x8   :  { %25827 = sst [smem:[#allocation57_spill]] %s25781_s11 }
   0x9   :  { %25828 = sst [smem:[#allocation58_spill]] %s25783_s13 }
   0xa   :  { %25829 = sst [smem:[#allocation59_spill]] %s25785_s15 }
   0xb   :  { %25830 = sst [smem:[#allocation60_spill]] %s25787_s17 }
   0xc   :  { %22 = vsyncpa [#allocation6], 0 }
   0xd   :  { %23 = vsyncpa [#allocation9], 0 }
   0xe   :  { %25 = vsyncpa [#allocation9 + $0x1], 0 }
   0xf   :  { %26 = vsyncpa [#allocation12], 0 }
  0x10   :  { %28 = vsyncpa [#allocation12 + $0x1], 0 }
  0x11   :  { %29 = vsyncpa [#allocation15], 0 }
  0x12   :  { %31 = vsyncpa [#allocation15 + $0x1], 0 }
  0x13   :  { %32 = vsyncpa [#allocation18], 0 }
  0x14   :  { %33 = vsyncpa [#allocation21], 0 }
  0x15   :  { %34 = vsyncpa [#allocation24], 0 }
  0x16   :  { %35 = vsyncpa [#allocation27], 0 }
  0x17   :  { %36 = vsyncpa [#allocation30], 0 }
  0x18   :  { %37 = vsyncpa [#allocation7], 0  ;;  %s23108_s24 = smov 0   ;;  %s23110_s25 = smov 0  }
  0x19   :  { %s23112_s26 = smov 0   ;;  %s23114_s27 = smov 0  }
  0x1a LB: > { %25831 = sst [smem:[#allocation43_spill]] %s22975_s25  ;;  %s22985_s28 = smov [#allocation17]   ;;  %s22983_s27 = sphi %s23114_s27, %s25890_s27   ;;  %s22979_s26 = sphi %s23112_s26, %s25893_s26   ;;  %s22975_s25 = sphi %s23110_s25, %s25892_s25   ;;  %s22971_s24 = sphi %s23108_s24, %s25891_s24  }
  0x1b   : > { %25832 = sst [smem:[#allocation44_spill]] %s22979_s26  ;;  %s480_s29 = sshll.u32 %s22985_s28, 4  ;;  %s481_s29 = int_to_ptr.vmem [resolvable:$true] %s480_s29 }
  0x1c   : > { %s23129_s0 = sadd.s32 4294967295, %s22983_s27   ;;  %p17896_p0 = scmp.ge.s32.totalorder %s22983_s27, 1 }
  0x1d   : > { %25833 = sst [smem:[#allocation45_spill]] %s23129_s0  ;;  %p25795_p1 = scmp.eq.s32.totalorder %s23129_s0, 0 }
  0x1e   : > { %p456_p2 = scmp.lt.s32.totalorder %s22983_s27, 5  ;;  %s22986_s18 = smov [#allocation20]  }
  0x1f   : > { %s501_s19 = sshll.u32 %s22986_s18, 4  ;;  %s22987_s20 = smov [#allocation23]   ;;  %s23141_s19 = int_to_ptr.vmem [resolvable:$true] %s501_s19 }
  0x20   : > { %p23135_p4 = pnand %p17896_p0, %p456_p2  ;;  %s525_s21 = sshll.u32 %s22987_s20, 4  ;;  %s23149_s21 = int_to_ptr.vmem [resolvable:$true] %s525_s21 }
  0x21   : > { %s22446_s23 = scalar_lea.vmem %s481_s29, 160  ;;  %p22454_p11 = scmp.lt.s32.totalorder %s481_s29, %s481_s29 }
  0x22   : > { %s25834_s30 = scalar_select %p23135_p4, 1, 0 }
  0x23   : > { %p20337_p5 = pneg %p23135_p4  ;;  %p22447_p8 = scmp.ne.s32.totalorder %s481_s29, %s22446_s23 }
  0x24   : > { %25835 = sst [smem:[#allocation46_spill]] %s25834_s30  ;;  %p22455_p12 = scmp.lt.s32.totalorder %s22446_s23, %s22446_s23 }
  0x25   : > { %p23145_p6 = pnand %p20337_p5, %p25795_p1 }
  0x26   : > { %p22456_p13 = por %p22455_p12, %p22454_p11 }
  0x27   : > { %s25836_s1 = scalar_select %p23145_p6, 1, 0 }
  0x28   : > { %p23153_p7 = pneg %p23145_p6 }
  0x2a   : > { %s25837_s22 = scalar_select %p23153_p7, 1, 0 }
  0x2b   : > { %p22449_p9 = pnand %p22447_p8, %p23153_p7 }
  0x2d   : > { %p22450_p10 = pneg %p22449_p9 }
  0x2f   : > { %p22457_p0 = pnand %p22456_p13, %p22450_p10 }
  0x31   : > { %22460 = shalt.err (!%p22457_p0)
}
  0x32   : > { %s25838_s7 = sld [smem:[#allocation55_spill]]  ;;  %s22472_s20 = scalar_lea.vmem %s23141_s19, 8192 }
  0x33   : > { %p22473_p2 = scmp.ne.s32.totalorder %s23141_s19, %s22472_s20  ;;  %p22480_p9 = scmp.lt.s32.totalorder %s23141_s19, %s23141_s19 }
  0x34   : > { %p22481_p11 = scmp.lt.s32.totalorder %s22472_s20, %s22472_s20 }
  0x35   : > { %p22475_p5 = pnand %p22473_p2, %p23153_p7 }
  0x36   : > { %p22482_p10 = por %p22481_p11, %p22480_p9 }
  0x37   : > { %p22476_p8 = pneg %p22475_p5 }
  0x38   : > { %20343 = dma.hbm_to_vmem [thread:$0]  (!%p23145_p6), %s25838_s7, 160, %s481_s29, [#allocation18]  }
  0x39   : > { %p22483_p12 = pnand %p22482_p10, %p22476_p8 }
  0x3b   : > { %22486 = shalt.err (!%p22483_p12)
}
  0x3c   : > { %s25789_s23 = smov 64   ;;  %s22989_s28 = smov 4  }
  0x3d   : > { %s25839_s9 = sld [smem:[#allocation56_spill]]  ;;  %s22498_s20 = scalar_lea.vmem %s23149_s21, 8192 }
  0x3e   : > { %p22499_p13 = scmp.ne.s32.totalorder %s23149_s21, %s22498_s20  ;;  %p22506_p5 = scmp.lt.s32.totalorder %s23149_s21, %s23149_s21 }
  0x3f   : > { %p22507_p8 = scmp.lt.s32.totalorder %s22498_s20, %s22498_s20 }
  0x40   : > { %p22501_p0 = pnand %p22499_p13, %p23153_p7 }
  0x41   : > { %p22508_p9 = por %p22507_p8, %p22506_p5 }
  0x42   : > { %p22502_p2 = pneg %p22501_p0 }
  0x43   : > { %20349 = dma.hbm_to_vmem [thread:$0]  (!%p23145_p6), %s25839_s9, 8192, %s23141_s19, [#allocation21], %s25789_s23, %s25789_s23, %s22989_s28  }
  0x44   : > { %p22509_p11 = pnand %p22508_p9, %p22502_p2 }
  0x46   : > { %22512 = shalt.err (!%p22509_p11)
}
  0x47   : > { %s25840_s11 = sld [smem:[#allocation57_spill]]  ;;  %s22990_s19 = smov [#allocation26]  }
  0x48   : > { %s549_s18 = sshll.u32 %s22990_s19, 4  ;;  %s550_s18 = int_to_ptr.vmem [resolvable:$true] %s549_s18 }
  0x49   : > { %s22524_s9 = scalar_lea.vmem %s550_s18, 40960  ;;  %p22532_p0 = scmp.lt.s32.totalorder %s550_s18, %s550_s18 }
  0x4a   : > { %p22525_p10 = scmp.ne.s32.totalorder %s550_s18, %s22524_s9  ;;  %p22533_p2 = scmp.lt.s32.totalorder %s22524_s9, %s22524_s9 }
  0x4c   : > { %p22527_p12 = pnand %p22525_p10, %p23153_p7  ;;  %p22534_p5 = por %p22533_p2, %p22532_p0 }
  0x4d   : > { %20355 = dma.hbm_to_vmem [thread:$0]  (!%p23145_p6), %s25840_s11, 8192, %s23149_s21, [#allocation24], %s25789_s23, %s25789_s23, %s22989_s28  }
  0x4e   : > { %p22528_p13 = pneg %p22527_p12 }
  0x50   : > { %p22535_p8 = pnand %p22534_p5, %p22528_p13 }
  0x52   : > { %22538 = shalt.err (!%p22535_p8)
}
  0x53   : > { %s25790_s20 = smov 512   ;;  %s25791_s17 = smov 32  }
  0x54   : > { %s25841_s13 = sld [smem:[#allocation58_spill]]  ;;  %s22993_s29 = smov [#allocation29]  }
  0x55   : > { %s573_s19 = sshll.u32 %s22993_s29, 4  ;;  %s574_s19 = int_to_ptr.vmem [resolvable:$true] %s573_s19 }
  0x56   : > { %s22550_s23 = scalar_lea.vmem %s574_s19, 8192  ;;  %p22558_p12 = scmp.lt.s32.totalorder %s574_s19, %s574_s19 }
  0x57   : > { %p22551_p9 = scmp.ne.s32.totalorder %s574_s19, %s22550_s23  ;;  %p22559_p13 = scmp.lt.s32.totalorder %s22550_s23, %s22550_s23 }
  0x59   : > { %p22553_p11 = pnand %p22551_p9, %p23153_p7  ;;  %p22560_p0 = por %p22559_p13, %p22558_p12 }
  0x5a   : > { %20361 = dma.hbm_to_vmem [thread:$0]  (!%p23145_p6), %s25841_s13, 40960, %s550_s18, [#allocation27], %s25790_s20, %s25790_s20, %s25791_s17  }
  0x5b   : > { %p22554_p10 = pneg %p22553_p11 }
  0x5d   : > { %p22561_p2 = pnand %p22560_p0, %p22554_p10 }
  0x5f   : > { %22564 = shalt.err (!%p22561_p2)
}
  0x60   : > { %s25842_s9 = smov 64   ;;  %s25843_s15 = sld [smem:[#allocation59_spill]] }
  0x61   : > { %s23215_s23 = sadd.s32 1, %s22983_s27   ;;  %s71_s29 = sadd.s32 1, %s22979_s26 }
  0x62   : > { %25844 = sst [smem:[#allocation47_spill]] %s23215_s23  ;;  %s68_s21 = ssub.s32 %s22983_s27, %s23215_s23 }
  0x63   : > { %p69_p5 = scmp.eq.s32.totalorder %s68_s21, 0  ;;  %p78_p8 = scmp.ne.s32.totalorder %s22979_s26, %s22975_s25 }
  0x64   : > { %p79_p9 = scmp.eq.s32.totalorder %s22983_s27, 0  ;;  %p84_p11 = scmp.ne.s32.totalorder %s22975_s25, %s22971_s24 }
  0x65   : > { %s23226_s7 = scalar_select %p69_p5, %s22979_s26, %s71_s29  }
  0x66   : > { %20367 = dma.hbm_to_vmem [thread:$0]  (!%p23145_p6), %s25843_s15, 8192, %s574_s19, [#allocation30], %s25842_s9, %s25842_s9, %s22989_s28  }
  0x67   : > { %25845 = sst [smem:[#allocation48_spill]] %s23226_s7  ;;  %p80_p10 = por %p79_p9, %p78_p8 }
  0x68   : > { %p23230_p12 = por %p25795_p1, %p84_p11  ;;  %p20401_p13 = scmp.lt.s32.totalorder %s22983_s27, 4 }
  0x69   : > { %s23236_s20 = sand.u32 1, %s22983_s27   ;;  %s23239_s28 = sand.u32 1, %s22979_s26  }
  0x6a   : > { %s25846_s18 = scalar_select %p23230_p12, 1, 0 }
  0x6b   : > { %s20267_s19 = smul.u32 1536, %s23239_s28  ;;  %s19999_s9 = sshll.u32 %s22983_s27, 8 }
  0x6c   : > { %25847 = sst [smem:[#allocation49_spill]] %s25846_s18  ;;  %p23248_p0 = pnand %p20401_p13, %p80_p10 }
  0x6d   : > { %s25848_s24 = sld [smem:[#allocation51_spill]]  ;;  %s602_s15 = scalar_lea.vmem [#allocation8], %s20267_s19 }
  0x6e   : > { %s25850_s13 = scalar_select %p23248_p0, 1, 0 }
  0x6f   : > { %s609_s7 = sshll.u32 %s602_s15, 4  ;;  %p23259_p5 = pneg %p23248_p0  ;;  %s23252_s7 = int_to_ptr.vmem [resolvable:$true] %s609_s7 }
  0x71   : > { %s25851_s17 = scalar_select %p23259_p5, 1, 0 }
  0x73   : > { %s25849_s11 = smov %s25848_s24  ;;  %s23246_s29 = scalar_lea.hbm %s25848_s24, %s19999_s9 }
  0x74   : > { %s22565_s23 = scalar_lea.hbm %s23246_s29, 24576  ;;  %s22570_s24 = scalar_lea.hbm %s25849_s11, 98304 }
  0x75   : > { %p22566_p2 = scmp.ne.s32.totalorder %s23246_s29, %s22565_s23  ;;  %p22571_p11 = scmp.lt.s32.totalorder %s23246_s29, %s25849_s11 }
  0x76   : > { %p22572_p10 = scmp.lt.s32.totalorder %s22570_s24, %s22565_s23 }
  0x77   : > { %p22568_p8 = pnand %p23259_p5, %p22566_p2 }
  0x78   : > { %p22573_p13 = por %p22572_p10, %p22571_p11 }
  0x79   : > { %p22569_p9 = pneg %p22568_p8 }
  0x7b   : > { %p22574_p3 = pnand %p22573_p13, %p22569_p9 }
  0x7d   : > { %22577 = shalt.err (!%p22574_p3)
}
  0x7e   : > { %s22578_s26 = scalar_lea.vmem %s23252_s7, 24576  ;;  %s22994_s18 = smov [#allocation8]  }
  0x7f   : > { %p22579_p1 = scmp.ne.s32.totalorder %s23252_s7, %s22578_s26  ;;  %s22583_s9 = sshll.u32 %s22994_s18, 4  ;;  %s22584_s9 = int_to_ptr.vmem [resolvable:$false] %s22583_s9 }
  0x80   : > { %s22585_s21 = scalar_lea.vmem %s22584_s9, 49152  ;;  %p22586_p12 = scmp.lt.s32.totalorder %s23252_s7, %s22584_s9 }
  0x81   : > { %p22581_p2 = pnand %p22579_p1, %p23259_p5  ;;  %p22587_p4 = scmp.lt.s32.totalorder %s22585_s21, %s22578_s26 }
  0x83   : > { %p22582_p8 = pneg %p22581_p2  ;;  %p22588_p6 = por %p22587_p4, %p22586_p12 }
  0x85   : > { %p22589_p7 = pnand %p22588_p6, %p22582_p8 }
  0x87   : > { %22592 = shalt.err (!%p22589_p7)
}
  0x88   : > { %s22995_s23 = smov 1024   ;;  %s22996_s24 = smov 256  }
  0x89   : > { %s22997_s18 = smov 16   ;;  %s25852_s19 = scalar_lea.sflag [#allocation9], %s23236_s20 }
  0x8a   : > { %20374 = dma.hbm_to_vmem [thread:$0]  (!%p23248_p0), %s23246_s29, 24576, %s23252_s7, %s25852_s19, %s22995_s23, %s22996_s24, %s22997_s18  }
  0x8b   : > { %s20268_s26 = smul.u32 3072, %s23239_s28  ;;  %s20001_s15 = sshll.u32 %s22983_s27, 9 }
  0x8c   : > { %s23288_s11 = scalar_lea.hbm %s25773_s3, %s20001_s15  ;;  %s20269_s30 = smul.u32 2560, %s23239_s28 }
  0x8d   : > { %s642_s25 = scalar_lea.vmem [#allocation11], %s20268_s26  ;;  %s20270_s6 = smul.u32 40960, %s22983_s27 }
  0x8e   : > { %s649_s0 = sshll.u32 %s642_s25, 4  ;;  %s639_s4 = scalar_lea.sflag [#allocation12], %s23236_s20  ;;  %s23291_s0 = int_to_ptr.vmem [resolvable:$true] %s649_s0 }
  0x8f   : > { %s22593_s2 = scalar_lea.hbm %s23288_s11, 49152  ;;  %s22598_s23 = scalar_lea.hbm %s25773_s3, 196608 }
  0x90   : > { %p22594_p1 = scmp.ne.s32.totalorder %s23288_s11, %s22593_s2  ;;  %p22599_p6 = scmp.lt.s32.totalorder %s23288_s11, %s25773_s3 }
  0x91   : > { %p22600_p7 = scmp.lt.s32.totalorder %s22598_s23, %s22593_s2 }
  0x92   : > { %p22596_p3 = pnand %p22594_p1, %p23259_p5 }
  0x93   : > { %p22601_p12 = por %p22600_p7, %p22599_p6 }
  0x94   : > { %p22597_p4 = pneg %p22596_p3 }
  0x96   : > { %p22602_p9 = pnand %p22601_p12, %p22597_p4 }
  0x98   : > { %22605 = shalt.err (!%p22602_p9)
}
  0x99   : > { %s22606_s25 = scalar_lea.vmem %s23291_s0, 49152  ;;  %s22998_s19 = smov [#allocation11]  }
  0x9a   : > { %p22607_p11 = scmp.ne.s32.totalorder %s23291_s0, %s22606_s25  ;;  %s22611_s26 = sshll.u32 %s22998_s19, 4  ;;  %s22612_s26 = int_to_ptr.vmem [resolvable:$false] %s22611_s26 }
  0x9b   : > { %s22613_s15 = scalar_lea.vmem %s22612_s26, 98304  ;;  %p22614_p2 = scmp.lt.s32.totalorder %s23291_s0, %s22612_s26 }
  0x9c   : > { %p22609_p10 = pnand %p22607_p11, %p23259_p5  ;;  %p22615_p8 = scmp.lt.s32.totalorder %s22613_s15, %s22606_s25 }
  0x9e   : > { %p22610_p13 = pneg %p22609_p10  ;;  %p22616_p1 = por %p22615_p8, %p22614_p2 }
  0xa0   : > { %p22617_p3 = pnand %p22616_p1, %p22610_p13 }
  0xa2   : > { %22620 = shalt.err (!%p22617_p3)
}
  0xa3   : > { %s22999_s2 = smov 2048   ;;  %s25853_s9 = smov 32  }
  0xa4   : > { %s25854_s21 = smov 512   ;;  %s23324_s23 = scalar_lea.hbm %s25775_s5, %s20270_s6 }
  0xa5   : > { %20380 = dma.hbm_to_vmem [thread:$0]  (!%p23248_p0), %s23288_s11, 49152, %s23291_s0, %s639_s4, %s22999_s2, %s25854_s21, %s25853_s9  }
  0xa6   : > { %s682_s24 = scalar_lea.vmem [#allocation14], %s20269_s30  ;;  %s25817_s25 = scalar_lea.sflag [#allocation15], %s23236_s20 }
  0xa7   : > { %s690_s18 = sshll.u32 %s682_s24, 4  ;;  %s22621_s19 = scalar_lea.hbm %s23324_s23, 40960  ;;  %s23328_s18 = int_to_ptr.vmem [resolvable:$true] %s690_s18 }
  0xa8   : > { %p22622_p4 = scmp.ne.s32.totalorder %s23324_s23, %s22621_s19  ;;  %s22626_s26 = scalar_lea.hbm %s25775_s5, 163840 }
  0xa9   : > { %p22627_p12 = scmp.lt.s32.totalorder %s23324_s23, %s25775_s5  ;;  %p22628_p9 = scmp.lt.s32.totalorder %s22626_s26, %s22621_s19 }
  0xaa   : > { %p22624_p6 = pnand %p22622_p4, %p23259_p5 }
  0xab   : > { %p22629_p11 = por %p22628_p9, %p22627_p12 }
  0xac   : > { %p22625_p7 = pneg %p22624_p6 }
  0xae   : > { %p22630_p10 = pnand %p22629_p11, %p22625_p7 }
  0xb0   : > { %22633 = shalt.err (!%p22630_p10)
}
  0xb1   : > { %s22634_s30 = scalar_lea.vmem %s23328_s18, 40960  ;;  %s23000_s2 = smov [#allocation14]  }
  0xb2   : > { %p22635_p13 = scmp.ne.s32.totalorder %s23328_s18, %s22634_s30  ;;  %s22639_s9 = sshll.u32 %s23000_s2, 4  ;;  %s22640_s9 = int_to_ptr.vmem [resolvable:$false] %s22639_s9 }
  0xb3   : > { %s22641_s21 = scalar_lea.vmem %s22640_s9, 81920  ;;  %p22642_p1 = scmp.lt.s32.totalorder %s23328_s18, %s22640_s9 }
  0xb4   : > { %p22637_p2 = pnand %p22635_p13, %p23259_p5  ;;  %p22643_p3 = scmp.lt.s32.totalorder %s22641_s21, %s22634_s30 }
  0xb6   : > { %p22638_p8 = pneg %p22637_p2  ;;  %p22644_p4 = por %p22643_p3, %p22642_p1 }
  0xb8   : > { %p22645_p6 = pnand %p22644_p4, %p22638_p8 }
  0xba   : > { %22648 = shalt.err (!%p22645_p6)
}
  0xbb   : > { %s25818_s7 = smov 640   ;;  %s25819_s29 = smov 40  }
  0xbc   : > { %20386 = dma.hbm_to_vmem [thread:$0]  (!%p23248_p0), %s23324_s23, 40960, %s23328_s18, %s25817_s25, %s25818_s7, %s25818_s7, %s25819_s29  }
  0xbd   : > { %s23003_s24 = smov [#allocation5]   ;;  %s23004_s11 = smov [#allocation19]  }
  0xbe   : > { %s469_s19 = sshll.u32 %s23003_s24, 4  ;;  %s491_s0 = sshll.u32 %s23004_s11, 4  ;;  %s470_s19 = int_to_ptr.vmem [resolvable:$true] %s469_s19  ;;  %s492_s0 = int_to_ptr.vmem [resolvable:$true] %s491_s0 }
  0xbf   : > { %s22660_s26 = scalar_lea.vmem %s470_s19, 96  ;;  %p25855_p12 = scmp.ne.s32.totalorder %s25837_s22, 0 }
  0xc0   : > { %p22661_p7 = scmp.ne.s32.totalorder %s470_s19, %s22660_s26  ;;  %p22668_p10 = scmp.lt.s32.totalorder %s470_s19, %s470_s19 }
  0xc1   : > { %p22669_p13 = scmp.lt.s32.totalorder %s22660_s26, %s22660_s26 }
  0xc2   : > { %p22663_p9 = pnand %p22661_p7, %p25855_p12 }
  0xc3   : > { %p22670_p2 = por %p22669_p13, %p22668_p10 }
  0xc4   : > { %p22664_p11 = pneg %p22663_p9 }
  0xc6   : > { %p22671_p8 = pnand %p22670_p2, %p22664_p11 }
  0xc8   : > { %22674 = shalt.err (!%p22671_p8)
}
  0xc9   : > { %p25856_p1 = scmp.ne.s32.totalorder %s25836_s1, 0  ;;  %s25857_s18 = sld [smem:[#allocation50_spill]] }
  0xca   : > { %s22686_s15 = scalar_lea.vmem %s492_s0, 160  ;;  %p22694_p0 = scmp.lt.s32.totalorder %s492_s0, %s492_s0 }
  0xcb   : > { %p22687_p3 = scmp.ne.s32.totalorder %s492_s0, %s22686_s15  ;;  %p22695_p7 = scmp.lt.s32.totalorder %s22686_s15, %s22686_s15 }
  0xcd   : > { %p22689_p4 = pnand %p22687_p3, %p25855_p12  ;;  %p22696_p9 = por %p22695_p7, %p22694_p0 }
  0xcf   : > { %20340 = dma.hbm_to_vmem [thread:$0]  (!%p25856_p1), %s25857_s18, 96, %s470_s19, [#allocation6]  }
  0xd0   : > { %p22690_p6 = pneg %p22689_p4 }
  0xd2   : > { %p22697_p5 = pnand %p22696_p9, %p22690_p6 }
  0xd4   : > { %22700 = shalt.err (!%p22697_p5)
}
  0xd5   : > { %20346 = dma.hbm_to_vmem [thread:$0]  (!%p25856_p1), %s25778_s8, 160, %s492_s0, [#allocation18]  }
  0xd6   : > { %s23005_s9 = smov [#allocation22]   ;;  %s23006_s24 = smov [#allocation25]  }
  0xd7   : > { %s515_s21 = sshll.u32 %s23005_s9, 4  ;;  %s539_s19 = sshll.u32 %s23006_s24, 4  ;;  %s516_s21 = int_to_ptr.vmem [resolvable:$true] %s515_s21  ;;  %s540_s19 = int_to_ptr.vmem [resolvable:$true] %s539_s19 }
  0xd8   : > { %s22712_s11 = scalar_lea.vmem %s516_s21, 16  ;;  %s22719_s26 = scalar_lea.vmem %s516_s21, 32 }
  0xd9   : > { %p22713_p11 = scmp.ne.s32.totalorder %s516_s21, %s22712_s11  ;;  %p22720_p5 = scmp.lt.s32.totalorder %s516_s21, %s516_s21 }
  0xda   : > { %p22721_p13 = scmp.lt.s32.totalorder %s22719_s26, %s22712_s11 }
  0xdb   : > { %p22715_p10 = pnand %p22713_p11, %p25855_p12 }
  0xdc   : > { %p22722_p2 = por %p22721_p13, %p22720_p5 }
  0xdd   : > { %p22716_p0 = pneg %p22715_p10 }
  0xdf   : > { %p22723_p8 = pnand %p22722_p2, %p22716_p0 }
  0xe1   : > { %22726 = shalt.err (!%p22723_p8)
}
  0xe2   : > { %20352 = dma.hbm_to_vmem [thread:$0]  (!%p25856_p1), %s25780_s10, 16, %s516_s21, [#allocation21]  }
  0xe3   : > { %s22738_s23 = scalar_lea.vmem %s540_s19, 16  ;;  %s22745_s18 = scalar_lea.vmem %s540_s19, 32 }
  0xe4   : > { %p22739_p3 = scmp.ne.s32.totalorder %s540_s19, %s22738_s23  ;;  %p22746_p7 = scmp.lt.s32.totalorder %s540_s19, %s540_s19 }
  0xe5   : > { %p22747_p9 = scmp.lt.s32.totalorder %s22745_s18, %s22738_s23 }
  0xe6   : > { %p22741_p4 = pnand %p22739_p3, %p25855_p12 }
  0xe7   : > { %p22748_p11 = por %p22747_p9, %p22746_p7 }
  0xe8   : > { %p22742_p6 = pneg %p22741_p4 }
  0xea   : > { %p22749_p10 = pnand %p22748_p11, %p22742_p6 }
  0xec   : > { %22752 = shalt.err (!%p22749_p10)
}
  0xed   : > { %20358 = dma.hbm_to_vmem [thread:$0]  (!%p25856_p1), %s25782_s12, 16, %s540_s19, [#allocation24]  }
  0xee   : > { %s23007_s2 = smov [#allocation28]   ;;  %s23008_s21 = smov [#allocation31]  }
  0xef   : > { %s563_s9 = sshll.u32 %s23007_s2, 4  ;;  %s587_s24 = sshll.u32 %s23008_s21, 4  ;;  %s564_s9 = int_to_ptr.vmem [resolvable:$true] %s563_s9  ;;  %s588_s24 = int_to_ptr.vmem [resolvable:$true] %s587_s24 }
  0xf0   : > { %s22764_s11 = scalar_lea.vmem %s564_s9, 128  ;;  %p22772_p2 = scmp.lt.s32.totalorder %s564_s9, %s564_s9 }
  0xf1   : > { %p22765_p0 = scmp.ne.s32.totalorder %s564_s9, %s22764_s11  ;;  %p22773_p8 = scmp.lt.s32.totalorder %s22764_s11, %s22764_s11 }
  0xf3   : > { %p22767_p5 = pnand %p22765_p0, %p25855_p12  ;;  %p22774_p3 = por %p22773_p8, %p22772_p2 }
  0xf5   : > { %p22768_p13 = pneg %p22767_p5 }
  0xf7   : > { %p22775_p4 = pnand %p22774_p3, %p22768_p13 }
  0xf9   : > { %22778 = shalt.err (!%p22775_p4)
}
  0xfa   : > { %20364 = dma.hbm_to_vmem [thread:$0]  (!%p25856_p1), %s25784_s14, 128, %s564_s9, [#allocation27]  }
  0xfb   : > { %s22790_s0 = scalar_lea.vmem %s588_s24, 16  ;;  %s22797_s6 = scalar_lea.vmem %s588_s24, 32 }
  0xfc   : > { %p22791_p6 = scmp.ne.s32.totalorder %s588_s24, %s22790_s0  ;;  %p22798_p11 = scmp.lt.s32.totalorder %s588_s24, %s588_s24 }
  0xfd   : > { %p22799_p10 = scmp.lt.s32.totalorder %s22797_s6, %s22790_s0 }
  0xfe   : > { %p22793_p7 = pnand %p22791_p6, %p25855_p12 }
  0xff   : > { %p22800_p0 = por %p22799_p10, %p22798_p11 }
 0x100   : > { %p22794_p9 = pneg %p22793_p7 }
 0x102   : > { %p22801_p5 = pnand %p22800_p0, %p22794_p9 }
 0x104   : > { %22804 = shalt.err (!%p22801_p5)
}
 0x105   : > { %20370 = dma.hbm_to_vmem [thread:$0]  (!%p25856_p1), %s25786_s16, 16, %s588_s24, [#allocation30]  }
 0x106   : > { %s17911_s15 = sshll.u32 %s23239_s28, 2  ;;  %s20000_s22 = sshll.u32 %s22983_s27, 6 }
 0x107   : > { %s25858_s9 = sld [smem:[#allocation52_spill]]  ;;  %s623_s11 = scalar_lea.vmem [#allocation10], %s17911_s15 }
 0x108   : > { %s631_s1 = sshll.u32 %s623_s11, 4  ;;  %s17916_s26 = sshll.u32 %s23239_s28, 3  ;;  %s632_s1 = int_to_ptr.vmem [resolvable:$true] %s631_s1 }
 0x109   : > { %p25859_p13 = scmp.ne.s32.totalorder %s25851_s17, 0 }
 0x10d   : > { %s23403_s21 = scalar_lea.hbm %s25858_s9, %s20000_s22  ;;  %s22810_s6 = scalar_lea.hbm %s25858_s9, 256 }
 0x10e   : > { %s22805_s19 = scalar_lea.hbm %s23403_s21, 64  ;;  %p22811_p1 = scmp.lt.s32.totalorder %s23403_s21, %s25858_s9 }
 0x10f   : > { %p22806_p12 = scmp.ne.s32.totalorder %s23403_s21, %s22805_s19  ;;  %p22812_p3 = scmp.lt.s32.totalorder %s22810_s6, %s22805_s19 }
 0x111   : > { %p22808_p2 = pnand %p22806_p12, %p25859_p13  ;;  %p22813_p4 = por %p22812_p3, %p22811_p1 }
 0x113   : > { %p22809_p8 = pneg %p22808_p2 }
 0x115   : > { %p22814_p6 = pnand %p22813_p4, %p22809_p8 }
 0x117   : > { %22817 = shalt.err (!%p22814_p6)
}
 0x118   : > { %s22818_s15 = scalar_lea.vmem %s632_s1, 64  ;;  %s23009_s22 = smov [#allocation10]  }
 0x119   : > { %p22819_p7 = scmp.ne.s32.totalorder %s632_s1, %s22818_s15  ;;  %s22823_s30 = sshll.u32 %s23009_s22, 4  ;;  %s22824_s30 = int_to_ptr.vmem [resolvable:$false] %s22823_s30 }
 0x11a   : > { %s22825_s2 = scalar_lea.vmem %s22824_s30, 128  ;;  %p22826_p10 = scmp.lt.s32.totalorder %s632_s1, %s22824_s30 }
 0x11b   : > { %p22821_p9 = pnand %p22819_p7, %p25859_p13  ;;  %p22827_p0 = scmp.lt.s32.totalorder %s22825_s2, %s22818_s15 }
 0x11d   : > { %p22822_p11 = pneg %p22821_p9  ;;  %p22828_p5 = por %p22827_p0, %p22826_p10 }
 0x11f   : > { %p22829_p12 = pnand %p22828_p5, %p22822_p11 }
 0x121   : > { %22832 = shalt.err (!%p22829_p12)
}
 0x122   : > { %p25860_p2 = scmp.ne.s32.totalorder %s25850_s13, 0  ;;  %s25861_s11 = scalar_lea.sflag [#allocation9], %s23236_s20 }
 0x123   : > { %s20002_s19 = sshll.u32 %s22983_s27, 7  ;;  %s663_s24 = scalar_lea.vmem [#allocation13], %s17916_s26 }
 0x124   : > { %20377 = dma.hbm_to_vmem [thread:$0]  (!%p25860_p2), %s23403_s21, 64, %s632_s1, %s25861_s11  }
 0x125   : > { %s671_s0 = sshll.u32 %s663_s24, 4  ;;  %s25862_s18 = sld [smem:[#allocation53_spill]]  ;;  %s672_s0 = int_to_ptr.vmem [resolvable:$true] %s671_s0 }
 0x12b   : > { %s669_s22 = scalar_lea.hbm %s25862_s18, %s20002_s19  ;;  %s22838_s25 = scalar_lea.hbm %s25862_s18, 512 }
 0x12c   : > { %s22833_s15 = scalar_lea.hbm %s669_s22, 128  ;;  %p22839_p4 = scmp.lt.s32.totalorder %s669_s22, %s25862_s18 }
 0x12d   : > { %p22834_p8 = scmp.ne.s32.totalorder %s669_s22, %s22833_s15  ;;  %p22840_p6 = scmp.lt.s32.totalorder %s22838_s25, %s22833_s15 }
 0x12f   : > { %p22836_p1 = pnand %p22834_p8, %p25859_p13  ;;  %p22841_p7 = por %p22840_p6, %p22839_p4 }
 0x131   : > { %p22837_p3 = pneg %p22836_p1 }
 0x133   : > { %p22842_p9 = pnand %p22841_p7, %p22837_p3 }
 0x135   : > { %22845 = shalt.err (!%p22842_p9)
}
 0x136   : > { %s22846_s21 = scalar_lea.vmem %s672_s0, 128  ;;  %s23010_s1 = smov [#allocation13]  }
 0x137   : > { %p22847_p11 = scmp.ne.s32.totalorder %s672_s0, %s22846_s21  ;;  %s22851_s26 = sshll.u32 %s23010_s1, 4  ;;  %s22852_s26 = int_to_ptr.vmem [resolvable:$false] %s22851_s26 }
 0x138   : > { %s22853_s11 = scalar_lea.vmem %s22852_s26, 256  ;;  %p22854_p5 = scmp.lt.s32.totalorder %s672_s0, %s22852_s26 }
 0x139   : > { %p22849_p10 = pnand %p22847_p11, %p25859_p13  ;;  %p22855_p12 = scmp.lt.s32.totalorder %s22853_s11, %s22846_s21 }
 0x13b   : > { %p22850_p0 = pneg %p22849_p10  ;;  %p22856_p8 = por %p22855_p12, %p22854_p5 }
 0x13d   : > { %p22857_p1 = pnand %p22856_p8, %p22850_p0 }
 0x13f   : > { %22860 = shalt.err (!%p22857_p1)
}
 0x140   : > { %20383 = dma.hbm_to_vmem [thread:$0]  (!%p25860_p2), %s669_s22, 128, %s672_s0, %s639_s4  }
 0x141   : > { %s20271_s25 = smul.u32 5120, %s23239_s28  ;;  %s25863_s24 = sld [smem:[#allocation54_spill]] }
 0x142   : > { %s20272_s7 = smul.u32 81920, %s22983_s27 }
 0x143   : > { %s704_s15 = scalar_lea.vmem [#allocation16], %s20271_s25 }
 0x144   : > { %s712_s30 = sshll.u32 %s704_s15, 4  ;;  %s713_s30 = int_to_ptr.vmem [resolvable:$true] %s712_s30 }
 0x147   : > { %s25864_s6 = smov %s25863_s24  ;;  %s23447_s23 = scalar_lea.hbm %s25863_s24, %s20272_s7 }
 0x148   : > { %s22861_s2 = scalar_lea.hbm %s23447_s23, 81920  ;;  %s22866_s27 = scalar_lea.hbm %s25864_s6, 327680 }
 0x149   : > { %p22862_p3 = scmp.ne.s32.totalorder %s23447_s23, %s22861_s2  ;;  %p22867_p7 = scmp.lt.s32.totalorder %s23447_s23, %s25864_s6 }
 0x14a   : > { %p22868_p9 = scmp.lt.s32.totalorder %s22866_s27, %s22861_s2 }
 0x14b   : > { %p22864_p4 = pnand %p22862_p3, %p25859_p13 }
 0x14c   : > { %p22869_p11 = por %p22868_p9, %p22867_p7 }
 0x14d   : > { %p22865_p6 = pneg %p22864_p4 }
 0x14f   : > { %p22870_p10 = pnand %p22869_p11, %p22865_p6 }
 0x151   : > { %22873 = shalt.err (!%p22870_p10)
}
 0x152   : > { %s22874_s22 = scalar_lea.vmem %s713_s30, 81920  ;;  %s23011_s1 = smov [#allocation16]  }
 0x153   : > { %p22875_p0 = scmp.ne.s32.totalorder %s713_s30, %s22874_s22  ;;  %s22879_s26 = sshll.u32 %s23011_s1, 4  ;;  %s22880_s26 = int_to_ptr.vmem [resolvable:$false] %s22879_s26 }
 0x154   : > { %s22881_s11 = scalar_lea.vmem %s22880_s26, 163840  ;;  %p22882_p8 = scmp.lt.s32.totalorder %s713_s30, %s22880_s26 }
 0x155   : > { %p22877_p5 = pnand %p22875_p0, %p25859_p13  ;;  %p22883_p1 = scmp.lt.s32.totalorder %s22881_s11, %s22874_s22 }
 0x157   : > { %p22878_p12 = pneg %p22877_p5  ;;  %p22884_p3 = por %p22883_p1, %p22882_p8 }
 0x159   : > { %p22885_p4 = pnand %p22884_p3, %p22878_p12 }
 0x15b   : > { %22888 = shalt.err (!%p22885_p4)
}
 0x15c   : > { %s25865_s25 = smov 40   ;;  %s25866_s7 = smov 640  }
 0x15d   : > { %s25867_s29 = scalar_lea.sflag [#allocation15], %s23236_s20  ;;  %s25868_s17 = sld [smem:[#allocation46_spill]] }
 0x15e   : > { %20389 = dma.hbm_to_vmem [thread:$0]  (!%p25860_p2), %s23447_s23, 81920, %s713_s30, %s25867_s29, %s25866_s7, %s25866_s7, %s25865_s25  }
 0x163   : > { %p25869_p13 = scmp.ne.s32.totalorder %s25868_s17, 0 }
 0x164   : > { %s25870_s19 = sld [smem:[#allocation45_spill]] (!%p25869_p13) }
 0x165   : > { %724 = sbr.rel (%p25869_p13) target bundleno = 4010 (0xfaa), region = 88 }
 0x16a   : > { %p25871_p6 = scmp.eq.s32.totalorder %s25870_s19, 0 }
 0x16c   : > { %22930 = dma.done.wait (%p25871_p6), [#allocation6], 96   ;;  %p25872_p7 = pmov %p25871_p6 }
 0x16d   : > { %s25873_s24 = sld [smem:[#allocation43_spill]]  ;;  %s730_s13 = sand.u32 1, %s25870_s19  }
 0x16e   : > { %22932 = vsyncadd (%p25872_p7), [#allocation6], 4294967200  ;;  %s25874_s15 = sld [smem:[#allocation49_spill]]  ;;  %s731_s4 = scalar_lea.sflag [#allocation9], %s730_s13 }
 0x173   : > { %s732_s2 = sand.u32 1, %s25873_s24  }
 0x174   : > { %s20273_s21 = smul.u32 1536, %s732_s2  ;;  %p25875_p9 = scmp.ne.s32.totalorder %s25874_s15, 0 }
 0x176   : > { %s23478_s27 = scalar_lea.vmem [#allocation8], %s20273_s21 }
 0x177   : > { %22934 = dma.done.wait (%p25875_p9), %s731_s4, 24640  }
 0x178   : > { %22936 = vsyncadd (%p25875_p9), %s731_s4, 4294942656  ;;  %s17927_s20 = sshll.u32 %s732_s2, 2  ;;  %s20274_s23 = smul.u32 3072, %s732_s2 }
 0x179   : > { %s23484_s30 = scalar_lea.vmem [#allocation10], %s17927_s20  ;;  %s749_s28 = scalar_lea.sflag [#allocation12], %s730_s13 }
 0x17a   : > { %s23486_s0 = scalar_lea.vmem [#allocation11], %s20274_s23 }
 0x17b   : > { %22938 = dma.done.wait (%p25875_p9), %s749_s28, 49280  }
 0x17c   : > { %22940 = vsyncadd (%p25875_p9), %s749_s28, 4294918016  ;;  %s17928_s22 = sshll.u32 %s732_s2, 3  ;;  %s20275_s1 = smul.u32 2560, %s732_s2 }
 0x17d   : > { %s23492_s26 = scalar_lea.vmem [#allocation13], %s17928_s22  ;;  %s767_s11 = scalar_lea.sflag [#allocation15], %s730_s13 }
 0x17e   : > { %s23494_s25 = scalar_lea.vmem [#allocation14], %s20275_s1 }
 0x17f   : > { %22942 = dma.done.wait (%p25875_p9), %s767_s11, 122880  }
 0x180   : > { %22944 = vsyncadd (%p25875_p9), %s767_s11, 4294844416  ;;  %s20276_s7 = smul.u32 5120, %s732_s2  ;;  %p25876_p2 = pmov %p25871_p6 }
 0x182   : > { %s23500_s29 = scalar_lea.vmem [#allocation16], %s20276_s7 }
 0x183   : > { %22946 = dma.done.wait (%p25876_p2), [#allocation18], 320   ;;  %p25877_p11 = pmov %p25876_p2 }
 0x184   : > { %p25878_p10 = pmov %p25876_p2 }
 0x185   : > { %22948 = vsyncadd (%p25877_p11), [#allocation18], 4294966976 }
 0x186   : > { %22950 = dma.done.wait (%p25878_p10), [#allocation21], 8208   ;;  %p25879_p0 = pmov %p25876_p2 }
 0x188   : > { %22952 = vsyncadd (%p25879_p0), [#allocation21], 4294959088  ;;  %p25880_p5 = pmov %p25879_p0 }
 0x189   : > { %p25881_p12 = pmov %p25879_p0 }
 0x18a   : > { %22954 = dma.done.wait (%p25880_p5), [#allocation24], 8208  }
 0x18b   : > { %22956 = vsyncadd (%p25881_p12), [#allocation24], 4294959088  ;;  %p25882_p8 = pmov %p25879_p0 }
 0x18c   : > { %p25883_p1 = pmov %p25879_p0 }
 0x18d   : > { %22958 = dma.done.wait (%p25882_p8), [#allocation27], 41088  }
 0x18e   : > { %22960 = vsyncadd (%p25883_p1), [#allocation27], 4294926208  ;;  %p25884_p3 = pmov %p25879_p0 }
 0x18f   : > { %p25885_p4 = pmov %p25879_p0 }
 0x190   : > { %22962 = dma.done.wait (%p25884_p3), [#allocation30], 8208  }
 0x191   : > { %22964 = vsyncadd (%p25885_p4), [#allocation30], 4294959088  ;;  %p25886_p13 = scmp.ne.s32.totalorder %s25870_s19, 0 }
 0x193   : > { %900 = sbr.rel (%p25886_p13) target bundleno = 430 (0x1ae), region = 160 }
 0x198   : > { %v905_v0 = vlaneseq  ;;  %v23012_v1 = vmov 1983009808   ;;  %v901_v4 = vld [vmem:[#allocation17] sm:$0xff]  ;;  %v902_v14 = vld [vmem:[#allocation17 + $0x8] sm:$0x3]  ;;  %v1023_v19 = vld [vmem:[#allocation19] sm:$0xff] }
 0x199   : > { %v978_v2 = vunpack.c.l.s4 %v23012_v1  ;;  %v1024_v40 = vld [vmem:[#allocation19 + $0x8] sm:$0x3] }
 0x19a   : > { %v906_v3 = vshrl.u32 %v905_v0, 7 }
 0x19b   : > { %v979_v5 = vunpack.c.0.s8 %v978_v2 }
 0x19c   : > { %v907_v6 = vsub.s32 0, %v906_v3  ;;  %v911_v7 = vsub.s32 1, %v906_v3  ;;  %v915_v8 = vsub.s32 2, %v906_v3  ;;  %v919_v9 = vsub.s32 3, %v906_v3 }
 0x19d   : > { %v982_v10 = vsub.s32 %v979_v5, %v906_v3  ;;  %v923_v11 = vsub.s32 4, %v906_v3  ;;  %v927_v12 = vsub.s32 5, %v906_v3  ;;  %v931_v13 = vsub.s32 6, %v906_v3 }
 0x19e   : > { %v908_v15 = vrot.slane %v901_v4, %v907_v6  ;;  %v912_v16 = vrot.slane %v901_v4, %v911_v7  ;;  %v916_v17 = vrot.slane %v901_v4, %v915_v8  ;;  %v920_v18 = vrot.slane %v901_v4, %v919_v9 }
 0x19f   : > { %v924_v20 = vrot.slane %v901_v4, %v923_v11  ;;  %v928_v21 = vrot.slane %v901_v4, %v927_v12  ;;  %v932_v22 = vrot.slane %v901_v4, %v931_v13  ;;  %v935_v23 = vsub.s32 7, %v906_v3 }
 0x1a0   : > { %v975_v24 = vcombine.low %v908_v15, %v912_v16  ;;  %v976_v25 = vcombine.low %v916_v17, %v920_v18  ;;  %v940_v26 = vrot.slane %v902_v14, %v907_v6  ;;  %v944_v27 = vrot.slane %v902_v14, %v911_v7 }
 0x1a1   : > { %v936_v28 = vrot.slane %v901_v4, %v935_v23  ;;  %v992_v29 = vcombine.low %v924_v20, %v928_v21  ;;  %v1030_v30 = vrot.slane %v1023_v19, %v907_v6  ;;  %v1034_v31 = vrot.slane %v1023_v19, %v911_v7 }
 0x1a2   : > { %v983_v32 = vrot.slane %v975_v24, %v982_v10  ;;  %v990_v33 = vrot.slane %v976_v25, %v982_v10  ;;  %v1009_v34 = vcombine.low %v940_v26, %v944_v27  ;;  %v1038_v35 = vrot.slane %v1023_v19, %v915_v8 }
 0x1a3   : > { %v993_v36 = vcombine.low %v932_v22, %v936_v28  ;;  %v1000_v37 = vrot.slane %v992_v29, %v982_v10  ;;  %v1042_v38 = vrot.slane %v1023_v19, %v919_v9  ;;  %v1097_v39 = vcombine.low %v1030_v30, %v1034_v31 }
 0x1a4   : > { %v991_v41 = vcombine.low %v983_v32, %v990_v33  ;;  %17940 = vst.sshfl [vmem:[#allocation2 + $0x10] sm:$0x33 pattern:$0x76325410] %v1009_v34  ;;  %v1046_v42 = vrot.slane %v1023_v19, %v923_v11  ;;  %v1050_v43 = vrot.slane %v1023_v19, %v927_v12  ;;  %v1054_v44 = vrot.slane %v1023_v19, %v931_v13 }
 0x1a5   : > { %v1007_v45 = vrot.slane %v993_v36, %v982_v10  ;;  %v1098_v46 = vcombine.low %v1038_v35, %v1042_v38  ;;  %v1105_v47 = vrot.slane %v1097_v39, %v982_v10  ;;  %v1058_v48 = vrot.slane %v1023_v19, %v935_v23 }
 0x1a6   : > { %1020 = vst [vmem:[#allocation2] sm:$0xff] %v991_v41  ;;  %v1114_v49 = vcombine.low %v1046_v42, %v1050_v43  ;;  %v1062_v50 = vrot.slane %v1024_v40, %v907_v6  ;;  %v1066_v51 = vrot.slane %v1024_v40, %v911_v7 }
 0x1a7   : > { %v1008_v52 = vcombine.low %v1000_v37, %v1007_v45  ;;  %v1112_v53 = vrot.slane %v1098_v46, %v982_v10  ;;  %v1115_v54 = vcombine.low %v1054_v44, %v1058_v48 }
 0x1a8   : > { %v1122_v55 = vrot.slane %v1114_v49, %v982_v10  ;;  %v1131_v56 = vcombine.low %v1062_v50, %v1066_v51 }
 0x1a9   : > { %1021 = vst [vmem:[#allocation2 + $0x8] sm:$0xff] %v1008_v52  ;;  %v1113_v57 = vcombine.low %v1105_v47, %v1112_v53  ;;  %v1129_v58 = vrot.slane %v1115_v54, %v982_v10 }
 0x1aa   : > { %17941 = vst.sshfl [vmem:[#allocation3 + $0x10] sm:$0x33 pattern:$0x76325410] %v1131_v56 }
 0x1ab   : > { %1142 = vst [vmem:[#allocation3] sm:$0xff] %v1113_v57  ;;  %v1130_v59 = vcombine.low %v1122_v55, %v1129_v58 }
 0x1ad   : > { %1143 = vst [vmem:[#allocation3 + $0x8] sm:$0xff] %v1130_v59 }
 0x1ae PF: > { %v20474_v60 = vld [vmem:[%s23478_s27 + $0xe4] ss:$16 sps:$4 sm:$0xff]   ;;  %v20478_v62 = vld [vmem:[%s23478_s27 + $0xe0] ss:$16 sps:$4 sm:$0xff]   ;;  %v1340_v32 = vlaneseq  ;;  %v23013_v33 = vmov 1966171168  }
 0x1af   : > { %v20476_v61 = vld [vmem:[%s23478_s27 + $0x2e4] ss:$16 sps:$4 sm:$0xff]   ;;  %2374 = vmatprep.subr.bf16.mxu0 %v20474_v60  ;;  %v20479_v63 = vld [vmem:[%s23478_s27 + $0x2e0] ss:$16 sps:$4 sm:$0xff]   ;;  %v1363_v34 = vunpack.c.l.s4 %v23013_v33  ;;  %v1145_v48 = vld [vmem:[#allocation5] sm:$0x3f] }
 0x1b0   : > { %2415 = vmatprep.subr.bf16.mxu1 %v20476_v61  ;;  %v20480_v0 = vld [vmem:[%s23478_s27 + $0xc4] ss:$16 sps:$4 sm:$0xff]   ;;  %2375 = vmatpush1.bf16.msra.mxu0 %v20478_v62  ;;  %v20484_v2 = vld [vmem:[%s23478_s27 + $0xc0] ss:$16 sps:$4 sm:$0xff]   ;;  %v23563_v38 = vshrl.u32 %v1340_v32, 7  ;;  %v1361_v51 = vcombine.high %v1145_v48, %v1145_v48  ;;  %s25887_s17 = sld [smem:[#allocation45_spill]] }
 0x1b1   : > { %2416 = vmatpush1.bf16.msra.mxu1 %v20479_v63  ;;  %v20482_v1 = vld [vmem:[%s23478_s27 + $0x2c4] ss:$16 sps:$4 sm:$0xff]   ;;  %2376 = vmatprep.subr.bf16.mxu0 %v20480_v0  ;;  %v20485_v3 = vld [vmem:[%s23478_s27 + $0x2c0] ss:$16 sps:$4 sm:$0xff]   ;;  %v1364_v39 = vunpack.c.0.s8 %v1363_v34  ;;  %v20597_v33 = vld [vmem:[%s23478_s27 + $0x68] ss:$16 sps:$4 sm:$0xff]  }
 0x1b2   : > { %2417 = vmatprep.subr.bf16.mxu1 %v20482_v1  ;;  %v20486_v4 = vld [vmem:[%s23478_s27 + $0xa4] ss:$16 sps:$4 sm:$0xff]   ;;  %v20490_v6 = vld [vmem:[%s23478_s27 + $0xa0] ss:$16 sps:$4 sm:$0xff]  }
 0x1b3   : > { %v20488_v5 = vld [vmem:[%s23478_s27 + $0x2a4] ss:$16 sps:$4 sm:$0xff]   ;;  %v20491_v7 = vld [vmem:[%s23478_s27 + $0x2a0] ss:$16 sps:$4 sm:$0xff]   ;;  %v23571_v45 = vsub.s32 %v1364_v39, %v23563_v38 }
 0x1b4   : > { %2377 = vmatpush1.bf16.msra.mxu0 %v20484_v2  ;;  %v20492_v8 = vld [vmem:[%s23478_s27 + $0x84] ss:$16 sps:$4 sm:$0xff]   ;;  %v20496_v10 = vld [vmem:[%s23478_s27 + $0x80] ss:$16 sps:$4 sm:$0xff]  }
 0x1b5   : > { %2418 = vmatpush1.bf16.msra.mxu1 %v20485_v3  ;;  %2378 = vmatprep.subr.bf16.mxu0 %v20486_v4  ;;  %v20494_v9 = vld [vmem:[%s23478_s27 + $0x284] ss:$16 sps:$4 sm:$0xff]   ;;  %v20497_v11 = vld [vmem:[%s23478_s27 + $0x280] ss:$16 sps:$4 sm:$0xff]   ;;  %v1368_v50 = vrot.slane %v1145_v48, %v23571_v45  ;;  %v1375_v56 = vrot.slane %v1361_v51, %v23571_v45  ;;  %v20623_v48 = vld [vmem:[%s23478_s27 + $0x1ec] ss:$16 sps:$4 sm:$0xff]  }
 0x1b6   : > { %2419 = vmatprep.subr.bf16.mxu1 %v20488_v5  ;;  %v20498_v12 = vld [vmem:[%s23478_s27 + $0x64] ss:$16 sps:$4 sm:$0xff]   ;;  %v20502_v14 = vld [vmem:[%s23478_s27 + $0x60] ss:$16 sps:$4 sm:$0xff]   ;;  %p19478_p6 = scmp.ne.s32.totalorder %s25887_s17, 3 }
 0x1b7   : > { %v20500_v13 = vld [vmem:[%s23478_s27 + $0x264] ss:$16 sps:$4 sm:$0xff]   ;;  %v20503_v15 = vld [vmem:[%s23478_s27 + $0x260] ss:$16 sps:$4 sm:$0xff]   ;;  %v1376_v55 = vcombine.high %v1368_v50, %v1368_v50  ;;  %v23586_v59 = vrot.slane %v1375_v56, %v23571_v45 }
 0x1b8   : > { %2379 = vmatpush1.bf16.msra.mxu0 %v20490_v6  ;;  %v20504_v16 = vld [vmem:[%s23478_s27 + $0x44] ss:$16 sps:$4 sm:$0xff]   ;;  %v20508_v18 = vld [vmem:[%s23478_s27 + $0x40] ss:$16 sps:$4 sm:$0xff]  }
 0x1b9   : > { %2420 = vmatpush1.bf16.msra.mxu1 %v20491_v7  ;;  %2380 = vmatprep.subr.bf16.mxu0 %v20492_v8  ;;  %v20506_v17 = vld [vmem:[%s23478_s27 + $0x244] ss:$16 sps:$4 sm:$0xff]   ;;  %v20509_v19 = vld [vmem:[%s23478_s27 + $0x240] ss:$16 sps:$4 sm:$0xff]   ;;  %v23583_v58 = vrot.slane %v1376_v55, %v23571_v45 }
 0x1ba   : > { %2421 = vmatprep.subr.bf16.mxu1 %v20494_v9  ;;  %v20510_v20 = vld [vmem:[%s23478_s27 + $0x24] ss:$16 sps:$4 sm:$0xff]   ;;  %v20514_v22 = vld [vmem:[%s23478_s27 + $0x20] ss:$16 sps:$4 sm:$0xff]   ;;  %v23607_v9 = vrot.slane %v1368_v50, %v23571_v45  ;;  %v20621_v50 = vld [vmem:[%s23478_s27 + $0x1e8] ss:$16 sps:$4 sm:$0xff]  }
 0x1bb   : > { %v20512_v21 = vld [vmem:[%s23478_s27 + $0x224] ss:$16 sps:$4 sm:$0xff]   ;;  %v20515_v23 = vld [vmem:[%s23478_s27 + $0x220] ss:$16 sps:$4 sm:$0xff]   ;;  %v23593_v63 = vcombine.high %v23583_v58, %v23583_v58  ;;  %2406 = vmatprep.mubr.bf16.mxu0 %v23583_v58 }
 0x1bc   : > { %2381 = vmatpush1.bf16.msra.mxu0 %v20496_v10  ;;  %v20516_v24 = vld [vmem:[%s23478_s27 + $0x4] ss:$16 sps:$4 sm:$0xff]   ;;  %v20520_v26 = vld [vmem:[%s23478_s27] ss:$16 sps:$4 sm:$0xff]  }
 0x1bd   : > { %2422 = vmatpush1.bf16.msra.mxu1 %v20497_v11  ;;  %2382 = vmatprep.subr.bf16.mxu0 %v20498_v12  ;;  %v20518_v25 = vld [vmem:[%s23478_s27 + $0x204] ss:$16 sps:$4 sm:$0xff]   ;;  %v20521_v27 = vld [vmem:[%s23478_s27 + $0x200] ss:$16 sps:$4 sm:$0xff]   ;;  %v20575_v12 = vld [vmem:[%s23478_s27 + $0xec] ss:$16 sps:$4 sm:$0xff]  }
 0x1be   : > { %2423 = vmatprep.subr.bf16.mxu1 %v20500_v13  ;;  %v20522_v28 = vld [vmem:[%s23478_s27 + $0x1e4] ss:$16 sps:$4 sm:$0xff]   ;;  %v20526_v30 = vld [vmem:[%s23478_s27 + $0x1e0] ss:$16 sps:$4 sm:$0xff]   ;;  %2447 = vmatprep.mubr.bf16.mxu1 %v23593_v63  ;;  %v1377_v13 = vcombine.high %v1375_v56, %v1375_v56  ;;  %v20635_v56 = vld [vmem:[%s23478_s27 + $0x1ac] ss:$16 sps:$4 sm:$0xff]  }
 0x1bf   : > { %v20524_v29 = vld [vmem:[%s23478_s27 + $0x3e4] ss:$16 sps:$4 sm:$0xff]   ;;  %v20527_v31 = vld [vmem:[%s23478_s27 + $0x3e0] ss:$16 sps:$4 sm:$0xff]  }
 0x1c0   : > { %2383 = vmatpush1.bf16.msra.mxu0 %v20502_v14  ;;  %v20528_v35 = vld [vmem:[%s23478_s27 + $0x1c4] ss:$16 sps:$4 sm:$0xff]   ;;  %v20532_v37 = vld [vmem:[%s23478_s27 + $0x1c0] ss:$16 sps:$4 sm:$0xff]   ;;  %v23614_v14 = vcombine.high %v23607_v9, %v23607_v9 }
 0x1c1   : > { %2424 = vmatpush1.bf16.msra.mxu1 %v20503_v15  ;;  %2384 = vmatprep.subr.bf16.mxu0 %v20504_v16  ;;  %v20530_v36 = vld [vmem:[%s23478_s27 + $0x3c4] ss:$16 sps:$4 sm:$0xff]   ;;  %v20533_v40 = vld [vmem:[%s23478_s27 + $0x3c0] ss:$16 sps:$4 sm:$0xff]   ;;  %v20573_v16 = vld [vmem:[%s23478_s27 + $0xe8] ss:$16 sps:$4 sm:$0xff]  }
 0x1c2   : > { %2425 = vmatprep.subr.bf16.mxu1 %v20506_v17  ;;  %v20534_v41 = vld [vmem:[%s23478_s27 + $0x1a4] ss:$16 sps:$4 sm:$0xff]   ;;  %v20538_v43 = vld [vmem:[%s23478_s27 + $0x1a0] ss:$16 sps:$4 sm:$0xff]  }
 0x1c3   : > { %v20536_v42 = vld [vmem:[%s23478_s27 + $0x3a4] ss:$16 sps:$4 sm:$0xff]   ;;  %v20539_v44 = vld [vmem:[%s23478_s27 + $0x3a0] ss:$16 sps:$4 sm:$0xff]  }
 0x1c4   : > { %2385 = vmatpush1.bf16.msra.mxu0 %v20508_v18  ;;  %v20540_v46 = vld [vmem:[%s23478_s27 + $0x184] ss:$16 sps:$4 sm:$0xff]   ;;  %v20544_v49 = vld [vmem:[%s23478_s27 + $0x180] ss:$16 sps:$4 sm:$0xff]   ;;  %v20581_v18 = vld [vmem:[%s23478_s27 + $0xcc] ss:$16 sps:$4 sm:$0xff]  }
 0x1c5   : > { %2426 = vmatpush1.bf16.msra.mxu1 %v20509_v19  ;;  %2386 = vmatprep.subr.bf16.mxu0 %v20510_v20  ;;  %v20542_v47 = vld [vmem:[%s23478_s27 + $0x384] ss:$16 sps:$4 sm:$0xff]   ;;  %v20545_v52 = vld [vmem:[%s23478_s27 + $0x380] ss:$16 sps:$4 sm:$0xff]   ;;  %v23621_v19 = vrot.slane %v1377_v13, %v23571_v45 }
 0x1c6   : > { %2427 = vmatprep.subr.bf16.mxu1 %v20512_v21  ;;  %v20546_v53 = vld [vmem:[%s23478_s27 + $0x164] ss:$16 sps:$4 sm:$0xff]   ;;  %v20550_v57 = vld [vmem:[%s23478_s27 + $0x160] ss:$16 sps:$4 sm:$0xff]   ;;  %v20579_v21 = vld [vmem:[%s23478_s27 + $0xc8] ss:$16 sps:$4 sm:$0xff]  }
 0x1c7   : > { %v20548_v54 = vld [vmem:[%s23478_s27 + $0x364] ss:$16 sps:$4 sm:$0xff]   ;;  %v20551_v60 = vld [vmem:[%s23478_s27 + $0x360] ss:$16 sps:$4 sm:$0xff]  }
 0x1c8   : > { %2387 = vmatpush1.bf16.msra.mxu0 %v20514_v22  ;;  %v20552_v61 = vld [vmem:[%s23478_s27 + $0x144] ss:$16 sps:$4 sm:$0xff]   ;;  %v20556_v0 = vld [vmem:[%s23478_s27 + $0x140] ss:$16 sps:$4 sm:$0xff]  }
 0x1c9   : > { %2428 = vmatpush1.bf16.msra.mxu1 %v20515_v23  ;;  %2388 = vmatprep.subr.bf16.mxu0 %v20516_v24  ;;  %v20554_v62 = vld [vmem:[%s23478_s27 + $0x344] ss:$16 sps:$4 sm:$0xff]   ;;  %v20557_v1 = vld [vmem:[%s23478_s27 + $0x340] ss:$16 sps:$4 sm:$0xff]   ;;  %v20587_v23 = vld [vmem:[%s23478_s27 + $0xac] ss:$16 sps:$4 sm:$0xff]  }
 0x1ca   : > { %2429 = vmatprep.subr.bf16.mxu1 %v20518_v25  ;;  %v20558_v2 = vld [vmem:[%s23478_s27 + $0x124] ss:$16 sps:$4 sm:$0xff]   ;;  %v20562_v4 = vld [vmem:[%s23478_s27 + $0x120] ss:$16 sps:$4 sm:$0xff]   ;;  %v20585_v25 = vld [vmem:[%s23478_s27 + $0xa8] ss:$16 sps:$4 sm:$0xff]  }
 0x1cb   : > { %v20560_v3 = vld [vmem:[%s23478_s27 + $0x324] ss:$16 sps:$4 sm:$0xff]   ;;  %v20563_v5 = vld [vmem:[%s23478_s27 + $0x320] ss:$16 sps:$4 sm:$0xff]  }
 0x1cc   : > { %2389 = vmatpush1.bf16.msra.mxu0 %v20520_v26  ;;  %v20564_v6 = vld [vmem:[%s23478_s27 + $0x104] ss:$16 sps:$4 sm:$0xff]   ;;  %v20568_v8 = vld [vmem:[%s23478_s27 + $0x100] ss:$16 sps:$4 sm:$0xff]  }
 0x1cd   : > { %2430 = vmatpush1.bf16.msra.mxu1 %v20521_v27  ;;  %2390 = vmatprep.subr.bf16.mxu0 %v20522_v28  ;;  %v20566_v7 = vld [vmem:[%s23478_s27 + $0x304] ss:$16 sps:$4 sm:$0xff]   ;;  %v20569_v10 = vld [vmem:[%s23478_s27 + $0x300] ss:$16 sps:$4 sm:$0xff]   ;;  %v20593_v27 = vld [vmem:[%s23478_s27 + $0x8c] ss:$16 sps:$4 sm:$0xff]  }
 0x1ce   : > { %2431 = vmatprep.subr.bf16.mxu1 %v20524_v29  ;;  %v20572_v11 = vld [vmem:[%s23478_s27 + $0x4e4] ss:$16 sps:$4 sm:$0xff]   ;;  %v20570_v15 = vld [vmem:[%s23478_s27 + $0x4e0] ss:$16 sps:$4 sm:$0xff]   ;;  %v20591_v29 = vld [vmem:[%s23478_s27 + $0x88] ss:$16 sps:$4 sm:$0xff]  }
 0x1cf   : > { %v20578_v17 = vld [vmem:[%s23478_s27 + $0x4c4] ss:$16 sps:$4 sm:$0xff]   ;;  %v20576_v20 = vld [vmem:[%s23478_s27 + $0x4c0] ss:$16 sps:$4 sm:$0xff]  }
 0x1d0   : > { %2391 = vmatpush2.bf16.msra.mxu0 %v20526_v30  ;;  %v20584_v22 = vld [vmem:[%s23478_s27 + $0x4a4] ss:$16 sps:$4 sm:$0xff]   ;;  %v20582_v24 = vld [vmem:[%s23478_s27 + $0x4a0] ss:$16 sps:$4 sm:$0xff]  }
 0x1d1   : > { %2432 = vmatpush2.bf16.msra.mxu1 %v20527_v31  ;;  %2392 = vmatprep.subr.bf16.mxu0 %v20528_v35  ;;  %v20590_v26 = vld [vmem:[%s23478_s27 + $0x484] ss:$16 sps:$4 sm:$0xff]   ;;  %v20588_v28 = vld [vmem:[%s23478_s27 + $0x480] ss:$16 sps:$4 sm:$0xff]   ;;  %v20599_v31 = vld [vmem:[%s23478_s27 + $0x6c] ss:$16 sps:$4 sm:$0xff]  }
 0x1d2   : > { %2433 = vmatprep.subr.bf16.mxu1 %v20530_v36  ;;  %v20596_v30 = vld [vmem:[%s23478_s27 + $0x464] ss:$16 sps:$4 sm:$0xff]   ;;  %v20594_v32 = vld [vmem:[%s23478_s27 + $0x460] ss:$16 sps:$4 sm:$0xff]   ;;  %v20605_v35 = vld [vmem:[%s23478_s27 + $0x4c] ss:$16 sps:$4 sm:$0xff]  }
 0x1d3   : > { %v20602_v34 = vld [vmem:[%s23478_s27 + $0x444] ss:$16 sps:$4 sm:$0xff]   ;;  %v20600_v36 = vld [vmem:[%s23478_s27 + $0x440] ss:$16 sps:$4 sm:$0xff]  }
 0x1d4   : > { %2393 = vmatpush2.bf16.msra.mxu0 %v20532_v37  ;;  %v20603_v37 = vld [vmem:[%s23478_s27 + $0x48] ss:$16 sps:$4 sm:$0xff]   ;;  %v20608_v39 = vld [vmem:[%s23478_s27 + $0x424] ss:$16 sps:$4 sm:$0xff]   ;;  %v20612_v45 = vld [vmem:[%s23478_s27 + $0x400] ss:$16 sps:$4 sm:$0xff]  }
 0x1d5   : > { %2434 = vmatpush2.bf16.msra.mxu1 %v20533_v40  ;;  %2394 = vmatprep.subr.bf16.mxu0 %v20534_v41  ;;  %v20611_v40 = vld [vmem:[%s23478_s27 + $0x2c] ss:$16 sps:$4 sm:$0xff]   ;;  %v20606_v41 = vld [vmem:[%s23478_s27 + $0x420] ss:$16 sps:$4 sm:$0xff]   ;;  %v20626_v51 = vld [vmem:[%s23478_s27 + $0x5c4] ss:$16 sps:$4 sm:$0xff]  }
 0x1d6   : > { %2435 = vmatprep.subr.bf16.mxu1 %v20536_v42  ;;  %v20609_v42 = vld [vmem:[%s23478_s27 + $0x28] ss:$16 sps:$4 sm:$0xff]   ;;  %v20632_v55 = vld [vmem:[%s23478_s27 + $0x5a4] ss:$16 sps:$4 sm:$0xff]   ;;  %v20654_v13 = vld [vmem:[%s23478_s27 + $0x520] ss:$16 sps:$4 sm:$0xff]  }
 0x1d8   : > { %2395 = vmatpush2.bf16.msra.mxu0 %v20538_v43  ;;  %v20614_v43 = vld [vmem:[%s23478_s27 + $0x404] ss:$16 sps:$4 sm:$0xff]  }
 0x1d9   : > { %2436 = vmatpush2.bf16.msra.mxu1 %v20539_v44  ;;  %2396 = vmatprep.subr.bf16.mxu0 %v20540_v46  ;;  %v20617_v44 = vld [vmem:[%s23478_s27 + $0xc] ss:$16 sps:$4 sm:$0xff]   ;;  %v20615_v46 = vld [vmem:[%s23478_s27 + $0x8] ss:$16 sps:$4 sm:$0xff]  }
 0x1da   : > { %2437 = vmatprep.subr.bf16.mxu1 %v20542_v47  ;;  %v20620_v47 = vld [vmem:[%s23478_s27 + $0x5e4] ss:$16 sps:$4 sm:$0xff]  }
 0x1dc   : > { %2397 = vmatpush2.bf16.msra.mxu0 %v20544_v49  ;;  %v20618_v49 = vld [vmem:[%s23478_s27 + $0x5e0] ss:$16 sps:$4 sm:$0xff]  }
 0x1dd   : > { %2438 = vmatpush2.bf16.msra.mxu1 %v20545_v52  ;;  %2398 = vmatprep.subr.bf16.mxu0 %v20546_v53  ;;  %v20629_v52 = vld [vmem:[%s23478_s27 + $0x1cc] ss:$16 sps:$4 sm:$0xff]   ;;  %v20624_v53 = vld [vmem:[%s23478_s27 + $0x5c0] ss:$16 sps:$4 sm:$0xff]  }
 0x1de   : > { %2439 = vmatprep.subr.bf16.mxu1 %v20548_v54  ;;  %v20627_v54 = vld [vmem:[%s23478_s27 + $0x1c8] ss:$16 sps:$4 sm:$0xff]  }
 0x1e0   : > { %2399 = vmatpush2.bf16.msra.mxu0 %v20550_v57  ;;  %v20630_v57 = vld [vmem:[%s23478_s27 + $0x5a0] ss:$16 sps:$4 sm:$0xff]  }
 0x1e1   : > { %2440 = vmatpush2.bf16.msra.mxu1 %v20551_v60  ;;  %2400 = vmatprep.subr.bf16.mxu0 %v20552_v61  ;;  %v20633_v60 = vld [vmem:[%s23478_s27 + $0x1a8] ss:$16 sps:$4 sm:$0xff]   ;;  %v20638_v61 = vld [vmem:[%s23478_s27 + $0x584] ss:$16 sps:$4 sm:$0xff]  }
 0x1e2   : > { %2441 = vmatprep.subr.bf16.mxu1 %v20554_v62  ;;  %v20641_v62 = vld [vmem:[%s23478_s27 + $0x18c] ss:$16 sps:$4 sm:$0xff]  }
 0x1e4   : > { %2401 = vmatpush2.bf16.msra.mxu0 %v20556_v0  ;;  %v20636_v0 = vld [vmem:[%s23478_s27 + $0x580] ss:$16 sps:$4 sm:$0xff]  }
 0x1e5   : > { %2442 = vmatpush2.bf16.msra.mxu1 %v20557_v1  ;;  %2402 = vmatprep.subr.bf16.mxu0 %v20558_v2  ;;  %v20639_v1 = vld [vmem:[%s23478_s27 + $0x188] ss:$16 sps:$4 sm:$0xff]   ;;  %v20644_v2 = vld [vmem:[%s23478_s27 + $0x564] ss:$16 sps:$4 sm:$0xff]  }
 0x1e6   : > { %2443 = vmatprep.subr.bf16.mxu1 %v20560_v3  ;;  %v20647_v3 = vld [vmem:[%s23478_s27 + $0x16c] ss:$16 sps:$4 sm:$0xff]  }
 0x1e8   : > { %2403 = vmatpush2.bf16.msra.mxu0 %v20562_v4  ;;  %v20642_v4 = vld [vmem:[%s23478_s27 + $0x560] ss:$16 sps:$4 sm:$0xff]  }
 0x1e9   : > { %2444 = vmatpush2.bf16.msra.mxu1 %v20563_v5  ;;  %2404 = vmatprep.subr.bf16.mxu0 %v20564_v6  ;;  %v20645_v5 = vld [vmem:[%s23478_s27 + $0x168] ss:$16 sps:$4 sm:$0xff]   ;;  %v20650_v6 = vld [vmem:[%s23478_s27 + $0x544] ss:$16 sps:$4 sm:$0xff]  }
 0x1ea   : > { %2445 = vmatprep.subr.bf16.mxu1 %v20566_v7  ;;  %v20653_v7 = vld [vmem:[%s23478_s27 + $0x14c] ss:$16 sps:$4 sm:$0xff]  }
 0x1ec   : > { %2405 = vmatpush2.bf16.msra.mxu0 %v20568_v8  ;;  %v20648_v8 = vld [vmem:[%s23478_s27 + $0x540] ss:$16 sps:$4 sm:$0xff]  }
 0x1ed   : > { %2446 = vmatpush2.bf16.msra.mxu1 %v20569_v10  ;;  %2456 = vmatprep.subr.bf16.mxu0 %v20572_v11  ;;  %v20651_v10 = vld [vmem:[%s23478_s27 + $0x148] ss:$16 sps:$4 sm:$0xff]   ;;  %v20656_v11 = vld [vmem:[%s23478_s27 + $0x524] ss:$16 sps:$4 sm:$0xff]  }
 0x1ee   : > { %2497 = vmatprep.subr.bf16.mxu1 %v20575_v12  ;;  %v20659_v12 = vld [vmem:[%s23478_s27 + $0x12c] ss:$16 sps:$4 sm:$0xff]  }
 0x1ef   : > { %2407 = vmatmul.mubr.bf16.vlgmr.msra.gmra.mxu0 %v23607_v9 }
 0x1f0   : > { %2448 = vmatmul.mubr.bf16.vlgmr.msra.gmra.mxu1 %v23614_v14  ;;  %2457 = vmatpush1.bf16.msra.mxu0 %v20570_v15  ;;  %v20657_v15 = vld [vmem:[%s23478_s27 + $0x128] ss:$16 sps:$4 sm:$0xff]  }
 0x1f1   : > { %2498 = vmatpush1.bf16.msra.mxu1 %v20573_v16  ;;  %2458 = vmatprep.subr.bf16.mxu0 %v20578_v17  ;;  %v20662_v16 = vld [vmem:[%s23478_s27 + $0x504] ss:$16 sps:$4 sm:$0xff]   ;;  %v20665_v17 = vld [vmem:[%s23478_s27 + $0x10c] ss:$16 sps:$4 sm:$0xff]  }
 0x1f2   : > { %2499 = vmatprep.subr.bf16.mxu1 %v20581_v18  ;;  %2488 = vmatprep.mubr.bf16.mxu0 %v23621_v19  ;;  %v20660_v18 = vld [vmem:[%s23478_s27 + $0x500] ss:$16 sps:$4 sm:$0xff]  }
 0x1f3   : > { %2529 = vmatprep.mubr.bf16.mxu1 %v23583_v58 }
 0x1f4   : > { %2459 = vmatpush1.bf16.msra.mxu0 %v20576_v20  ;;  %v20663_v20 = vld [vmem:[%s23478_s27 + $0x108] ss:$16 sps:$4 sm:$0xff]  }
 0x1f5   : > { %2500 = vmatpush1.bf16.msra.mxu1 %v20579_v21  ;;  %2460 = vmatprep.subr.bf16.mxu0 %v20584_v22  ;;  %v20669_v21 = vld [vmem:[%s23478_s27 + $0x2ec] ss:$16 sps:$4 sm:$0xff]  }
 0x1f6   : > { %2501 = vmatprep.subr.bf16.mxu1 %v20587_v23  ;;  %v20672_v22 = vld [vmem:[%s23478_s27 + $0x4ec] ss:$16 sps:$4 sm:$0xff]   ;;  %v20667_v23 = vld [vmem:[%s23478_s27 + $0x2e8] ss:$16 sps:$4 sm:$0xff]  }
 0x1f8   : > { %2461 = vmatpush1.bf16.msra.mxu0 %v20582_v24  ;;  %v20670_v24 = vld [vmem:[%s23478_s27 + $0x4e8] ss:$16 sps:$4 sm:$0xff]  }
 0x1f9   : > { %2502 = vmatpush1.bf16.msra.mxu1 %v20585_v25  ;;  %2462 = vmatprep.subr.bf16.mxu0 %v20590_v26  ;;  %v20675_v25 = vld [vmem:[%s23478_s27 + $0x2cc] ss:$16 sps:$4 sm:$0xff]  }
 0x1fa   : > { %2503 = vmatprep.subr.bf16.mxu1 %v20593_v27  ;;  %v20678_v26 = vld [vmem:[%s23478_s27 + $0x4cc] ss:$16 sps:$4 sm:$0xff]   ;;  %v20673_v27 = vld [vmem:[%s23478_s27 + $0x2c8] ss:$16 sps:$4 sm:$0xff]  }
 0x1fc   : > { %2463 = vmatpush1.bf16.msra.mxu0 %v20588_v28  ;;  %v20676_v28 = vld [vmem:[%s23478_s27 + $0x4c8] ss:$16 sps:$4 sm:$0xff]  }
 0x1fd   : > { %2504 = vmatpush1.bf16.msra.mxu1 %v20591_v29  ;;  %2464 = vmatprep.subr.bf16.mxu0 %v20596_v30  ;;  %v20681_v29 = vld [vmem:[%s23478_s27 + $0x2ac] ss:$16 sps:$4 sm:$0xff]  }
 0x1fe   : > { %2505 = vmatprep.subr.bf16.mxu1 %v20599_v31  ;;  %v20684_v30 = vld [vmem:[%s23478_s27 + $0x4ac] ss:$16 sps:$4 sm:$0xff]   ;;  %v20679_v31 = vld [vmem:[%s23478_s27 + $0x2a8] ss:$16 sps:$4 sm:$0xff]  }
 0x200   : > { %2465 = vmatpush1.bf16.msra.mxu0 %v20594_v32  ;;  %v20682_v32 = vld [vmem:[%s23478_s27 + $0x4a8] ss:$16 sps:$4 sm:$0xff]  }
 0x201   : > { %2506 = vmatpush1.bf16.msra.mxu1 %v20597_v33  ;;  %2466 = vmatprep.subr.bf16.mxu0 %v20602_v34  ;;  %v20687_v33 = vld [vmem:[%s23478_s27 + $0x28c] ss:$16 sps:$4 sm:$0xff]  }
 0x202   : > { %2507 = vmatprep.subr.bf16.mxu1 %v20605_v35  ;;  %v20690_v34 = vld [vmem:[%s23478_s27 + $0x48c] ss:$16 sps:$4 sm:$0xff]   ;;  %v20685_v35 = vld [vmem:[%s23478_s27 + $0x288] ss:$16 sps:$4 sm:$0xff]  }
 0x204   : > { %2467 = vmatpush1.bf16.msra.mxu0 %v20600_v36  ;;  %v20688_v36 = vld [vmem:[%s23478_s27 + $0x488] ss:$16 sps:$4 sm:$0xff]  }
 0x205   : > { %2508 = vmatpush1.bf16.msra.mxu1 %v20603_v37  ;;  %2468 = vmatprep.subr.bf16.mxu0 %v20608_v39  ;;  %v20693_v37 = vld [vmem:[%s23478_s27 + $0x26c] ss:$16 sps:$4 sm:$0xff]  }
 0x206   : > { %2509 = vmatprep.subr.bf16.mxu1 %v20611_v40  ;;  %v20696_v39 = vld [vmem:[%s23478_s27 + $0x46c] ss:$16 sps:$4 sm:$0xff]   ;;  %v20691_v40 = vld [vmem:[%s23478_s27 + $0x268] ss:$16 sps:$4 sm:$0xff]  }
 0x208   : > { %2469 = vmatpush1.bf16.msra.mxu0 %v20606_v41  ;;  %v20694_v41 = vld [vmem:[%s23478_s27 + $0x468] ss:$16 sps:$4 sm:$0xff]  }
 0x209   : > { %2510 = vmatpush1.bf16.msra.mxu1 %v20609_v42  ;;  %2470 = vmatprep.subr.bf16.mxu0 %v20614_v43  ;;  %v20699_v42 = vld [vmem:[%s23478_s27 + $0x24c] ss:$16 sps:$4 sm:$0xff]  }
 0x20a   : > { %2511 = vmatprep.subr.bf16.mxu1 %v20617_v44  ;;  %v20702_v43 = vld [vmem:[%s23478_s27 + $0x44c] ss:$16 sps:$4 sm:$0xff]   ;;  %v20697_v44 = vld [vmem:[%s23478_s27 + $0x248] ss:$16 sps:$4 sm:$0xff]  }
 0x20c   : > { %2471 = vmatpush1.bf16.msra.mxu0 %v20612_v45  ;;  %v20700_v45 = vld [vmem:[%s23478_s27 + $0x448] ss:$16 sps:$4 sm:$0xff]  }
 0x20d   : > { %2512 = vmatpush1.bf16.msra.mxu1 %v20615_v46  ;;  %2472 = vmatprep.subr.bf16.mxu0 %v20620_v47  ;;  %v20705_v46 = vld [vmem:[%s23478_s27 + $0x22c] ss:$16 sps:$4 sm:$0xff]  }
 0x20e   : > { %2513 = vmatprep.subr.bf16.mxu1 %v20623_v48  ;;  %v20708_v47 = vld [vmem:[%s23478_s27 + $0x42c] ss:$16 sps:$4 sm:$0xff]   ;;  %v20703_v48 = vld [vmem:[%s23478_s27 + $0x228] ss:$16 sps:$4 sm:$0xff]  }
 0x210   : > { %2473 = vmatpush2.bf16.msra.mxu0 %v20618_v49  ;;  %v20706_v49 = vld [vmem:[%s23478_s27 + $0x428] ss:$16 sps:$4 sm:$0xff]  }
 0x211   : > { %2514 = vmatpush2.bf16.msra.mxu1 %v20621_v50  ;;  %2474 = vmatprep.subr.bf16.mxu0 %v20626_v51  ;;  %v20711_v50 = vld [vmem:[%s23478_s27 + $0x20c] ss:$16 sps:$4 sm:$0xff]  }
 0x212   : > { %2515 = vmatprep.subr.bf16.mxu1 %v20629_v52  ;;  %v20714_v51 = vld [vmem:[%s23478_s27 + $0x40c] ss:$16 sps:$4 sm:$0xff]   ;;  %v20709_v52 = vld [vmem:[%s23478_s27 + $0x208] ss:$16 sps:$4 sm:$0xff]  }
 0x214   : > { %2475 = vmatpush2.bf16.msra.mxu0 %v20624_v53  ;;  %v20712_v53 = vld [vmem:[%s23478_s27 + $0x408] ss:$16 sps:$4 sm:$0xff]  }
 0x215   : > { %2516 = vmatpush2.bf16.msra.mxu1 %v20627_v54  ;;  %2476 = vmatprep.subr.bf16.mxu0 %v20632_v55  ;;  %v20717_v54 = vld [vmem:[%s23478_s27 + $0x3ec] ss:$16 sps:$4 sm:$0xff]  }
 0x216   : > { %2517 = vmatprep.subr.bf16.mxu1 %v20635_v56  ;;  %v20720_v55 = vld [vmem:[%s23478_s27 + $0x5ec] ss:$16 sps:$4 sm:$0xff]   ;;  %v20715_v56 = vld [vmem:[%s23478_s27 + $0x3e8] ss:$16 sps:$4 sm:$0xff]  }
 0x218   : > { %2477 = vmatpush2.bf16.msra.mxu0 %v20630_v57  ;;  %v20718_v57 = vld [vmem:[%s23478_s27 + $0x5e8] ss:$16 sps:$4 sm:$0xff]  }
 0x219   : > { %2518 = vmatpush2.bf16.msra.mxu1 %v20633_v60  ;;  %2478 = vmatprep.subr.bf16.mxu0 %v20638_v61  ;;  %v20723_v60 = vld [vmem:[%s23478_s27 + $0x3cc] ss:$16 sps:$4 sm:$0xff]  }
 0x21a   : > { %2519 = vmatprep.subr.bf16.mxu1 %v20641_v62  ;;  %v20726_v61 = vld [vmem:[%s23478_s27 + $0x5cc] ss:$16 sps:$4 sm:$0xff]   ;;  %v20721_v62 = vld [vmem:[%s23478_s27 + $0x3c8] ss:$16 sps:$4 sm:$0xff]  }
 0x21c   : > { %2479 = vmatpush2.bf16.msra.mxu0 %v20636_v0  ;;  %v20724_v0 = vld [vmem:[%s23478_s27 + $0x5c8] ss:$16 sps:$4 sm:$0xff]  }
 0x21d   : > { %2520 = vmatpush2.bf16.msra.mxu1 %v20639_v1  ;;  %2480 = vmatprep.subr.bf16.mxu0 %v20644_v2  ;;  %v20729_v1 = vld [vmem:[%s23478_s27 + $0x3ac] ss:$16 sps:$4 sm:$0xff]  }
 0x21e   : > { %2521 = vmatprep.subr.bf16.mxu1 %v20647_v3  ;;  %v20732_v2 = vld [vmem:[%s23478_s27 + $0x5ac] ss:$16 sps:$4 sm:$0xff]   ;;  %v20727_v3 = vld [vmem:[%s23478_s27 + $0x3a8] ss:$16 sps:$4 sm:$0xff]  }
 0x220   : > { %2481 = vmatpush2.bf16.msra.mxu0 %v20642_v4  ;;  %v20730_v4 = vld [vmem:[%s23478_s27 + $0x5a8] ss:$16 sps:$4 sm:$0xff]  }
 0x221   : > { %2522 = vmatpush2.bf16.msra.mxu1 %v20645_v5  ;;  %2482 = vmatprep.subr.bf16.mxu0 %v20650_v6  ;;  %v20735_v5 = vld [vmem:[%s23478_s27 + $0x38c] ss:$16 sps:$4 sm:$0xff]  }
 0x222   : > { %2523 = vmatprep.subr.bf16.mxu1 %v20653_v7  ;;  %v20738_v6 = vld [vmem:[%s23478_s27 + $0x58c] ss:$16 sps:$4 sm:$0xff]   ;;  %v20733_v7 = vld [vmem:[%s23478_s27 + $0x388] ss:$16 sps:$4 sm:$0xff]  }
 0x224   : > { %2483 = vmatpush2.bf16.msra.mxu0 %v20648_v8  ;;  %v20736_v8 = vld [vmem:[%s23478_s27 + $0x588] ss:$16 sps:$4 sm:$0xff]  }
 0x225   : > { %2524 = vmatpush2.bf16.msra.mxu1 %v20651_v10  ;;  %2484 = vmatprep.subr.bf16.mxu0 %v20656_v11  ;;  %v20741_v10 = vld [vmem:[%s23478_s27 + $0x36c] ss:$16 sps:$4 sm:$0xff]  }
 0x226   : > { %2525 = vmatprep.subr.bf16.mxu1 %v20659_v12  ;;  %v20744_v11 = vld [vmem:[%s23478_s27 + $0x56c] ss:$16 sps:$4 sm:$0xff]   ;;  %v20739_v12 = vld [vmem:[%s23478_s27 + $0x368] ss:$16 sps:$4 sm:$0xff]  }
 0x228   : > { %2485 = vmatpush2.bf16.msra.mxu0 %v20654_v13  ;;  %v20742_v13 = vld [vmem:[%s23478_s27 + $0x568] ss:$16 sps:$4 sm:$0xff]  }
 0x229   : > { %2526 = vmatpush2.bf16.msra.mxu1 %v20657_v15  ;;  %2486 = vmatprep.subr.bf16.mxu0 %v20662_v16  ;;  %v20747_v15 = vld [vmem:[%s23478_s27 + $0x34c] ss:$16 sps:$4 sm:$0xff]  }
 0x22a   : > { %2527 = vmatprep.subr.bf16.mxu1 %v20665_v17  ;;  %v20750_v16 = vld [vmem:[%s23478_s27 + $0x54c] ss:$16 sps:$4 sm:$0xff]   ;;  %v20745_v17 = vld [vmem:[%s23478_s27 + $0x348] ss:$16 sps:$4 sm:$0xff]  }
 0x22c   : > { %2487 = vmatpush2.bf16.msra.mxu0 %v20660_v18  ;;  %v20748_v18 = vld [vmem:[%s23478_s27 + $0x548] ss:$16 sps:$4 sm:$0xff]  }
 0x22d   : > { %2528 = vmatpush2.bf16.msra.mxu1 %v20663_v20  ;;  %2538 = vmatprep.subr.bf16.mxu0 %v20669_v21  ;;  %v20753_v20 = vld [vmem:[%s23478_s27 + $0x32c] ss:$16 sps:$4 sm:$0xff]  }
 0x22e   : > { %2579 = vmatprep.subr.bf16.mxu1 %v20672_v22  ;;  %v20756_v21 = vld [vmem:[%s23478_s27 + $0x52c] ss:$16 sps:$4 sm:$0xff]   ;;  %v20751_v22 = vld [vmem:[%s23478_s27 + $0x328] ss:$16 sps:$4 sm:$0xff]  }
 0x22f   : > { %2489 = vmatmul.mubr.bf16.vlgmr.msra.gmra.mxu0 %v23586_v59 }
 0x230   : > { %2530 = vmatmul.mubr.bf16.vlgmr.msra.gmra.mxu1 %v23607_v9  ;;  %2539 = vmatpush1.bf16.msra.mxu0 %v20667_v23  ;;  %v20754_v23 = vld [vmem:[%s23478_s27 + $0x528] ss:$16 sps:$4 sm:$0xff]  }
 0x231   : > { %2580 = vmatpush1.bf16.msra.mxu1 %v20670_v24  ;;  %2540 = vmatprep.subr.bf16.mxu0 %v20675_v25  ;;  %v20759_v24 = vld [vmem:[%s23478_s27 + $0x30c] ss:$16 sps:$4 sm:$0xff]  }
 0x232   : > { %2581 = vmatprep.subr.bf16.mxu1 %v20678_v26  ;;  %2570 = vmatprep.mubr.bf16.mxu0 %v23593_v63  ;;  %v20762_v25 = vld [vmem:[%s23478_s27 + $0x50c] ss:$16 sps:$4 sm:$0xff]  }
 0x233   : > { %2611 = vmatprep.mubr.bf16.mxu1 %v23621_v19  ;;  %v2676_v26 = vld [vmem:[%s23486_s0 + $0x1c0] sm:$0xff] }
 0x234   : > { %2541 = vmatpush1.bf16.msra.mxu0 %v20673_v27  ;;  %v2680_v27 = vld [vmem:[%s23486_s0 + $0x1e0] sm:$0xff] }
 0x235   : > { %2582 = vmatpush1.bf16.msra.mxu1 %v20676_v28  ;;  %2542 = vmatprep.subr.bf16.mxu0 %v20681_v29  ;;  %v2804_v28 = vld [vmem:[%s23486_s0 + $0x5c0] sm:$0xff] }
 0x236   : > { %2583 = vmatprep.subr.bf16.mxu1 %v20684_v30  ;;  %v2808_v29 = vld [vmem:[%s23486_s0 + $0x5e0] sm:$0xff] }
 0x237   : > { %v20757_v30 = vld [vmem:[%s23478_s27 + $0x308] ss:$16 sps:$4 sm:$0xff]  }
 0x238   : > { %2543 = vmatpush1.bf16.msra.mxu0 %v20679_v31  ;;  %v20760_v31 = vld [vmem:[%s23478_s27 + $0x508] ss:$16 sps:$4 sm:$0xff]  }
 0x239   : > { %2584 = vmatpush1.bf16.msra.mxu1 %v20682_v32  ;;  %2544 = vmatprep.subr.bf16.mxu0 %v20687_v33  ;;  %v2668_v32 = vld [vmem:[%s23486_s0 + $0x180] sm:$0xff] }
 0x23a   : > { %2585 = vmatprep.subr.bf16.mxu1 %v20690_v34  ;;  %v2672_v33 = vld [vmem:[%s23486_s0 + $0x1a0] sm:$0xff] }
 0x23b   : > { %v2796_v34 = vld [vmem:[%s23486_s0 + $0x580] sm:$0xff] }
 0x23c   : > { %2545 = vmatpush1.bf16.msra.mxu0 %v20685_v35  ;;  %v18191_v35 = vcombine.high %v2676_v26, %v2680_v27 }
 0x23d   : > { %2586 = vmatpush1.bf16.msra.mxu1 %v20688_v36  ;;  %2546 = vmatprep.subr.bf16.mxu0 %v20693_v37  ;;  %v18319_v36 = vcombine.high %v2804_v28, %v2808_v29  ;;  %v2800_v37 = vld [vmem:[%s23486_s0 + $0x5a0] sm:$0xff] }
 0x23e   : > { %2587 = vmatprep.subr.bf16.mxu1 %v20696_v39  ;;  %v18190_v39 = vcombine.low %v2676_v26, %v2680_v27 }
 0x240   : > { %2547 = vmatpush1.bf16.msra.mxu0 %v20691_v40  ;;  %v18318_v40 = vcombine.low %v2804_v28, %v2808_v29  ;;  %v2752_v28 = vld [vmem:[%s23486_s0 + $0x420] sm:$0xff] }
 0x241   : > { %2588 = vmatpush1.bf16.msra.mxu1 %v20694_v41  ;;  %2548 = vmatprep.subr.bf16.mxu0 %v20699_v42  ;;  %v2660_v41 = vld [vmem:[%s23486_s0 + $0x140] sm:$0xff] }
 0x242   : > { %2589 = vmatprep.subr.bf16.mxu1 %v20702_v43  ;;  %v2664_v42 = vld [vmem:[%s23486_s0 + $0x160] sm:$0xff] }
 0x243   : > { %v2788_v43 = vld [vmem:[%s23486_s0 + $0x540] sm:$0xff] }
 0x244   : > { %2549 = vmatpush1.bf16.msra.mxu0 %v20697_v44  ;;  %v18183_v44 = vcombine.high %v2668_v32, %v2672_v33 }
 0x245   : > { %2590 = vmatpush1.bf16.msra.mxu1 %v20700_v45  ;;  %2550 = vmatprep.subr.bf16.mxu0 %v20705_v46  ;;  %v18311_v45 = vcombine.high %v2796_v34, %v2800_v37  ;;  %v2792_v46 = vld [vmem:[%s23486_s0 + $0x560] sm:$0xff] }
 0x246   : > { %2591 = vmatprep.subr.bf16.mxu1 %v20708_v47  ;;  %v18182_v47 = vcombine.low %v2668_v32, %v2672_v33  ;;  %v2744_v32 = vld [vmem:[%s23486_s0 + $0x3e0] sm:$0xff] }
 0x247   : > { %v2868_v33 = vld [vmem:[%s23486_s0 + $0x7c0] sm:$0xff] }
 0x248   : > { %2551 = vmatpush1.bf16.msra.mxu0 %v20703_v48  ;;  %v18310_v48 = vcombine.low %v2796_v34, %v2800_v37 }
 0x249   : > { %2592 = vmatpush1.bf16.msra.mxu1 %v20706_v49  ;;  %2552 = vmatprep.subr.bf16.mxu0 %v20711_v50  ;;  %v2652_v49 = vld [vmem:[%s23486_s0 + $0x100] sm:$0xff] }
 0x24a   : > { %2593 = vmatprep.subr.bf16.mxu1 %v20714_v51  ;;  %v2656_v50 = vld [vmem:[%s23486_s0 + $0x120] sm:$0xff] }
 0x24b   : > { %v2780_v51 = vld [vmem:[%s23486_s0 + $0x500] sm:$0xff] }
 0x24c   : > { %2553 = vmatpush1.bf16.msra.mxu0 %v20709_v52  ;;  %v18175_v52 = vcombine.high %v2660_v41, %v2664_v42 }
 0x24d   : > { %2594 = vmatpush1.bf16.msra.mxu1 %v20712_v53  ;;  %2554 = vmatprep.subr.bf16.mxu0 %v20717_v54  ;;  %v18303_v53 = vcombine.high %v2788_v43, %v2792_v46  ;;  %v2784_v54 = vld [vmem:[%s23486_s0 + $0x520] sm:$0xff] }
 0x24e   : > { %2595 = vmatprep.subr.bf16.mxu1 %v20720_v55  ;;  %v18174_v55 = vcombine.low %v2660_v41, %v2664_v42  ;;  %v2736_v41 = vld [vmem:[%s23486_s0 + $0x3a0] sm:$0xff] }
 0x24f   : > { %v2860_v42 = vld [vmem:[%s23486_s0 + $0x780] sm:$0xff] }
 0x250   : > { %2555 = vmatpush2.bf16.msra.mxu0 %v20715_v56  ;;  %v18302_v56 = vcombine.low %v2788_v43, %v2792_v46 }
 0x251   : > { %2596 = vmatpush2.bf16.msra.mxu1 %v20718_v57  ;;  %2556 = vmatprep.subr.bf16.mxu0 %v20723_v60  ;;  %v2644_v57 = vld [vmem:[%s23486_s0 + $0xc0] sm:$0xff] }
 0x252   : > { %2597 = vmatprep.subr.bf16.mxu1 %v20726_v61  ;;  %v2648_v60 = vld [vmem:[%s23486_s0 + $0xe0] sm:$0xff] }
 0x253   : > { %v2772_v61 = vld [vmem:[%s23486_s0 + $0x4c0] sm:$0xff] }
 0x254   : > { %2557 = vmatpush2.bf16.msra.mxu0 %v20721_v62  ;;  %v18167_v62 = vcombine.high %v2652_v49, %v2656_v50 }
 0x255   : > { %2598 = vmatpush2.bf16.msra.mxu1 %v20724_v0  ;;  %2558 = vmatprep.subr.bf16.mxu0 %v20729_v1  ;;  %v18295_v0 = vcombine.high %v2780_v51, %v2784_v54  ;;  %v2776_v1 = vld [vmem:[%s23486_s0 + $0x4e0] sm:$0xff] }
 0x256   : > { %2599 = vmatprep.subr.bf16.mxu1 %v20732_v2  ;;  %v18166_v2 = vcombine.low %v2652_v49, %v2656_v50  ;;  %v2728_v49 = vld [vmem:[%s23486_s0 + $0x360] sm:$0xff] }
 0x257   : > { %v2852_v50 = vld [vmem:[%s23486_s0 + $0x740] sm:$0xff] }
 0x258   : > { %2559 = vmatpush2.bf16.msra.mxu0 %v20727_v3  ;;  %v18294_v3 = vcombine.low %v2780_v51, %v2784_v54 }
 0x259   : > { %2600 = vmatpush2.bf16.msra.mxu1 %v20730_v4  ;;  %2560 = vmatprep.subr.bf16.mxu0 %v20735_v5  ;;  %v2636_v4 = vld [vmem:[%s23486_s0 + $0x80] sm:$0xff] }
 0x25a   : > { %2601 = vmatprep.subr.bf16.mxu1 %v20738_v6  ;;  %v2640_v5 = vld [vmem:[%s23486_s0 + $0xa0] sm:$0xff] }
 0x25b   : > { %v2764_v6 = vld [vmem:[%s23486_s0 + $0x480] sm:$0xff] }
 0x25c   : > { %2561 = vmatpush2.bf16.msra.mxu0 %v20733_v7  ;;  %v18159_v7 = vcombine.high %v2644_v57, %v2648_v60 }
 0x25d   : > { %2602 = vmatpush2.bf16.msra.mxu1 %v20736_v8  ;;  %2562 = vmatprep.subr.bf16.mxu0 %v20741_v10  ;;  %v18287_v8 = vcombine.high %v2772_v61, %v2776_v1  ;;  %v2768_v10 = vld [vmem:[%s23486_s0 + $0x4a0] sm:$0xff] }
 0x25e   : > { %2603 = vmatprep.subr.bf16.mxu1 %v20744_v11  ;;  %v18158_v11 = vcombine.low %v2644_v57, %v2648_v60  ;;  %v2720_v57 = vld [vmem:[%s23486_s0 + $0x320] sm:$0xff] }
 0x25f   : > { %v2844_v60 = vld [vmem:[%s23486_s0 + $0x700] sm:$0xff] }
 0x260   : > { %2563 = vmatpush2.bf16.msra.mxu0 %v20739_v12  ;;  %v18286_v12 = vcombine.low %v2772_v61, %v2776_v1 }
 0x261   : > { %2604 = vmatpush2.bf16.msra.mxu1 %v20742_v13  ;;  %2564 = vmatprep.subr.bf16.mxu0 %v20747_v15  ;;  %v2628_v13 = vld [vmem:[%s23486_s0 + $0x40] sm:$0xff] }
 0x262   : > { %2605 = vmatprep.subr.bf16.mxu1 %v20750_v16  ;;  %v2632_v15 = vld [vmem:[%s23486_s0 + $0x60] sm:$0xff] }
 0x263   : > { %v2756_v16 = vld [vmem:[%s23486_s0 + $0x440] sm:$0xff]  ;;  %v18143_v26 = vcombine.high %v2628_v13, %v2632_v15  ;;  %v18142_v29 = vcombine.low %v2628_v13, %v2632_v15 }
 0x264   : > { %2565 = vmatpush2.bf16.msra.mxu0 %v20745_v17  ;;  %v18151_v17 = vcombine.high %v2636_v4, %v2640_v5  ;;  %v2704_v13 = vld [vmem:[%s23486_s0 + $0x2a0] sm:$0xff] }
 0x265   : > { %2606 = vmatpush2.bf16.msra.mxu1 %v20748_v18  ;;  %2566 = vmatprep.subr.bf16.mxu0 %v20753_v20  ;;  %v18279_v18 = vcombine.high %v2764_v6, %v2768_v10  ;;  %v2760_v20 = vld [vmem:[%s23486_s0 + $0x460] sm:$0xff] }
 0x266   : > { %2607 = vmatprep.subr.bf16.mxu1 %v20756_v21  ;;  %v18150_v21 = vcombine.low %v2636_v4, %v2640_v5  ;;  %v18271_v27 = vcombine.high %v2756_v16, %v2760_v20  ;;  %v2712_v4 = vld [vmem:[%s23486_s0 + $0x2e0] sm:$0xff] }
 0x267   : > { %v2836_v5 = vld [vmem:[%s23486_s0 + $0x6c0] sm:$0xff] }
 0x268   : > { %2567 = vmatpush2.bf16.msra.mxu0 %v20751_v22  ;;  %v18278_v22 = vcombine.low %v2764_v6, %v2768_v10  ;;  %v2828_v15 = vld [vmem:[%s23486_s0 + $0x680] sm:$0xff] }
 0x269   : > { %2608 = vmatpush2.bf16.msra.mxu1 %v20754_v23  ;;  %2568 = vmatprep.subr.bf16.mxu0 %v20759_v24  ;;  %v2620_v23 = vld [vmem:[%s23486_s0] sm:$0xff] }
 0x26a   : > { %2609 = vmatprep.subr.bf16.mxu1 %v20762_v25  ;;  %v2624_v24 = vld [vmem:[%s23486_s0 + $0x20] sm:$0xff] }
 0x26b   : > { %v2748_v25 = vld [vmem:[%s23486_s0 + $0x400] sm:$0xff]  ;;  %v18135_v34 = vcombine.high %v2620_v23, %v2624_v24  ;;  %v18134_v37 = vcombine.low %v2620_v23, %v2624_v24 }
 0x26c   : > { %2569 = vmatpush2.bf16.msra.mxu0 %v20757_v30  ;;  %v18270_v30 = vcombine.low %v2756_v16, %v2760_v20  ;;  %v2696_v23 = vld [vmem:[%s23486_s0 + $0x260] sm:$0xff] }
 0x26d   : > { %2610 = vmatpush2.bf16.msra.mxu1 %v20760_v31  ;;  %4966 = vmatprep.subr.bf16.mxu0 %v18191_v35  ;;  %v2740_v31 = vld [vmem:[%s23486_s0 + $0x3c0] sm:$0xff]  ;;  %v18263_v35 = vcombine.high %v2748_v25, %v2752_v28 }
 0x26e   : > { %5007 = vmatprep.subr.bf16.mxu1 %v18319_v36  ;;  %v2872_v36 = vld [vmem:[%s23486_s0 + $0x7e0] sm:$0xff]  ;;  %v18255_v43 = vcombine.high %v2740_v31, %v2744_v32  ;;  %v18254_v46 = vcombine.low %v2740_v31, %v2744_v32 }
 0x26f   : > { %2571 = vmatmul.mubr.bf16.vlgmr.msra.gmra.mxu0 %v23614_v14  ;;  %v2820_v24 = vld [vmem:[%s23486_s0 + $0x640] sm:$0xff] }
 0x270   : > { %2612 = vmatmul.mubr.bf16.vlgmr.msra.gmra.mxu1 %v23586_v59  ;;  %4967 = vmatpush1.bf16.msra.mxu0 %v18190_v39  ;;  %v18262_v39 = vcombine.low %v2748_v25, %v2752_v28  ;;  %v2688_v31 = vld [vmem:[%s23486_s0 + $0x220] sm:$0xff] }
 0x271   : > { %5008 = vmatpush1.bf16.msra.mxu1 %v18318_v40  ;;  %4968 = vmatprep.subr.bf16.mxu0 %v18183_v44  ;;  %v2732_v40 = vld [vmem:[%s23486_s0 + $0x380] sm:$0xff]  ;;  %v18383_v44 = vcombine.high %v2868_v33, %v2872_v36 }
 0x272   : > { %5009 = vmatprep.subr.bf16.mxu1 %v18311_v45  ;;  %4998 = vmatprep.mubr.bf16.mxu0 %v23583_v58  ;;  %v2864_v45 = vld [vmem:[%s23486_s0 + $0x7a0] sm:$0xff]  ;;  %v18247_v51 = vcombine.high %v2732_v40, %v2736_v41  ;;  %v18246_v54 = vcombine.low %v2732_v40, %v2736_v41  ;;  %v2677_v41 = vld [vmem:[%s23486_s0 + $0x1c8] sm:$0xff] }
 0x273   : > { %5039 = vmatprep.mubr.bf16.mxu1 %v23593_v63  ;;  %v2812_v32 = vld [vmem:[%s23486_s0 + $0x600] sm:$0xff] }
 0x274   : > { %4969 = vmatpush1.bf16.msra.mxu0 %v18182_v47  ;;  %v18382_v47 = vcombine.low %v2868_v33, %v2872_v36  ;;  %v2936_v40 = vld [vmem:[%s23486_s0 + $0x9e0] sm:$0xff] }
 0x275   : > { %5010 = vmatpush1.bf16.msra.mxu1 %v18310_v48  ;;  %4970 = vmatprep.subr.bf16.mxu0 %v18175_v52  ;;  %v2724_v48 = vld [vmem:[%s23486_s0 + $0x340] sm:$0xff]  ;;  %v18375_v52 = vcombine.high %v2860_v42, %v2864_v45 }
 0x276   : > { %5011 = vmatprep.subr.bf16.mxu1 %v18303_v53  ;;  %v2856_v53 = vld [vmem:[%s23486_s0 + $0x760] sm:$0xff]  ;;  %v18239_v61 = vcombine.high %v2724_v48, %v2728_v49  ;;  %v18238_v1 = vcombine.low %v2724_v48, %v2728_v49  ;;  %v23829_v48 = vsub.s32 0, %v23563_v38 }
 0x277   : > { %v2924_v49 = vld [vmem:[%s23486_s0 + $0x980] sm:$0xff] }
 0x278   : > { %4971 = vmatpush1.bf16.msra.mxu0 %v18174_v55  ;;  %v18374_v55 = vcombine.low %v2860_v42, %v2864_v45  ;;  %v23826_v45 = vld [vmem:[%s23484_s30] sm:$0xf] }
 0x279   : > { %5012 = vmatpush1.bf16.msra.mxu1 %v18302_v56  ;;  %4972 = vmatprep.subr.bf16.mxu0 %v18167_v62  ;;  %v2716_v56 = vld [vmem:[%s23486_s0 + $0x300] sm:$0xff]  ;;  %v18367_v62 = vcombine.high %v2852_v50, %v2856_v53 }
 0x27a   : > { %5013 = vmatprep.subr.bf16.mxu1 %v18295_v0  ;;  %v2848_v0 = vld [vmem:[%s23486_s0 + $0x720] sm:$0xff]  ;;  %v18231_v6 = vcombine.high %v2716_v56, %v2720_v57  ;;  %v18230_v10 = vcombine.low %v2716_v56, %v2720_v57  ;;  %v1343_v56 = vrot.slane %v23826_v45, %v23829_v48 }
 0x27c   : > { %4973 = vmatpush1.bf16.msra.mxu0 %v18166_v2  ;;  %v18366_v2 = vcombine.low %v2852_v50, %v2856_v53  ;;  %v2928_v50 = vld [vmem:[%s23486_s0 + $0x9a0] sm:$0xff] }
 0x27d   : > { %5014 = vmatpush1.bf16.msra.mxu1 %v18294_v3  ;;  %4974 = vmatprep.subr.bf16.mxu0 %v18159_v7  ;;  %v2708_v3 = vld [vmem:[%s23486_s0 + $0x2c0] sm:$0xff]  ;;  %v18359_v7 = vcombine.high %v2844_v60, %v2848_v0 }
 0x27e   : > { %5015 = vmatprep.subr.bf16.mxu1 %v18287_v8  ;;  %v2840_v8 = vld [vmem:[%s23486_s0 + $0x6e0] sm:$0xff]  ;;  %v18223_v16 = vcombine.high %v2708_v3, %v2712_v4  ;;  %v18222_v20 = vcombine.low %v2708_v3, %v2712_v4  ;;  %v2665_v3 = vld [vmem:[%s23486_s0 + $0x168] sm:$0xff] }
 0x280   : > { %4975 = vmatpush1.bf16.msra.mxu0 %v18158_v11  ;;  %v18358_v11 = vcombine.low %v2844_v60, %v2848_v0  ;;  %v2661_v0 = vld [vmem:[%s23486_s0 + $0x148] sm:$0xff] }
 0x281   : > { %5016 = vmatpush1.bf16.msra.mxu1 %v18286_v12  ;;  %4976 = vmatprep.subr.bf16.mxu0 %v18151_v17  ;;  %v2700_v12 = vld [vmem:[%s23486_s0 + $0x280] sm:$0xff]  ;;  %v18351_v17 = vcombine.high %v2836_v5, %v2840_v8 }
 0x282   : > { %5017 = vmatprep.subr.bf16.mxu1 %v18279_v18  ;;  %v2832_v18 = vld [vmem:[%s23486_s0 + $0x6a0] sm:$0xff]  ;;  %v18215_v25 = vcombine.high %v2700_v12, %v2704_v13  ;;  %v18214_v28 = vcombine.low %v2700_v12, %v2704_v13  ;;  %v2653_v13 = vld [vmem:[%s23486_s0 + $0x108] sm:$0xff] }
 0x283   : > { %v2912_v12 = vld [vmem:[%s23486_s0 + $0x920] sm:$0xff] }
 0x284   : > { %4977 = vmatpush1.bf16.msra.mxu0 %v18150_v21  ;;  %v18350_v21 = vcombine.low %v2836_v5, %v2840_v8  ;;  %v18438_v8 = vcombine.low %v2924_v49, %v2928_v50 }
 0x285   : > { %5018 = vmatpush1.bf16.msra.mxu1 %v18278_v22  ;;  %4978 = vmatprep.subr.bf16.mxu0 %v18143_v26  ;;  %v2692_v22 = vld [vmem:[%s23486_s0 + $0x240] sm:$0xff]  ;;  %v18343_v26 = vcombine.high %v2828_v15, %v2832_v18 }
 0x286   : > { %5019 = vmatprep.subr.bf16.mxu1 %v18271_v27  ;;  %v2824_v27 = vld [vmem:[%s23486_s0 + $0x660] sm:$0xff]  ;;  %v18207_v33 = vcombine.high %v2692_v22, %v2696_v23  ;;  %v18206_v36 = vcombine.low %v2692_v22, %v2696_v23 }
 0x288   : > { %4979 = vmatpush1.bf16.msra.mxu0 %v18142_v29  ;;  %v18342_v29 = vcombine.low %v2828_v15, %v2832_v18  ;;  %v18177_v18 = vcombine.high %v2661_v0, %v2665_v3 }
 0x289   : > { %5020 = vmatpush1.bf16.msra.mxu1 %v18270_v30  ;;  %4980 = vmatprep.subr.bf16.mxu0 %v18135_v34  ;;  %v2684_v30 = vld [vmem:[%s23486_s0 + $0x200] sm:$0xff]  ;;  %v18335_v34 = vcombine.high %v2820_v24, %v2824_v27 }
 0x28a   : > { %5021 = vmatprep.subr.bf16.mxu1 %v18263_v35  ;;  %v2816_v35 = vld [vmem:[%s23486_s0 + $0x620] sm:$0xff]  ;;  %v18199_v42 = vcombine.high %v2684_v30, %v2688_v31 }
 0x28c   : > { %4981 = vmatpush1.bf16.msra.mxu0 %v18134_v37  ;;  %v18334_v37 = vcombine.low %v2820_v24, %v2824_v27  ;;  %v18176_v27 = vcombine.low %v2661_v0, %v2665_v3 }
 0x28d   : > { %5022 = vmatpush1.bf16.msra.mxu1 %v18262_v39  ;;  %4982 = vmatprep.subr.bf16.mxu0 %v18255_v43  ;;  %v2932_v39 = vld [vmem:[%s23486_s0 + $0x9c0] sm:$0xff]  ;;  %v18327_v43 = vcombine.high %v2812_v32, %v2816_v35 }
 0x28e   : > { %5023 = vmatprep.subr.bf16.mxu1 %v18383_v44  ;;  %v2681_v44 = vld [vmem:[%s23486_s0 + $0x1e8] sm:$0xff]  ;;  %v18446_v57 = vcombine.low %v2932_v39, %v2936_v40 }
 0x28f   : > { %v18193_v53 = vcombine.high %v2677_v41, %v2681_v44  ;;  %v18192_v60 = vcombine.low %v2677_v41, %v2681_v44  ;;  %v2637_v41 = vld [vmem:[%s23486_s0 + $0x88] sm:$0xff] }
 0x290   : > { %4983 = vmatpush2.bf16.msra.mxu0 %v18254_v46  ;;  %v18198_v46 = vcombine.low %v2684_v30, %v2688_v31  ;;  %v2645_v30 = vld [vmem:[%s23486_s0 + $0xc8] sm:$0xff] }
 0x291   : > { %5024 = vmatpush2.bf16.msra.mxu1 %v18382_v47  ;;  %4984 = vmatprep.subr.bf16.mxu0 %v18247_v51  ;;  %v18326_v47 = vcombine.low %v2812_v32, %v2816_v35  ;;  %v2669_v51 = vld [vmem:[%s23486_s0 + $0x188] sm:$0xff] }
 0x292   : > { %5025 = vmatprep.subr.bf16.mxu1 %v18375_v52  ;;  %v18447_v52 = vcombine.high %v2932_v39, %v2936_v40  ;;  %v2649_v35 = vld [vmem:[%s23486_s0 + $0xe8] sm:$0xff]  ;;  %v2892_v39 = vld [vmem:[%s23486_s0 + $0x880] sm:$0xff] }
 0x293   : > { %v2896_v40 = vld [vmem:[%s23486_s0 + $0x8a0] sm:$0xff]  ;;  %v2641_v44 = vld [vmem:[%s23486_s0 + $0xa8] sm:$0xff] }
 0x294   : > { %4985 = vmatpush2.bf16.msra.mxu0 %v18246_v54  ;;  %v2673_v54 = vld [vmem:[%s23486_s0 + $0x1a8] sm:$0xff] }
 0x295   : > { %5026 = vmatpush2.bf16.msra.mxu1 %v18374_v55  ;;  %4986 = vmatprep.subr.bf16.mxu0 %v18239_v61  ;;  %v23836_v55 = vsub.s32 1, %v23563_v38  ;;  %v2916_v61 = vld [vmem:[%s23486_s0 + $0x940] sm:$0xff] }
 0x296   : > { %5027 = vmatprep.subr.bf16.mxu1 %v18367_v62  ;;  %v2920_v62 = vld [vmem:[%s23486_s0 + $0x960] sm:$0xff] }
 0x297   : > { %v1347_v4 = vrot.slane %v23826_v45, %v23836_v55 }
 0x298   : > { %4987 = vmatpush2.bf16.msra.mxu0 %v18238_v1  ;;  %v18439_v1 = vcombine.high %v2924_v49, %v2928_v50  ;;  %v2884_v49 = vld [vmem:[%s23486_s0 + $0x840] sm:$0xff] }
 0x299   : > { %5028 = vmatpush2.bf16.msra.mxu1 %v18366_v2  ;;  %4988 = vmatprep.subr.bf16.mxu0 %v18231_v6  ;;  %v18185_v2 = vcombine.high %v2669_v51, %v2673_v54  ;;  %v2888_v50 = vld [vmem:[%s23486_s0 + $0x860] sm:$0xff] }
 0x29a   : > { %5029 = vmatprep.subr.bf16.mxu1 %v18359_v7  ;;  %v18399_v0 = vcombine.high %v2884_v49, %v2888_v50  ;;  %v18398_v3 = vcombine.low %v2884_v49, %v2888_v50  ;;  %v2713_v50 = vld [vmem:[%s23486_s0 + $0x2e8] sm:$0xff] }
 0x29c   : > { %4989 = vmatpush2.bf16.msra.mxu0 %v18230_v10  ;;  %v18184_v10 = vcombine.low %v2669_v51, %v2673_v54  ;;  %v2629_v51 = vld [vmem:[%s23486_s0 + $0x48] sm:$0xff] }
 0x29d   : > { %5030 = vmatpush2.bf16.msra.mxu1 %v18358_v11  ;;  %4990 = vmatprep.subr.bf16.mxu0 %v18223_v16  ;;  %v2908_v11 = vld [vmem:[%s23486_s0 + $0x900] sm:$0xff]  ;;  %v2633_v54 = vld [vmem:[%s23486_s0 + $0x68] sm:$0xff] }
 0x29e   : > { %5031 = vmatprep.subr.bf16.mxu1 %v18351_v17  ;;  %v18431_v17 = vcombine.high %v2916_v61, %v2920_v62 }
 0x2a0   : > { %4991 = vmatpush2.bf16.msra.mxu0 %v18222_v20  ;;  %v2657_v20 = vld [vmem:[%s23486_s0 + $0x128] sm:$0xff] }
 0x2a1   : > { %5032 = vmatpush2.bf16.msra.mxu1 %v18350_v21  ;;  %4992 = vmatprep.subr.bf16.mxu0 %v18215_v25 }
 0x2a2   : > { %5033 = vmatprep.subr.bf16.mxu1 %v18343_v26  ;;  %v18430_v26 = vcombine.low %v2916_v61, %v2920_v62  ;;  %v2880_v61 = vld [vmem:[%s23486_s0 + $0x820] sm:$0xff]  ;;  %v2621_v62 = vld [vmem:[%s23486_s0 + $0x8] sm:$0xff] }
 0x2a4   : > { %4993 = vmatpush2.bf16.msra.mxu0 %v18214_v28  ;;  %v2900_v28 = vld [vmem:[%s23486_s0 + $0x8c0] sm:$0xff] }
 0x2a5   : > { %5034 = vmatpush2.bf16.msra.mxu1 %v18342_v29  ;;  %4994 = vmatprep.subr.bf16.mxu0 %v18207_v33  ;;  %v2904_v29 = vld [vmem:[%s23486_s0 + $0x8e0] sm:$0xff]  ;;  %v18423_v33 = vcombine.high %v2908_v11, %v2912_v12 }
 0x2a6   : > { %5035 = vmatprep.subr.bf16.mxu1 %v18335_v34  ;;  %v18169_v34 = vcombine.high %v2653_v13, %v2657_v20 }
 0x2a8   : > { %4995 = vmatpush2.bf16.msra.mxu0 %v18206_v36  ;;  %v18422_v36 = vcombine.low %v2908_v11, %v2912_v12  ;;  %v2745_v11 = vld [vmem:[%s23486_s0 + $0x3e8] sm:$0xff] }
 0x2a9   : > { %5036 = vmatpush2.bf16.msra.mxu1 %v18334_v37  ;;  %4996 = vmatprep.subr.bf16.mxu0 %v18199_v42  ;;  %v18168_v37 = vcombine.low %v2653_v13, %v2657_v20  ;;  %v18415_v42 = vcombine.high %v2900_v28, %v2904_v29 }
 0x2aa   : > { %5037 = vmatprep.subr.bf16.mxu1 %v18327_v43  ;;  %v18161_v43 = vcombine.high %v2645_v30, %v2649_v35 }
 0x2ac   : > { %4997 = vmatpush2.bf16.msra.mxu0 %v18198_v46  ;;  %v18414_v46 = vcombine.low %v2900_v28, %v2904_v29  ;;  %v2725_v28 = vld [vmem:[%s23486_s0 + $0x348] sm:$0xff] }
 0x2ad   : > { %5038 = vmatpush2.bf16.msra.mxu1 %v18326_v47  ;;  %5048 = vmatprep.subr.bf16.mxu0 %v18447_v52  ;;  %v18160_v47 = vcombine.low %v2645_v30, %v2649_v35  ;;  %v18407_v52 = vcombine.high %v2892_v39, %v2896_v40  ;;  %v2976_v35 = vld [vmem:[%s23486_s0 + $0xb20] sm:$0xff] }
 0x2ae   : > { %5089 = vmatprep.subr.bf16.mxu1 %v18193_v53  ;;  %v18153_v53 = vcombine.high %v2637_v41, %v2641_v44 }
 0x2af   : > { %v2408_v5 = vpop.f32.mrf.mxu0  ;;  %4999 = vmatmul.mubr.bf16.vlgmr.msra.gmra.mxu0 %v23607_v9 }
 0x2b0   : > { %v2449_v6 = vpop.f32.mrf.mxu1  ;;  %5040 = vmatmul.mubr.bf16.vlgmr.msra.gmra.mxu1 %v23614_v14  ;;  %v2409_v7 = vadd.f32 %v2408_v5, %v1343_v56  ;;  %5049 = vmatpush1.bf16.msra.mxu0 %v18446_v57  ;;  %v18406_v56 = vcombine.low %v2892_v39, %v2896_v40  ;;  %v18152_v57 = vcombine.low %v2637_v41, %v2641_v44  ;;  %v2996_v5 = vld [vmem:[%s23486_s0 + $0xbc0] sm:$0xff]  ;;  %v2721_v40 = vld [vmem:[%s23486_s0 + $0x328] sm:$0xff] }
 0x2b1   : > { %5090 = vmatpush1.bf16.msra.mxu1 %v18192_v60  ;;  %v2410_v15 = vpop.f32.mrf.mxu0  ;;  %5050 = vmatprep.subr.bf16.mxu0 %v18439_v1  ;;  %v2876_v60 = vld [vmem:[%s23486_s0 + $0x800] sm:$0xff]  ;;  %v18145_v1 = vcombine.high %v2629_v51, %v2633_v54 }
 0x2b2   : > { %v2451_v16 = vpop.f32.mrf.mxu1  ;;  %5091 = vmatprep.subr.bf16.mxu1 %v18185_v2  ;;  %v23852_v21 = vadd.f32 %v2449_v6, %v2409_v7  ;;  %v2411_v22 = vadd.f32 %v2410_v15, %v1347_v4  ;;  %5080 = vmatprep.mubr.bf16.mxu0 %v23621_v19  ;;  %v2625_v2 = vld [vmem:[%s23486_s0 + $0x28] sm:$0xff]  ;;  %v18144_v4 = vcombine.low %v2629_v51, %v2633_v54  ;;  %v3000_v6 = vld [vmem:[%s23486_s0 + $0xbe0] sm:$0xff] }
 0x2b3   : > { %5121 = vmatprep.mubr.bf16.mxu1 %v23583_v58  ;;  %v2412_v23 = vpop.f32.mrf.mxu0  ;;  %v2741_v7 = vld [vmem:[%s23486_s0 + $0x3c8] sm:$0xff]  ;;  %v18390_v12 = vcombine.low %v2876_v60, %v2880_v61  ;;  %v18136_v13 = vcombine.low %v2621_v62, %v2625_v2  ;;  %v2988_v15 = vld [vmem:[%s23486_s0 + $0xb80] sm:$0xff] }
 0x2b4   : > { %v2453_v24 = vpop.f32.mrf.mxu1  ;;  %v23856_v25 = vadd.f32 %v2451_v16, %v2411_v22  ;;  %5051 = vmatpush1.bf16.msra.mxu0 %v18438_v8  ;;  %v18391_v8 = vcombine.high %v2876_v60, %v2880_v61  ;;  %v2992_v16 = vld [vmem:[%s23486_s0 + $0xba0] sm:$0xff]  ;;  %v18257_v20 = vcombine.high %v2741_v7, %v2745_v11  ;;  %v2737_v22 = vld [vmem:[%s23486_s0 + $0x3a8] sm:$0xff]  ;;  %v18510_v23 = vcombine.low %v2996_v5, %v3000_v6 }
 0x2b5   : > { %5092 = vmatpush1.bf16.msra.mxu1 %v18184_v10  ;;  %v2413_v31 = vpop.f32.mrf.mxu0  ;;  %5052 = vmatprep.subr.bf16.mxu0 %v18431_v17  ;;  %v18137_v10 = vcombine.high %v2621_v62, %v2625_v2  ;;  %v2733_v17 = vld [vmem:[%s23486_s0 + $0x388] sm:$0xff]  ;;  %v18256_v24 = vcombine.low %v2741_v7, %v2745_v11  ;;  %v18503_v29 = vcombine.high %v2988_v15, %v2992_v16  ;;  %v2968_v44 = vld [vmem:[%s23486_s0 + $0xae0] sm:$0xff] }
 0x2b6   : > { %v2454_v32 = vpop.f32.mrf.mxu1  ;;  %5093 = vmatprep.subr.bf16.mxu1 %v18177_v18  ;;  %v18511_v18 = vcombine.high %v2996_v5, %v3000_v6  ;;  %v18249_v30 = vcombine.high %v2733_v17, %v2737_v22  ;;  %v2729_v31 = vld [vmem:[%s23486_s0 + $0x368] sm:$0xff]  ;;  %v2960_v54 = vld [vmem:[%s23486_s0 + $0xaa0] sm:$0xff] }
 0x2b7   : > { %v18502_v32 = vcombine.low %v2988_v15, %v2992_v16  ;;  %v18241_v39 = vcombine.high %v2725_v28, %v2729_v31  ;;  %v2705_v61 = vld [vmem:[%s23486_s0 + $0x2a8] sm:$0xff]  ;;  %v2952_v2 = vld [vmem:[%s23486_s0 + $0xa60] sm:$0xff] }
 0x2b8   : > { %5053 = vmatpush1.bf16.msra.mxu0 %v18430_v26  ;;  %v2980_v26 = vld [vmem:[%s23486_s0 + $0xb40] sm:$0xff]  ;;  %v2697_v6 = vld [vmem:[%s23486_s0 + $0x268] sm:$0xff] }
 0x2b9   : > { %5094 = vmatpush1.bf16.msra.mxu1 %v18176_v27  ;;  %5054 = vmatprep.subr.bf16.mxu0 %v18423_v33  ;;  %v2984_v27 = vld [vmem:[%s23486_s0 + $0xb60] sm:$0xff]  ;;  %v18248_v33 = vcombine.low %v2733_v17, %v2737_v22  ;;  %v2689_v16 = vld [vmem:[%s23486_s0 + $0x228] sm:$0xff] }
 0x2ba   : > { %5095 = vmatprep.subr.bf16.mxu1 %v18169_v34  ;;  %v2972_v34 = vld [vmem:[%s23486_s0 + $0xb00] sm:$0xff]  ;;  %v18494_v41 = vcombine.low %v2980_v26, %v2984_v27  ;;  %v2809_v22 = vld [vmem:[%s23486_s0 + $0x5e8] sm:$0xff] }
 0x2bb   : > { %v18486_v51 = vcombine.low %v2972_v34, %v2976_v35  ;;  %v2944_v11 = vld [vmem:[%s23486_s0 + $0xa20] sm:$0xff] }
 0x2bc   : > { %5055 = vmatpush1.bf16.msra.mxu0 %v18422_v36  ;;  %v2717_v36 = vld [vmem:[%s23486_s0 + $0x308] sm:$0xff] }
 0x2bd   : > { %5096 = vmatpush1.bf16.msra.mxu1 %v18168_v37  ;;  %5056 = vmatprep.subr.bf16.mxu0 %v18415_v42  ;;  %v18495_v37 = vcombine.high %v2980_v26, %v2984_v27  ;;  %v18240_v42 = vcombine.low %v2725_v28, %v2729_v31  ;;  %v18233_v49 = vcombine.high %v2717_v36, %v2721_v40  ;;  %v2937_v27 = vld [vmem:[%s23486_s0 + $0x9e8] sm:$0xff] }
 0x2be   : > { %5097 = vmatprep.subr.bf16.mxu1 %v18161_v43  ;;  %v2964_v43 = vld [vmem:[%s23486_s0 + $0xac0] sm:$0xff]  ;;  %v2797_v31 = vld [vmem:[%s23486_s0 + $0x588] sm:$0xff] }
 0x2bf   : > { %v18478_v62 = vcombine.low %v2964_v43, %v2968_v44 }
 0x2c0   : > { %5057 = vmatpush1.bf16.msra.mxu0 %v18414_v46  ;;  %v2709_v46 = vld [vmem:[%s23486_s0 + $0x2c8] sm:$0xff] }
 0x2c1   : > { %5098 = vmatpush1.bf16.msra.mxu1 %v18160_v47  ;;  %5058 = vmatprep.subr.bf16.mxu0 %v18407_v52  ;;  %v18487_v47 = vcombine.high %v2972_v34, %v2976_v35  ;;  %v18232_v52 = vcombine.low %v2717_v36, %v2721_v40  ;;  %v18225_v60 = vcombine.high %v2709_v46, %v2713_v50  ;;  %v2929_v36 = vld [vmem:[%s23486_s0 + $0x9a8] sm:$0xff] }
 0x2c2   : > { %5099 = vmatprep.subr.bf16.mxu1 %v18153_v53  ;;  %v2956_v53 = vld [vmem:[%s23486_s0 + $0xa80] sm:$0xff] }
 0x2c3   : > { %v18470_v7 = vcombine.low %v2956_v53, %v2960_v54 }
 0x2c4   : > { %5059 = vmatpush1.bf16.msra.mxu0 %v18406_v56  ;;  %v2701_v56 = vld [vmem:[%s23486_s0 + $0x288] sm:$0xff] }
 0x2c5   : > { %5100 = vmatpush1.bf16.msra.mxu1 %v18152_v57  ;;  %5060 = vmatprep.subr.bf16.mxu0 %v18399_v0  ;;  %v18479_v57 = vcombine.high %v2964_v43, %v2968_v44  ;;  %v18224_v0 = vcombine.low %v2709_v46, %v2713_v50  ;;  %v18217_v5 = vcombine.high %v2701_v56, %v2705_v61  ;;  %v2917_v46 = vld [vmem:[%s23486_s0 + $0x948] sm:$0xff] }
 0x2c6   : > { %5101 = vmatprep.subr.bf16.mxu1 %v18145_v1  ;;  %v2948_v1 = vld [vmem:[%s23486_s0 + $0xa40] sm:$0xff] }
 0x2c7   : > { %v18462_v17 = vcombine.low %v2948_v1, %v2952_v2 }
 0x2c8   : > { %5061 = vmatpush1.bf16.msra.mxu0 %v18398_v3  ;;  %v2693_v3 = vld [vmem:[%s23486_s0 + $0x248] sm:$0xff] }
 0x2c9   : > { %5102 = vmatpush1.bf16.msra.mxu1 %v18144_v4  ;;  %5062 = vmatprep.subr.bf16.mxu0 %v18391_v8  ;;  %v18471_v4 = vcombine.high %v2956_v53, %v2960_v54  ;;  %v18216_v8 = vcombine.low %v2701_v56, %v2705_v61  ;;  %v18209_v15 = vcombine.high %v2693_v3, %v2697_v6  ;;  %v2781_v54 = vld [vmem:[%s23486_s0 + $0x508] sm:$0xff] }
 0x2ca   : > { %5103 = vmatprep.subr.bf16.mxu1 %v18137_v10  ;;  %v2940_v10 = vld [vmem:[%s23486_s0 + $0xa00] sm:$0xff]  ;;  %v2785_v56 = vld [vmem:[%s23486_s0 + $0x528] sm:$0xff] }
 0x2cb   : > { %v18454_v28 = vcombine.low %v2940_v10, %v2944_v11 }
 0x2cc   : > { %5063 = vmatpush1.bf16.msra.mxu0 %v18390_v12  ;;  %v2685_v12 = vld [vmem:[%s23486_s0 + $0x208] sm:$0xff] }
 0x2cd   : > { %5104 = vmatpush1.bf16.msra.mxu1 %v18136_v13  ;;  %5064 = vmatprep.subr.bf16.mxu0 %v18511_v18  ;;  %v18463_v13 = vcombine.high %v2948_v1, %v2952_v2  ;;  %v18208_v18 = vcombine.low %v2693_v3, %v2697_v6  ;;  %v18201_v26 = vcombine.high %v2685_v12, %v2689_v16  ;;  %v2773_v6 = vld [vmem:[%s23486_s0 + $0x4c8] sm:$0xff] }
 0x2ce   : > { %5105 = vmatprep.subr.bf16.mxu1 %v18257_v20  ;;  %v2805_v20 = vld [vmem:[%s23486_s0 + $0x5c8] sm:$0xff] }
 0x2cf   : > { %v18321_v34 = vcombine.high %v2805_v20, %v2809_v22 }
 0x2d0   : > { %5065 = vmatpush2.bf16.msra.mxu0 %v18510_v23  ;;  %v2933_v23 = vld [vmem:[%s23486_s0 + $0x9c8] sm:$0xff] }
 0x2d1   : > { %5106 = vmatpush2.bf16.msra.mxu1 %v18256_v24  ;;  %5066 = vmatprep.subr.bf16.mxu0 %v18503_v29  ;;  %v18455_v24 = vcombine.high %v2940_v10, %v2944_v11  ;;  %v18200_v29 = vcombine.low %v2685_v12, %v2689_v16  ;;  %v18449_v35 = vcombine.high %v2933_v23, %v2937_v27 }
 0x2d2   : > { %5107 = vmatprep.subr.bf16.mxu1 %v18249_v30  ;;  %v23911_v30 = vsub.s32 2, %v23563_v38  ;;  %v18448_v40 = vcombine.low %v2933_v23, %v2937_v27  ;;  %v18297_v11 = vcombine.high %v2781_v54, %v2785_v56 }
 0x2d4   : > { %5067 = vmatpush2.bf16.msra.mxu0 %v18502_v32  ;;  %v2801_v32 = vld [vmem:[%s23486_s0 + $0x5a8] sm:$0xff] }
 0x2d5   : > { %5108 = vmatpush2.bf16.msra.mxu1 %v18248_v33  ;;  %5068 = vmatprep.subr.bf16.mxu0 %v18495_v37  ;;  %v2925_v33 = vld [vmem:[%s23486_s0 + $0x988] sm:$0xff]  ;;  %v1351_v37 = vrot.slane %v23826_v45, %v23911_v30  ;;  %v18313_v43 = vcombine.high %v2797_v31, %v2801_v32  ;;  %v18312_v45 = vcombine.low %v2797_v31, %v2801_v32 }
 0x2d6   : > { %5109 = vmatprep.subr.bf16.mxu1 %v18241_v39  ;;  %v18320_v39 = vcombine.low %v2805_v20, %v2809_v22  ;;  %v18441_v44 = vcombine.high %v2925_v33, %v2929_v36  ;;  %v18440_v53 = vcombine.low %v2925_v33, %v2929_v36  ;;  %v2893_v20 = vld [vmem:[%s23486_s0 + $0x888] sm:$0xff] }
 0x2d7   : > { %v2885_v31 = vld [vmem:[%s23486_s0 + $0x848] sm:$0xff] }
 0x2d8   : > { %5069 = vmatpush2.bf16.msra.mxu0 %v18494_v41  ;;  %v2789_v41 = vld [vmem:[%s23486_s0 + $0x548] sm:$0xff] }
 0x2d9   : > { %5110 = vmatpush2.bf16.msra.mxu1 %v18240_v42  ;;  %5070 = vmatprep.subr.bf16.mxu0 %v18487_v47  ;;  %v2793_v42 = vld [vmem:[%s23486_s0 + $0x568] sm:$0xff] }
 0x2da   : > { %5111 = vmatprep.subr.bf16.mxu1 %v18233_v49  ;;  %v2921_v47 = vld [vmem:[%s23486_s0 + $0x968] sm:$0xff] }
 0x2dc   : > { %5071 = vmatpush2.bf16.msra.mxu0 %v18486_v51 }
 0x2dd   : > { %5112 = vmatpush2.bf16.msra.mxu1 %v18232_v52  ;;  %5072 = vmatprep.subr.bf16.mxu0 %v18479_v57  ;;  %v2909_v57 = vld [vmem:[%s23486_s0 + $0x908] sm:$0xff] }
 0x2de   : > { %5113 = vmatprep.subr.bf16.mxu1 %v18225_v60 }
 0x2e0   : > { %5073 = vmatpush2.bf16.msra.mxu0 %v18478_v62  ;;  %v18305_v62 = vcombine.high %v2789_v41, %v2793_v42 }
 0x2e1   : > { %5114 = vmatpush2.bf16.msra.mxu1 %v18224_v0  ;;  %5074 = vmatprep.subr.bf16.mxu0 %v18471_v4  ;;  %v18433_v0 = vcombine.high %v2917_v46, %v2921_v47  ;;  %v18304_v4 = vcombine.low %v2789_v41, %v2793_v42 }
 0x2e2   : > { %5115 = vmatprep.subr.bf16.mxu1 %v18217_v5  ;;  %v18432_v5 = vcombine.low %v2917_v46, %v2921_v47  ;;  %v2869_v47 = vld [vmem:[%s23486_s0 + $0x7c8] sm:$0xff] }
 0x2e4   : > { %5075 = vmatpush2.bf16.msra.mxu0 %v18470_v7  ;;  %v2777_v7 = vld [vmem:[%s23486_s0 + $0x4e8] sm:$0xff] }
 0x2e5   : > { %5116 = vmatpush2.bf16.msra.mxu1 %v18216_v8  ;;  %5076 = vmatprep.subr.bf16.mxu0 %v18463_v13  ;;  %v2901_v8 = vld [vmem:[%s23486_s0 + $0x8c8] sm:$0xff]  ;;  %v18289_v22 = vcombine.high %v2773_v6, %v2777_v7 }
 0x2e6   : > { %5117 = vmatprep.subr.bf16.mxu1 %v18209_v15  ;;  %v2905_v13 = vld [vmem:[%s23486_s0 + $0x8e8] sm:$0xff]  ;;  %v18296_v15 = vcombine.low %v2781_v54, %v2785_v56 }
 0x2e7   : > { %v18417_v23 = vcombine.high %v2901_v8, %v2905_v13  ;;  %v18416_v27 = vcombine.low %v2901_v8, %v2905_v13  ;;  %v3001_v54 = vld [vmem:[%s23486_s0 + $0xbe8] sm:$0xff] }
 0x2e8   : > { %5077 = vmatpush2.bf16.msra.mxu0 %v18462_v17  ;;  %v2765_v17 = vld [vmem:[%s23486_s0 + $0x488] sm:$0xff] }
 0x2e9   : > { %5118 = vmatpush2.bf16.msra.mxu1 %v18208_v18  ;;  %5078 = vmatprep.subr.bf16.mxu0 %v18455_v24  ;;  %v2769_v18 = vld [vmem:[%s23486_s0 + $0x4a8] sm:$0xff] }
 0x2ea   : > { %5119 = vmatprep.subr.bf16.mxu1 %v18201_v26  ;;  %v2897_v24 = vld [vmem:[%s23486_s0 + $0x8a8] sm:$0xff]  ;;  %v18288_v26 = vcombine.low %v2773_v6, %v2777_v7  ;;  %v18281_v32 = vcombine.high %v2765_v17, %v2769_v18 }
 0x2eb   : > { %v18409_v33 = vcombine.high %v2893_v20, %v2897_v24  ;;  %v18408_v36 = vcombine.low %v2893_v20, %v2897_v24  ;;  %v2853_v6 = vld [vmem:[%s23486_s0 + $0x748] sm:$0xff] }
 0x2ec   : > { %5079 = vmatpush2.bf16.msra.mxu0 %v18454_v28  ;;  %v2757_v28 = vld [vmem:[%s23486_s0 + $0x448] sm:$0xff] }
 0x2ed   : > { %5120 = vmatpush2.bf16.msra.mxu1 %v18200_v29  ;;  %5130 = vmatprep.subr.bf16.mxu0 %v18321_v34  ;;  %v2761_v29 = vld [vmem:[%s23486_s0 + $0x468] sm:$0xff] }
 0x2ee   : > { %5171 = vmatprep.subr.bf16.mxu1 %v18449_v35  ;;  %v2889_v34 = vld [vmem:[%s23486_s0 + $0x868] sm:$0xff]  ;;  %v18280_v35 = vcombine.low %v2765_v17, %v2769_v18  ;;  %v18273_v41 = vcombine.high %v2757_v28, %v2761_v29 }
 0x2ef   : > { %v2490_v49 = vpop.f32.mrf.mxu0  ;;  %5081 = vmatmul.mubr.bf16.vlgmr.msra.gmra.mxu0 %v23586_v59  ;;  %v18401_v42 = vcombine.high %v2885_v31, %v2889_v34  ;;  %v18400_v46 = vcombine.low %v2885_v31, %v2889_v34  ;;  %v2857_v7 = vld [vmem:[%s23486_s0 + $0x768] sm:$0xff] }
 0x2f0   : > { %v2531_v50 = vpop.f32.mrf.mxu1  ;;  %5122 = vmatmul.mubr.bf16.vlgmr.msra.gmra.mxu1 %v23607_v9  ;;  %v23926_v51 = vadd.f32 %v2490_v49, %v23852_v21  ;;  %5131 = vmatpush1.bf16.msra.mxu0 %v18320_v39  ;;  %v2913_v21 = vld [vmem:[%s23486_s0 + $0x928] sm:$0xff]  ;;  %v18369_v18 = vcombine.high %v2853_v6, %v2857_v7 }
 0x2f1   : > { %v23928_v52 = vadd.f32 %v2531_v50, %v1351_v37  ;;  %5172 = vmatpush1.bf16.msra.mxu1 %v18448_v40  ;;  %v2492_v60 = vpop.f32.mrf.mxu0  ;;  %5132 = vmatprep.subr.bf16.mxu0 %v18313_v43  ;;  %v18425_v12 = vcombine.high %v2909_v57, %v2913_v21  ;;  %v18424_v16 = vcombine.low %v2909_v57, %v2913_v21  ;;  %v2749_v37 = vld [vmem:[%s23486_s0 + $0x408] sm:$0xff] }
 0x2f2   : > { %v23933_v61 = vpop.f32.mrf.mxu1  ;;  %5173 = vmatprep.subr.bf16.mxu1 %v18441_v44  ;;  %v23937_v1 = vadd.f32 %v2492_v60, %v23856_v25  ;;  %5162 = vmatprep.mubr.bf16.mxu0 %v23593_v63  ;;  %v2753_v39 = vld [vmem:[%s23486_s0 + $0x428] sm:$0xff]  ;;  %v18272_v44 = vcombine.low %v2757_v28, %v2761_v29 }
 0x2f3   : > { %5203 = vmatprep.mubr.bf16.mxu1 %v23621_v19  ;;  %v2494_v2 = vpop.f32.mrf.mxu0  ;;  %v2877_v40 = vld [vmem:[%s23486_s0 + $0x808] sm:$0xff]  ;;  %v18264_v56 = vcombine.low %v2749_v37, %v2753_v39 }
 0x2f4   : > { %v2535_v3 = vpop.f32.mrf.mxu1  ;;  %5133 = vmatpush1.bf16.msra.mxu0 %v18312_v45  ;;  %v2881_v43 = vld [vmem:[%s23486_s0 + $0x828] sm:$0xff]  ;;  %v18265_v45 = vcombine.high %v2749_v37, %v2753_v39 }
 0x2f5   : > { %5174 = vmatpush1.bf16.msra.mxu1 %v18440_v53  ;;  %v2495_v10 = vpop.f32.mrf.mxu0  ;;  %5134 = vmatprep.subr.bf16.mxu0 %v18305_v62  ;;  %v2873_v49 = vld [vmem:[%s23486_s0 + $0x7e8] sm:$0xff]  ;;  %v18393_v53 = vcombine.high %v2877_v40, %v2881_v43  ;;  %v18392_v57 = vcombine.low %v2877_v40, %v2881_v43 }
 0x2f6   : > { %v2536_v25 = vpop.f32.mrf.mxu1  ;;  %5175 = vmatprep.subr.bf16.mxu1 %v18433_v0  ;;  %v2997_v50 = vld [vmem:[%s23486_s0 + $0xbc8] sm:$0xff]  ;;  %v18385_v21 = vcombine.high %v2869_v47, %v2873_v49 }
 0x2f7   : > { %v2861_v60 = vld [vmem:[%s23486_s0 + $0x788] sm:$0xff]  ;;  %v18513_v2 = vcombine.high %v2997_v50, %v3001_v54 }
 0x2f8   : > { %5135 = vmatpush1.bf16.msra.mxu0 %v18304_v4  ;;  %v2865_v62 = vld [vmem:[%s23486_s0 + $0x7a8] sm:$0xff]  ;;  %v18384_v4 = vcombine.low %v2869_v47, %v2873_v49 }
 0x2f9   : > { %5176 = vmatpush1.bf16.msra.mxu1 %v18432_v5  ;;  %5136 = vmatprep.subr.bf16.mxu0 %v18297_v11  ;;  %v2989_v0 = vld [vmem:[%s23486_s0 + $0xb88] sm:$0xff]  ;;  %v18512_v5 = vcombine.low %v2997_v50, %v3001_v54  ;;  %v18377_v10 = vcombine.high %v2861_v60, %v2865_v62 }
 0x2fa   : > { %5177 = vmatprep.subr.bf16.mxu1 %v18425_v12  ;;  %v2993_v3 = vld [vmem:[%s23486_s0 + $0xba8] sm:$0xff]  ;;  %v18376_v12 = vcombine.low %v2861_v60, %v2865_v62 }
 0x2fb   : > { %v2981_v8 = vld [vmem:[%s23486_s0 + $0xb48] sm:$0xff]  ;;  %v18505_v25 = vcombine.high %v2989_v0, %v2993_v3  ;;  %v18504_v13 = vcombine.low %v2989_v0, %v2993_v3 }
 0x2fc   : > { %5137 = vmatpush1.bf16.msra.mxu0 %v18296_v15  ;;  %v2985_v11 = vld [vmem:[%s23486_s0 + $0xb68] sm:$0xff] }
 0x2fd   : > { %5178 = vmatpush1.bf16.msra.mxu1 %v18424_v16  ;;  %5138 = vmatprep.subr.bf16.mxu0 %v18289_v22  ;;  %v2845_v15 = vld [vmem:[%s23486_s0 + $0x708] sm:$0xff]  ;;  %v18497_v20 = vcombine.high %v2981_v8, %v2985_v11  ;;  %v18496_v24 = vcombine.low %v2981_v8, %v2985_v11 }
 0x2fe   : > { %5179 = vmatprep.subr.bf16.mxu1 %v18417_v23  ;;  %v2849_v16 = vld [vmem:[%s23486_s0 + $0x728] sm:$0xff]  ;;  %v18368_v23 = vcombine.low %v2853_v6, %v2857_v7  ;;  %v2806_v6 = vld [vmem:[%s23486_s0 + $0x5d0] sm:$0xff] }
 0x2ff   : > { %v2973_v17 = vld [vmem:[%s23486_s0 + $0xb08] sm:$0xff]  ;;  %v18361_v29 = vcombine.high %v2845_v15, %v2849_v16 }
 0x300   : > { %5139 = vmatpush1.bf16.msra.mxu0 %v18288_v26  ;;  %v2977_v22 = vld [vmem:[%s23486_s0 + $0xb28] sm:$0xff] }
 0x301   : > { %5180 = vmatpush1.bf16.msra.mxu1 %v18416_v27  ;;  %5140 = vmatprep.subr.bf16.mxu0 %v18281_v32  ;;  %v2837_v26 = vld [vmem:[%s23486_s0 + $0x6c8] sm:$0xff]  ;;  %v18489_v31 = vcombine.high %v2973_v17, %v2977_v22  ;;  %v18488_v34 = vcombine.low %v2973_v17, %v2977_v22  ;;  %v22203_v22 = vld [vmem:[%s23484_s30] sm:$0xf] }
 0x302   : > { %5181 = vmatprep.subr.bf16.mxu1 %v18409_v33  ;;  %v2841_v27 = vld [vmem:[%s23486_s0 + $0x6e8] sm:$0xff]  ;;  %v18360_v33 = vcombine.low %v2845_v15, %v2849_v16  ;;  %v2674_v15 = vld [vmem:[%s23486_s0 + $0x1b0] sm:$0xff] }
 0x303   : > { %v2965_v28 = vld [vmem:[%s23486_s0 + $0xac8] sm:$0xff]  ;;  %v18353_v39 = vcombine.high %v2837_v26, %v2841_v27  ;;  %v2798_v16 = vld [vmem:[%s23486_s0 + $0x590] sm:$0xff] }
 0x304   : > { %5141 = vmatpush1.bf16.msra.mxu0 %v18280_v35  ;;  %v2969_v32 = vld [vmem:[%s23486_s0 + $0xae8] sm:$0xff] }
 0x305   : > { %5182 = vmatpush1.bf16.msra.mxu1 %v18408_v36  ;;  %5142 = vmatprep.subr.bf16.mxu0 %v18273_v41  ;;  %v2829_v35 = vld [vmem:[%s23486_s0 + $0x688] sm:$0xff]  ;;  %v18481_v40 = vcombine.high %v2965_v28, %v2969_v32  ;;  %v18480_v43 = vcombine.low %v2965_v28, %v2969_v32  ;;  %v2666_v28 = vld [vmem:[%s23486_s0 + $0x170] sm:$0xff] }
 0x306   : > { %5183 = vmatprep.subr.bf16.mxu1 %v18401_v42  ;;  %v2833_v36 = vld [vmem:[%s23486_s0 + $0x6a8] sm:$0xff]  ;;  %v18352_v42 = vcombine.low %v2837_v26, %v2841_v27  ;;  %v2662_v27 = vld [vmem:[%s23486_s0 + $0x150] sm:$0xff] }
 0x307   : > { %v2957_v37 = vld [vmem:[%s23486_s0 + $0xa88] sm:$0xff]  ;;  %v18345_v49 = vcombine.high %v2829_v35, %v2833_v36 }
 0x308   : > { %5143 = vmatpush1.bf16.msra.mxu0 %v18272_v44  ;;  %v2961_v41 = vld [vmem:[%s23486_s0 + $0xaa8] sm:$0xff] }
 0x309   : > { %5184 = vmatpush1.bf16.msra.mxu1 %v18400_v46  ;;  %5144 = vmatprep.subr.bf16.mxu0 %v18265_v45  ;;  %v2821_v44 = vld [vmem:[%s23486_s0 + $0x648] sm:$0xff]  ;;  %v18473_v50 = vcombine.high %v2957_v37, %v2961_v41  ;;  %v18472_v54 = vcombine.low %v2957_v37, %v2961_v41  ;;  %v2654_v41 = vld [vmem:[%s23486_s0 + $0x110] sm:$0xff] }
 0x30a   : > { %5185 = vmatprep.subr.bf16.mxu1 %v18393_v53  ;;  %v2825_v46 = vld [vmem:[%s23486_s0 + $0x668] sm:$0xff]  ;;  %v18344_v53 = vcombine.low %v2829_v35, %v2833_v36 }
 0x30b   : > { %v2949_v47 = vld [vmem:[%s23486_s0 + $0xa48] sm:$0xff]  ;;  %v18337_v62 = vcombine.high %v2821_v44, %v2825_v46 }
 0x30c   : > { %5145 = vmatpush1.bf16.msra.mxu0 %v18264_v56  ;;  %v2953_v45 = vld [vmem:[%s23486_s0 + $0xa68] sm:$0xff] }
 0x30d   : > { %5186 = vmatpush1.bf16.msra.mxu1 %v18392_v57  ;;  %5146 = vmatprep.subr.bf16.mxu0 %v18385_v21  ;;  %v2813_v56 = vld [vmem:[%s23486_s0 + $0x608] sm:$0xff]  ;;  %v18465_v0 = vcombine.high %v2949_v47, %v2953_v45  ;;  %v18464_v3 = vcombine.low %v2949_v47, %v2953_v45  ;;  %v18179_v47 = vcombine.high %v2662_v27, %v2666_v28 }
 0x30e   : > { %5187 = vmatprep.subr.bf16.mxu1 %v18513_v2  ;;  %v2817_v57 = vld [vmem:[%s23486_s0 + $0x628] sm:$0xff]  ;;  %v18336_v2 = vcombine.low %v2821_v44, %v2825_v46 }
 0x30f   : > { %v2941_v60 = vld [vmem:[%s23486_s0 + $0xa08] sm:$0xff]  ;;  %v18329_v7 = vcombine.high %v2813_v56, %v2817_v57  ;;  %v18328_v11 = vcombine.low %v2813_v56, %v2817_v57  ;;  %v18178_v56 = vcombine.low %v2662_v27, %v2666_v28 }
 0x310   : > { %5147 = vmatpush2.bf16.msra.mxu0 %v18384_v4  ;;  %v2945_v21 = vld [vmem:[%s23486_s0 + $0xa28] sm:$0xff]  ;;  %v2678_v4 = vld [vmem:[%s23486_s0 + $0x1d0] sm:$0xff] }
 0x311   : > { %5188 = vmatpush2.bf16.msra.mxu1 %v18512_v5  ;;  %5148 = vmatprep.subr.bf16.mxu0 %v18377_v10  ;;  %v2682_v5 = vld [vmem:[%s23486_s0 + $0x1f0] sm:$0xff]  ;;  %v18457_v8 = vcombine.high %v2941_v60, %v2945_v21 }
 0x312   : > { %5189 = vmatprep.subr.bf16.mxu1 %v18505_v25  ;;  %v2810_v10 = vld [vmem:[%s23486_s0 + $0x5f0] sm:$0xff]  ;;  %v23994_v25 = vsub.s32 3, %v23563_v38  ;;  %v18195_v17 = vcombine.high %v2678_v4, %v2682_v5 }
 0x313   : > { %v18322_v26 = vcombine.low %v2806_v6, %v2810_v10 }
 0x314   : > { %5149 = vmatpush2.bf16.msra.mxu0 %v18376_v12  ;;  %v18456_v12 = vcombine.low %v2941_v60, %v2945_v21  ;;  %v2646_v60 = vld [vmem:[%s23486_s0 + $0xd0] sm:$0xff] }
 0x315   : > { %5190 = vmatpush2.bf16.msra.mxu1 %v18504_v13  ;;  %5150 = vmatprep.subr.bf16.mxu0 %v18369_v18  ;;  %v2670_v13 = vld [vmem:[%s23486_s0 + $0x190] sm:$0xff]  ;;  %v18323_v18 = vcombine.high %v2806_v6, %v2810_v10 }
 0x316   : > { %5191 = vmatprep.subr.bf16.mxu1 %v18497_v20  ;;  %v2802_v20 = vld [vmem:[%s23486_s0 + $0x5b0] sm:$0xff]  ;;  %v18186_v36 = vcombine.low %v2670_v13, %v2674_v15 }
 0x317   : > { %v18315_v32 = vcombine.high %v2798_v16, %v2802_v20  ;;  %v2642_v10 = vld [vmem:[%s23486_s0 + $0xb0] sm:$0xff] }
 0x318   : > { %5151 = vmatpush2.bf16.msra.mxu0 %v18368_v23  ;;  %v1355_v23 = vrot.slane %v22203_v22, %v23994_v25  ;;  %v2758_v22 = vld [vmem:[%s23486_s0 + $0x450] sm:$0xff] }
 0x319   : > { %5192 = vmatpush2.bf16.msra.mxu1 %v18496_v24  ;;  %5152 = vmatprep.subr.bf16.mxu0 %v18361_v29  ;;  %v18194_v24 = vcombine.low %v2678_v4, %v2682_v5  ;;  %v2790_v29 = vld [vmem:[%s23486_s0 + $0x550] sm:$0xff] }
 0x31a   : > { %5193 = vmatprep.subr.bf16.mxu1 %v18489_v31  ;;  %v18187_v31 = vcombine.high %v2670_v13, %v2674_v15  ;;  %v2534_v37 = vadd.f32 %v23933_v61, %v1355_v23  ;;  %v2778_v5 = vld [vmem:[%s23486_s0 + $0x4f0] sm:$0xff] }
 0x31b   : > { %v2770_v15 = vld [vmem:[%s23486_s0 + $0x4b0] sm:$0xff] }
 0x31c   : > { %5153 = vmatpush2.bf16.msra.mxu0 %v18360_v33  ;;  %v2794_v33 = vld [vmem:[%s23486_s0 + $0x570] sm:$0xff] }
 0x31d   : > { %5194 = vmatpush2.bf16.msra.mxu1 %v18488_v34  ;;  %5154 = vmatprep.subr.bf16.mxu0 %v18353_v39  ;;  %v18306_v57 = vcombine.low %v2790_v29, %v2794_v33 }
 0x31e   : > { %5195 = vmatprep.subr.bf16.mxu1 %v18481_v40  ;;  %v18314_v40 = vcombine.low %v2798_v16, %v2802_v20  ;;  %v2634_v20 = vld [vmem:[%s23486_s0 + $0x70] sm:$0xff] }
 0x320   : > { %5155 = vmatpush2.bf16.msra.mxu0 %v18352_v42  ;;  %v2658_v42 = vld [vmem:[%s23486_s0 + $0x130] sm:$0xff] }
 0x321   : > { %5196 = vmatpush2.bf16.msra.mxu1 %v18480_v43  ;;  %5156 = vmatprep.subr.bf16.mxu0 %v18345_v49  ;;  %v2782_v43 = vld [vmem:[%s23486_s0 + $0x510] sm:$0xff]  ;;  %v18307_v49 = vcombine.high %v2790_v29, %v2794_v33  ;;  %v18170_v6 = vcombine.low %v2654_v41, %v2658_v42 }
 0x322   : > { %5197 = vmatprep.subr.bf16.mxu1 %v18473_v50  ;;  %v2786_v50 = vld [vmem:[%s23486_s0 + $0x530] sm:$0xff] }
 0x323   : > { %v18299_v4 = vcombine.high %v2782_v43, %v2786_v50  ;;  %v2622_v29 = vld [vmem:[%s23486_s0 + $0x10] sm:$0xff] }
 0x324   : > { %5157 = vmatpush2.bf16.msra.mxu0 %v18344_v53 }
 0x325   : > { %5198 = vmatpush2.bf16.msra.mxu1 %v18472_v54  ;;  %5158 = vmatprep.subr.bf16.mxu0 %v18337_v62  ;;  %v2650_v62 = vld [vmem:[%s23486_s0 + $0xf0] sm:$0xff] }
 0x326   : > { %5199 = vmatprep.subr.bf16.mxu1 %v18465_v0  ;;  %v2774_v0 = vld [vmem:[%s23486_s0 + $0x4d0] sm:$0xff]  ;;  %v18162_v16 = vcombine.low %v2646_v60, %v2650_v62 }
 0x327   : > { %v18291_v13 = vcombine.high %v2774_v0, %v2778_v5 }
 0x328   : > { %5159 = vmatpush2.bf16.msra.mxu0 %v18336_v2 }
 0x329   : > { %5200 = vmatpush2.bf16.msra.mxu1 %v18464_v3  ;;  %5160 = vmatprep.subr.bf16.mxu0 %v18329_v7  ;;  %v18171_v3 = vcombine.high %v2654_v41, %v2658_v42  ;;  %v18298_v7 = vcombine.low %v2782_v43, %v2786_v50  ;;  %v2870_v41 = vld [vmem:[%s23486_s0 + $0x7d0] sm:$0xff] }
 0x32a   : > { %5201 = vmatprep.subr.bf16.mxu1 %v18457_v8  ;;  %v2638_v8 = vld [vmem:[%s23486_s0 + $0x90] sm:$0xff] }
 0x32b   : > { %v18155_v23 = vcombine.high %v2638_v8, %v2642_v10  ;;  %v18154_v27 = vcombine.low %v2638_v8, %v2642_v10  ;;  %v2738_v50 = vld [vmem:[%s23486_s0 + $0x3b0] sm:$0xff] }
 0x32c   : > { %5161 = vmatpush2.bf16.msra.mxu0 %v18328_v11  ;;  %v2766_v11 = vld [vmem:[%s23486_s0 + $0x490] sm:$0xff] }
 0x32d   : > { %5202 = vmatpush2.bf16.msra.mxu1 %v18456_v12  ;;  %5212 = vmatprep.subr.bf16.mxu0 %v18195_v17  ;;  %v18163_v12 = vcombine.high %v2646_v60, %v2650_v62  ;;  %v18290_v17 = vcombine.low %v2774_v0, %v2778_v5  ;;  %v18282_v28 = vcombine.low %v2766_v11, %v2770_v15  ;;  %v2726_v62 = vld [vmem:[%s23486_s0 + $0x350] sm:$0xff] }
 0x32e   : > { %5253 = vmatprep.subr.bf16.mxu1 %v18323_v18  ;;  %v2630_v18 = vld [vmem:[%s23486_s0 + $0x50] sm:$0xff] }
 0x32f   : > { %v2572_v34 = vpop.f32.mrf.mxu0  ;;  %5163 = vmatmul.mubr.bf16.vlgmr.msra.gmra.mxu0 %v23614_v14  ;;  %v18147_v33 = vcombine.high %v2630_v18, %v2634_v20  ;;  %v2730_v0 = vld [vmem:[%s23486_s0 + $0x370] sm:$0xff] }
 0x330   : > { %v2613_v35 = vpop.f32.mrf.mxu1  ;;  %5204 = vmatmul.mubr.bf16.vlgmr.msra.gmra.mxu1 %v23586_v59  ;;  %v2573_v39 = vadd.f32 %v2572_v34, %v23928_v52  ;;  %5213 = vmatpush1.bf16.msra.mxu0 %v18194_v24  ;;  %v18283_v24 = vcombine.high %v2766_v11, %v2770_v15  ;;  %v2722_v8 = vld [vmem:[%s23486_s0 + $0x330] sm:$0xff]  ;;  %v18243_v11 = vcombine.high %v2726_v62, %v2730_v0 }
 0x331   : > { %5254 = vmatpush1.bf16.msra.mxu1 %v18322_v26  ;;  %v2574_v44 = vpop.f32.mrf.mxu0  ;;  %5214 = vmatprep.subr.bf16.mxu0 %v18187_v31  ;;  %v2762_v26 = vld [vmem:[%s23486_s0 + $0x470] sm:$0xff]  ;;  %v18242_v15 = vcombine.low %v2726_v62, %v2730_v0  ;;  %v2679_v0 = vld [vmem:[%s23486_s0 + $0x1d8] sm:$0xff] }
 0x332   : > { %v2615_v46 = vpop.f32.mrf.mxu1  ;;  %5255 = vmatprep.subr.bf16.mxu1 %v18315_v32  ;;  %v24014_v45 = vadd.f32 %v2613_v35, %v2573_v39  ;;  %v2575_v61 = vadd.f32 %v2574_v44, %v2534_v37  ;;  %5244 = vmatprep.mubr.bf16.mxu0 %v23583_v58  ;;  %v2626_v31 = vld [vmem:[%s23486_s0 + $0x30] sm:$0xff]  ;;  %v18275_v34 = vcombine.high %v2758_v22, %v2762_v26 }
 0x333   : > { %5285 = vmatprep.mubr.bf16.mxu1 %v23593_v63  ;;  %v2576_v52 = vpop.f32.mrf.mxu0  ;;  %v2750_v32 = vld [vmem:[%s23486_s0 + $0x410] sm:$0xff]  ;;  %v18274_v37 = vcombine.low %v2758_v22, %v2762_v26  ;;  %v18139_v42 = vcombine.high %v2622_v29, %v2626_v31 }
 0x334   : > { %v2617_v53 = vpop.f32.mrf.mxu1  ;;  %v24018_v54 = vadd.f32 %v2615_v46, %v2575_v61  ;;  %5215 = vmatpush1.bf16.msra.mxu0 %v18186_v36  ;;  %v2754_v35 = vld [vmem:[%s23486_s0 + $0x430] sm:$0xff]  ;;  %v18146_v36 = vcombine.low %v2630_v18, %v2634_v20  ;;  %v18138_v46 = vcombine.low %v2622_v29, %v2626_v31 }
 0x335   : > { %5256 = vmatpush1.bf16.msra.mxu1 %v18314_v40  ;;  %v2577_v21 = vpop.f32.mrf.mxu0  ;;  %5216 = vmatprep.subr.bf16.mxu0 %v18179_v47  ;;  %v2742_v39 = vld [vmem:[%s23486_s0 + $0x3d0] sm:$0xff]  ;;  %v18267_v43 = vcombine.high %v2750_v32, %v2754_v35  ;;  %v18266_v47 = vcombine.low %v2750_v32, %v2754_v35 }
 0x336   : > { %v2618_v2 = vpop.f32.mrf.mxu1  ;;  %5257 = vmatprep.subr.bf16.mxu1 %v18307_v49  ;;  %v2746_v40 = vld [vmem:[%s23486_s0 + $0x3f0] sm:$0xff] }
 0x337   : > { %v2874_v44 = vld [vmem:[%s23486_s0 + $0x7f0] sm:$0xff]  ;;  %v18259_v52 = vcombine.high %v2742_v39, %v2746_v40 }
 0x338   : > { %5217 = vmatpush1.bf16.msra.mxu0 %v18178_v56  ;;  %v2734_v49 = vld [vmem:[%s23486_s0 + $0x390] sm:$0xff]  ;;  %v18387_v53 = vcombine.high %v2870_v41, %v2874_v44  ;;  %v18386_v60 = vcombine.low %v2870_v41, %v2874_v44 }
 0x339   : > { %5258 = vmatpush1.bf16.msra.mxu1 %v18306_v57  ;;  %5218 = vmatprep.subr.bf16.mxu0 %v18171_v3  ;;  %v2862_v61 = vld [vmem:[%s23486_s0 + $0x790] sm:$0xff]  ;;  %v18258_v57 = vcombine.low %v2742_v39, %v2746_v40  ;;  %v18251_v2 = vcombine.high %v2734_v49, %v2738_v50  ;;  %v18250_v5 = vcombine.low %v2734_v49, %v2738_v50 }
 0x33a   : > { %5259 = vmatprep.subr.bf16.mxu1 %v18299_v4  ;;  %v2866_v56 = vld [vmem:[%s23486_s0 + $0x7b0] sm:$0xff] }
 0x33b   : > { %v2854_v21 = vld [vmem:[%s23486_s0 + $0x750] sm:$0xff]  ;;  %v18379_v3 = vcombine.high %v2862_v61, %v2866_v56 }
 0x33c   : > { %5219 = vmatpush1.bf16.msra.mxu0 %v18170_v6  ;;  %v2858_v4 = vld [vmem:[%s23486_s0 + $0x770] sm:$0xff]  ;;  %v18378_v6 = vcombine.low %v2862_v61, %v2866_v56 }
 0x33d   : > { %5260 = vmatpush1.bf16.msra.mxu1 %v18298_v7  ;;  %5220 = vmatprep.subr.bf16.mxu0 %v18163_v12  ;;  %v2718_v7 = vld [vmem:[%s23486_s0 + $0x310] sm:$0xff]  ;;  %v18371_v12 = vcombine.high %v2854_v21, %v2858_v4 }
 0x33e   : > { %5261 = vmatprep.subr.bf16.mxu1 %v18291_v13  ;;  %v2846_v10 = vld [vmem:[%s23486_s0 + $0x710] sm:$0xff]  ;;  %v18235_v22 = vcombine.high %v2718_v7, %v2722_v8  ;;  %v18234_v26 = vcombine.low %v2718_v7, %v2722_v8 }
 0x33f   : > { %v2850_v13 = vld [vmem:[%s23486_s0 + $0x730] sm:$0xff] }
 0x340   : > { %5221 = vmatpush1.bf16.msra.mxu0 %v18162_v16  ;;  %v18370_v16 = vcombine.low %v2854_v21, %v2858_v4  ;;  %v2714_v18 = vld [vmem:[%s23486_s0 + $0x2f0] sm:$0xff]  ;;  %v3004_v4 = vld [vmem:[%s23492_s26] sm:$0xff] }
 0x341   : > { %5262 = vmatpush1.bf16.msra.mxu1 %v18290_v17  ;;  %5222 = vmatprep.subr.bf16.mxu0 %v18155_v23  ;;  %v2710_v17 = vld [vmem:[%s23486_s0 + $0x2d0] sm:$0xff]  ;;  %v18363_v23 = vcombine.high %v2846_v10, %v2850_v13 }
 0x342   : > { %5263 = vmatprep.subr.bf16.mxu1 %v18283_v24  ;;  %v2838_v20 = vld [vmem:[%s23486_s0 + $0x6d0] sm:$0xff]  ;;  %v18227_v32 = vcombine.high %v2710_v17, %v2714_v18  ;;  %v18226_v35 = vcombine.low %v2710_v17, %v2714_v18 }
 0x343   : > { %v2842_v24 = vld [vmem:[%s23486_s0 + $0x6f0] sm:$0xff] }
 0x344   : > { %5223 = vmatpush1.bf16.msra.mxu0 %v18154_v27  ;;  %v18362_v27 = vcombine.low %v2846_v10, %v2850_v13  ;;  %v2706_v29 = vld [vmem:[%s23486_s0 + $0x2b0] sm:$0xff]  ;;  %v2671_v10 = vld [vmem:[%s23486_s0 + $0x198] sm:$0xff] }
 0x345   : > { %5264 = vmatpush1.bf16.msra.mxu1 %v18282_v28  ;;  %5224 = vmatprep.subr.bf16.mxu0 %v18147_v33  ;;  %v2702_v28 = vld [vmem:[%s23486_s0 + $0x290] sm:$0xff]  ;;  %v18355_v33 = vcombine.high %v2838_v20, %v2842_v24  ;;  %v2675_v13 = vld [vmem:[%s23486_s0 + $0x1b8] sm:$0xff] }
 0x346   : > { %5265 = vmatprep.subr.bf16.mxu1 %v18275_v34  ;;  %v2830_v31 = vld [vmem:[%s23486_s0 + $0x690] sm:$0xff]  ;;  %v18219_v41 = vcombine.high %v2702_v28, %v2706_v29  ;;  %v18218_v44 = vcombine.low %v2702_v28, %v2706_v29 }
 0x347   : > { %v2834_v34 = vld [vmem:[%s23486_s0 + $0x6b0] sm:$0xff] }
 0x348   : > { %5225 = vmatpush1.bf16.msra.mxu0 %v18146_v36  ;;  %v18354_v36 = vcombine.low %v2838_v20, %v2842_v24  ;;  %v2698_v39 = vld [vmem:[%s23486_s0 + $0x270] sm:$0xff]  ;;  %v18189_v20 = vcombine.high %v2671_v10, %v2675_v13  ;;  %v3013_v24 = vrot.slane %v3004_v4, %v23836_v55 }
 0x349   : > { %5266 = vmatpush1.bf16.msra.mxu1 %v18274_v37  ;;  %5226 = vmatprep.subr.bf16.mxu0 %v18139_v42  ;;  %v2694_v37 = vld [vmem:[%s23486_s0 + $0x250] sm:$0xff]  ;;  %v18347_v42 = vcombine.high %v2830_v31, %v2834_v34 }
 0x34a   : > { %5267 = vmatprep.subr.bf16.mxu1 %v18267_v43  ;;  %v2822_v40 = vld [vmem:[%s23486_s0 + $0x650] sm:$0xff]  ;;  %v18211_v61 = vcombine.high %v2694_v37, %v2698_v39  ;;  %v18210_v56 = vcombine.low %v2694_v37, %v2698_v39 }
 0x34b   : > { %v2826_v43 = vld [vmem:[%s23486_s0 + $0x670] sm:$0xff] }
 0x34c   : > { %5227 = vmatpush1.bf16.msra.mxu0 %v18138_v46  ;;  %v18346_v46 = vcombine.low %v2830_v31, %v2834_v34  ;;  %v2690_v49 = vld [vmem:[%s23486_s0 + $0x230] sm:$0xff] }
 0x34d   : > { %5268 = vmatpush1.bf16.msra.mxu1 %v18266_v47  ;;  %5228 = vmatprep.subr.bf16.mxu0 %v18259_v52  ;;  %v2686_v47 = vld [vmem:[%s23486_s0 + $0x210] sm:$0xff]  ;;  %v18339_v52 = vcombine.high %v2822_v40, %v2826_v43 }
 0x34e   : > { %5269 = vmatprep.subr.bf16.mxu1 %v18387_v53  ;;  %v2814_v50 = vld [vmem:[%s23486_s0 + $0x610] sm:$0xff]  ;;  %v18203_v21 = vcombine.high %v2686_v47, %v2690_v49 }
 0x34f   : > { %v2818_v53 = vld [vmem:[%s23486_s0 + $0x630] sm:$0xff] }
 0x350   : > { %5229 = vmatpush2.bf16.msra.mxu0 %v18258_v57  ;;  %v18338_v57 = vcombine.low %v2822_v40, %v2826_v43  ;;  %v2938_v62 = vld [vmem:[%s23486_s0 + $0x9f0] sm:$0xff]  ;;  %v2655_v43 = vld [vmem:[%s23486_s0 + $0x118] sm:$0xff] }
 0x351   : > { %5270 = vmatpush2.bf16.msra.mxu1 %v18386_v60  ;;  %5230 = vmatprep.subr.bf16.mxu0 %v18251_v2  ;;  %v2934_v60 = vld [vmem:[%s23486_s0 + $0x9d0] sm:$0xff]  ;;  %v18331_v2 = vcombine.high %v2814_v50, %v2818_v53 }
 0x352   : > { %5271 = vmatprep.subr.bf16.mxu1 %v18379_v3  ;;  %v2683_v3 = vld [vmem:[%s23486_s0 + $0x1f8] sm:$0xff]  ;;  %v2926_v7 = vld [vmem:[%s23486_s0 + $0x990] sm:$0xff] }
 0x353   : > { %v2930_v8 = vld [vmem:[%s23486_s0 + $0x9b0] sm:$0xff]  ;;  %v18196_v17 = vcombine.low %v2679_v0, %v2683_v3 }
 0x354   : > { %5231 = vmatpush2.bf16.msra.mxu0 %v18250_v5  ;;  %v18202_v5 = vcombine.low %v2686_v47, %v2690_v49  ;;  %v18443_v18 = vcombine.high %v2926_v7, %v2930_v8  ;;  %v2910_v34 = vld [vmem:[%s23486_s0 + $0x910] sm:$0xff] }
 0x355   : > { %5272 = vmatpush2.bf16.msra.mxu1 %v18378_v6  ;;  %5232 = vmatprep.subr.bf16.mxu0 %v18243_v11  ;;  %v18330_v6 = vcombine.low %v2814_v50, %v2818_v53  ;;  %v18451_v11 = vcombine.high %v2934_v60, %v2938_v62 }
 0x356   : > { %5273 = vmatprep.subr.bf16.mxu1 %v18371_v12  ;;  %v18197_v12 = vcombine.high %v2679_v0, %v2683_v3  ;;  %v2651_v0 = vld [vmem:[%s23486_s0 + $0xf8] sm:$0xff] }
 0x358   : > { %5233 = vmatpush2.bf16.msra.mxu0 %v18242_v15  ;;  %v3009_v15 = vrot.slane %v3004_v4, %v23829_v48 }
 0x359   : > { %5274 = vmatpush2.bf16.msra.mxu1 %v18370_v16  ;;  %5234 = vmatprep.subr.bf16.mxu0 %v18235_v22  ;;  %v18450_v16 = vcombine.low %v2934_v60, %v2938_v62  ;;  %v2918_v22 = vld [vmem:[%s23486_s0 + $0x950] sm:$0xff]  ;;  %v2647_v62 = vld [vmem:[%s23486_s0 + $0xd8] sm:$0xff] }
 0x35a   : > { %5275 = vmatprep.subr.bf16.mxu1 %v18363_v23  ;;  %v2922_v23 = vld [vmem:[%s23486_s0 + $0x970] sm:$0xff]  ;;  %v18165_v4 = vcombine.high %v2647_v62, %v2651_v0 }
 0x35b   : > { %v18435_v39 = vcombine.high %v2918_v22, %v2922_v23  ;;  %v18434_v50 = vcombine.low %v2918_v22, %v2922_v23  ;;  %v2906_v60 = vld [vmem:[%s23486_s0 + $0x8f0] sm:$0xff] }
 0x35c   : > { %5235 = vmatpush2.bf16.msra.mxu0 %v18234_v26  ;;  %v2663_v26 = vld [vmem:[%s23486_s0 + $0x158] sm:$0xff] }
 0x35d   : > { %5276 = vmatpush2.bf16.msra.mxu1 %v18362_v27  ;;  %5236 = vmatprep.subr.bf16.mxu0 %v18227_v32  ;;  %v2667_v27 = vld [vmem:[%s23486_s0 + $0x178] sm:$0xff]  ;;  %v18442_v32 = vcombine.low %v2926_v7, %v2930_v8 }
 0x35e   : > { %5277 = vmatprep.subr.bf16.mxu1 %v18355_v33  ;;  %v18188_v33 = vcombine.low %v2671_v10, %v2675_v13  ;;  %v18181_v40 = vcombine.high %v2663_v26, %v2667_v27  ;;  %v2639_v7 = vld [vmem:[%s23486_s0 + $0x98] sm:$0xff] }
 0x35f   : > { %v2643_v8 = vld [vmem:[%s23486_s0 + $0xb8] sm:$0xff] }
 0x360   : > { %5237 = vmatpush2.bf16.msra.mxu0 %v18226_v35  ;;  %v2914_v35 = vld [vmem:[%s23486_s0 + $0x930] sm:$0xff]  ;;  %v18157_v13 = vcombine.high %v2639_v7, %v2643_v8  ;;  %v18156_v22 = vcombine.low %v2639_v7, %v2643_v8  ;;  %v2719_v7 = vld [vmem:[%s23486_s0 + $0x318] sm:$0xff] }
 0x361   : > { %5278 = vmatpush2.bf16.msra.mxu1 %v18354_v36  ;;  %5238 = vmatprep.subr.bf16.mxu0 %v18219_v41  ;;  %v2723_v8 = vld [vmem:[%s23486_s0 + $0x338] sm:$0xff] }
 0x362   : > { %5279 = vmatprep.subr.bf16.mxu1 %v18347_v42 }
 0x364   : > { %5239 = vmatpush2.bf16.msra.mxu0 %v18218_v44  ;;  %v2659_v44 = vld [vmem:[%s23486_s0 + $0x138] sm:$0xff] }
 0x365   : > { %5280 = vmatpush2.bf16.msra.mxu1 %v18346_v46  ;;  %5240 = vmatprep.subr.bf16.mxu0 %v18211_v61  ;;  %v18180_v61 = vcombine.low %v2663_v26, %v2667_v27  ;;  %v2878_v26 = vld [vmem:[%s23486_s0 + $0x810] sm:$0xff] }
 0x366   : > { %5281 = vmatprep.subr.bf16.mxu1 %v18339_v52  ;;  %v2902_v52 = vld [vmem:[%s23486_s0 + $0x8d0] sm:$0xff] }
 0x367   : > { %v18419_v3 = vcombine.high %v2902_v52, %v2906_v60  ;;  %v18418_v10 = vcombine.low %v2902_v52, %v2906_v60  ;;  %v2882_v27 = vld [vmem:[%s23486_s0 + $0x830] sm:$0xff] }
 0x368   : > { %5241 = vmatpush2.bf16.msra.mxu0 %v18210_v56  ;;  %v2986_v60 = vld [vmem:[%s23486_s0 + $0xb70] sm:$0xff] }
 0x369   : > { %5282 = vmatpush2.bf16.msra.mxu1 %v18338_v57  ;;  %5242 = vmatprep.subr.bf16.mxu0 %v18203_v21  ;;  %v18427_v57 = vcombine.high %v2910_v34, %v2914_v35  ;;  %v18426_v21 = vcombine.low %v2910_v34, %v2914_v35  ;;  %v2998_v35 = vld [vmem:[%s23486_s0 + $0xbd0] sm:$0xff] }
 0x36a   : > { %5283 = vmatprep.subr.bf16.mxu1 %v18331_v2  ;;  %v18172_v2 = vcombine.low %v2655_v43, %v2659_v44 }
 0x36c   : > { %5243 = vmatpush2.bf16.msra.mxu0 %v18202_v5  ;;  %v2894_v5 = vld [vmem:[%s23486_s0 + $0x890] sm:$0xff] }
 0x36d   : > { %5284 = vmatpush2.bf16.msra.mxu1 %v18330_v6  ;;  %5294 = vmatprep.subr.bf16.mxu0 %v18451_v11  ;;  %v2898_v6 = vld [vmem:[%s23486_s0 + $0x8b0] sm:$0xff]  ;;  %v18164_v11 = vcombine.low %v2647_v62, %v2651_v0  ;;  %v2727_v62 = vld [vmem:[%s23486_s0 + $0x358] sm:$0xff] }
 0x36e   : > { %5335 = vmatprep.subr.bf16.mxu1 %v18197_v12  ;;  %v18411_v12 = vcombine.high %v2894_v5, %v2898_v6  ;;  %v2731_v0 = vld [vmem:[%s23486_s0 + $0x378] sm:$0xff] }
 0x36f   : > { %v5000_v28 = vpop.f32.mrf.mxu0  ;;  %5245 = vmatmul.mubr.bf16.vlgmr.msra.gmra.mxu0 %v23607_v9 }
 0x370   : > { %v5041_v29 = vpop.f32.mrf.mxu1  ;;  %5286 = vmatmul.mubr.bf16.vlgmr.msra.gmra.mxu1 %v23614_v14  ;;  %v5001_v31 = vadd.f32 %v5000_v28, %v3009_v15  ;;  %5295 = vmatpush1.bf16.msra.mxu0 %v18450_v16  ;;  %v2886_v15 = vld [vmem:[%s23486_s0 + $0x850] sm:$0xff]  ;;  %v2623_v28 = vld [vmem:[%s23486_s0 + $0x18] sm:$0xff] }
 0x371   : > { %5336 = vmatpush1.bf16.msra.mxu1 %v18196_v17  ;;  %v5002_v36 = vpop.f32.mrf.mxu0  ;;  %5296 = vmatprep.subr.bf16.mxu0 %v18443_v18  ;;  %v2890_v16 = vld [vmem:[%s23486_s0 + $0x870] sm:$0xff]  ;;  %v2631_v17 = vld [vmem:[%s23486_s0 + $0x58] sm:$0xff] }
 0x372   : > { %v5043_v37 = vpop.f32.mrf.mxu1  ;;  %5337 = vmatprep.subr.bf16.mxu1 %v18189_v20  ;;  %v24087_v41 = vadd.f32 %v5041_v29, %v5001_v31  ;;  %v5003_v42 = vadd.f32 %v5002_v36, %v3013_v24  ;;  %5326 = vmatprep.mubr.bf16.mxu0 %v23621_v19  ;;  %v2635_v18 = vld [vmem:[%s23486_s0 + $0x78] sm:$0xff]  ;;  %v18410_v20 = vcombine.low %v2894_v5, %v2898_v6  ;;  %v3002_v36 = vld [vmem:[%s23486_s0 + $0xbf0] sm:$0xff] }
 0x373   : > { %5367 = vmatprep.mubr.bf16.mxu1 %v23583_v58  ;;  %v5004_v46 = vpop.f32.mrf.mxu0  ;;  %v18173_v58 = vcombine.high %v2655_v43, %v2659_v44  ;;  %v18403_v23 = vcombine.high %v2886_v15, %v2890_v16  ;;  %v18149_v24 = vcombine.high %v2631_v17, %v2635_v18  ;;  %v2627_v29 = vld [vmem:[%s23486_s0 + $0x38] sm:$0xff]  ;;  %v18402_v31 = vcombine.low %v2886_v15, %v2890_v16  ;;  %v2974_v5 = vld [vmem:[%s23486_s0 + $0xb10] sm:$0xff] }
 0x374   : > { %v5045_v47 = vpop.f32.mrf.mxu1  ;;  %v24093_v49 = vadd.f32 %v5043_v37, %v5003_v42  ;;  %5297 = vmatpush1.bf16.msra.mxu0 %v18442_v32  ;;  %v18148_v32 = vcombine.low %v2631_v17, %v2635_v18  ;;  %v18141_v34 = vcombine.high %v2623_v28, %v2627_v29  ;;  %v2743_v37 = vld [vmem:[%s23486_s0 + $0x3d8] sm:$0xff]  ;;  %v18140_v42 = vcombine.low %v2623_v28, %v2627_v29  ;;  %v2990_v46 = vld [vmem:[%s23486_s0 + $0xb90] sm:$0xff] }
 0x375   : > { %5338 = vmatpush1.bf16.msra.mxu1 %v18188_v33  ;;  %v5005_v53 = vpop.f32.mrf.mxu0  ;;  %5298 = vmatprep.subr.bf16.mxu0 %v18435_v39  ;;  %v18395_v33 = vcombine.high %v2878_v26, %v2882_v27  ;;  %v2747_v39 = vld [vmem:[%s23486_s0 + $0x3f8] sm:$0xff]  ;;  %v18515_v43 = vcombine.high %v2998_v35, %v3002_v36  ;;  %v2994_v47 = vld [vmem:[%s23486_s0 + $0xbb0] sm:$0xff]  ;;  %v18514_v52 = vcombine.low %v2998_v35, %v3002_v36 }
 0x376   : > { %v5046_v56 = vpop.f32.mrf.mxu1  ;;  %5339 = vmatprep.subr.bf16.mxu1 %v18181_v40  ;;  %v18394_v40 = vcombine.low %v2878_v26, %v2882_v27  ;;  %v18261_v44 = vcombine.high %v2743_v37, %v2747_v39  ;;  %v18260_v53 = vcombine.low %v2743_v37, %v2747_v39  ;;  %v2978_v6 = vld [vmem:[%s23486_s0 + $0xb30] sm:$0xff]  ;;  %v2711_v17 = vld [vmem:[%s23486_s0 + $0x2d8] sm:$0xff] }
 0x377   : > { %v18507_v56 = vcombine.high %v2990_v46, %v2994_v47  ;;  %v2966_v15 = vld [vmem:[%s23486_s0 + $0xad0] sm:$0xff]  ;;  %v2715_v18 = vld [vmem:[%s23486_s0 + $0x2f8] sm:$0xff] }
 0x378   : > { %5299 = vmatpush1.bf16.msra.mxu0 %v18434_v50  ;;  %v2735_v50 = vld [vmem:[%s23486_s0 + $0x398] sm:$0xff]  ;;  %v2970_v16 = vld [vmem:[%s23486_s0 + $0xaf0] sm:$0xff] }
 0x379   : > { %5340 = vmatpush1.bf16.msra.mxu1 %v18180_v61  ;;  %5300 = vmatprep.subr.bf16.mxu0 %v18427_v57  ;;  %v2739_v61 = vld [vmem:[%s23486_s0 + $0x3b8] sm:$0xff]  ;;  %v2958_v26 = vld [vmem:[%s23486_s0 + $0xa90] sm:$0xff] }
 0x37a   : > { %5341 = vmatprep.subr.bf16.mxu1 %v18173_v58  ;;  %v18253_v57 = vcombine.high %v2735_v50, %v2739_v61  ;;  %v2982_v58 = vld [vmem:[%s23486_s0 + $0xb50] sm:$0xff]  ;;  %v2703_v28 = vld [vmem:[%s23486_s0 + $0x298] sm:$0xff] }
 0x37b   : > { %v2962_v27 = vld [vmem:[%s23486_s0 + $0xab0] sm:$0xff]  ;;  %v2707_v29 = vld [vmem:[%s23486_s0 + $0x2b8] sm:$0xff] }
 0x37c   : > { %5301 = vmatpush1.bf16.msra.mxu0 %v18426_v21  ;;  %v18506_v21 = vcombine.low %v2990_v46, %v2994_v47  ;;  %v2950_v35 = vld [vmem:[%s23486_s0 + $0xa50] sm:$0xff]  ;;  %v2695_v37 = vld [vmem:[%s23486_s0 + $0x258] sm:$0xff] }
 0x37d   : > { %5342 = vmatpush1.bf16.msra.mxu1 %v18172_v2  ;;  %5302 = vmatprep.subr.bf16.mxu0 %v18419_v3  ;;  %v18252_v2 = vcombine.low %v2735_v50, %v2739_v61  ;;  %v18499_v3 = vcombine.high %v2982_v58, %v2986_v60  ;;  %v2954_v36 = vld [vmem:[%s23486_s0 + $0xa70] sm:$0xff]  ;;  %v2699_v39 = vld [vmem:[%s23486_s0 + $0x278] sm:$0xff] }
 0x37e   : > { %5343 = vmatprep.subr.bf16.mxu1 %v18165_v4  ;;  %v18245_v4 = vcombine.high %v2727_v62, %v2731_v0  ;;  %v2942_v46 = vld [vmem:[%s23486_s0 + $0xa10] sm:$0xff]  ;;  %v2687_v50 = vld [vmem:[%s23486_s0 + $0x218] sm:$0xff] }
 0x37f   : > { %v2946_v47 = vld [vmem:[%s23486_s0 + $0xa30] sm:$0xff]  ;;  %v2691_v61 = vld [vmem:[%s23486_s0 + $0x238] sm:$0xff] }
 0x380   : > { %5303 = vmatpush1.bf16.msra.mxu0 %v18418_v10  ;;  %v18498_v10 = vcombine.low %v2982_v58, %v2986_v60  ;;  %v2807_v58 = vld [vmem:[%s23486_s0 + $0x5d8] sm:$0xff] }
 0x381   : > { %5344 = vmatpush1.bf16.msra.mxu1 %v18164_v11  ;;  %5304 = vmatprep.subr.bf16.mxu0 %v18411_v12  ;;  %v18244_v11 = vcombine.low %v2727_v62, %v2731_v0  ;;  %v18491_v12 = vcombine.high %v2974_v5, %v2978_v6  ;;  %v2811_v60 = vld [vmem:[%s23486_s0 + $0x5f8] sm:$0xff] }
 0x382   : > { %5345 = vmatprep.subr.bf16.mxu1 %v18157_v13  ;;  %v18237_v13 = vcombine.high %v2719_v7, %v2723_v8  ;;  %v2935_v62 = vld [vmem:[%s23486_s0 + $0x9d8] sm:$0xff] }
 0x383   : > { %v2939_v0 = vld [vmem:[%s23486_s0 + $0x9f8] sm:$0xff] }
 0x384   : > { %5305 = vmatpush1.bf16.msra.mxu0 %v18410_v20  ;;  %v18490_v20 = vcombine.low %v2974_v5, %v2978_v6  ;;  %v2799_v5 = vld [vmem:[%s23486_s0 + $0x598] sm:$0xff] }
 0x385   : > { %5346 = vmatpush1.bf16.msra.mxu1 %v18156_v22  ;;  %5306 = vmatprep.subr.bf16.mxu0 %v18403_v23  ;;  %v18236_v22 = vcombine.low %v2719_v7, %v2723_v8  ;;  %v18483_v23 = vcombine.high %v2966_v15, %v2970_v16  ;;  %v2803_v6 = vld [vmem:[%s23486_s0 + $0x5b8] sm:$0xff] }
 0x386   : > { %5347 = vmatprep.subr.bf16.mxu1 %v18149_v24  ;;  %v18229_v24 = vcombine.high %v2711_v17, %v2715_v18  ;;  %v2927_v7 = vld [vmem:[%s23486_s0 + $0x998] sm:$0xff] }
 0x387   : > { %v2931_v8 = vld [vmem:[%s23486_s0 + $0x9b8] sm:$0xff] }
 0x388   : > { %5307 = vmatpush1.bf16.msra.mxu0 %v18402_v31  ;;  %v18482_v31 = vcombine.low %v2966_v15, %v2970_v16  ;;  %v18317_v15 = vcombine.high %v2799_v5, %v2803_v6  ;;  %v18445_v16 = vcombine.high %v2927_v7, %v2931_v8 }
 0x389   : > { %5348 = vmatpush1.bf16.msra.mxu1 %v18148_v32  ;;  %5308 = vmatprep.subr.bf16.mxu0 %v18395_v33  ;;  %v18228_v32 = vcombine.low %v2711_v17, %v2715_v18  ;;  %v18475_v33 = vcombine.high %v2958_v26, %v2962_v27  ;;  %v2919_v17 = vld [vmem:[%s23486_s0 + $0x958] sm:$0xff] }
 0x38a   : > { %5349 = vmatprep.subr.bf16.mxu1 %v18141_v34  ;;  %v18221_v34 = vcombine.high %v2703_v28, %v2707_v29  ;;  %v2923_v18 = vld [vmem:[%s23486_s0 + $0x978] sm:$0xff] }
 0x38c   : > { %5309 = vmatpush1.bf16.msra.mxu0 %v18394_v40  ;;  %v18474_v40 = vcombine.low %v2958_v26, %v2962_v27  ;;  %v18444_v26 = vcombine.low %v2927_v7, %v2931_v8  ;;  %v2783_v27 = vld [vmem:[%s23486_s0 + $0x518] sm:$0xff] }
 0x38d   : > { %5350 = vmatpush1.bf16.msra.mxu1 %v18140_v42  ;;  %5310 = vmatprep.subr.bf16.mxu0 %v18515_v43  ;;  %v18220_v42 = vcombine.low %v2703_v28, %v2707_v29  ;;  %v18467_v43 = vcombine.high %v2950_v35, %v2954_v36  ;;  %v2787_v28 = vld [vmem:[%s23486_s0 + $0x538] sm:$0xff] }
 0x38e   : > { %5351 = vmatprep.subr.bf16.mxu1 %v18261_v44  ;;  %v18213_v44 = vcombine.high %v2695_v37, %v2699_v39  ;;  %v2911_v29 = vld [vmem:[%s23486_s0 + $0x918] sm:$0xff] }
 0x390   : > { %5311 = vmatpush2.bf16.msra.mxu0 %v18514_v52  ;;  %v18466_v52 = vcombine.low %v2950_v35, %v2954_v36  ;;  %v18437_v35 = vcombine.high %v2919_v17, %v2923_v18 }
 0x391   : > { %5352 = vmatpush2.bf16.msra.mxu1 %v18260_v53  ;;  %5312 = vmatprep.subr.bf16.mxu0 %v18507_v56  ;;  %v18212_v53 = vcombine.low %v2695_v37, %v2699_v39  ;;  %v18459_v56 = vcombine.high %v2942_v46, %v2946_v47  ;;  %v18436_v39 = vcombine.low %v2919_v17, %v2923_v18 }
 0x392   : > { %5353 = vmatprep.subr.bf16.mxu1 %v18253_v57  ;;  %v18205_v57 = vcombine.high %v2687_v50, %v2691_v61 }
 0x394   : > { %5313 = vmatpush2.bf16.msra.mxu0 %v18506_v21  ;;  %v18458_v21 = vcombine.low %v2942_v46, %v2946_v47  ;;  %v2907_v46 = vld [vmem:[%s23486_s0 + $0x8f8] sm:$0xff]  ;;  %v18300_v47 = vcombine.low %v2783_v27, %v2787_v28 }
 0x395   : > { %5354 = vmatpush2.bf16.msra.mxu1 %v18252_v2  ;;  %5314 = vmatprep.subr.bf16.mxu0 %v18499_v3  ;;  %v18204_v2 = vcombine.low %v2687_v50, %v2691_v61  ;;  %v18325_v3 = vcombine.high %v2807_v58, %v2811_v60 }
 0x396   : > { %5355 = vmatprep.subr.bf16.mxu1 %v18245_v4  ;;  %v18453_v4 = vcombine.high %v2935_v62, %v2939_v0 }
 0x398   : > { %5315 = vmatpush2.bf16.msra.mxu0 %v18498_v10  ;;  %v18324_v10 = vcombine.low %v2807_v58, %v2811_v60  ;;  %v2899_v58 = vld [vmem:[%s23486_s0 + $0x8b8] sm:$0xff] }
 0x399   : > { %5356 = vmatpush2.bf16.msra.mxu1 %v18244_v11  ;;  %5316 = vmatprep.subr.bf16.mxu0 %v18491_v12  ;;  %v18452_v11 = vcombine.low %v2935_v62, %v2939_v0  ;;  %v2791_v12 = vld [vmem:[%s23486_s0 + $0x558] sm:$0xff] }
 0x39a   : > { %5357 = vmatprep.subr.bf16.mxu1 %v18237_v13  ;;  %v2795_v13 = vld [vmem:[%s23486_s0 + $0x578] sm:$0xff] }
 0x39b   : > { %v18308_v37 = vcombine.low %v2791_v12, %v2795_v13 }
 0x39c   : > { %5317 = vmatpush2.bf16.msra.mxu0 %v18490_v20 }
 0x39d   : > { %5358 = vmatpush2.bf16.msra.mxu1 %v18236_v22  ;;  %5318 = vmatprep.subr.bf16.mxu0 %v18483_v23 }
 0x39e   : > { %5359 = vmatprep.subr.bf16.mxu1 %v18229_v24  ;;  %v18316_v24 = vcombine.low %v2799_v5, %v2803_v6  ;;  %v2891_v5 = vld [vmem:[%s23486_s0 + $0x878] sm:$0xff] }
 0x3a0   : > { %5319 = vmatpush2.bf16.msra.mxu0 %v18482_v31  ;;  %v2915_v31 = vld [vmem:[%s23486_s0 + $0x938] sm:$0xff] }
 0x3a1   : > { %5360 = vmatpush2.bf16.msra.mxu1 %v18228_v32  ;;  %5320 = vmatprep.subr.bf16.mxu0 %v18475_v33  ;;  %v18428_v50 = vcombine.low %v2911_v29, %v2915_v31 }
 0x3a2   : > { %5361 = vmatprep.subr.bf16.mxu1 %v18221_v34  ;;  %v18309_v34 = vcombine.high %v2791_v12, %v2795_v13  ;;  %v2755_v12 = vld [vmem:[%s23486_s0 + $0x438] sm:$0xff] }
 0x3a3   : > { %v2879_v13 = vld [vmem:[%s23486_s0 + $0x818] sm:$0xff] }
 0x3a4   : > { %5321 = vmatpush2.bf16.msra.mxu0 %v18474_v40 }
 0x3a5   : > { %5362 = vmatpush2.bf16.msra.mxu1 %v18220_v42  ;;  %5322 = vmatprep.subr.bf16.mxu0 %v18467_v43  ;;  %v18429_v43 = vcombine.high %v2911_v29, %v2915_v31 }
 0x3a6   : > { %5363 = vmatprep.subr.bf16.mxu1 %v18213_v44  ;;  %v2779_v44 = vld [vmem:[%s23486_s0 + $0x4f8] sm:$0xff] }
 0x3a8   : > { %5323 = vmatpush2.bf16.msra.mxu0 %v18466_v52 }
 0x3a9   : > { %5364 = vmatpush2.bf16.msra.mxu1 %v18212_v53  ;;  %5324 = vmatprep.subr.bf16.mxu0 %v18459_v56  ;;  %v2767_v53 = vld [vmem:[%s23486_s0 + $0x498] sm:$0xff] }
 0x3aa   : > { %5365 = vmatprep.subr.bf16.mxu1 %v18205_v57  ;;  %v2771_v56 = vld [vmem:[%s23486_s0 + $0x4b8] sm:$0xff] }
 0x3ab   : > { %v2895_v57 = vld [vmem:[%s23486_s0 + $0x898] sm:$0xff]  ;;  %v18285_v0 = vcombine.high %v2767_v53, %v2771_v56  ;;  %v18284_v6 = vcombine.low %v2767_v53, %v2771_v56 }
 0x3ac   : > { %5325 = vmatpush2.bf16.msra.mxu0 %v18458_v21  ;;  %v18413_v21 = vcombine.high %v2895_v57, %v2899_v58  ;;  %v18412_v7 = vcombine.low %v2895_v57, %v2899_v58  ;;  %v2851_v53 = vld [vmem:[%s23486_s0 + $0x738] sm:$0xff] }
 0x3ad   : > { %5366 = vmatpush2.bf16.msra.mxu1 %v18204_v2  ;;  %5376 = vmatprep.subr.bf16.mxu0 %v18325_v3  ;;  %v2759_v2 = vld [vmem:[%s23486_s0 + $0x458] sm:$0xff] }
 0x3ae   : > { %5417 = vmatprep.subr.bf16.mxu1 %v18453_v4  ;;  %v2763_v3 = vld [vmem:[%s23486_s0 + $0x478] sm:$0xff] }
 0x3af   : > { %v5082_v20 = vpop.f32.mrf.mxu0  ;;  %5327 = vmatmul.mubr.bf16.vlgmr.msra.gmra.mxu0 %v23586_v59  ;;  %v2887_v4 = vld [vmem:[%s23486_s0 + $0x858] sm:$0xff]  ;;  %v18277_v8 = vcombine.high %v2759_v2, %v2763_v3 }
 0x3b0   : > { %v24155_v22 = vpop.f32.mrf.mxu1  ;;  %5368 = vmatmul.mubr.bf16.vlgmr.msra.gmra.mxu1 %v23607_v9  ;;  %v24160_v23 = vadd.f32 %v5082_v20, %v24087_v41  ;;  %5377 = vmatpush1.bf16.msra.mxu0 %v18324_v10  ;;  %v18405_v10 = vcombine.high %v2887_v4, %v2891_v5  ;;  %v18404_v17 = vcombine.low %v2887_v4, %v2891_v5  ;;  %v2975_v56 = vld [vmem:[%s23486_s0 + $0xb18] sm:$0xff] }
 0x3b1   : > { %5418 = vmatpush1.bf16.msra.mxu1 %v18452_v11  ;;  %v5084_v32 = vpop.f32.mrf.mxu0  ;;  %5378 = vmatprep.subr.bf16.mxu0 %v18317_v15  ;;  %v2751_v11 = vld [vmem:[%s23486_s0 + $0x418] sm:$0xff] }
 0x3b2   : > { %v24166_v33 = vpop.f32.mrf.mxu1  ;;  %5419 = vmatprep.subr.bf16.mxu1 %v18445_v16  ;;  %v24169_v9 = vadd.f32 %v5084_v32, %v24093_v49  ;;  %5408 = vmatprep.mubr.bf16.mxu0 %v23593_v63  ;;  %v18301_v49 = vcombine.high %v2783_v27, %v2787_v28  ;;  %v2775_v63 = vld [vmem:[%s23486_s0 + $0x4d8] sm:$0xff]  ;;  %v18276_v16 = vcombine.low %v2759_v2, %v2763_v3 }
 0x3b3   : > { %5449 = vmatprep.mubr.bf16.mxu1 %v23621_v19  ;;  %v5086_v41 = vpop.f32.mrf.mxu0  ;;  %v2903_v19 = vld [vmem:[%s23486_s0 + $0x8d8] sm:$0xff]  ;;  %v18293_v61 = vcombine.high %v2775_v63, %v2779_v44  ;;  %v18292_v60 = vcombine.low %v2775_v63, %v2779_v44  ;;  %v18269_v18 = vcombine.high %v2751_v11, %v2755_v12  ;;  %v18268_v29 = vcombine.low %v2751_v11, %v2755_v12 }
 0x3b4   : > { %v5127_v36 = vpop.f32.mrf.mxu1  ;;  %5379 = vmatpush1.bf16.msra.mxu0 %v18316_v24  ;;  %v18421_v52 = vcombine.high %v2903_v19, %v2907_v46  ;;  %v18420_v62 = vcombine.low %v2903_v19, %v2907_v46  ;;  %v2883_v15 = vld [vmem:[%s23486_s0 + $0x838] sm:$0xff] }
 0x3b5   : > { %5420 = vmatpush1.bf16.msra.mxu1 %v18444_v26  ;;  %v5087_v40 = vpop.f32.mrf.mxu0  ;;  %5380 = vmatprep.subr.bf16.mxu0 %v18309_v34  ;;  %v18397_v20 = vcombine.high %v2879_v13, %v2883_v15  ;;  %v2871_v24 = vld [vmem:[%s23486_s0 + $0x7d8] sm:$0xff]  ;;  %v18396_v31 = vcombine.low %v2879_v13, %v2883_v15 }
 0x3b6   : > { %v5128_v42 = vpop.f32.mrf.mxu1  ;;  %5421 = vmatprep.subr.bf16.mxu1 %v18437_v35  ;;  %v2875_v26 = vld [vmem:[%s23486_s0 + $0x7f8] sm:$0xff] }
 0x3b7   : > { %v2999_v27 = vld [vmem:[%s23486_s0 + $0xbd8] sm:$0xff]  ;;  %v18389_v32 = vcombine.high %v2871_v24, %v2875_v26 }
 0x3b8   : > { %5381 = vmatpush1.bf16.msra.mxu0 %v18308_v37  ;;  %v3003_v28 = vld [vmem:[%s23486_s0 + $0xbf8] sm:$0xff] }
 0x3b9   : > { %5422 = vmatpush1.bf16.msra.mxu1 %v18436_v39  ;;  %5382 = vmatprep.subr.bf16.mxu0 %v18301_v49  ;;  %v18517_v34 = vcombine.high %v2999_v27, %v3003_v28  ;;  %v2863_v35 = vld [vmem:[%s23486_s0 + $0x798] sm:$0xff]  ;;  %v18388_v39 = vcombine.low %v2871_v24, %v2875_v26  ;;  %v18516_v40 = vcombine.low %v2999_v27, %v3003_v28 }
 0x3ba   : > { %5423 = vmatprep.subr.bf16.mxu1 %v18429_v43  ;;  %v2867_v41 = vld [vmem:[%s23486_s0 + $0x7b8] sm:$0xff] }
 0x3bb   : > { %v2991_v36 = vld [vmem:[%s23486_s0 + $0xb98] sm:$0xff]  ;;  %v18381_v42 = vcombine.high %v2863_v35, %v2867_v41  ;;  %v18380_v46 = vcombine.low %v2863_v35, %v2867_v41 }
 0x3bc   : > { %5383 = vmatpush1.bf16.msra.mxu0 %v18300_v47  ;;  %v2995_v37 = vld [vmem:[%s23486_s0 + $0xbb8] sm:$0xff] }
 0x3bd   : > { %5424 = vmatpush1.bf16.msra.mxu1 %v18428_v50  ;;  %5384 = vmatprep.subr.bf16.mxu0 %v18293_v61  ;;  %v18509_v49 = vcombine.high %v2991_v36, %v2995_v37  ;;  %v2855_v43 = vld [vmem:[%s23486_s0 + $0x758] sm:$0xff]  ;;  %v18508_v47 = vcombine.low %v2991_v36, %v2995_v37 }
 0x3be   : > { %5425 = vmatprep.subr.bf16.mxu1 %v18421_v52  ;;  %v2859_v63 = vld [vmem:[%s23486_s0 + $0x778] sm:$0xff] }
 0x3bf   : > { %v2983_v44 = vld [vmem:[%s23486_s0 + $0xb58] sm:$0xff]  ;;  %v18373_v50 = vcombine.high %v2855_v43, %v2859_v63  ;;  %v18372_v58 = vcombine.low %v2855_v43, %v2859_v63  ;;  %v20765_v63 = vld [vmem:[%s23494_s25 + $0x234] ss:$40 sps:$4 sm:$0xff]  }
 0x3c0   : > { %5385 = vmatpush1.bf16.msra.mxu0 %v18292_v60  ;;  %v2987_v19 = vld [vmem:[%s23486_s0 + $0xb78] sm:$0xff] }
 0x3c1   : > { %5426 = vmatpush1.bf16.msra.mxu1 %v18420_v62  ;;  %5386 = vmatprep.subr.bf16.mxu0 %v18285_v0  ;;  %v18501_v61 = vcombine.high %v2983_v44, %v2987_v19  ;;  %v2847_v52 = vld [vmem:[%s23486_s0 + $0x718] sm:$0xff]  ;;  %v18500_v60 = vcombine.low %v2983_v44, %v2987_v19  ;;  %v20768_v44 = vld [vmem:[%s23494_s25 + $0x734] ss:$40 sps:$4 sm:$0xff]  }
 0x3c2   : > { %5427 = vmatprep.subr.bf16.mxu1 %v18413_v21  ;;  %v2979_v57 = vld [vmem:[%s23486_s0 + $0xb38] sm:$0xff]  ;;  %v18365_v62 = vcombine.high %v2847_v52, %v2851_v53  ;;  %v18364_v5 = vcombine.low %v2847_v52, %v2851_v53  ;;  %v24224_v19 = vld [vmem:[%s23492_s26] sm:$0xff] }
 0x3c3   : > { %v18493_v0 = vcombine.high %v2975_v56, %v2979_v57  ;;  %v2839_v21 = vld [vmem:[%s23486_s0 + $0x6d8] sm:$0xff] }
 0x3c4   : > { %5387 = vmatpush1.bf16.msra.mxu0 %v18284_v6  ;;  %v2843_v2 = vld [vmem:[%s23486_s0 + $0x6f8] sm:$0xff]  ;;  %v18492_v6 = vcombine.low %v2975_v56, %v2979_v57  ;;  %v24236_v56 = vpack.c.bf16 %v23937_v1, %v23937_v1  ;;  %v20777_v1 = vld [vmem:[%s23494_s25 + $0x194] ss:$40 sps:$4 sm:$0xff]  }
 0x3c5   : > { %5428 = vmatpush1.bf16.msra.mxu1 %v18412_v7  ;;  %5388 = vmatprep.subr.bf16.mxu0 %v18277_v8  ;;  %v2967_v3 = vld [vmem:[%s23486_s0 + $0xad8] sm:$0xff]  ;;  %v18357_v7 = vcombine.high %v2839_v21, %v2843_v2  ;;  %v18356_v15 = vcombine.low %v2839_v21, %v2843_v2 }
 0x3c6   : > { %5429 = vmatprep.subr.bf16.mxu1 %v18405_v10  ;;  %v2971_v4 = vld [vmem:[%s23486_s0 + $0xaf8] sm:$0xff] }
 0x3c7   : > { %v18485_v8 = vcombine.high %v2967_v3, %v2971_v4  ;;  %v2831_v10 = vld [vmem:[%s23486_s0 + $0x698] sm:$0xff] }
 0x3c8   : > { %5389 = vmatpush1.bf16.msra.mxu0 %v18276_v16  ;;  %v2835_v11 = vld [vmem:[%s23486_s0 + $0x6b8] sm:$0xff]  ;;  %v18484_v16 = vcombine.low %v2967_v3, %v2971_v4 }
 0x3c9   : > { %5430 = vmatpush1.bf16.msra.mxu1 %v18404_v17  ;;  %5390 = vmatprep.subr.bf16.mxu0 %v18269_v18  ;;  %v2959_v12 = vld [vmem:[%s23486_s0 + $0xa98] sm:$0xff]  ;;  %v18349_v17 = vcombine.high %v2831_v10, %v2835_v11  ;;  %v18348_v28 = vcombine.low %v2831_v10, %v2835_v11  ;;  %v20778_v11 = vld [vmem:[%s23494_s25 + $0x690] ss:$40 sps:$4 sm:$0xff]  }
 0x3ca   : > { %5431 = vmatprep.subr.bf16.mxu1 %v18397_v20  ;;  %v2963_v13 = vld [vmem:[%s23486_s0 + $0xab8] sm:$0xff] }
 0x3cb   : > { %v18477_v18 = vcombine.high %v2959_v12, %v2963_v13  ;;  %v2823_v20 = vld [vmem:[%s23486_s0 + $0x658] sm:$0xff] }
 0x3cc   : > { %5391 = vmatpush1.bf16.msra.mxu0 %v18268_v29  ;;  %v2827_v24 = vld [vmem:[%s23486_s0 + $0x678] sm:$0xff]  ;;  %v18476_v29 = vcombine.low %v2959_v12, %v2963_v13 }
 0x3cd   : > { %5432 = vmatpush1.bf16.msra.mxu1 %v18396_v31  ;;  %5392 = vmatprep.subr.bf16.mxu0 %v18389_v32  ;;  %v2951_v26 = vld [vmem:[%s23486_s0 + $0xa58] sm:$0xff]  ;;  %v18341_v31 = vcombine.high %v2823_v20, %v2827_v24  ;;  %v18340_v37 = vcombine.low %v2823_v20, %v2827_v24  ;;  %v20792_v20 = vld [vmem:[%s23494_s25 + $0x5f4] ss:$40 sps:$4 sm:$0xff]   ;;  %v20790_v24 = vld [vmem:[%s23494_s25 + $0x5f0] ss:$40 sps:$4 sm:$0xff]  }
 0x3ce   : > { %5433 = vmatprep.subr.bf16.mxu1 %v18517_v34  ;;  %v2955_v27 = vld [vmem:[%s23486_s0 + $0xa78] sm:$0xff] }
 0x3cf   : > { %v18469_v32 = vcombine.high %v2951_v26, %v2955_v27  ;;  %v2815_v34 = vld [vmem:[%s23486_s0 + $0x618] sm:$0xff] }
 0x3d0   : > { %5393 = vmatpush2.bf16.msra.mxu0 %v18388_v39  ;;  %v2819_v35 = vld [vmem:[%s23486_s0 + $0x638] sm:$0xff]  ;;  %v18468_v39 = vcombine.low %v2951_v26, %v2955_v27 }
 0x3d1   : > { %5434 = vmatpush2.bf16.msra.mxu1 %v18516_v40  ;;  %5394 = vmatprep.subr.bf16.mxu0 %v18381_v42  ;;  %v2943_v41 = vld [vmem:[%s23486_s0 + $0xa18] sm:$0xff]  ;;  %v18333_v40 = vcombine.high %v2815_v34, %v2819_v35 }
 0x3d2   : > { %5435 = vmatprep.subr.bf16.mxu1 %v18509_v49  ;;  %v2947_v36 = vld [vmem:[%s23486_s0 + $0xa38] sm:$0xff]  ;;  %v18332_v49 = vcombine.low %v2815_v34, %v2819_v35  ;;  %v20804_v34 = vld [vmem:[%s23494_s25 + $0x554] ss:$40 sps:$4 sm:$0xff]   ;;  %v20802_v35 = vld [vmem:[%s23494_s25 + $0x550] ss:$40 sps:$4 sm:$0xff]  }
 0x3d3   : > { %v18461_v42 = vcombine.high %v2943_v41, %v2947_v36  ;;  %v18460_v43 = vcombine.low %v2943_v41, %v2947_v36  ;;  %v20771_v52 = vld [vmem:[%s23494_s25 + $0x1e4] ss:$40 sps:$4 sm:$0xff]   ;;  %v20772_v21 = vld [vmem:[%s23494_s25 + $0x6e0] ss:$40 sps:$4 sm:$0xff]  }
 0x3d4   : > { %5395 = vmatpush2.bf16.msra.mxu0 %v18380_v46  ;;  %v3017_v46 = vrot.slane %v24224_v19, %v23911_v30  ;;  %v20774_v53 = vld [vmem:[%s23494_s25 + $0x6e4] ss:$40 sps:$4 sm:$0xff]   ;;  %v20781_v13 = vld [vmem:[%s23494_s25 + $0x140] ss:$40 sps:$4 sm:$0xff]  }
 0x3d5   : > { %5436 = vmatpush2.bf16.msra.mxu1 %v18508_v47  ;;  %5396 = vmatprep.subr.bf16.mxu0 %v18373_v50  ;;  %v20763_v47 = vld [vmem:[%s23494_s25 + $0x230] ss:$40 sps:$4 sm:$0xff]   ;;  %v20783_v12 = vld [vmem:[%s23494_s25 + $0x144] ss:$40 sps:$4 sm:$0xff]   ;;  %v20793_v27 = vld [vmem:[%s23494_s25 + $0xa0] ss:$40 sps:$4 sm:$0xff]  }
 0x3d6   : > { %5437 = vmatprep.subr.bf16.mxu1 %v18501_v61  ;;  %v20766_v50 = vld [vmem:[%s23494_s25 + $0x730] ss:$40 sps:$4 sm:$0xff]   ;;  %v3021_v61 = vrot.slane %v24224_v19, %v23994_v25  ;;  %v5124_v57 = vadd.f32 %v24155_v22, %v3017_v46  ;;  %v20780_v22 = vld [vmem:[%s23494_s25 + $0x694] ss:$40 sps:$4 sm:$0xff]   ;;  %v20795_v26 = vld [vmem:[%s23494_s25 + $0xa4] ss:$40 sps:$4 sm:$0xff]  }
 0x3d7   : > { %v20807_v41 = vld [vmem:[%s23494_s25 + $0x4] ss:$40 sps:$4 sm:$0xff]   ;;  %v20805_v36 = vld [vmem:[%s23494_s25] ss:$40 sps:$4 sm:$0xff]  }
 0x3d8   : > { %5397 = vmatpush2.bf16.msra.mxu0 %v18372_v58  ;;  %v24241_v58 = vpack.c.bf16 %v24018_v54, %v24018_v54  ;;  %v5126_v2 = vadd.f32 %v24166_v33, %v3021_v61  ;;  %v20822_v46 = vld [vmem:[%s23494_s25 + $0x964] ss:$40 sps:$4 sm:$0xff]   ;;  %v20823_v61 = vld [vmem:[%s23494_s25 + $0x410] ss:$40 sps:$4 sm:$0xff]  }
 0x3d9   : > { %5438 = vmatpush2.bf16.msra.mxu1 %v18500_v60  ;;  %5398 = vmatprep.subr.bf16.mxu0 %v18365_v62 }
 0x3da   : > { %5439 = vmatprep.subr.bf16.mxu1 %v18493_v0  ;;  %v20769_v0 = vld [vmem:[%s23494_s25 + $0x1e0] ss:$40 sps:$4 sm:$0xff]  }
 0x3dc   : > { %5399 = vmatpush2.bf16.msra.mxu0 %v18364_v5 }
 0x3dd   : > { %5440 = vmatpush2.bf16.msra.mxu1 %v18492_v6  ;;  %5400 = vmatprep.subr.bf16.mxu0 %v18357_v7  ;;  %v20775_v7 = vld [vmem:[%s23494_s25 + $0x190] ss:$40 sps:$4 sm:$0xff]  }
 0x3de   : > { %5441 = vmatprep.subr.bf16.mxu1 %v18485_v8 }
 0x3e0   : > { %5401 = vmatpush2.bf16.msra.mxu0 %v18356_v15  ;;  %v20786_v15 = vld [vmem:[%s23494_s25 + $0x644] ss:$40 sps:$4 sm:$0xff]  }
 0x3e1   : > { %5442 = vmatpush2.bf16.msra.mxu1 %v18484_v16  ;;  %5402 = vmatprep.subr.bf16.mxu0 %v18349_v17  ;;  %v20784_v16 = vld [vmem:[%s23494_s25 + $0x640] ss:$40 sps:$4 sm:$0xff]   ;;  %v20789_v17 = vld [vmem:[%s23494_s25 + $0xf4] ss:$40 sps:$4 sm:$0xff]  }
 0x3e2   : > { %5443 = vmatprep.subr.bf16.mxu1 %v18477_v18  ;;  %v20787_v18 = vld [vmem:[%s23494_s25 + $0xf0] ss:$40 sps:$4 sm:$0xff]  }
 0x3e4   : > { %5403 = vmatpush2.bf16.msra.mxu0 %v18348_v28  ;;  %v20798_v28 = vld [vmem:[%s23494_s25 + $0x5a4] ss:$40 sps:$4 sm:$0xff]  }
 0x3e5   : > { %5444 = vmatpush2.bf16.msra.mxu1 %v18476_v29  ;;  %5404 = vmatprep.subr.bf16.mxu0 %v18341_v31  ;;  %v20796_v29 = vld [vmem:[%s23494_s25 + $0x5a0] ss:$40 sps:$4 sm:$0xff]   ;;  %v20801_v31 = vld [vmem:[%s23494_s25 + $0x54] ss:$40 sps:$4 sm:$0xff]  }
 0x3e6   : > { %5445 = vmatprep.subr.bf16.mxu1 %v18469_v32  ;;  %v20799_v32 = vld [vmem:[%s23494_s25 + $0x50] ss:$40 sps:$4 sm:$0xff]  }
 0x3e8   : > { %5405 = vmatpush2.bf16.msra.mxu0 %v18340_v37  ;;  %v20810_v37 = vld [vmem:[%s23494_s25 + $0x504] ss:$40 sps:$4 sm:$0xff]  }
 0x3e9   : > { %5446 = vmatpush2.bf16.msra.mxu1 %v18468_v39  ;;  %5406 = vmatprep.subr.bf16.mxu0 %v18333_v40  ;;  %v20808_v39 = vld [vmem:[%s23494_s25 + $0x500] ss:$40 sps:$4 sm:$0xff]   ;;  %v20813_v40 = vld [vmem:[%s23494_s25 + $0x4b4] ss:$40 sps:$4 sm:$0xff]  }
 0x3ea   : > { %5447 = vmatprep.subr.bf16.mxu1 %v18461_v42  ;;  %v20811_v42 = vld [vmem:[%s23494_s25 + $0x4b0] ss:$40 sps:$4 sm:$0xff]  }
 0x3ec   : > { %5407 = vmatpush2.bf16.msra.mxu0 %v18332_v49  ;;  %v20816_v49 = vld [vmem:[%s23494_s25 + $0x9b4] ss:$40 sps:$4 sm:$0xff]  }
 0x3ed   : > { %5448 = vmatpush2.bf16.msra.mxu1 %v18460_v43  ;;  %7385 = vmatprep.subr.bf16.mxu0 %v20765_v63  ;;  %v20814_v43 = vld [vmem:[%s23494_s25 + $0x9b0] ss:$40 sps:$4 sm:$0xff]   ;;  %v20819_v63 = vld [vmem:[%s23494_s25 + $0x464] ss:$40 sps:$4 sm:$0xff]  }
 0x3ee   : > { %7426 = vmatprep.subr.bf16.mxu1 %v20768_v44  ;;  %v20817_v44 = vld [vmem:[%s23494_s25 + $0x460] ss:$40 sps:$4 sm:$0xff]  }
 0x3ef   : > { %v5164_v60 = vpop.f32.mrf.mxu0  ;;  %5409 = vmatmul.mubr.bf16.vlgmr.msra.gmra.mxu0 %v23614_v14 }
 0x3f0   : > { %v5205_v62 = vpop.f32.mrf.mxu1  ;;  %5450 = vmatmul.mubr.bf16.vlgmr.msra.gmra.mxu1 %v23586_v59  ;;  %v5165_v3 = vadd.f32 %v5164_v60, %v5124_v57  ;;  %7386 = vmatpush1.bf16.msra.mxu0 %v20763_v47  ;;  %v20820_v47 = vld [vmem:[%s23494_s25 + $0x960] ss:$40 sps:$4 sm:$0xff]   ;;  %v20831_v57 = vld [vmem:[%s23494_s25 + $0x3c4] ss:$40 sps:$4 sm:$0xff]  }
 0x3f1   : > { %7417 = vmatprep.mubr.bf16.mxu0 %v24236_v56  ;;  %7427 = vmatpush1.bf16.msra.mxu1 %v20766_v50  ;;  %v5166_v54 = vpop.f32.mrf.mxu0  ;;  %v20825_v50 = vld [vmem:[%s23494_s25 + $0x414] ss:$40 sps:$4 sm:$0xff]   ;;  %v20829_v60 = vld [vmem:[%s23494_s25 + $0x3c0] ss:$40 sps:$4 sm:$0xff]  }
 0x3f2   : > { %7458 = vmatprep.mubr.bf16.mxu1 %v24241_v58  ;;  %v5207_v14 = vpop.f32.mrf.mxu1  ;;  %v24252_v4 = vadd.f32 %v5205_v62, %v5165_v3  ;;  %v5167_v59 = vadd.f32 %v5166_v54, %v5126_v2  ;;  %7387 = vmatprep.subr.bf16.mxu0 %v20771_v52  ;;  %v20828_v52 = vld [vmem:[%s23494_s25 + $0x914] ss:$40 sps:$4 sm:$0xff]   ;;  %v20834_v62 = vld [vmem:[%s23494_s25 + $0x8c4] ss:$40 sps:$4 sm:$0xff]   ;;  %v20835_v2 = vld [vmem:[%s23494_s25 + $0x370] ss:$40 sps:$4 sm:$0xff]  }
 0x3f3   : > { %7428 = vmatprep.subr.bf16.mxu1 %v20774_v53  ;;  %v5168_v33 = vpop.f32.mrf.mxu0  ;;  %v20826_v53 = vld [vmem:[%s23494_s25 + $0x910] ss:$40 sps:$4 sm:$0xff]   ;;  %v20840_v3 = vld [vmem:[%s23494_s25 + $0x874] ss:$40 sps:$4 sm:$0xff]   ;;  %v20841_v54 = vld [vmem:[%s23494_s25 + $0x320] ss:$40 sps:$4 sm:$0xff]  }
 0x3f4   : > { %v5209_v5 = vpop.f32.mrf.mxu1  ;;  %v24254_v6 = vadd.f32 %v5207_v14, %v5167_v59  ;;  %7388 = vmatpush1.bf16.msra.mxu0 %v20769_v0  ;;  %v20832_v0 = vld [vmem:[%s23494_s25 + $0x8c0] ss:$40 sps:$4 sm:$0xff]   ;;  %v20846_v14 = vld [vmem:[%s23494_s25 + $0x824] ss:$40 sps:$4 sm:$0xff]   ;;  %v20849_v33 = vld [vmem:[%s23494_s25 + $0x2d4] ss:$40 sps:$4 sm:$0xff]  }
 0x3f5   : > { %7429 = vmatpush1.bf16.msra.mxu1 %v20772_v21  ;;  %v5169_v8 = vpop.f32.mrf.mxu0  ;;  %7389 = vmatprep.subr.bf16.mxu0 %v20777_v1  ;;  %v20837_v21 = vld [vmem:[%s23494_s25 + $0x374] ss:$40 sps:$4 sm:$0xff]   ;;  %v20838_v1 = vld [vmem:[%s23494_s25 + $0x870] ss:$40 sps:$4 sm:$0xff]   ;;  %v20844_v59 = vld [vmem:[%s23494_s25 + $0x820] ss:$40 sps:$4 sm:$0xff]  }
 0x3f6   : > { %v5210_v10 = vpop.f32.mrf.mxu1  ;;  %7430 = vmatprep.subr.bf16.mxu1 %v20780_v22  ;;  %v20843_v22 = vld [vmem:[%s23494_s25 + $0x324] ss:$40 sps:$4 sm:$0xff]   ;;  %v20847_v5 = vld [vmem:[%s23494_s25 + $0x2d0] ss:$40 sps:$4 sm:$0xff]  }
 0x3f7   : > { %v20850_v8 = vld [vmem:[%s23494_s25 + $0x7d0] ss:$40 sps:$4 sm:$0xff]   ;;  %v20855_v10 = vld [vmem:[%s23494_s25 + $0x284] ss:$40 sps:$4 sm:$0xff]  }
 0x3f8   : > { %7390 = vmatpush1.bf16.msra.mxu0 %v20775_v7  ;;  %v20852_v7 = vld [vmem:[%s23494_s25 + $0x7d4] ss:$40 sps:$4 sm:$0xff]  }
 0x3f9   : > { %7431 = vmatpush1.bf16.msra.mxu1 %v20778_v11  ;;  %7391 = vmatprep.subr.bf16.mxu0 %v20783_v12  ;;  %v20853_v11 = vld [vmem:[%s23494_s25 + $0x280] ss:$40 sps:$4 sm:$0xff]   ;;  %v20858_v12 = vld [vmem:[%s23494_s25 + $0x784] ss:$40 sps:$4 sm:$0xff]  }
 0x3fa   : > { %7432 = vmatprep.subr.bf16.mxu1 %v20786_v15  ;;  %v20856_v15 = vld [vmem:[%s23494_s25 + $0x780] ss:$40 sps:$4 sm:$0xff]  }
 0x3fc   : > { %7392 = vmatpush1.bf16.msra.mxu0 %v20781_v13  ;;  %v3024_v13 = vsub.s32 4, %v23563_v38 }
 0x3fd   : > { %7433 = vmatpush1.bf16.msra.mxu1 %v20784_v16  ;;  %7393 = vmatprep.subr.bf16.mxu0 %v20789_v17  ;;  %v20861_v16 = vld [vmem:[%s23494_s25 + $0x23c] ss:$40 sps:$4 sm:$0xff]  }
 0x3fe   : > { %7434 = vmatprep.subr.bf16.mxu1 %v20792_v20  ;;  %v20864_v17 = vld [vmem:[%s23494_s25 + $0x73c] ss:$40 sps:$4 sm:$0xff]   ;;  %v3028_v20 = vsub.s32 5, %v23563_v38 }
 0x400   : > { %7394 = vmatpush1.bf16.msra.mxu0 %v20787_v18  ;;  %v20859_v18 = vld [vmem:[%s23494_s25 + $0x238] ss:$40 sps:$4 sm:$0xff]  }
 0x401   : > { %7435 = vmatpush1.bf16.msra.mxu1 %v20790_v24  ;;  %7395 = vmatprep.subr.bf16.mxu0 %v20795_v26  ;;  %v3025_v24 = vrot.slane %v24224_v19, %v3024_v13  ;;  %v24320_v26 = vpack.c.bf16 %v23926_v51, %v23926_v51  ;;  %v20870_v51 = vld [vmem:[%s23494_s25 + $0x6ec] ss:$40 sps:$4 sm:$0xff]  }
 0x402   : > { %7436 = vmatprep.subr.bf16.mxu1 %v20798_v28  ;;  %v24325_v28 = vpack.c.bf16 %v24014_v45, %v24014_v45  ;;  %v20865_v45 = vld [vmem:[%s23494_s25 + $0x1e8] ss:$40 sps:$4 sm:$0xff]  }
 0x404   : > { %7396 = vmatpush1.bf16.msra.mxu0 %v20793_v27  ;;  %v20862_v27 = vld [vmem:[%s23494_s25 + $0x738] ss:$40 sps:$4 sm:$0xff]  }
 0x405   : > { %7437 = vmatpush1.bf16.msra.mxu1 %v20796_v29  ;;  %7397 = vmatprep.subr.bf16.mxu0 %v20801_v31  ;;  %v3029_v29 = vrot.slane %v24224_v19, %v3028_v20  ;;  %v20867_v31 = vld [vmem:[%s23494_s25 + $0x1ec] ss:$40 sps:$4 sm:$0xff]   ;;  %v20873_v19 = vld [vmem:[%s23494_s25 + $0x19c] ss:$40 sps:$4 sm:$0xff]  }
 0x406   : > { %7438 = vmatprep.subr.bf16.mxu1 %v20804_v34 }
 0x408   : > { %7398 = vmatpush1.bf16.msra.mxu0 %v20799_v32 }
 0x409   : > { %7439 = vmatpush1.bf16.msra.mxu1 %v20802_v35  ;;  %7399 = vmatprep.subr.bf16.mxu0 %v20807_v41 }
 0x40a   : > { %7440 = vmatprep.subr.bf16.mxu1 %v20810_v37  ;;  %v20868_v37 = vld [vmem:[%s23494_s25 + $0x6e8] ss:$40 sps:$4 sm:$0xff]  }
 0x40c   : > { %7400 = vmatpush1.bf16.msra.mxu0 %v20805_v36 }
 0x40d   : > { %7441 = vmatpush1.bf16.msra.mxu1 %v20808_v39  ;;  %7401 = vmatprep.subr.bf16.mxu0 %v20813_v40 }
 0x40e   : > { %7442 = vmatprep.subr.bf16.mxu1 %v20816_v49 }
 0x410   : > { %7402 = vmatpush2.bf16.msra.mxu0 %v20811_v42  ;;  %v20876_v42 = vld [vmem:[%s23494_s25 + $0x69c] ss:$40 sps:$4 sm:$0xff]  }
 0x411   : > { %7443 = vmatpush2.bf16.msra.mxu1 %v20814_v43  ;;  %7403 = vmatprep.subr.bf16.mxu0 %v20819_v63 }
 0x412   : > { %7444 = vmatprep.subr.bf16.mxu1 %v20822_v46 }
 0x414   : > { %7404 = vmatpush2.bf16.msra.mxu0 %v20817_v44  ;;  %v20871_v44 = vld [vmem:[%s23494_s25 + $0x198] ss:$40 sps:$4 sm:$0xff]  }
 0x415   : > { %7445 = vmatpush2.bf16.msra.mxu1 %v20820_v47  ;;  %7405 = vmatprep.subr.bf16.mxu0 %v20825_v50  ;;  %v20874_v50 = vld [vmem:[%s23494_s25 + $0x698] ss:$40 sps:$4 sm:$0xff]  }
 0x416   : > { %7446 = vmatprep.subr.bf16.mxu1 %v20828_v52  ;;  %v20882_v52 = vld [vmem:[%s23494_s25 + $0x64c] ss:$40 sps:$4 sm:$0xff]  }
 0x418   : > { %7406 = vmatpush2.bf16.msra.mxu0 %v20823_v61  ;;  %v20879_v61 = vld [vmem:[%s23494_s25 + $0x14c] ss:$40 sps:$4 sm:$0xff]  }
 0x419   : > { %7447 = vmatpush2.bf16.msra.mxu1 %v20826_v53  ;;  %7407 = vmatprep.subr.bf16.mxu0 %v20831_v57  ;;  %v20877_v53 = vld [vmem:[%s23494_s25 + $0x148] ss:$40 sps:$4 sm:$0xff]  }
 0x41a   : > { %7448 = vmatprep.subr.bf16.mxu1 %v20834_v62  ;;  %v20880_v57 = vld [vmem:[%s23494_s25 + $0x648] ss:$40 sps:$4 sm:$0xff]   ;;  %v20888_v62 = vld [vmem:[%s23494_s25 + $0x5fc] ss:$40 sps:$4 sm:$0xff]  }
 0x41c   : > { %7408 = vmatpush2.bf16.msra.mxu0 %v20829_v60  ;;  %v20885_v60 = vld [vmem:[%s23494_s25 + $0xfc] ss:$40 sps:$4 sm:$0xff]  }
 0x41d   : > { %7449 = vmatpush2.bf16.msra.mxu1 %v20832_v0  ;;  %7409 = vmatprep.subr.bf16.mxu0 %v20837_v21  ;;  %v20883_v0 = vld [vmem:[%s23494_s25 + $0xf8] ss:$40 sps:$4 sm:$0xff]  }
 0x41e   : > { %7450 = vmatprep.subr.bf16.mxu1 %v20840_v3  ;;  %v20886_v21 = vld [vmem:[%s23494_s25 + $0x5f8] ss:$40 sps:$4 sm:$0xff]   ;;  %v20894_v3 = vld [vmem:[%s23494_s25 + $0x5ac] ss:$40 sps:$4 sm:$0xff]  }
 0x420   : > { %7410 = vmatpush2.bf16.msra.mxu0 %v20835_v2  ;;  %v20891_v2 = vld [vmem:[%s23494_s25 + $0xac] ss:$40 sps:$4 sm:$0xff]  }
 0x421   : > { %7451 = vmatpush2.bf16.msra.mxu1 %v20838_v1  ;;  %7411 = vmatprep.subr.bf16.mxu0 %v20843_v22  ;;  %v20889_v1 = vld [vmem:[%s23494_s25 + $0xa8] ss:$40 sps:$4 sm:$0xff]  }
 0x422   : > { %7452 = vmatprep.subr.bf16.mxu1 %v20846_v14  ;;  %v20892_v22 = vld [vmem:[%s23494_s25 + $0x5a8] ss:$40 sps:$4 sm:$0xff]   ;;  %v20900_v14 = vld [vmem:[%s23494_s25 + $0x55c] ss:$40 sps:$4 sm:$0xff]  }
 0x424   : > { %7412 = vmatpush2.bf16.msra.mxu0 %v20841_v54  ;;  %v20897_v54 = vld [vmem:[%s23494_s25 + $0x5c] ss:$40 sps:$4 sm:$0xff]  }
 0x425   : > { %7453 = vmatpush2.bf16.msra.mxu1 %v20844_v59  ;;  %7413 = vmatprep.subr.bf16.mxu0 %v20849_v33  ;;  %v20895_v59 = vld [vmem:[%s23494_s25 + $0x58] ss:$40 sps:$4 sm:$0xff]  }
 0x426   : > { %7454 = vmatprep.subr.bf16.mxu1 %v20852_v7  ;;  %v20898_v33 = vld [vmem:[%s23494_s25 + $0x558] ss:$40 sps:$4 sm:$0xff]   ;;  %v20906_v7 = vld [vmem:[%s23494_s25 + $0x50c] ss:$40 sps:$4 sm:$0xff]  }
 0x428   : > { %7414 = vmatpush2.bf16.msra.mxu0 %v20847_v5  ;;  %v20903_v5 = vld [vmem:[%s23494_s25 + $0xc] ss:$40 sps:$4 sm:$0xff]  }
 0x429   : > { %7455 = vmatpush2.bf16.msra.mxu1 %v20850_v8  ;;  %7415 = vmatprep.subr.bf16.mxu0 %v20855_v10  ;;  %v20901_v8 = vld [vmem:[%s23494_s25 + $0x8] ss:$40 sps:$4 sm:$0xff]  }
 0x42a   : > { %7456 = vmatprep.subr.bf16.mxu1 %v20858_v12  ;;  %v20904_v10 = vld [vmem:[%s23494_s25 + $0x508] ss:$40 sps:$4 sm:$0xff]   ;;  %v20912_v12 = vld [vmem:[%s23494_s25 + $0x9bc] ss:$40 sps:$4 sm:$0xff]  }
 0x42c   : > { %7416 = vmatpush2.bf16.msra.mxu0 %v20853_v11  ;;  %v20909_v11 = vld [vmem:[%s23494_s25 + $0x4bc] ss:$40 sps:$4 sm:$0xff]  }
 0x42d   : > { %7457 = vmatpush2.bf16.msra.mxu1 %v20856_v15  ;;  %7467 = vmatprep.subr.bf16.mxu0 %v20861_v16  ;;  %v20907_v15 = vld [vmem:[%s23494_s25 + $0x4b8] ss:$40 sps:$4 sm:$0xff]  }
 0x42e   : > { %7508 = vmatprep.subr.bf16.mxu1 %v20864_v17  ;;  %v20910_v16 = vld [vmem:[%s23494_s25 + $0x9b8] ss:$40 sps:$4 sm:$0xff]   ;;  %v20915_v17 = vld [vmem:[%s23494_s25 + $0x46c] ss:$40 sps:$4 sm:$0xff]  }
 0x42f   : > { %v5246_v32 = vpop.f32.mrf.mxu0  ;;  %7418 = vmatmul.mubr.bf16.vlgmr.msra.gmra.mxu0 %v24320_v26 }
 0x430   : > { %v5287_v34 = vpop.f32.mrf.mxu1  ;;  %v5247_v35 = vadd.f32 %v5246_v32, %v3025_v24  ;;  %7459 = vmatmul.mubr.bf16.vlgmr.msra.gmra.mxu1 %v24325_v28  ;;  %7468 = vmatpush1.bf16.msra.mxu0 %v20859_v18  ;;  %v20918_v18 = vld [vmem:[%s23494_s25 + $0x96c] ss:$40 sps:$4 sm:$0xff]   ;;  %v20913_v24 = vld [vmem:[%s23494_s25 + $0x468] ss:$40 sps:$4 sm:$0xff]   ;;  %v20919_v32 = vld [vmem:[%s23494_s25 + $0x418] ss:$40 sps:$4 sm:$0xff]  }
 0x431   : > { %7499 = vmatprep.mubr.bf16.mxu0 %v24236_v56  ;;  %7509 = vmatpush1.bf16.msra.mxu1 %v20862_v27  ;;  %v5248_v41 = vpop.f32.mrf.mxu0  ;;  %v20916_v27 = vld [vmem:[%s23494_s25 + $0x968] ss:$40 sps:$4 sm:$0xff]  }
 0x432   : > { %v5289_v36 = vpop.f32.mrf.mxu1  ;;  %v24338_v39 = vadd.f32 %v5287_v34, %v5247_v35  ;;  %7540 = vmatprep.mubr.bf16.mxu1 %v24241_v58  ;;  %v5249_v40 = vadd.f32 %v5248_v41, %v3029_v29  ;;  %7469 = vmatprep.subr.bf16.mxu0 %v20867_v31  ;;  %v20921_v29 = vld [vmem:[%s23494_s25 + $0x41c] ss:$40 sps:$4 sm:$0xff]   ;;  %v20922_v34 = vld [vmem:[%s23494_s25 + $0x918] ss:$40 sps:$4 sm:$0xff]   ;;  %v20930_v35 = vld [vmem:[%s23494_s25 + $0x8cc] ss:$40 sps:$4 sm:$0xff]  }
 0x433   : > { %v5250_v49 = vpop.f32.mrf.mxu0  ;;  %7510 = vmatprep.subr.bf16.mxu1 %v20870_v51  ;;  %v20924_v31 = vld [vmem:[%s23494_s25 + $0x91c] ss:$40 sps:$4 sm:$0xff]   ;;  %v20927_v51 = vld [vmem:[%s23494_s25 + $0x3cc] ss:$40 sps:$4 sm:$0xff]   ;;  %v20928_v41 = vld [vmem:[%s23494_s25 + $0x8c8] ss:$40 sps:$4 sm:$0xff]  }
 0x434   : > { %v5291_v43 = vpop.f32.mrf.mxu1  ;;  %v24342_v63 = vadd.f32 %v5289_v36, %v5249_v40  ;;  %7470 = vmatpush1.bf16.msra.mxu0 %v20865_v45  ;;  %v20925_v45 = vld [vmem:[%s23494_s25 + $0x3c8] ss:$40 sps:$4 sm:$0xff]   ;;  %v20933_v36 = vld [vmem:[%s23494_s25 + $0x37c] ss:$40 sps:$4 sm:$0xff]   ;;  %v20934_v40 = vld [vmem:[%s23494_s25 + $0x878] ss:$40 sps:$4 sm:$0xff]  }
 0x435   : > { %7511 = vmatpush1.bf16.msra.mxu1 %v20868_v37  ;;  %v5251_v46 = vpop.f32.mrf.mxu0  ;;  %7471 = vmatprep.subr.bf16.mxu0 %v20873_v19  ;;  %v20936_v37 = vld [vmem:[%s23494_s25 + $0x87c] ss:$40 sps:$4 sm:$0xff]   ;;  %v20931_v19 = vld [vmem:[%s23494_s25 + $0x378] ss:$40 sps:$4 sm:$0xff]   ;;  %v20942_v49 = vld [vmem:[%s23494_s25 + $0x82c] ss:$40 sps:$4 sm:$0xff]  }
 0x436   : > { %v5292_v47 = vpop.f32.mrf.mxu1  ;;  %7512 = vmatprep.subr.bf16.mxu1 %v20876_v42  ;;  %v20939_v42 = vld [vmem:[%s23494_s25 + $0x32c] ss:$40 sps:$4 sm:$0xff]   ;;  %v20937_v43 = vld [vmem:[%s23494_s25 + $0x328] ss:$40 sps:$4 sm:$0xff]   ;;  %v20945_v46 = vld [vmem:[%s23494_s25 + $0x2dc] ss:$40 sps:$4 sm:$0xff]  }
 0x437   : > { %v20948_v47 = vld [vmem:[%s23494_s25 + $0x7dc] ss:$40 sps:$4 sm:$0xff]  }
 0x438   : > { %7472 = vmatpush1.bf16.msra.mxu0 %v20871_v44  ;;  %v20940_v44 = vld [vmem:[%s23494_s25 + $0x828] ss:$40 sps:$4 sm:$0xff]  }
 0x439   : > { %7513 = vmatpush1.bf16.msra.mxu1 %v20874_v50  ;;  %7473 = vmatprep.subr.bf16.mxu0 %v20879_v61  ;;  %v20943_v50 = vld [vmem:[%s23494_s25 + $0x2d8] ss:$40 sps:$4 sm:$0xff]  }
 0x43a   : > { %7514 = vmatprep.subr.bf16.mxu1 %v20882_v52  ;;  %v20946_v61 = vld [vmem:[%s23494_s25 + $0x7d8] ss:$40 sps:$4 sm:$0xff]   ;;  %v20951_v52 = vld [vmem:[%s23494_s25 + $0x28c] ss:$40 sps:$4 sm:$0xff]  }
 0x43c   : > { %7474 = vmatpush1.bf16.msra.mxu0 %v20877_v53  ;;  %v20954_v53 = vld [vmem:[%s23494_s25 + $0x78c] ss:$40 sps:$4 sm:$0xff]  }
 0x43d   : > { %7515 = vmatpush1.bf16.msra.mxu1 %v20880_v57  ;;  %7475 = vmatprep.subr.bf16.mxu0 %v20885_v60  ;;  %v20949_v57 = vld [vmem:[%s23494_s25 + $0x288] ss:$40 sps:$4 sm:$0xff]  }
 0x43e   : > { %7516 = vmatprep.subr.bf16.mxu1 %v20888_v62  ;;  %v20952_v60 = vld [vmem:[%s23494_s25 + $0x788] ss:$40 sps:$4 sm:$0xff]   ;;  %v20957_v62 = vld [vmem:[%s23494_s25 + $0x244] ss:$40 sps:$4 sm:$0xff]  }
 0x440   : > { %7476 = vmatpush1.bf16.msra.mxu0 %v20883_v0  ;;  %v20960_v0 = vld [vmem:[%s23494_s25 + $0x744] ss:$40 sps:$4 sm:$0xff]  }
 0x441   : > { %7517 = vmatpush1.bf16.msra.mxu1 %v20886_v21  ;;  %7477 = vmatprep.subr.bf16.mxu0 %v20891_v2  ;;  %v20955_v21 = vld [vmem:[%s23494_s25 + $0x240] ss:$40 sps:$4 sm:$0xff]  }
 0x442   : > { %7518 = vmatprep.subr.bf16.mxu1 %v20894_v3  ;;  %v20958_v2 = vld [vmem:[%s23494_s25 + $0x740] ss:$40 sps:$4 sm:$0xff]   ;;  %v20963_v3 = vld [vmem:[%s23494_s25 + $0x1f4] ss:$40 sps:$4 sm:$0xff]  }
 0x444   : > { %7478 = vmatpush1.bf16.msra.mxu0 %v20889_v1 }
 0x445   : > { %7519 = vmatpush1.bf16.msra.mxu1 %v20892_v22  ;;  %7479 = vmatprep.subr.bf16.mxu0 %v20897_v54  ;;  %v20966_v54 = vld [vmem:[%s23494_s25 + $0x6f4] ss:$40 sps:$4 sm:$0xff]  }
 0x446   : > { %7520 = vmatprep.subr.bf16.mxu1 %v20900_v14 }
 0x448   : > { %7480 = vmatpush1.bf16.msra.mxu0 %v20895_v59  ;;  %v20961_v59 = vld [vmem:[%s23494_s25 + $0x1f0] ss:$40 sps:$4 sm:$0xff]  }
 0x449   : > { %7521 = vmatpush1.bf16.msra.mxu1 %v20898_v33  ;;  %7481 = vmatprep.subr.bf16.mxu0 %v20903_v5 }
 0x44a   : > { %7522 = vmatprep.subr.bf16.mxu1 %v20906_v7  ;;  %v20964_v7 = vld [vmem:[%s23494_s25 + $0x6f0] ss:$40 sps:$4 sm:$0xff]  }
 0x44c   : > { %7482 = vmatpush1.bf16.msra.mxu0 %v20901_v8  ;;  %v20969_v8 = vld [vmem:[%s23494_s25 + $0x1a4] ss:$40 sps:$4 sm:$0xff]  }
 0x44d   : > { %7523 = vmatpush1.bf16.msra.mxu1 %v20904_v10  ;;  %7483 = vmatprep.subr.bf16.mxu0 %v20909_v11  ;;  %v20972_v10 = vld [vmem:[%s23494_s25 + $0x6a4] ss:$40 sps:$4 sm:$0xff]  }
 0x44e   : > { %7524 = vmatprep.subr.bf16.mxu1 %v20912_v12 }
 0x450   : > { %7484 = vmatpush2.bf16.msra.mxu0 %v20907_v15  ;;  %v20967_v15 = vld [vmem:[%s23494_s25 + $0x1a0] ss:$40 sps:$4 sm:$0xff]  }
 0x451   : > { %7525 = vmatpush2.bf16.msra.mxu1 %v20910_v16  ;;  %7485 = vmatprep.subr.bf16.mxu0 %v20915_v17 }
 0x452   : > { %7526 = vmatprep.subr.bf16.mxu1 %v20918_v18  ;;  %v20970_v18 = vld [vmem:[%s23494_s25 + $0x6a0] ss:$40 sps:$4 sm:$0xff]  }
 0x454   : > { %7486 = vmatpush2.bf16.msra.mxu0 %v20913_v24  ;;  %v20978_v24 = vld [vmem:[%s23494_s25 + $0x654] ss:$40 sps:$4 sm:$0xff]  }
 0x455   : > { %7527 = vmatpush2.bf16.msra.mxu1 %v20916_v27  ;;  %7487 = vmatprep.subr.bf16.mxu0 %v20921_v29  ;;  %v20973_v27 = vld [vmem:[%s23494_s25 + $0x150] ss:$40 sps:$4 sm:$0xff]  }
 0x456   : > { %7528 = vmatprep.subr.bf16.mxu1 %v20924_v31  ;;  %v20976_v29 = vld [vmem:[%s23494_s25 + $0x650] ss:$40 sps:$4 sm:$0xff]   ;;  %v20981_v31 = vld [vmem:[%s23494_s25 + $0x104] ss:$40 sps:$4 sm:$0xff]  }
 0x458   : > { %7488 = vmatpush2.bf16.msra.mxu0 %v20919_v32  ;;  %v20984_v32 = vld [vmem:[%s23494_s25 + $0x604] ss:$40 sps:$4 sm:$0xff]  }
 0x459   : > { %7529 = vmatpush2.bf16.msra.mxu1 %v20922_v34  ;;  %7489 = vmatprep.subr.bf16.mxu0 %v20927_v51  ;;  %v20979_v34 = vld [vmem:[%s23494_s25 + $0x100] ss:$40 sps:$4 sm:$0xff]  }
 0x45a   : > { %7530 = vmatprep.subr.bf16.mxu1 %v20930_v35  ;;  %v20982_v51 = vld [vmem:[%s23494_s25 + $0x600] ss:$40 sps:$4 sm:$0xff]   ;;  %v20987_v35 = vld [vmem:[%s23494_s25 + $0xb4] ss:$40 sps:$4 sm:$0xff]  }
 0x45c   : > { %7490 = vmatpush2.bf16.msra.mxu0 %v20925_v45  ;;  %v20990_v45 = vld [vmem:[%s23494_s25 + $0x5b4] ss:$40 sps:$4 sm:$0xff]  }
 0x45d   : > { %7531 = vmatpush2.bf16.msra.mxu1 %v20928_v41  ;;  %7491 = vmatprep.subr.bf16.mxu0 %v20933_v36  ;;  %v20985_v41 = vld [vmem:[%s23494_s25 + $0xb0] ss:$40 sps:$4 sm:$0xff]  }
 0x45e   : > { %7532 = vmatprep.subr.bf16.mxu1 %v20936_v37  ;;  %v20988_v36 = vld [vmem:[%s23494_s25 + $0x5b0] ss:$40 sps:$4 sm:$0xff]   ;;  %v20993_v37 = vld [vmem:[%s23494_s25 + $0x64] ss:$40 sps:$4 sm:$0xff]  }
 0x460   : > { %7492 = vmatpush2.bf16.msra.mxu0 %v20931_v19  ;;  %v20996_v19 = vld [vmem:[%s23494_s25 + $0x564] ss:$40 sps:$4 sm:$0xff]  }
 0x461   : > { %7533 = vmatpush2.bf16.msra.mxu1 %v20934_v40  ;;  %7493 = vmatprep.subr.bf16.mxu0 %v20939_v42  ;;  %v20991_v40 = vld [vmem:[%s23494_s25 + $0x60] ss:$40 sps:$4 sm:$0xff]  }
 0x462   : > { %7534 = vmatprep.subr.bf16.mxu1 %v20942_v49  ;;  %v20994_v42 = vld [vmem:[%s23494_s25 + $0x560] ss:$40 sps:$4 sm:$0xff]   ;;  %v20999_v49 = vld [vmem:[%s23494_s25 + $0x14] ss:$40 sps:$4 sm:$0xff]  }
 0x464   : > { %7494 = vmatpush2.bf16.msra.mxu0 %v20937_v43  ;;  %v21002_v43 = vld [vmem:[%s23494_s25 + $0x514] ss:$40 sps:$4 sm:$0xff]  }
 0x465   : > { %7535 = vmatpush2.bf16.msra.mxu1 %v20940_v44  ;;  %7495 = vmatprep.subr.bf16.mxu0 %v20945_v46  ;;  %v20997_v44 = vld [vmem:[%s23494_s25 + $0x10] ss:$40 sps:$4 sm:$0xff]  }
 0x466   : > { %7536 = vmatprep.subr.bf16.mxu1 %v20948_v47  ;;  %v21000_v46 = vld [vmem:[%s23494_s25 + $0x510] ss:$40 sps:$4 sm:$0xff]   ;;  %v21005_v47 = vld [vmem:[%s23494_s25 + $0x4c4] ss:$40 sps:$4 sm:$0xff]  }
 0x468   : > { %7496 = vmatpush2.bf16.msra.mxu0 %v20943_v50  ;;  %v21008_v50 = vld [vmem:[%s23494_s25 + $0x9c4] ss:$40 sps:$4 sm:$0xff]  }
 0x469   : > { %7537 = vmatpush2.bf16.msra.mxu1 %v20946_v61  ;;  %7497 = vmatprep.subr.bf16.mxu0 %v20951_v52  ;;  %v21003_v61 = vld [vmem:[%s23494_s25 + $0x4c0] ss:$40 sps:$4 sm:$0xff]  }
 0x46a   : > { %7538 = vmatprep.subr.bf16.mxu1 %v20954_v53  ;;  %v21006_v52 = vld [vmem:[%s23494_s25 + $0x9c0] ss:$40 sps:$4 sm:$0xff]   ;;  %v21011_v53 = vld [vmem:[%s23494_s25 + $0x474] ss:$40 sps:$4 sm:$0xff]  }
 0x46c   : > { %7498 = vmatpush2.bf16.msra.mxu0 %v20949_v57  ;;  %v21014_v57 = vld [vmem:[%s23494_s25 + $0x974] ss:$40 sps:$4 sm:$0xff]  }
 0x46d   : > { %7539 = vmatpush2.bf16.msra.mxu1 %v20952_v60  ;;  %7549 = vmatprep.subr.bf16.mxu0 %v20957_v62  ;;  %v21009_v60 = vld [vmem:[%s23494_s25 + $0x470] ss:$40 sps:$4 sm:$0xff]  }
 0x46e   : > { %7590 = vmatprep.subr.bf16.mxu1 %v20960_v0  ;;  %v21012_v62 = vld [vmem:[%s23494_s25 + $0x970] ss:$40 sps:$4 sm:$0xff]   ;;  %v21017_v0 = vld [vmem:[%s23494_s25 + $0x424] ss:$40 sps:$4 sm:$0xff]  }
 0x46f   : > { %v5328_v1 = vpop.f32.mrf.mxu0  ;;  %7500 = vmatmul.mubr.bf16.vlgmr.msra.gmra.mxu0 %v24320_v26 }
 0x470   : > { %v24403_v22 = vpop.f32.mrf.mxu1  ;;  %v24408_v14 = vadd.f32 %v5328_v1, %v24338_v39  ;;  %7541 = vmatmul.mubr.bf16.vlgmr.msra.gmra.mxu1 %v24325_v28  ;;  %7550 = vmatpush1.bf16.msra.mxu0 %v20955_v21  ;;  %v21020_v21 = vld [vmem:[%s23494_s25 + $0x924] ss:$40 sps:$4 sm:$0xff]   ;;  %v21023_v1 = vld [vmem:[%s23494_s25 + $0x3d4] ss:$40 sps:$4 sm:$0xff]  }
 0x471   : > { %7581 = vmatprep.mubr.bf16.mxu0 %v24236_v56  ;;  %7591 = vmatpush1.bf16.msra.mxu1 %v20958_v2  ;;  %v5330_v33 = vpop.f32.mrf.mxu0  ;;  %v21015_v2 = vld [vmem:[%s23494_s25 + $0x420] ss:$40 sps:$4 sm:$0xff]  }
 0x472   : > { %v24413_v5 = vpop.f32.mrf.mxu1  ;;  %7622 = vmatprep.mubr.bf16.mxu1 %v24241_v58  ;;  %v24419_v39 = vadd.f32 %v5330_v33, %v24342_v63  ;;  %7551 = vmatprep.subr.bf16.mxu0 %v20963_v3  ;;  %v20975_v63 = vld [vmem:[%s23494_s25 + $0x154] ss:$40 sps:$4 sm:$0xff]   ;;  %v21018_v3 = vld [vmem:[%s23494_s25 + $0x920] ss:$40 sps:$4 sm:$0xff]   ;;  %v21024_v33 = vld [vmem:[%s23494_s25 + $0x8d0] ss:$40 sps:$4 sm:$0xff]  }
 0x473   : > { %v5332_v11 = vpop.f32.mrf.mxu0  ;;  %7592 = vmatprep.subr.bf16.mxu1 %v20966_v54  ;;  %v21026_v54 = vld [vmem:[%s23494_s25 + $0x8d4] ss:$40 sps:$4 sm:$0xff]  }
 0x474   : > { %v5373_v12 = vpop.f32.mrf.mxu1  ;;  %7552 = vmatpush1.bf16.msra.mxu0 %v20961_v59  ;;  %v21021_v59 = vld [vmem:[%s23494_s25 + $0x3d0] ss:$40 sps:$4 sm:$0xff]   ;;  %v21030_v11 = vld [vmem:[%s23494_s25 + $0x880] ss:$40 sps:$4 sm:$0xff]  }
 0x475   : > { %7593 = vmatpush1.bf16.msra.mxu1 %v20964_v7  ;;  %v5333_v16 = vpop.f32.mrf.mxu0  ;;  %7553 = vmatprep.subr.bf16.mxu0 %v20969_v8  ;;  %v21029_v7 = vld [vmem:[%s23494_s25 + $0x384] ss:$40 sps:$4 sm:$0xff]   ;;  %v21035_v12 = vld [vmem:[%s23494_s25 + $0x334] ss:$40 sps:$4 sm:$0xff]  }
 0x476   : > { %v5374_v17 = vpop.f32.mrf.mxu1  ;;  %7594 = vmatprep.subr.bf16.mxu1 %v20972_v10  ;;  %v21032_v8 = vld [vmem:[%s23494_s25 + $0x884] ss:$40 sps:$4 sm:$0xff]   ;;  %v21027_v10 = vld [vmem:[%s23494_s25 + $0x380] ss:$40 sps:$4 sm:$0xff]   ;;  %v21033_v16 = vld [vmem:[%s23494_s25 + $0x330] ss:$40 sps:$4 sm:$0xff]  }
 0x477   : > { %v21036_v17 = vld [vmem:[%s23494_s25 + $0x830] ss:$40 sps:$4 sm:$0xff]  }
 0x478   : > { %7554 = vmatpush1.bf16.msra.mxu0 %v20967_v15  ;;  %v21038_v15 = vld [vmem:[%s23494_s25 + $0x834] ss:$40 sps:$4 sm:$0xff]  }
 0x479   : > { %7595 = vmatpush1.bf16.msra.mxu1 %v20970_v18  ;;  %7555 = vmatprep.subr.bf16.mxu0 %v20975_v63  ;;  %v21041_v18 = vld [vmem:[%s23494_s25 + $0x2e4] ss:$40 sps:$4 sm:$0xff]  }
 0x47a   : > { %7596 = vmatprep.subr.bf16.mxu1 %v20978_v24  ;;  %v21044_v63 = vld [vmem:[%s23494_s25 + $0x7e4] ss:$40 sps:$4 sm:$0xff]   ;;  %v21039_v24 = vld [vmem:[%s23494_s25 + $0x2e0] ss:$40 sps:$4 sm:$0xff]  }
 0x47c   : > { %7556 = vmatpush1.bf16.msra.mxu0 %v20973_v27  ;;  %v21042_v27 = vld [vmem:[%s23494_s25 + $0x7e0] ss:$40 sps:$4 sm:$0xff]  }
 0x47d   : > { %7597 = vmatpush1.bf16.msra.mxu1 %v20976_v29  ;;  %7557 = vmatprep.subr.bf16.mxu0 %v20981_v31  ;;  %v21047_v29 = vld [vmem:[%s23494_s25 + $0x294] ss:$40 sps:$4 sm:$0xff]   ;;  %v3032_v31 = vsub.s32 6, %v23563_v38 }
 0x47e   : > { %7598 = vmatprep.subr.bf16.mxu1 %v20984_v32  ;;  %v21050_v32 = vld [vmem:[%s23494_s25 + $0x794] ss:$40 sps:$4 sm:$0xff]  }
 0x480   : > { %7558 = vmatpush1.bf16.msra.mxu0 %v20979_v34  ;;  %v3036_v34 = vsub.s32 7, %v23563_v38 }
 0x481   : > { %7599 = vmatpush1.bf16.msra.mxu1 %v20982_v51  ;;  %7559 = vmatprep.subr.bf16.mxu0 %v20987_v35  ;;  %v21045_v51 = vld [vmem:[%s23494_s25 + $0x290] ss:$40 sps:$4 sm:$0xff]  }
 0x482   : > { %7600 = vmatprep.subr.bf16.mxu1 %v20990_v45  ;;  %v21048_v35 = vld [vmem:[%s23494_s25 + $0x790] ss:$40 sps:$4 sm:$0xff]   ;;  %v21053_v45 = vld [vmem:[%s23494_s25 + $0x24c] ss:$40 sps:$4 sm:$0xff]  }
 0x484   : > { %7560 = vmatpush1.bf16.msra.mxu0 %v20985_v41  ;;  %v22205_v41 = vld [vmem:[%s23492_s26] sm:$0xff] }
 0x485   : > { %7601 = vmatpush1.bf16.msra.mxu1 %v20988_v36  ;;  %7561 = vmatprep.subr.bf16.mxu0 %v20993_v37  ;;  %v3033_v36 = vrot.slane %v22205_v41, %v3032_v31  ;;  %v21056_v37 = vld [vmem:[%s23494_s25 + $0x74c] ss:$40 sps:$4 sm:$0xff]  }
 0x486   : > { %7602 = vmatprep.subr.bf16.mxu1 %v20996_v19  ;;  %v3037_v19 = vrot.slane %v22205_v41, %v3036_v34  ;;  %v21098_v41 = vld [vmem:[%s23494_s25 + $0x51c] ss:$40 sps:$4 sm:$0xff]  }
 0x488   : > { %7562 = vmatpush1.bf16.msra.mxu0 %v20991_v40  ;;  %v21051_v40 = vld [vmem:[%s23494_s25 + $0x248] ss:$40 sps:$4 sm:$0xff]  }
 0x489   : > { %7603 = vmatpush1.bf16.msra.mxu1 %v20994_v42  ;;  %7563 = vmatprep.subr.bf16.mxu0 %v20999_v49  ;;  %v21054_v42 = vld [vmem:[%s23494_s25 + $0x748] ss:$40 sps:$4 sm:$0xff]   ;;  %v5370_v49 = vadd.f32 %v24403_v22, %v3033_v36  ;;  %v21093_v36 = vld [vmem:[%s23494_s25 + $0x18] ss:$40 sps:$4 sm:$0xff]  }
 0x48a   : > { %7604 = vmatprep.subr.bf16.mxu1 %v21002_v43  ;;  %v21059_v43 = vld [vmem:[%s23494_s25 + $0x1fc] ss:$40 sps:$4 sm:$0xff]  }
 0x48c   : > { %7564 = vmatpush1.bf16.msra.mxu0 %v20997_v44 }
 0x48d   : > { %7605 = vmatpush1.bf16.msra.mxu1 %v21000_v46  ;;  %7565 = vmatprep.subr.bf16.mxu0 %v21005_v47  ;;  %v21062_v47 = vld [vmem:[%s23494_s25 + $0x6fc] ss:$40 sps:$4 sm:$0xff]  }
 0x48e   : > { %7606 = vmatprep.subr.bf16.mxu1 %v21008_v50  ;;  %v5372_v50 = vadd.f32 %v24413_v5, %v3037_v19  ;;  %v21101_v19 = vld [vmem:[%s23494_s25 + $0x4cc] ss:$40 sps:$4 sm:$0xff]  }
 0x490   : > { %7566 = vmatpush2.bf16.msra.mxu0 %v21003_v61 }
 0x491   : > { %7607 = vmatpush2.bf16.msra.mxu1 %v21006_v52  ;;  %7567 = vmatprep.subr.bf16.mxu0 %v21011_v53  ;;  %v21057_v52 = vld [vmem:[%s23494_s25 + $0x1f8] ss:$40 sps:$4 sm:$0xff]  }
 0x492   : > { %7608 = vmatprep.subr.bf16.mxu1 %v21014_v57  ;;  %v21060_v57 = vld [vmem:[%s23494_s25 + $0x6f8] ss:$40 sps:$4 sm:$0xff]  }
 0x494   : > { %7568 = vmatpush2.bf16.msra.mxu0 %v21009_v60  ;;  %v21065_v60 = vld [vmem:[%s23494_s25 + $0x1ac] ss:$40 sps:$4 sm:$0xff]  }
 0x495   : > { %7609 = vmatpush2.bf16.msra.mxu1 %v21012_v62  ;;  %7569 = vmatprep.subr.bf16.mxu0 %v21017_v0  ;;  %v21068_v0 = vld [vmem:[%s23494_s25 + $0x6ac] ss:$40 sps:$4 sm:$0xff]  }
 0x496   : > { %7610 = vmatprep.subr.bf16.mxu1 %v21020_v21 }
 0x498   : > { %7570 = vmatpush2.bf16.msra.mxu0 %v21015_v2 }
 0x499   : > { %7611 = vmatpush2.bf16.msra.mxu1 %v21018_v3  ;;  %7571 = vmatprep.subr.bf16.mxu0 %v21023_v1  ;;  %v21063_v1 = vld [vmem:[%s23494_s25 + $0x1a8] ss:$40 sps:$4 sm:$0xff]  }
 0x49a   : > { %7612 = vmatprep.subr.bf16.mxu1 %v21026_v54 }
 0x49c   : > { %7572 = vmatpush2.bf16.msra.mxu0 %v21021_v59 }
 0x49d   : > { %7613 = vmatpush2.bf16.msra.mxu1 %v21024_v33  ;;  %7573 = vmatprep.subr.bf16.mxu0 %v21029_v7  ;;  %v21066_v33 = vld [vmem:[%s23494_s25 + $0x6a8] ss:$40 sps:$4 sm:$0xff]   ;;  %v21071_v7 = vld [vmem:[%s23494_s25 + $0x15c] ss:$40 sps:$4 sm:$0xff]  }
 0x49e   : > { %7614 = vmatprep.subr.bf16.mxu1 %v21032_v8  ;;  %v21074_v8 = vld [vmem:[%s23494_s25 + $0x65c] ss:$40 sps:$4 sm:$0xff]  }
 0x4a0   : > { %7574 = vmatpush2.bf16.msra.mxu0 %v21027_v10  ;;  %v21069_v10 = vld [vmem:[%s23494_s25 + $0x158] ss:$40 sps:$4 sm:$0xff]  }
 0x4a1   : > { %7615 = vmatpush2.bf16.msra.mxu1 %v21030_v11  ;;  %7575 = vmatprep.subr.bf16.mxu0 %v21035_v12  ;;  %v21072_v11 = vld [vmem:[%s23494_s25 + $0x658] ss:$40 sps:$4 sm:$0xff]   ;;  %v21077_v12 = vld [vmem:[%s23494_s25 + $0x10c] ss:$40 sps:$4 sm:$0xff]  }
 0x4a2   : > { %7616 = vmatprep.subr.bf16.mxu1 %v21038_v15  ;;  %v21080_v15 = vld [vmem:[%s23494_s25 + $0x60c] ss:$40 sps:$4 sm:$0xff]  }
 0x4a4   : > { %7576 = vmatpush2.bf16.msra.mxu0 %v21033_v16  ;;  %v21075_v16 = vld [vmem:[%s23494_s25 + $0x108] ss:$40 sps:$4 sm:$0xff]  }
 0x4a5   : > { %7617 = vmatpush2.bf16.msra.mxu1 %v21036_v17  ;;  %7577 = vmatprep.subr.bf16.mxu0 %v21041_v18  ;;  %v21078_v17 = vld [vmem:[%s23494_s25 + $0x608] ss:$40 sps:$4 sm:$0xff]   ;;  %v21083_v18 = vld [vmem:[%s23494_s25 + $0xbc] ss:$40 sps:$4 sm:$0xff]  }
 0x4a6   : > { %7618 = vmatprep.subr.bf16.mxu1 %v21044_v63  ;;  %v21086_v63 = vld [vmem:[%s23494_s25 + $0x5bc] ss:$40 sps:$4 sm:$0xff]  }
 0x4a8   : > { %7578 = vmatpush2.bf16.msra.mxu0 %v21039_v24  ;;  %v21081_v24 = vld [vmem:[%s23494_s25 + $0xb8] ss:$40 sps:$4 sm:$0xff]  }
 0x4a9   : > { %7619 = vmatpush2.bf16.msra.mxu1 %v21042_v27  ;;  %7579 = vmatprep.subr.bf16.mxu0 %v21047_v29  ;;  %v21084_v27 = vld [vmem:[%s23494_s25 + $0x5b8] ss:$40 sps:$4 sm:$0xff]   ;;  %v21089_v29 = vld [vmem:[%s23494_s25 + $0x6c] ss:$40 sps:$4 sm:$0xff]  }
 0x4aa   : > { %7620 = vmatprep.subr.bf16.mxu1 %v21050_v32  ;;  %v21092_v32 = vld [vmem:[%s23494_s25 + $0x56c] ss:$40 sps:$4 sm:$0xff]  }
 0x4ac   : > { %7580 = vmatpush2.bf16.msra.mxu0 %v21045_v51  ;;  %v21087_v51 = vld [vmem:[%s23494_s25 + $0x68] ss:$40 sps:$4 sm:$0xff]  }
 0x4ad   : > { %7621 = vmatpush2.bf16.msra.mxu1 %v21048_v35  ;;  %7631 = vmatprep.subr.bf16.mxu0 %v21053_v45  ;;  %v21090_v35 = vld [vmem:[%s23494_s25 + $0x568] ss:$40 sps:$4 sm:$0xff]   ;;  %v21095_v45 = vld [vmem:[%s23494_s25 + $0x1c] ss:$40 sps:$4 sm:$0xff]  }
 0x4ae   : > { %7672 = vmatprep.subr.bf16.mxu1 %v21056_v37  ;;  %v21096_v37 = vld [vmem:[%s23494_s25 + $0x518] ss:$40 sps:$4 sm:$0xff]  }
 0x4af   : > { %v5410_v44 = vpop.f32.mrf.mxu0  ;;  %7582 = vmatmul.mubr.bf16.vlgmr.msra.gmra.mxu0 %v24320_v26 }
 0x4b0   : > { %v5451_v46 = vpop.f32.mrf.mxu1  ;;  %v5411_v61 = vadd.f32 %v5410_v44, %v5370_v49  ;;  %7623 = vmatmul.mubr.bf16.vlgmr.msra.gmra.mxu1 %v24325_v28  ;;  %7632 = vmatpush1.bf16.msra.mxu0 %v21051_v40  ;;  %v21104_v40 = vld [vmem:[%s23494_s25 + $0x9cc] ss:$40 sps:$4 sm:$0xff]   ;;  %v21102_v49 = vld [vmem:[%s23494_s25 + $0x9c8] ss:$40 sps:$4 sm:$0xff]   ;;  %v21110_v44 = vld [vmem:[%s23494_s25 + $0x97c] ss:$40 sps:$4 sm:$0xff]  }
 0x4b1   : > { %7663 = vmatprep.mubr.bf16.mxu0 %v24236_v56  ;;  %7673 = vmatpush1.bf16.msra.mxu1 %v21054_v42  ;;  %v5412_v22 = vpop.f32.mrf.mxu0  ;;  %v21099_v42 = vld [vmem:[%s23494_s25 + $0x4c8] ss:$40 sps:$4 sm:$0xff]  }
 0x4b2   : > { %v5453_v53 = vpop.f32.mrf.mxu1  ;;  %v24497_v62 = vadd.f32 %v5451_v46, %v5411_v61  ;;  %7704 = vmatprep.mubr.bf16.mxu1 %v24241_v58  ;;  %v5413_v5 = vadd.f32 %v5412_v22, %v5372_v50  ;;  %7633 = vmatprep.subr.bf16.mxu0 %v21059_v43  ;;  %v21107_v43 = vld [vmem:[%s23494_s25 + $0x47c] ss:$40 sps:$4 sm:$0xff]   ;;  %v21105_v46 = vld [vmem:[%s23494_s25 + $0x478] ss:$40 sps:$4 sm:$0xff]   ;;  %v21113_v50 = vld [vmem:[%s23494_s25 + $0x42c] ss:$40 sps:$4 sm:$0xff]  }
 0x4b3   : > { %v5414_v21 = vpop.f32.mrf.mxu0  ;;  %7674 = vmatprep.subr.bf16.mxu1 %v21062_v47  ;;  %v21108_v47 = vld [vmem:[%s23494_s25 + $0x978] ss:$40 sps:$4 sm:$0xff]   ;;  %v21116_v61 = vld [vmem:[%s23494_s25 + $0x92c] ss:$40 sps:$4 sm:$0xff]   ;;  %v21114_v22 = vld [vmem:[%s23494_s25 + $0x928] ss:$40 sps:$4 sm:$0xff]  }
 0x4b4   : > { %v5455_v2 = vpop.f32.mrf.mxu1  ;;  %v24501_v3 = vadd.f32 %v5453_v53, %v5413_v5  ;;  %7634 = vmatpush1.bf16.msra.mxu0 %v21057_v52  ;;  %v21111_v52 = vld [vmem:[%s23494_s25 + $0x428] ss:$40 sps:$4 sm:$0xff]   ;;  %v21119_v53 = vld [vmem:[%s23494_s25 + $0x3dc] ss:$40 sps:$4 sm:$0xff]   ;;  %v21120_v5 = vld [vmem:[%s23494_s25 + $0x8d8] ss:$40 sps:$4 sm:$0xff]  }
 0x4b5   : > { %7675 = vmatpush1.bf16.msra.mxu1 %v21060_v57  ;;  %v5415_v54 = vpop.f32.mrf.mxu0  ;;  %7635 = vmatprep.subr.bf16.mxu0 %v21065_v60  ;;  %v21122_v57 = vld [vmem:[%s23494_s25 + $0x8dc] ss:$40 sps:$4 sm:$0xff]   ;;  %v21117_v60 = vld [vmem:[%s23494_s25 + $0x3d8] ss:$40 sps:$4 sm:$0xff]   ;;  %v21128_v21 = vld [vmem:[%s23494_s25 + $0x88c] ss:$40 sps:$4 sm:$0xff]  }
 0x4b6   : > { %v5456_v59 = vpop.f32.mrf.mxu1  ;;  %7676 = vmatprep.subr.bf16.mxu1 %v21068_v0  ;;  %v21125_v0 = vld [vmem:[%s23494_s25 + $0x38c] ss:$40 sps:$4 sm:$0xff]   ;;  %v21123_v2 = vld [vmem:[%s23494_s25 + $0x388] ss:$40 sps:$4 sm:$0xff]   ;;  %v21131_v54 = vld [vmem:[%s23494_s25 + $0x33c] ss:$40 sps:$4 sm:$0xff]  }
 0x4b7   : > { %v21134_v59 = vld [vmem:[%s23494_s25 + $0x83c] ss:$40 sps:$4 sm:$0xff]  }
 0x4b8   : > { %7636 = vmatpush1.bf16.msra.mxu0 %v21063_v1  ;;  %v21126_v1 = vld [vmem:[%s23494_s25 + $0x888] ss:$40 sps:$4 sm:$0xff]  }
 0x4b9   : > { %7677 = vmatpush1.bf16.msra.mxu1 %v21066_v33  ;;  %7637 = vmatprep.subr.bf16.mxu0 %v21071_v7  ;;  %v21129_v33 = vld [vmem:[%s23494_s25 + $0x338] ss:$40 sps:$4 sm:$0xff]  }
 0x4ba   : > { %7678 = vmatprep.subr.bf16.mxu1 %v21074_v8  ;;  %v21132_v7 = vld [vmem:[%s23494_s25 + $0x838] ss:$40 sps:$4 sm:$0xff]   ;;  %v21137_v8 = vld [vmem:[%s23494_s25 + $0x2ec] ss:$40 sps:$4 sm:$0xff]  }
 0x4bc   : > { %7638 = vmatpush1.bf16.msra.mxu0 %v21069_v10  ;;  %v21140_v10 = vld [vmem:[%s23494_s25 + $0x7ec] ss:$40 sps:$4 sm:$0xff]  }
 0x4bd   : > { %7679 = vmatpush1.bf16.msra.mxu1 %v21072_v11  ;;  %7639 = vmatprep.subr.bf16.mxu0 %v21077_v12  ;;  %v21135_v11 = vld [vmem:[%s23494_s25 + $0x2e8] ss:$40 sps:$4 sm:$0xff]  }
 0x4be   : > { %7680 = vmatprep.subr.bf16.mxu1 %v21080_v15  ;;  %v21138_v12 = vld [vmem:[%s23494_s25 + $0x7e8] ss:$40 sps:$4 sm:$0xff]   ;;  %v21143_v15 = vld [vmem:[%s23494_s25 + $0x29c] ss:$40 sps:$4 sm:$0xff]  }
 0x4c0   : > { %7640 = vmatpush1.bf16.msra.mxu0 %v21075_v16  ;;  %v21146_v16 = vld [vmem:[%s23494_s25 + $0x79c] ss:$40 sps:$4 sm:$0xff]  }
 0x4c1   : > { %7681 = vmatpush1.bf16.msra.mxu1 %v21078_v17  ;;  %7641 = vmatprep.subr.bf16.mxu0 %v21083_v18  ;;  %v21141_v17 = vld [vmem:[%s23494_s25 + $0x298] ss:$40 sps:$4 sm:$0xff]  }
 0x4c2   : > { %7682 = vmatprep.subr.bf16.mxu1 %v21086_v63  ;;  %v21144_v18 = vld [vmem:[%s23494_s25 + $0x798] ss:$40 sps:$4 sm:$0xff]   ;;  %v21149_v63 = vld [vmem:[%s23494_s25 + $0x254] ss:$40 sps:$4 sm:$0xff]  }
 0x4c4   : > { %7642 = vmatpush1.bf16.msra.mxu0 %v21081_v24  ;;  %v21152_v24 = vld [vmem:[%s23494_s25 + $0x754] ss:$40 sps:$4 sm:$0xff]  }
 0x4c5   : > { %7683 = vmatpush1.bf16.msra.mxu1 %v21084_v27  ;;  %7643 = vmatprep.subr.bf16.mxu0 %v21089_v29  ;;  %v21147_v27 = vld [vmem:[%s23494_s25 + $0x250] ss:$40 sps:$4 sm:$0xff]  }
 0x4c6   : > { %7684 = vmatprep.subr.bf16.mxu1 %v21092_v32  ;;  %v21150_v29 = vld [vmem:[%s23494_s25 + $0x750] ss:$40 sps:$4 sm:$0xff]   ;;  %v21155_v32 = vld [vmem:[%s23494_s25 + $0x204] ss:$40 sps:$4 sm:$0xff]  }
 0x4c8   : > { %7644 = vmatpush1.bf16.msra.mxu0 %v21087_v51 }
 0x4c9   : > { %7685 = vmatpush1.bf16.msra.mxu1 %v21090_v35  ;;  %7645 = vmatprep.subr.bf16.mxu0 %v21095_v45  ;;  %v21158_v35 = vld [vmem:[%s23494_s25 + $0x704] ss:$40 sps:$4 sm:$0xff]  }
 0x4ca   : > { %7686 = vmatprep.subr.bf16.mxu1 %v21098_v41  ;;  %v21153_v41 = vld [vmem:[%s23494_s25 + $0x200] ss:$40 sps:$4 sm:$0xff]  }
 0x4cc   : > { %7646 = vmatpush1.bf16.msra.mxu0 %v21093_v36 }
 0x4cd   : > { %7687 = vmatpush1.bf16.msra.mxu1 %v21096_v37  ;;  %7647 = vmatprep.subr.bf16.mxu0 %v21101_v19  ;;  %v21156_v19 = vld [vmem:[%s23494_s25 + $0x700] ss:$40 sps:$4 sm:$0xff]  }
 0x4ce   : > { %7688 = vmatprep.subr.bf16.mxu1 %v21104_v40  ;;  %v21161_v40 = vld [vmem:[%s23494_s25 + $0x1b4] ss:$40 sps:$4 sm:$0xff]  }
 0x4d0   : > { %7648 = vmatpush2.bf16.msra.mxu0 %v21099_v42 }
 0x4d1   : > { %7689 = vmatpush2.bf16.msra.mxu1 %v21102_v49  ;;  %7649 = vmatprep.subr.bf16.mxu0 %v21107_v43  ;;  %v21164_v49 = vld [vmem:[%s23494_s25 + $0x6b4] ss:$40 sps:$4 sm:$0xff]  }
 0x4d2   : > { %7690 = vmatprep.subr.bf16.mxu1 %v21110_v44 }
 0x4d4   : > { %7650 = vmatpush2.bf16.msra.mxu0 %v21105_v46 }
 0x4d5   : > { %7691 = vmatpush2.bf16.msra.mxu1 %v21108_v47  ;;  %7651 = vmatprep.subr.bf16.mxu0 %v21113_v50  ;;  %v21162_v50 = vld [vmem:[%s23494_s25 + $0x6b0] ss:$40 sps:$4 sm:$0xff]  }
 0x4d6   : > { %7692 = vmatprep.subr.bf16.mxu1 %v21116_v61  ;;  %v21167_v61 = vld [vmem:[%s23494_s25 + $0x164] ss:$40 sps:$4 sm:$0xff]  }
 0x4d8   : > { %7652 = vmatpush2.bf16.msra.mxu0 %v21111_v52 }
 0x4d9   : > { %7693 = vmatpush2.bf16.msra.mxu1 %v21114_v22  ;;  %7653 = vmatprep.subr.bf16.mxu0 %v21119_v53  ;;  %v21170_v22 = vld [vmem:[%s23494_s25 + $0x664] ss:$40 sps:$4 sm:$0xff]   ;;  %v21165_v53 = vld [vmem:[%s23494_s25 + $0x160] ss:$40 sps:$4 sm:$0xff]  }
 0x4da   : > { %7694 = vmatprep.subr.bf16.mxu1 %v21122_v57  ;;  %v21168_v57 = vld [vmem:[%s23494_s25 + $0x660] ss:$40 sps:$4 sm:$0xff]  }
 0x4dc   : > { %7654 = vmatpush2.bf16.msra.mxu0 %v21117_v60  ;;  %v21173_v60 = vld [vmem:[%s23494_s25 + $0x114] ss:$40 sps:$4 sm:$0xff]  }
 0x4dd   : > { %7695 = vmatpush2.bf16.msra.mxu1 %v21120_v5  ;;  %7655 = vmatprep.subr.bf16.mxu0 %v21125_v0  ;;  %v21176_v5 = vld [vmem:[%s23494_s25 + $0x614] ss:$40 sps:$4 sm:$0xff]   ;;  %v21171_v0 = vld [vmem:[%s23494_s25 + $0x110] ss:$40 sps:$4 sm:$0xff]  }
 0x4de   : > { %7696 = vmatprep.subr.bf16.mxu1 %v21128_v21  ;;  %v21174_v21 = vld [vmem:[%s23494_s25 + $0x610] ss:$40 sps:$4 sm:$0xff]  }
 0x4e0   : > { %7656 = vmatpush2.bf16.msra.mxu0 %v21123_v2  ;;  %v21179_v2 = vld [vmem:[%s23494_s25 + $0xc4] ss:$40 sps:$4 sm:$0xff]  }
 0x4e1   : > { %7697 = vmatpush2.bf16.msra.mxu1 %v21126_v1  ;;  %7657 = vmatprep.subr.bf16.mxu0 %v21131_v54  ;;  %v21182_v1 = vld [vmem:[%s23494_s25 + $0x5c4] ss:$40 sps:$4 sm:$0xff]   ;;  %v21177_v54 = vld [vmem:[%s23494_s25 + $0xc0] ss:$40 sps:$4 sm:$0xff]  }
 0x4e2   : > { %7698 = vmatprep.subr.bf16.mxu1 %v21134_v59  ;;  %v21180_v59 = vld [vmem:[%s23494_s25 + $0x5c0] ss:$40 sps:$4 sm:$0xff]  }
 0x4e4   : > { %7658 = vmatpush2.bf16.msra.mxu0 %v21129_v33  ;;  %v21185_v33 = vld [vmem:[%s23494_s25 + $0x74] ss:$40 sps:$4 sm:$0xff]  }
 0x4e5   : > { %7699 = vmatpush2.bf16.msra.mxu1 %v21132_v7  ;;  %7659 = vmatprep.subr.bf16.mxu0 %v21137_v8  ;;  %v21188_v7 = vld [vmem:[%s23494_s25 + $0x574] ss:$40 sps:$4 sm:$0xff]   ;;  %v21183_v8 = vld [vmem:[%s23494_s25 + $0x70] ss:$40 sps:$4 sm:$0xff]  }
 0x4e6   : > { %7700 = vmatprep.subr.bf16.mxu1 %v21140_v10  ;;  %v21186_v10 = vld [vmem:[%s23494_s25 + $0x570] ss:$40 sps:$4 sm:$0xff]  }
 0x4e8   : > { %7660 = vmatpush2.bf16.msra.mxu0 %v21135_v11  ;;  %v21191_v11 = vld [vmem:[%s23494_s25 + $0x24] ss:$40 sps:$4 sm:$0xff]  }
 0x4e9   : > { %7701 = vmatpush2.bf16.msra.mxu1 %v21138_v12  ;;  %7661 = vmatprep.subr.bf16.mxu0 %v21143_v15  ;;  %v21194_v12 = vld [vmem:[%s23494_s25 + $0x524] ss:$40 sps:$4 sm:$0xff]   ;;  %v21189_v15 = vld [vmem:[%s23494_s25 + $0x20] ss:$40 sps:$4 sm:$0xff]  }
 0x4ea   : > { %7702 = vmatprep.subr.bf16.mxu1 %v21146_v16  ;;  %v21192_v16 = vld [vmem:[%s23494_s25 + $0x520] ss:$40 sps:$4 sm:$0xff]  }
 0x4ec   : > { %7662 = vmatpush2.bf16.msra.mxu0 %v21141_v17  ;;  %v21197_v17 = vld [vmem:[%s23494_s25 + $0x4d4] ss:$40 sps:$4 sm:$0xff]  }
 0x4ed   : > { %7703 = vmatpush2.bf16.msra.mxu1 %v21144_v18  ;;  %7713 = vmatprep.subr.bf16.mxu0 %v21149_v63  ;;  %v21200_v18 = vld [vmem:[%s23494_s25 + $0x9d4] ss:$40 sps:$4 sm:$0xff]   ;;  %v21195_v63 = vld [vmem:[%s23494_s25 + $0x4d0] ss:$40 sps:$4 sm:$0xff]  }
 0x4ee   : > { %7754 = vmatprep.subr.bf16.mxu1 %v21152_v24  ;;  %v21198_v24 = vld [vmem:[%s23494_s25 + $0x9d0] ss:$40 sps:$4 sm:$0xff]  }
 0x4ef   : > { %v7419_v51 = vpop.f32.mrf.mxu0  ;;  %7664 = vmatmul.mubr.bf16.vlgmr.msra.gmra.mxu0 %v24320_v26 }
 0x4f0   : > { %v7460_v45 = vpop.f32.mrf.mxu1  ;;  %7705 = vmatmul.mubr.bf16.vlgmr.msra.gmra.mxu1 %v24325_v28  ;;  %7714 = vmatpush1.bf16.msra.mxu0 %v21147_v27  ;;  %v21203_v27 = vld [vmem:[%s23494_s25 + $0x484] ss:$40 sps:$4 sm:$0xff]  }
 0x4f1   : > { %v24566_v36 = vadd.f32 %v7460_v45, %v7419_v51  ;;  %7745 = vmatprep.mubr.bf16.mxu0 %v24236_v56  ;;  %7755 = vmatpush1.bf16.msra.mxu1 %v21150_v29  ;;  %v7421_v37 = vpop.f32.mrf.mxu0  ;;  %v21159_v56 = vld [vmem:[%s23494_s25 + $0x1b0] ss:$40 sps:$4 sm:$0xff]   ;;  %v21206_v29 = vld [vmem:[%s23494_s25 + $0x984] ss:$40 sps:$4 sm:$0xff]   ;;  %v21204_v51 = vld [vmem:[%s23494_s25 + $0x980] ss:$40 sps:$4 sm:$0xff]  }
 0x4f2   : > { %7786 = vmatprep.mubr.bf16.mxu1 %v24241_v58  ;;  %v7462_v42 = vpop.f32.mrf.mxu1  ;;  %7715 = vmatprep.subr.bf16.mxu0 %v21155_v32  ;;  %v21201_v32 = vld [vmem:[%s23494_s25 + $0x480] ss:$40 sps:$4 sm:$0xff]   ;;  %v21212_v45 = vld [vmem:[%s23494_s25 + $0x934] ss:$40 sps:$4 sm:$0xff]  }
 0x4f3   : > { %v24573_v43 = vadd.f32 %v7462_v42, %v7421_v37  ;;  %v7423_v44 = vpop.f32.mrf.mxu0  ;;  %7756 = vmatprep.subr.bf16.mxu1 %v21158_v35  ;;  %v21209_v35 = vld [vmem:[%s23494_s25 + $0x434] ss:$40 sps:$4 sm:$0xff]   ;;  %v21210_v37 = vld [vmem:[%s23494_s25 + $0x930] ss:$40 sps:$4 sm:$0xff]   ;;  %v21213_v42 = vld [vmem:[%s23494_s25 + $0x3e0] ss:$40 sps:$4 sm:$0xff]  }
 0x4f4   : > { %v7464_v46 = vpop.f32.mrf.mxu1  ;;  %7716 = vmatpush1.bf16.msra.mxu0 %v21153_v41  ;;  %v21207_v41 = vld [vmem:[%s23494_s25 + $0x430] ss:$40 sps:$4 sm:$0xff]   ;;  %v21221_v44 = vld [vmem:[%s23494_s25 + $0x394] ss:$40 sps:$4 sm:$0xff]  }
 0x4f5   : > { %v7805_v47 = vcombine.low %v24566_v36, %v24573_v43  ;;  %7757 = vmatpush1.bf16.msra.mxu1 %v21156_v19  ;;  %v7424_v58 = vpop.f32.mrf.mxu0  ;;  %7717 = vmatprep.subr.bf16.mxu0 %v21161_v40  ;;  %v21215_v19 = vld [vmem:[%s23494_s25 + $0x3e4] ss:$40 sps:$4 sm:$0xff]   ;;  %v21224_v46 = vld [vmem:[%s23494_s25 + $0x894] ss:$40 sps:$4 sm:$0xff]   ;;  %v21267_v43 = vld [vmem:[%s23500_s29 + $0xf0] ss:$40 sps:$4 sm:$0xff]  }
 0x4f6   : > { %v7465_v52 = vpop.f32.mrf.mxu1  ;;  %7758 = vmatprep.subr.bf16.mxu1 %v21164_v49  ;;  %v21218_v40 = vld [vmem:[%s23494_s25 + $0x8e4] ss:$40 sps:$4 sm:$0xff]   ;;  %v21216_v49 = vld [vmem:[%s23494_s25 + $0x8e0] ss:$40 sps:$4 sm:$0xff]   ;;  %v21222_v58 = vld [vmem:[%s23494_s25 + $0x890] ss:$40 sps:$4 sm:$0xff]  }
 0x4f7   : > { %v21225_v52 = vld [vmem:[%s23494_s25 + $0x340] ss:$40 sps:$4 sm:$0xff]  }
 0x4f8   : > { %7718 = vmatpush1.bf16.msra.mxu0 %v21159_v56  ;;  %v21219_v56 = vld [vmem:[%s23494_s25 + $0x390] ss:$40 sps:$4 sm:$0xff]  }
 0x4f9   : > { %7759 = vmatpush1.bf16.msra.mxu1 %v21162_v50  ;;  %7719 = vmatprep.subr.bf16.mxu0 %v21167_v61  ;;  %v21227_v50 = vld [vmem:[%s23494_s25 + $0x344] ss:$40 sps:$4 sm:$0xff]  }
 0x4fa   : > { %7760 = vmatprep.subr.bf16.mxu1 %v21170_v22  ;;  %v21230_v61 = vld [vmem:[%s23494_s25 + $0x844] ss:$40 sps:$4 sm:$0xff]   ;;  %v21228_v22 = vld [vmem:[%s23494_s25 + $0x840] ss:$40 sps:$4 sm:$0xff]  }
 0x4fc   : > { %7720 = vmatpush1.bf16.msra.mxu0 %v21165_v53  ;;  %v21233_v53 = vld [vmem:[%s23494_s25 + $0x2f4] ss:$40 sps:$4 sm:$0xff]  }
 0x4fd   : > { %7761 = vmatpush1.bf16.msra.mxu1 %v21168_v57  ;;  %7721 = vmatprep.subr.bf16.mxu0 %v21173_v60  ;;  %v21236_v57 = vld [vmem:[%s23494_s25 + $0x7f4] ss:$40 sps:$4 sm:$0xff]   ;;  %v21231_v60 = vld [vmem:[%s23494_s25 + $0x2f0] ss:$40 sps:$4 sm:$0xff]  }
 0x4fe   : > { %7762 = vmatprep.subr.bf16.mxu1 %v21176_v5  ;;  %v21234_v5 = vld [vmem:[%s23494_s25 + $0x7f0] ss:$40 sps:$4 sm:$0xff]  }
 0x500   : > { %7722 = vmatpush1.bf16.msra.mxu0 %v21171_v0  ;;  %v21239_v0 = vld [vmem:[%s23494_s25 + $0x2a4] ss:$40 sps:$4 sm:$0xff]  }
 0x501   : > { %7763 = vmatpush1.bf16.msra.mxu1 %v21174_v21  ;;  %7723 = vmatprep.subr.bf16.mxu0 %v21179_v2  ;;  %v21242_v21 = vld [vmem:[%s23494_s25 + $0x7a4] ss:$40 sps:$4 sm:$0xff]   ;;  %v21237_v2 = vld [vmem:[%s23494_s25 + $0x2a0] ss:$40 sps:$4 sm:$0xff]  }
 0x502   : > { %7764 = vmatprep.subr.bf16.mxu1 %v21182_v1  ;;  %v21240_v1 = vld [vmem:[%s23494_s25 + $0x7a0] ss:$40 sps:$4 sm:$0xff]  }
 0x504   : > { %7724 = vmatpush1.bf16.msra.mxu0 %v21177_v54  ;;  %v21245_v54 = vld [vmem:[%s23500_s29 + $0x234] ss:$40 sps:$4 sm:$0xff]  }
 0x505   : > { %7765 = vmatpush1.bf16.msra.mxu1 %v21180_v59  ;;  %7725 = vmatprep.subr.bf16.mxu0 %v21185_v33  ;;  %v21248_v59 = vld [vmem:[%s23500_s29 + $0x734] ss:$40 sps:$4 sm:$0xff]   ;;  %v23014_v33 = vmov 1983009808  }
 0x506   : > { %7766 = vmatprep.subr.bf16.mxu1 %v21188_v7  ;;  %v7808_v7 = vunpack.c.l.s4 %v23014_v33  ;;  %v21290_v33 = vld [vmem:[%s23500_s29 + $0x504] ss:$40 sps:$4 sm:$0xff]  }
 0x508   : > { %7726 = vmatpush1.bf16.msra.mxu0 %v21183_v8  ;;  %v21243_v8 = vld [vmem:[%s23500_s29 + $0x230] ss:$40 sps:$4 sm:$0xff]  }
 0x509   : > { %7767 = vmatpush1.bf16.msra.mxu1 %v21186_v10  ;;  %7727 = vmatprep.subr.bf16.mxu0 %v21191_v11  ;;  %v21246_v10 = vld [vmem:[%s23500_s29 + $0x730] ss:$40 sps:$4 sm:$0xff]   ;;  %v21251_v11 = vld [vmem:[%s23500_s29 + $0x1e4] ss:$40 sps:$4 sm:$0xff]  }
 0x50a   : > { %7768 = vmatprep.subr.bf16.mxu1 %v21194_v12  ;;  %v24638_v12 = vpack.c.bf16 %v24169_v9, %v24169_v9 }
 0x50c   : > { %7728 = vmatpush1.bf16.msra.mxu0 %v21189_v15  ;;  %v7809_v15 = vunpack.c.0.s8 %v7808_v7  ;;  %v21285_v7 = vld [vmem:[%s23500_s29] ss:$40 sps:$4 sm:$0xff]  }
 0x50d   : > { %7769 = vmatpush1.bf16.msra.mxu1 %v21192_v16  ;;  %7729 = vmatprep.subr.bf16.mxu0 %v21197_v17  ;;  %v21254_v17 = vld [vmem:[%s23500_s29 + $0x6e4] ss:$40 sps:$4 sm:$0xff]  }
 0x50e   : > { %7770 = vmatprep.subr.bf16.mxu1 %v21200_v18  ;;  %v24644_v18 = vpack.c.bf16 %v24254_v6, %v24254_v6  ;;  %v21260_v6 = vld [vmem:[%s23500_s29 + $0x694] ss:$40 sps:$4 sm:$0xff]  }
 0x510   : > { %7730 = vmatpush2.bf16.msra.mxu0 %v21195_v63 }
 0x511   : > { %7771 = vmatpush2.bf16.msra.mxu1 %v21198_v24  ;;  %7731 = vmatprep.subr.bf16.mxu0 %v21203_v27  ;;  %v21249_v24 = vld [vmem:[%s23500_s29 + $0x1e0] ss:$40 sps:$4 sm:$0xff]  }
 0x512   : > { %7772 = vmatprep.subr.bf16.mxu1 %v21206_v29  ;;  %v21252_v27 = vld [vmem:[%s23500_s29 + $0x6e0] ss:$40 sps:$4 sm:$0xff]   ;;  %v21257_v29 = vld [vmem:[%s23500_s29 + $0x194] ss:$40 sps:$4 sm:$0xff]  }
 0x514   : > { %7732 = vmatpush2.bf16.msra.mxu0 %v21201_v32  ;;  %v24654_v32 = vsub.s32 %v7809_v15, %v23563_v38  ;;  %v21291_v15 = vld [vmem:[%s23500_s29 + $0x4b0] ss:$40 sps:$4 sm:$0xff]  }
 0x515   : > { %7773 = vmatpush2.bf16.msra.mxu1 %v21204_v51  ;;  %7733 = vmatprep.subr.bf16.mxu0 %v21209_v35 }
 0x516   : > { %7774 = vmatprep.subr.bf16.mxu1 %v21212_v45 }
 0x518   : > { %7734 = vmatpush2.bf16.msra.mxu0 %v21207_v41  ;;  %v21255_v41 = vld [vmem:[%s23500_s29 + $0x190] ss:$40 sps:$4 sm:$0xff]  }
 0x519   : > { %7775 = vmatpush2.bf16.msra.mxu1 %v21210_v37  ;;  %7735 = vmatprep.subr.bf16.mxu0 %v21215_v19 }
 0x51a   : > { %7776 = vmatprep.subr.bf16.mxu1 %v21218_v40  ;;  %v21258_v40 = vld [vmem:[%s23500_s29 + $0x690] ss:$40 sps:$4 sm:$0xff]  }
 0x51c   : > { %7736 = vmatpush2.bf16.msra.mxu0 %v21213_v42  ;;  %v21263_v42 = vld [vmem:[%s23500_s29 + $0x144] ss:$40 sps:$4 sm:$0xff]  }
 0x51d   : > { %7777 = vmatpush2.bf16.msra.mxu1 %v21216_v49  ;;  %7737 = vmatprep.subr.bf16.mxu0 %v21221_v44  ;;  %v21266_v44 = vld [vmem:[%s23500_s29 + $0x644] ss:$40 sps:$4 sm:$0xff]  }
 0x51e   : > { %7778 = vmatprep.subr.bf16.mxu1 %v21224_v46  ;;  %v7813_v46 = vrot.slane %v7805_v47, %v24654_v32  ;;  %v21270_v47 = vld [vmem:[%s23500_s29 + $0x5f0] ss:$40 sps:$4 sm:$0xff]  }
 0x520   : > { %7738 = vmatpush2.bf16.msra.mxu0 %v21219_v56 }
 0x521   : > { %7779 = vmatpush2.bf16.msra.mxu1 %v21222_v58  ;;  %7739 = vmatprep.subr.bf16.mxu0 %v21227_v50  ;;  %v5458_v58 = vld [vmem:[#allocation2] sm:$0xff]  ;;  %v21261_v50 = vld [vmem:[%s23500_s29 + $0x140] ss:$40 sps:$4 sm:$0xff]  }
 0x522   : > { %7780 = vmatprep.subr.bf16.mxu1 %v21230_v61 }
 0x524   : > { %7740 = vmatpush2.bf16.msra.mxu0 %v21225_v52  ;;  %v21264_v52 = vld [vmem:[%s23500_s29 + $0x640] ss:$40 sps:$4 sm:$0xff]  }
 0x525   : > { %7781 = vmatpush2.bf16.msra.mxu1 %v21228_v22  ;;  %7741 = vmatprep.subr.bf16.mxu0 %v21233_v53  ;;  %v21269_v22 = vld [vmem:[%s23500_s29 + $0xf4] ss:$40 sps:$4 sm:$0xff]  }
 0x526   : > { %7782 = vmatprep.subr.bf16.mxu1 %v21236_v57  ;;  %v21272_v53 = vld [vmem:[%s23500_s29 + $0x5f4] ss:$40 sps:$4 sm:$0xff]   ;;  %v21275_v57 = vld [vmem:[%s23500_s29 + $0xa4] ss:$40 sps:$4 sm:$0xff]  }
 0x528   : > { %7742 = vmatpush2.bf16.msra.mxu0 %v21231_v60  ;;  %v21278_v60 = vld [vmem:[%s23500_s29 + $0x5a4] ss:$40 sps:$4 sm:$0xff]  }
 0x529   : > { %7783 = vmatpush2.bf16.msra.mxu1 %v21234_v5  ;;  %7743 = vmatprep.subr.bf16.mxu0 %v21239_v0  ;;  %v21273_v5 = vld [vmem:[%s23500_s29 + $0xa0] ss:$40 sps:$4 sm:$0xff]  }
 0x52a   : > { %7784 = vmatprep.subr.bf16.mxu1 %v21242_v21  ;;  %v21276_v0 = vld [vmem:[%s23500_s29 + $0x5a0] ss:$40 sps:$4 sm:$0xff]   ;;  %v21281_v21 = vld [vmem:[%s23500_s29 + $0x54] ss:$40 sps:$4 sm:$0xff]  }
 0x52c   : > { %7744 = vmatpush2.bf16.msra.mxu0 %v21237_v2  ;;  %v21284_v2 = vld [vmem:[%s23500_s29 + $0x554] ss:$40 sps:$4 sm:$0xff]  }
 0x52d   : > { %7785 = vmatpush2.bf16.msra.mxu1 %v21240_v1  ;;  %11707 = vmatprep.subr.bf16.mxu0 %v21245_v54  ;;  %v21279_v1 = vld [vmem:[%s23500_s29 + $0x50] ss:$40 sps:$4 sm:$0xff]  }
 0x52e   : > { %11748 = vmatprep.subr.bf16.mxu1 %v21248_v59  ;;  %v21282_v54 = vld [vmem:[%s23500_s29 + $0x550] ss:$40 sps:$4 sm:$0xff]   ;;  %v21287_v59 = vld [vmem:[%s23500_s29 + $0x4] ss:$40 sps:$4 sm:$0xff]  }
 0x52f   : > { %v7501_v16 = vpop.f32.mrf.mxu0  ;;  %7746 = vmatmul.mubr.bf16.vlgmr.msra.gmra.mxu0 %v24320_v26 }
 0x530   : > { %v7542_v63 = vpop.f32.mrf.mxu1  ;;  %7787 = vmatmul.mubr.bf16.vlgmr.msra.gmra.mxu1 %v24325_v28  ;;  %11708 = vmatpush1.bf16.msra.mxu0 %v21243_v8  ;;  %v21288_v8 = vld [vmem:[%s23500_s29 + $0x500] ss:$40 sps:$4 sm:$0xff]  }
 0x531   : > { %11739 = vmatprep.mubr.bf16.mxu0 %v24638_v12  ;;  %11749 = vmatpush1.bf16.msra.mxu1 %v21246_v10  ;;  %v7503_v9 = vpop.f32.mrf.mxu0  ;;  %v7543_v28 = vadd.f32 %v7542_v63, %v7501_v16  ;;  %v21293_v10 = vld [vmem:[%s23500_s29 + $0x4b4] ss:$40 sps:$4 sm:$0xff]   ;;  %v21294_v16 = vld [vmem:[%s23500_s29 + $0x9b0] ss:$40 sps:$4 sm:$0xff]   ;;  %v21302_v63 = vld [vmem:[%s23500_s29 + $0x964] ss:$40 sps:$4 sm:$0xff]  }
 0x532   : > { %11780 = vmatprep.mubr.bf16.mxu1 %v24644_v18  ;;  %v7544_v26 = vpop.f32.mrf.mxu1  ;;  %11709 = vmatprep.subr.bf16.mxu0 %v21251_v11  ;;  %v21296_v11 = vld [vmem:[%s23500_s29 + $0x9b4] ss:$40 sps:$4 sm:$0xff]  }
 0x533   : > { %v7545_v51 = vadd.f32 %v7544_v26, %v7503_v9  ;;  %v7505_v35 = vpop.f32.mrf.mxu0  ;;  %11750 = vmatprep.subr.bf16.mxu1 %v21254_v17  ;;  %v21299_v17 = vld [vmem:[%s23500_s29 + $0x464] ss:$40 sps:$4 sm:$0xff]   ;;  %v21300_v9 = vld [vmem:[%s23500_s29 + $0x960] ss:$40 sps:$4 sm:$0xff]   ;;  %v21303_v26 = vld [vmem:[%s23500_s29 + $0x410] ss:$40 sps:$4 sm:$0xff]  }
 0x534   : > { %v7546_v45 = vpop.f32.mrf.mxu1  ;;  %11710 = vmatpush1.bf16.msra.mxu0 %v21249_v24  ;;  %v21297_v24 = vld [vmem:[%s23500_s29 + $0x460] ss:$40 sps:$4 sm:$0xff]  }
 0x535   : > { %v7806_v37 = vcombine.low %v7543_v28, %v7545_v51  ;;  %11751 = vmatpush1.bf16.msra.mxu1 %v21252_v27  ;;  %v7506_v19 = vpop.f32.mrf.mxu0  ;;  %11711 = vmatprep.subr.bf16.mxu0 %v21257_v29  ;;  %v21305_v27 = vld [vmem:[%s23500_s29 + $0x414] ss:$40 sps:$4 sm:$0xff]   ;;  %v21311_v28 = vld [vmem:[%s23500_s29 + $0x3c4] ss:$40 sps:$4 sm:$0xff]   ;;  %v21309_v35 = vld [vmem:[%s23500_s29 + $0x3c0] ss:$40 sps:$4 sm:$0xff]  }
 0x536   : > { %v7547_v49 = vpop.f32.mrf.mxu1  ;;  %11752 = vmatprep.subr.bf16.mxu1 %v21260_v6  ;;  %v21308_v29 = vld [vmem:[%s23500_s29 + $0x914] ss:$40 sps:$4 sm:$0xff]   ;;  %v21306_v6 = vld [vmem:[%s23500_s29 + $0x910] ss:$40 sps:$4 sm:$0xff]   ;;  %v21314_v51 = vld [vmem:[%s23500_s29 + $0x8c4] ss:$40 sps:$4 sm:$0xff]  }
 0x537   : > { %v7820_v56 = vrot.slane %v7806_v37, %v24654_v32  ;;  %v21312_v45 = vld [vmem:[%s23500_s29 + $0x8c0] ss:$40 sps:$4 sm:$0xff]   ;;  %v21320_v37 = vld [vmem:[%s23500_s29 + $0x874] ss:$40 sps:$4 sm:$0xff]   ;;  %v21315_v19 = vld [vmem:[%s23500_s29 + $0x370] ss:$40 sps:$4 sm:$0xff]  }
 0x538   : > { %11712 = vmatpush1.bf16.msra.mxu0 %v21255_v41  ;;  %v21317_v41 = vld [vmem:[%s23500_s29 + $0x374] ss:$40 sps:$4 sm:$0xff]   ;;  %v21326_v49 = vld [vmem:[%s23500_s29 + $0x824] ss:$40 sps:$4 sm:$0xff]  }
 0x539   : > { %v7821_v61 = vcombine.low %v7813_v46, %v7820_v56  ;;  %11753 = vmatpush1.bf16.msra.mxu1 %v21258_v40  ;;  %11713 = vmatprep.subr.bf16.mxu0 %v21263_v42  ;;  %v21318_v40 = vld [vmem:[%s23500_s29 + $0x870] ss:$40 sps:$4 sm:$0xff]   ;;  %v21323_v42 = vld [vmem:[%s23500_s29 + $0x324] ss:$40 sps:$4 sm:$0xff]   ;;  %v21324_v46 = vld [vmem:[%s23500_s29 + $0x820] ss:$40 sps:$4 sm:$0xff]  }
 0x53a   : > { %11754 = vmatprep.subr.bf16.mxu1 %v21266_v44  ;;  %v21321_v44 = vld [vmem:[%s23500_s29 + $0x320] ss:$40 sps:$4 sm:$0xff]   ;;  %v21329_v56 = vld [vmem:[%s23500_s29 + $0x2d4] ss:$40 sps:$4 sm:$0xff]  }
 0x53b   : > { %v7850_v36 = vadd.f32 %v7821_v61, %v5458_v58  ;;  %v21332_v58 = vld [vmem:[%s23500_s29 + $0x7d4] ss:$40 sps:$4 sm:$0xff]   ;;  %v21330_v61 = vld [vmem:[%s23500_s29 + $0x7d0] ss:$40 sps:$4 sm:$0xff]  }
 0x53c   : > { %11714 = vmatpush1.bf16.msra.mxu0 %v21261_v50  ;;  %v21327_v50 = vld [vmem:[%s23500_s29 + $0x2d0] ss:$40 sps:$4 sm:$0xff]  }
 0x53d   : > { %7853 = vst [vmem:[#allocation2] sm:$0xff] %v7850_v36  ;;  %11755 = vmatpush1.bf16.msra.mxu1 %v21264_v52  ;;  %11715 = vmatprep.subr.bf16.mxu0 %v21269_v22  ;;  %v21335_v52 = vld [vmem:[%s23500_s29 + $0x284] ss:$40 sps:$4 sm:$0xff]   ;;  %v21336_v36 = vld [vmem:[%s23500_s29 + $0x780] ss:$40 sps:$4 sm:$0xff]  }
 0x53e   : > { %11756 = vmatprep.subr.bf16.mxu1 %v21272_v53  ;;  %v21338_v22 = vld [vmem:[%s23500_s29 + $0x784] ss:$40 sps:$4 sm:$0xff]   ;;  %v21333_v53 = vld [vmem:[%s23500_s29 + $0x280] ss:$40 sps:$4 sm:$0xff]  }
 0x540   : > { %11716 = vmatpush1.bf16.msra.mxu0 %v21267_v43  ;;  %v21341_v43 = vld [vmem:[%s23500_s29 + $0xc34] ss:$40 sps:$4 sm:$0xff]  }
 0x541   : > { %11757 = vmatpush1.bf16.msra.mxu1 %v21270_v47  ;;  %11717 = vmatprep.subr.bf16.mxu0 %v21275_v57  ;;  %v21344_v47 = vld [vmem:[%s23500_s29 + $0x1134] ss:$40 sps:$4 sm:$0xff]   ;;  %v21339_v57 = vld [vmem:[%s23500_s29 + $0xc30] ss:$40 sps:$4 sm:$0xff]  }
 0x542   : > { %11758 = vmatprep.subr.bf16.mxu1 %v21278_v60  ;;  %v24720_v60 = vpack.c.bf16 %v24160_v23, %v24160_v23  ;;  %v21350_v23 = vld [vmem:[%s23500_s29 + $0x10e4] ss:$40 sps:$4 sm:$0xff]  }
 0x544   : > { %11718 = vmatpush1.bf16.msra.mxu0 %v21273_v5  ;;  %v21342_v5 = vld [vmem:[%s23500_s29 + $0x1130] ss:$40 sps:$4 sm:$0xff]  }
 0x545   : > { %11759 = vmatpush1.bf16.msra.mxu1 %v21276_v0  ;;  %11719 = vmatprep.subr.bf16.mxu0 %v21281_v21  ;;  %v24725_v0 = vpack.c.bf16 %v24252_v4, %v24252_v4  ;;  %v21347_v21 = vld [vmem:[%s23500_s29 + $0xbe4] ss:$40 sps:$4 sm:$0xff]   ;;  %v21345_v4 = vld [vmem:[%s23500_s29 + $0xbe0] ss:$40 sps:$4 sm:$0xff]  }
 0x546   : > { %11760 = vmatprep.subr.bf16.mxu1 %v21284_v2  ;;  %v24730_v2 = vpack.c.bf16 %v24419_v39, %v24419_v39 }
 0x548   : > { %11720 = vmatpush1.bf16.msra.mxu0 %v21279_v1 }
 0x549   : > { %11761 = vmatpush1.bf16.msra.mxu1 %v21282_v54  ;;  %11721 = vmatprep.subr.bf16.mxu0 %v21287_v59  ;;  %v24736_v54 = vpack.c.bf16 %v24501_v3, %v24501_v3 }
 0x54a   : > { %11762 = vmatprep.subr.bf16.mxu1 %v21290_v33 }
 0x54c   : > { %11722 = vmatpush1.bf16.msra.mxu0 %v21285_v7  ;;  %v21348_v7 = vld [vmem:[%s23500_s29 + $0x10e0] ss:$40 sps:$4 sm:$0xff]  }
 0x54d   : > { %11763 = vmatpush1.bf16.msra.mxu1 %v21288_v8  ;;  %11723 = vmatprep.subr.bf16.mxu0 %v21293_v10  ;;  %v21353_v8 = vld [vmem:[%s23500_s29 + $0xb94] ss:$40 sps:$4 sm:$0xff]  }
 0x54e   : > { %11764 = vmatprep.subr.bf16.mxu1 %v21296_v11  ;;  %v21356_v10 = vld [vmem:[%s23500_s29 + $0x1094] ss:$40 sps:$4 sm:$0xff]  }
 0x550   : > { %11724 = vmatpush2.bf16.msra.mxu0 %v21291_v15 }
 0x551   : > { %11765 = vmatpush2.bf16.msra.mxu1 %v21294_v16  ;;  %11725 = vmatprep.subr.bf16.mxu0 %v21299_v17  ;;  %v21351_v17 = vld [vmem:[%s23500_s29 + $0xb90] ss:$40 sps:$4 sm:$0xff]  }
 0x552   : > { %11766 = vmatprep.subr.bf16.mxu1 %v21302_v63 }
 0x554   : > { %11726 = vmatpush2.bf16.msra.mxu0 %v21297_v24 }
 0x555   : > { %11767 = vmatpush2.bf16.msra.mxu1 %v21300_v9  ;;  %11727 = vmatprep.subr.bf16.mxu0 %v21305_v27  ;;  %v21354_v9 = vld [vmem:[%s23500_s29 + $0x1090] ss:$40 sps:$4 sm:$0xff]   ;;  %v21359_v27 = vld [vmem:[%s23500_s29 + $0xb44] ss:$40 sps:$4 sm:$0xff]  }
 0x556   : > { %11768 = vmatprep.subr.bf16.mxu1 %v21308_v29 }
 0x558   : > { %11728 = vmatpush2.bf16.msra.mxu0 %v21303_v26  ;;  %v21362_v26 = vld [vmem:[%s23500_s29 + $0x1044] ss:$40 sps:$4 sm:$0xff]  }
 0x559   : > { %11769 = vmatpush2.bf16.msra.mxu1 %v21306_v6  ;;  %11729 = vmatprep.subr.bf16.mxu0 %v21311_v28  ;;  %v21357_v6 = vld [vmem:[%s23500_s29 + $0xb40] ss:$40 sps:$4 sm:$0xff]  }
 0x55a   : > { %11770 = vmatprep.subr.bf16.mxu1 %v21314_v51  ;;  %v21360_v28 = vld [vmem:[%s23500_s29 + $0x1040] ss:$40 sps:$4 sm:$0xff]   ;;  %v21365_v51 = vld [vmem:[%s23500_s29 + $0xaf4] ss:$40 sps:$4 sm:$0xff]  }
 0x55c   : > { %11730 = vmatpush2.bf16.msra.mxu0 %v21309_v35  ;;  %v21368_v35 = vld [vmem:[%s23500_s29 + $0xff4] ss:$40 sps:$4 sm:$0xff]  }
 0x55d   : > { %11771 = vmatpush2.bf16.msra.mxu1 %v21312_v45  ;;  %11731 = vmatprep.subr.bf16.mxu0 %v21317_v41  ;;  %v21363_v45 = vld [vmem:[%s23500_s29 + $0xaf0] ss:$40 sps:$4 sm:$0xff]  }
 0x55e   : > { %11772 = vmatprep.subr.bf16.mxu1 %v21320_v37  ;;  %v21366_v41 = vld [vmem:[%s23500_s29 + $0xff0] ss:$40 sps:$4 sm:$0xff]   ;;  %v21371_v37 = vld [vmem:[%s23500_s29 + $0xaa4] ss:$40 sps:$4 sm:$0xff]  }
 0x560   : > { %11732 = vmatpush2.bf16.msra.mxu0 %v21315_v19  ;;  %v21374_v19 = vld [vmem:[%s23500_s29 + $0xfa4] ss:$40 sps:$4 sm:$0xff]  }
 0x561   : > { %11773 = vmatpush2.bf16.msra.mxu1 %v21318_v40  ;;  %11733 = vmatprep.subr.bf16.mxu0 %v21323_v42  ;;  %v21369_v40 = vld [vmem:[%s23500_s29 + $0xaa0] ss:$40 sps:$4 sm:$0xff]  }
 0x562   : > { %11774 = vmatprep.subr.bf16.mxu1 %v21326_v49  ;;  %v21372_v42 = vld [vmem:[%s23500_s29 + $0xfa0] ss:$40 sps:$4 sm:$0xff]   ;;  %v21377_v49 = vld [vmem:[%s23500_s29 + $0xa54] ss:$40 sps:$4 sm:$0xff]  }
 0x564   : > { %11734 = vmatpush2.bf16.msra.mxu0 %v21321_v44  ;;  %v21380_v44 = vld [vmem:[%s23500_s29 + $0xf54] ss:$40 sps:$4 sm:$0xff]  }
 0x565   : > { %11775 = vmatpush2.bf16.msra.mxu1 %v21324_v46  ;;  %11735 = vmatprep.subr.bf16.mxu0 %v21329_v56  ;;  %v21375_v46 = vld [vmem:[%s23500_s29 + $0xa50] ss:$40 sps:$4 sm:$0xff]  }
 0x566   : > { %11776 = vmatprep.subr.bf16.mxu1 %v21332_v58  ;;  %v21378_v56 = vld [vmem:[%s23500_s29 + $0xf50] ss:$40 sps:$4 sm:$0xff]   ;;  %v21383_v58 = vld [vmem:[%s23500_s29 + $0xa04] ss:$40 sps:$4 sm:$0xff]  }
 0x568   : > { %11736 = vmatpush2.bf16.msra.mxu0 %v21327_v50  ;;  %v21386_v50 = vld [vmem:[%s23500_s29 + $0xf04] ss:$40 sps:$4 sm:$0xff]  }
 0x569   : > { %11777 = vmatpush2.bf16.msra.mxu1 %v21330_v61  ;;  %11737 = vmatprep.subr.bf16.mxu0 %v21335_v52  ;;  %v21381_v61 = vld [vmem:[%s23500_s29 + $0xa00] ss:$40 sps:$4 sm:$0xff]  }
 0x56a   : > { %11778 = vmatprep.subr.bf16.mxu1 %v21338_v22  ;;  %v21384_v52 = vld [vmem:[%s23500_s29 + $0xf00] ss:$40 sps:$4 sm:$0xff]   ;;  %v21389_v22 = vld [vmem:[%s23500_s29 + $0xeb4] ss:$40 sps:$4 sm:$0xff]  }
 0x56c   : > { %11738 = vmatpush2.bf16.msra.mxu0 %v21333_v53  ;;  %v21392_v53 = vld [vmem:[%s23500_s29 + $0x13b4] ss:$40 sps:$4 sm:$0xff]  }
 0x56d   : > { %11779 = vmatpush2.bf16.msra.mxu1 %v21336_v36  ;;  %11789 = vmatprep.subr.bf16.mxu0 %v21341_v43  ;;  %v21387_v36 = vld [vmem:[%s23500_s29 + $0xeb0] ss:$40 sps:$4 sm:$0xff]  }
 0x56e   : > { %11830 = vmatprep.subr.bf16.mxu1 %v21344_v47  ;;  %v21390_v43 = vld [vmem:[%s23500_s29 + $0x13b0] ss:$40 sps:$4 sm:$0xff]   ;;  %v21395_v47 = vld [vmem:[%s23500_s29 + $0xe64] ss:$40 sps:$4 sm:$0xff]  }
 0x56f   : > { %v7583_v1 = vpop.f32.mrf.mxu0  ;;  %11740 = vmatmul.mubr.bf16.vlgmr.msra.gmra.mxu0 %v24720_v60 }
 0x570   : > { %v7624_v59 = vpop.f32.mrf.mxu1  ;;  %11781 = vmatmul.mubr.bf16.vlgmr.msra.gmra.mxu1 %v24725_v0  ;;  %11790 = vmatpush1.bf16.msra.mxu0 %v21339_v57  ;;  %v21398_v57 = vld [vmem:[%s23500_s29 + $0x1364] ss:$40 sps:$4 sm:$0xff]  }
 0x571   : > { %v24740_v33 = vadd.f32 %v7624_v59, %v7583_v1  ;;  %11821 = vmatprep.mubr.bf16.mxu0 %v24730_v2  ;;  %11831 = vmatpush1.bf16.msra.mxu1 %v21342_v5  ;;  %v7585_v39 = vpop.f32.mrf.mxu0  ;;  %v21393_v5 = vld [vmem:[%s23500_s29 + $0xe60] ss:$40 sps:$4 sm:$0xff]   ;;  %v21401_v1 = vld [vmem:[%s23500_s29 + $0xe14] ss:$40 sps:$4 sm:$0xff]   ;;  %v21399_v59 = vld [vmem:[%s23500_s29 + $0xe10] ss:$40 sps:$4 sm:$0xff]  }
 0x572   : > { %11862 = vmatprep.mubr.bf16.mxu1 %v24736_v54  ;;  %v7626_v3 = vpop.f32.mrf.mxu1  ;;  %11791 = vmatprep.subr.bf16.mxu0 %v21347_v21  ;;  %v21396_v21 = vld [vmem:[%s23500_s29 + $0x1360] ss:$40 sps:$4 sm:$0xff]  }
 0x573   : > { %v24747_v11 = vadd.f32 %v7626_v3, %v7585_v39  ;;  %v7587_v15 = vpop.f32.mrf.mxu0  ;;  %11832 = vmatprep.subr.bf16.mxu1 %v21350_v23  ;;  %v21404_v23 = vld [vmem:[%s23500_s29 + $0x1314] ss:$40 sps:$4 sm:$0xff]   ;;  %v21407_v39 = vld [vmem:[%s23500_s29 + $0xdc4] ss:$40 sps:$4 sm:$0xff]   ;;  %v21408_v3 = vld [vmem:[%s23500_s29 + $0x12c0] ss:$40 sps:$4 sm:$0xff]  }
 0x574   : > { %v7628_v16 = vpop.f32.mrf.mxu1  ;;  %11792 = vmatpush1.bf16.msra.mxu0 %v21345_v4  ;;  %v21402_v4 = vld [vmem:[%s23500_s29 + $0x1310] ss:$40 sps:$4 sm:$0xff]   ;;  %v21416_v15 = vld [vmem:[%s23500_s29 + $0x1274] ss:$40 sps:$4 sm:$0xff]  }
 0x575   : > { %v7822_v63 = vcombine.low %v24740_v33, %v24747_v11  ;;  %11833 = vmatpush1.bf16.msra.mxu1 %v21348_v7  ;;  %v7588_v24 = vpop.f32.mrf.mxu0  ;;  %11793 = vmatprep.subr.bf16.mxu0 %v21353_v8  ;;  %v21410_v7 = vld [vmem:[%s23500_s29 + $0x12c4] ss:$40 sps:$4 sm:$0xff]   ;;  %v21405_v8 = vld [vmem:[%s23500_s29 + $0xdc0] ss:$40 sps:$4 sm:$0xff]   ;;  %v21411_v16 = vld [vmem:[%s23500_s29 + $0xd70] ss:$40 sps:$4 sm:$0xff]  }
 0x576   : > { %v7629_v29 = vpop.f32.mrf.mxu1  ;;  %11834 = vmatprep.subr.bf16.mxu1 %v21356_v10  ;;  %v21413_v10 = vld [vmem:[%s23500_s29 + $0xd74] ss:$40 sps:$4 sm:$0xff]   ;;  %v21419_v24 = vld [vmem:[%s23500_s29 + $0xd24] ss:$40 sps:$4 sm:$0xff]   ;;  %v21459_v11 = vld [vmem:[%s23500_s29 + $0xf8] ss:$40 sps:$4 sm:$0xff]  }
 0x577   : > { %v21420_v29 = vld [vmem:[%s23500_s29 + $0x1220] ss:$40 sps:$4 sm:$0xff]  }
 0x578   : > { %11794 = vmatpush1.bf16.msra.mxu0 %v21351_v17  ;;  %v21414_v17 = vld [vmem:[%s23500_s29 + $0x1270] ss:$40 sps:$4 sm:$0xff]  }
 0x579   : > { %11835 = vmatpush1.bf16.msra.mxu1 %v21354_v9  ;;  %11795 = vmatprep.subr.bf16.mxu0 %v21359_v27  ;;  %v21422_v9 = vld [vmem:[%s23500_s29 + $0x1224] ss:$40 sps:$4 sm:$0xff]   ;;  %v21417_v27 = vld [vmem:[%s23500_s29 + $0xd20] ss:$40 sps:$4 sm:$0xff]  }
 0x57a   : > { %11836 = vmatprep.subr.bf16.mxu1 %v21362_v26  ;;  %v21425_v26 = vld [vmem:[%s23500_s29 + $0xcd4] ss:$40 sps:$4 sm:$0xff]  }
 0x57c   : > { %11796 = vmatpush1.bf16.msra.mxu0 %v21357_v6  ;;  %v21428_v6 = vld [vmem:[%s23500_s29 + $0x11d4] ss:$40 sps:$4 sm:$0xff]  }
 0x57d   : > { %11837 = vmatpush1.bf16.msra.mxu1 %v21360_v28  ;;  %11797 = vmatprep.subr.bf16.mxu0 %v21365_v51  ;;  %v21423_v28 = vld [vmem:[%s23500_s29 + $0xcd0] ss:$40 sps:$4 sm:$0xff]  }
 0x57e   : > { %11838 = vmatprep.subr.bf16.mxu1 %v21368_v35  ;;  %v21426_v51 = vld [vmem:[%s23500_s29 + $0x11d0] ss:$40 sps:$4 sm:$0xff]   ;;  %v21431_v35 = vld [vmem:[%s23500_s29 + $0xc84] ss:$40 sps:$4 sm:$0xff]  }
 0x580   : > { %11798 = vmatpush1.bf16.msra.mxu0 %v21363_v45  ;;  %v21434_v45 = vld [vmem:[%s23500_s29 + $0x1184] ss:$40 sps:$4 sm:$0xff]  }
 0x581   : > { %11839 = vmatpush1.bf16.msra.mxu1 %v21366_v41  ;;  %11799 = vmatprep.subr.bf16.mxu0 %v21371_v37  ;;  %v21429_v41 = vld [vmem:[%s23500_s29 + $0xc80] ss:$40 sps:$4 sm:$0xff]  }
 0x582   : > { %11840 = vmatprep.subr.bf16.mxu1 %v21374_v19  ;;  %v21432_v37 = vld [vmem:[%s23500_s29 + $0x1180] ss:$40 sps:$4 sm:$0xff]   ;;  %v21437_v19 = vld [vmem:[%s23500_s29 + $0x23c] ss:$40 sps:$4 sm:$0xff]  }
 0x584   : > { %11800 = vmatpush1.bf16.msra.mxu0 %v21369_v40  ;;  %v21440_v40 = vld [vmem:[%s23500_s29 + $0x73c] ss:$40 sps:$4 sm:$0xff]  }
 0x585   : > { %11841 = vmatpush1.bf16.msra.mxu1 %v21372_v42  ;;  %11801 = vmatprep.subr.bf16.mxu0 %v21377_v49  ;;  %v21435_v42 = vld [vmem:[%s23500_s29 + $0x238] ss:$40 sps:$4 sm:$0xff]   ;;  %v24810_v49 = vpack.c.bf16 %v24408_v14, %v24408_v14  ;;  %v21441_v14 = vld [vmem:[%s23500_s29 + $0x1e8] ss:$40 sps:$4 sm:$0xff]  }
 0x586   : > { %11842 = vmatprep.subr.bf16.mxu1 %v21380_v44  ;;  %v21438_v44 = vld [vmem:[%s23500_s29 + $0x738] ss:$40 sps:$4 sm:$0xff]  }
 0x588   : > { %11802 = vmatpush1.bf16.msra.mxu0 %v21375_v46  ;;  %v24815_v46 = vpack.c.bf16 %v24497_v62, %v24497_v62  ;;  %v21449_v62 = vld [vmem:[%s23500_s29 + $0x19c] ss:$40 sps:$4 sm:$0xff]  }
 0x589   : > { %11843 = vmatpush1.bf16.msra.mxu1 %v21378_v56  ;;  %11803 = vmatprep.subr.bf16.mxu0 %v21383_v58  ;;  %v21443_v56 = vld [vmem:[%s23500_s29 + $0x1ec] ss:$40 sps:$4 sm:$0xff]  }
 0x58a   : > { %11844 = vmatprep.subr.bf16.mxu1 %v21386_v50  ;;  %v21446_v50 = vld [vmem:[%s23500_s29 + $0x6ec] ss:$40 sps:$4 sm:$0xff]  }
 0x58c   : > { %11804 = vmatpush1.bf16.msra.mxu0 %v21381_v61 }
 0x58d   : > { %11845 = vmatpush1.bf16.msra.mxu1 %v21384_v52  ;;  %11805 = vmatprep.subr.bf16.mxu0 %v21389_v22  ;;  %v21444_v22 = vld [vmem:[%s23500_s29 + $0x6e8] ss:$40 sps:$4 sm:$0xff]  }
 0x58e   : > { %11846 = vmatprep.subr.bf16.mxu1 %v21392_v53 }
 0x590   : > { %11806 = vmatpush2.bf16.msra.mxu0 %v21387_v36  ;;  %v21452_v36 = vld [vmem:[%s23500_s29 + $0x69c] ss:$40 sps:$4 sm:$0xff]  }
 0x591   : > { %11847 = vmatpush2.bf16.msra.mxu1 %v21390_v43  ;;  %11807 = vmatprep.subr.bf16.mxu0 %v21395_v47 }
 0x592   : > { %11848 = vmatprep.subr.bf16.mxu1 %v21398_v57 }
 0x594   : > { %11808 = vmatpush2.bf16.msra.mxu0 %v21393_v5 }
 0x595   : > { %11849 = vmatpush2.bf16.msra.mxu1 %v21396_v21  ;;  %11809 = vmatprep.subr.bf16.mxu0 %v21401_v1  ;;  %v21447_v21 = vld [vmem:[%s23500_s29 + $0x198] ss:$40 sps:$4 sm:$0xff]  }
 0x596   : > { %11850 = vmatprep.subr.bf16.mxu1 %v21404_v23 }
 0x598   : > { %11810 = vmatpush2.bf16.msra.mxu0 %v21399_v59  ;;  %v21450_v59 = vld [vmem:[%s23500_s29 + $0x698] ss:$40 sps:$4 sm:$0xff]  }
 0x599   : > { %11851 = vmatpush2.bf16.msra.mxu1 %v21402_v4  ;;  %11811 = vmatprep.subr.bf16.mxu0 %v21407_v39  ;;  %v21455_v4 = vld [vmem:[%s23500_s29 + $0x14c] ss:$40 sps:$4 sm:$0xff]  }
 0x59a   : > { %11852 = vmatprep.subr.bf16.mxu1 %v21410_v7  ;;  %v21458_v7 = vld [vmem:[%s23500_s29 + $0x64c] ss:$40 sps:$4 sm:$0xff]  }
 0x59c   : > { %11812 = vmatpush2.bf16.msra.mxu0 %v21405_v8  ;;  %v7830_v8 = vrot.slane %v7822_v63, %v24654_v32  ;;  %v21462_v63 = vld [vmem:[%s23500_s29 + $0x5f8] ss:$40 sps:$4 sm:$0xff]  }
 0x59d   : > { %11853 = vmatpush2.bf16.msra.mxu1 %v21408_v3  ;;  %11813 = vmatprep.subr.bf16.mxu0 %v21413_v10  ;;  %v5459_v10 = vld [vmem:[#allocation2 + $0x8] sm:$0xff] }
 0x59e   : > { %11854 = vmatprep.subr.bf16.mxu1 %v21416_v15  ;;  %v21453_v15 = vld [vmem:[%s23500_s29 + $0x148] ss:$40 sps:$4 sm:$0xff]  }
 0x5a0   : > { %11814 = vmatpush2.bf16.msra.mxu0 %v21411_v16 }
 0x5a1   : > { %11855 = vmatpush2.bf16.msra.mxu1 %v21414_v17  ;;  %11815 = vmatprep.subr.bf16.mxu0 %v21419_v24  ;;  %v21456_v17 = vld [vmem:[%s23500_s29 + $0x648] ss:$40 sps:$4 sm:$0xff]   ;;  %v21461_v24 = vld [vmem:[%s23500_s29 + $0xfc] ss:$40 sps:$4 sm:$0xff]  }
 0x5a2   : > { %11856 = vmatprep.subr.bf16.mxu1 %v21422_v9  ;;  %v21464_v9 = vld [vmem:[%s23500_s29 + $0x5fc] ss:$40 sps:$4 sm:$0xff]  }
 0x5a4   : > { %11816 = vmatpush2.bf16.msra.mxu0 %v21417_v27  ;;  %v21467_v27 = vld [vmem:[%s23500_s29 + $0xac] ss:$40 sps:$4 sm:$0xff]  }
 0x5a5   : > { %11857 = vmatpush2.bf16.msra.mxu1 %v21420_v29  ;;  %11817 = vmatprep.subr.bf16.mxu0 %v21425_v26  ;;  %v21470_v29 = vld [vmem:[%s23500_s29 + $0x5ac] ss:$40 sps:$4 sm:$0xff]   ;;  %v21465_v26 = vld [vmem:[%s23500_s29 + $0xa8] ss:$40 sps:$4 sm:$0xff]  }
 0x5a6   : > { %11858 = vmatprep.subr.bf16.mxu1 %v21428_v6  ;;  %v21468_v6 = vld [vmem:[%s23500_s29 + $0x5a8] ss:$40 sps:$4 sm:$0xff]  }
 0x5a8   : > { %11818 = vmatpush2.bf16.msra.mxu0 %v21423_v28  ;;  %v21473_v28 = vld [vmem:[%s23500_s29 + $0x5c] ss:$40 sps:$4 sm:$0xff]  }
 0x5a9   : > { %11859 = vmatpush2.bf16.msra.mxu1 %v21426_v51  ;;  %11819 = vmatprep.subr.bf16.mxu0 %v21431_v35  ;;  %v21476_v51 = vld [vmem:[%s23500_s29 + $0x55c] ss:$40 sps:$4 sm:$0xff]   ;;  %v21471_v35 = vld [vmem:[%s23500_s29 + $0x58] ss:$40 sps:$4 sm:$0xff]  }
 0x5aa   : > { %11860 = vmatprep.subr.bf16.mxu1 %v21434_v45  ;;  %v21474_v45 = vld [vmem:[%s23500_s29 + $0x558] ss:$40 sps:$4 sm:$0xff]  }
 0x5ac   : > { %11820 = vmatpush2.bf16.msra.mxu0 %v21429_v41  ;;  %v21479_v41 = vld [vmem:[%s23500_s29 + $0xc] ss:$40 sps:$4 sm:$0xff]  }
 0x5ad   : > { %11861 = vmatpush2.bf16.msra.mxu1 %v21432_v37  ;;  %11871 = vmatprep.subr.bf16.mxu0 %v21437_v19  ;;  %v21482_v37 = vld [vmem:[%s23500_s29 + $0x50c] ss:$40 sps:$4 sm:$0xff]   ;;  %v21477_v19 = vld [vmem:[%s23500_s29 + $0x8] ss:$40 sps:$4 sm:$0xff]  }
 0x5ae   : > { %11912 = vmatprep.subr.bf16.mxu1 %v21440_v40  ;;  %v21480_v40 = vld [vmem:[%s23500_s29 + $0x508] ss:$40 sps:$4 sm:$0xff]  }
 0x5af   : > { %v7665_v58 = vpop.f32.mrf.mxu0  ;;  %11822 = vmatmul.mubr.bf16.vlgmr.msra.gmra.mxu0 %v24810_v49 }
 0x5b0   : > { %v7706_v61 = vpop.f32.mrf.mxu1  ;;  %11863 = vmatmul.mubr.bf16.vlgmr.msra.gmra.mxu1 %v24815_v46  ;;  %11872 = vmatpush1.bf16.msra.mxu0 %v21435_v42  ;;  %v21485_v42 = vld [vmem:[%s23500_s29 + $0x4bc] ss:$40 sps:$4 sm:$0xff]  }
 0x5b1   : > { %11903 = vmatprep.mubr.bf16.mxu0 %v24638_v12  ;;  %11913 = vmatpush1.bf16.msra.mxu1 %v21438_v44  ;;  %v7667_v52 = vpop.f32.mrf.mxu0  ;;  %v7707_v43 = vadd.f32 %v7706_v61, %v7665_v58  ;;  %v21488_v44 = vld [vmem:[%s23500_s29 + $0x9bc] ss:$40 sps:$4 sm:$0xff]   ;;  %v21486_v58 = vld [vmem:[%s23500_s29 + $0x9b8] ss:$40 sps:$4 sm:$0xff]   ;;  %v21494_v61 = vld [vmem:[%s23500_s29 + $0x96c] ss:$40 sps:$4 sm:$0xff]  }
 0x5b2   : > { %11944 = vmatprep.mubr.bf16.mxu1 %v24644_v18  ;;  %v7708_v53 = vpop.f32.mrf.mxu1  ;;  %11873 = vmatprep.subr.bf16.mxu0 %v21443_v56  ;;  %v21483_v56 = vld [vmem:[%s23500_s29 + $0x4b8] ss:$40 sps:$4 sm:$0xff]  }
 0x5b3   : > { %v7709_v47 = vadd.f32 %v7708_v53, %v7667_v52  ;;  %v7669_v57 = vpop.f32.mrf.mxu0  ;;  %11914 = vmatprep.subr.bf16.mxu1 %v21446_v50  ;;  %v21491_v50 = vld [vmem:[%s23500_s29 + $0x46c] ss:$40 sps:$4 sm:$0xff]   ;;  %v21492_v52 = vld [vmem:[%s23500_s29 + $0x968] ss:$40 sps:$4 sm:$0xff]   ;;  %v21495_v53 = vld [vmem:[%s23500_s29 + $0x418] ss:$40 sps:$4 sm:$0xff]  }
 0x5b4   : > { %v7710_v5 = vpop.f32.mrf.mxu1  ;;  %11874 = vmatpush1.bf16.msra.mxu0 %v21441_v14  ;;  %v21489_v14 = vld [vmem:[%s23500_s29 + $0x468] ss:$40 sps:$4 sm:$0xff]  }
 0x5b5   : > { %v7823_v1 = vcombine.low %v7707_v43, %v7709_v47  ;;  %11915 = vmatpush1.bf16.msra.mxu1 %v21444_v22  ;;  %v7670_v23 = vpop.f32.mrf.mxu0  ;;  %11875 = vmatprep.subr.bf16.mxu0 %v21449_v62  ;;  %v21497_v22 = vld [vmem:[%s23500_s29 + $0x41c] ss:$40 sps:$4 sm:$0xff]   ;;  %v21503_v43 = vld [vmem:[%s23500_s29 + $0x3cc] ss:$40 sps:$4 sm:$0xff]   ;;  %v21501_v57 = vld [vmem:[%s23500_s29 + $0x3c8] ss:$40 sps:$4 sm:$0xff]  }
 0x5b6   : > { %v7711_v39 = vpop.f32.mrf.mxu1  ;;  %11916 = vmatprep.subr.bf16.mxu1 %v21452_v36  ;;  %v21500_v62 = vld [vmem:[%s23500_s29 + $0x91c] ss:$40 sps:$4 sm:$0xff]   ;;  %v21498_v36 = vld [vmem:[%s23500_s29 + $0x918] ss:$40 sps:$4 sm:$0xff]   ;;  %v21506_v47 = vld [vmem:[%s23500_s29 + $0x8cc] ss:$40 sps:$4 sm:$0xff]  }
 0x5b7   : > { %v7837_v3 = vrot.slane %v7823_v1, %v24654_v32  ;;  %v21504_v5 = vld [vmem:[%s23500_s29 + $0x8c8] ss:$40 sps:$4 sm:$0xff]   ;;  %v21512_v1 = vld [vmem:[%s23500_s29 + $0x87c] ss:$40 sps:$4 sm:$0xff]   ;;  %v21507_v23 = vld [vmem:[%s23500_s29 + $0x378] ss:$40 sps:$4 sm:$0xff]  }
 0x5b8   : > { %11876 = vmatpush1.bf16.msra.mxu0 %v21447_v21  ;;  %v21509_v21 = vld [vmem:[%s23500_s29 + $0x37c] ss:$40 sps:$4 sm:$0xff]   ;;  %v21518_v39 = vld [vmem:[%s23500_s29 + $0x82c] ss:$40 sps:$4 sm:$0xff]  }
 0x5b9   : > { %v7838_v16 = vcombine.low %v7830_v8, %v7837_v3  ;;  %11917 = vmatpush1.bf16.msra.mxu1 %v21450_v59  ;;  %11877 = vmatprep.subr.bf16.mxu0 %v21455_v4  ;;  %v21510_v59 = vld [vmem:[%s23500_s29 + $0x878] ss:$40 sps:$4 sm:$0xff]   ;;  %v21515_v4 = vld [vmem:[%s23500_s29 + $0x32c] ss:$40 sps:$4 sm:$0xff]   ;;  %v21516_v8 = vld [vmem:[%s23500_s29 + $0x828] ss:$40 sps:$4 sm:$0xff]  }
 0x5ba   : > { %11918 = vmatprep.subr.bf16.mxu1 %v21458_v7  ;;  %v21513_v7 = vld [vmem:[%s23500_s29 + $0x328] ss:$40 sps:$4 sm:$0xff]   ;;  %v21521_v3 = vld [vmem:[%s23500_s29 + $0x2dc] ss:$40 sps:$4 sm:$0xff]  }
 0x5bb   : > { %v7851_v33 = vadd.f32 %v7838_v16, %v5459_v10  ;;  %v21524_v10 = vld [vmem:[%s23500_s29 + $0x7dc] ss:$40 sps:$4 sm:$0xff]   ;;  %v21522_v16 = vld [vmem:[%s23500_s29 + $0x7d8] ss:$40 sps:$4 sm:$0xff]  }
 0x5bc   : > { %11878 = vmatpush1.bf16.msra.mxu0 %v21453_v15  ;;  %v21519_v15 = vld [vmem:[%s23500_s29 + $0x2d8] ss:$40 sps:$4 sm:$0xff]  }
 0x5bd   : > { %7854 = vst [vmem:[#allocation2 + $0x8] sm:$0xff] %v7851_v33  ;;  %11919 = vmatpush1.bf16.msra.mxu1 %v21456_v17  ;;  %11879 = vmatprep.subr.bf16.mxu0 %v21461_v24  ;;  %v21527_v17 = vld [vmem:[%s23500_s29 + $0x28c] ss:$40 sps:$4 sm:$0xff]   ;;  %v21528_v33 = vld [vmem:[%s23500_s29 + $0x788] ss:$40 sps:$4 sm:$0xff]  }
 0x5be   : > { %11920 = vmatprep.subr.bf16.mxu1 %v21464_v9  ;;  %v21530_v24 = vld [vmem:[%s23500_s29 + $0x78c] ss:$40 sps:$4 sm:$0xff]   ;;  %v21525_v9 = vld [vmem:[%s23500_s29 + $0x288] ss:$40 sps:$4 sm:$0xff]  }
 0x5c0   : > { %11880 = vmatpush1.bf16.msra.mxu0 %v21459_v11  ;;  %v21533_v11 = vld [vmem:[%s23500_s29 + $0xc3c] ss:$40 sps:$4 sm:$0xff]  }
 0x5c1   : > { %11921 = vmatpush1.bf16.msra.mxu1 %v21462_v63  ;;  %11881 = vmatprep.subr.bf16.mxu0 %v21467_v27  ;;  %v21536_v63 = vld [vmem:[%s23500_s29 + $0x113c] ss:$40 sps:$4 sm:$0xff]   ;;  %v21531_v27 = vld [vmem:[%s23500_s29 + $0xc38] ss:$40 sps:$4 sm:$0xff]  }
 0x5c2   : > { %11922 = vmatprep.subr.bf16.mxu1 %v21470_v29  ;;  %v21534_v29 = vld [vmem:[%s23500_s29 + $0x1138] ss:$40 sps:$4 sm:$0xff]  }
 0x5c4   : > { %11882 = vmatpush1.bf16.msra.mxu0 %v21465_v26  ;;  %v21539_v26 = vld [vmem:[%s23500_s29 + $0xbec] ss:$40 sps:$4 sm:$0xff]  }
 0x5c5   : > { %11923 = vmatpush1.bf16.msra.mxu1 %v21468_v6  ;;  %11883 = vmatprep.subr.bf16.mxu0 %v21473_v28  ;;  %v21542_v28 = vld [vmem:[%s23500_s29 + $0x10ec] ss:$40 sps:$4 sm:$0xff]  }
 0x5c6   : > { %11924 = vmatprep.subr.bf16.mxu1 %v21476_v51 }
 0x5c8   : > { %11884 = vmatpush1.bf16.msra.mxu0 %v21471_v35  ;;  %v21537_v35 = vld [vmem:[%s23500_s29 + $0xbe8] ss:$40 sps:$4 sm:$0xff]  }
 0x5c9   : > { %11925 = vmatpush1.bf16.msra.mxu1 %v21474_v45  ;;  %11885 = vmatprep.subr.bf16.mxu0 %v21479_v41  ;;  %v21540_v41 = vld [vmem:[%s23500_s29 + $0x10e8] ss:$40 sps:$4 sm:$0xff]  }
 0x5ca   : > { %11926 = vmatprep.subr.bf16.mxu1 %v21482_v37  ;;  %v21545_v37 = vld [vmem:[%s23500_s29 + $0xb9c] ss:$40 sps:$4 sm:$0xff]  }
 0x5cc   : > { %11886 = vmatpush1.bf16.msra.mxu0 %v21477_v19 }
 0x5cd   : > { %11927 = vmatpush1.bf16.msra.mxu1 %v21480_v40  ;;  %11887 = vmatprep.subr.bf16.mxu0 %v21485_v42  ;;  %v21548_v40 = vld [vmem:[%s23500_s29 + $0x109c] ss:$40 sps:$4 sm:$0xff]  }
 0x5ce   : > { %11928 = vmatprep.subr.bf16.mxu1 %v21488_v44 }
 0x5d0   : > { %11888 = vmatpush2.bf16.msra.mxu0 %v21483_v56 }
 0x5d1   : > { %11929 = vmatpush2.bf16.msra.mxu1 %v21486_v58  ;;  %11889 = vmatprep.subr.bf16.mxu0 %v21491_v50  ;;  %v21543_v50 = vld [vmem:[%s23500_s29 + $0xb98] ss:$40 sps:$4 sm:$0xff]  }
 0x5d2   : > { %11930 = vmatprep.subr.bf16.mxu1 %v21494_v61 }
 0x5d4   : > { %11890 = vmatpush2.bf16.msra.mxu0 %v21489_v14 }
 0x5d5   : > { %11931 = vmatpush2.bf16.msra.mxu1 %v21492_v52  ;;  %11891 = vmatprep.subr.bf16.mxu0 %v21497_v22  ;;  %v21546_v52 = vld [vmem:[%s23500_s29 + $0x1098] ss:$40 sps:$4 sm:$0xff]   ;;  %v21551_v22 = vld [vmem:[%s23500_s29 + $0xb4c] ss:$40 sps:$4 sm:$0xff]  }
 0x5d6   : > { %11932 = vmatprep.subr.bf16.mxu1 %v21500_v62  ;;  %v5460_v62 = vld [vmem:[#allocation2 + $0x10] sm:$0xf] }
 0x5d8   : > { %11892 = vmatpush2.bf16.msra.mxu0 %v21495_v53 }
 0x5d9   : > { %11933 = vmatpush2.bf16.msra.mxu1 %v21498_v36  ;;  %11893 = vmatprep.subr.bf16.mxu0 %v21503_v43  ;;  %v21554_v36 = vld [vmem:[%s23500_s29 + $0x104c] ss:$40 sps:$4 sm:$0xff]  }
 0x5da   : > { %11934 = vmatprep.subr.bf16.mxu1 %v21506_v47  ;;  %v21549_v47 = vld [vmem:[%s23500_s29 + $0xb48] ss:$40 sps:$4 sm:$0xff]  }
 0x5dc   : > { %11894 = vmatpush2.bf16.msra.mxu0 %v21501_v57 }
 0x5dd   : > { %11935 = vmatpush2.bf16.msra.mxu1 %v21504_v5  ;;  %11895 = vmatprep.subr.bf16.mxu0 %v21509_v21  ;;  %v21552_v5 = vld [vmem:[%s23500_s29 + $0x1048] ss:$40 sps:$4 sm:$0xff]   ;;  %v21557_v21 = vld [vmem:[%s23500_s29 + $0xafc] ss:$40 sps:$4 sm:$0xff]  }
 0x5de   : > { %11936 = vmatprep.subr.bf16.mxu1 %v21512_v1  ;;  %v21560_v1 = vld [vmem:[%s23500_s29 + $0xffc] ss:$40 sps:$4 sm:$0xff]  }
 0x5e0   : > { %11896 = vmatpush2.bf16.msra.mxu0 %v21507_v23  ;;  %v21555_v23 = vld [vmem:[%s23500_s29 + $0xaf8] ss:$40 sps:$4 sm:$0xff]  }
 0x5e1   : > { %11937 = vmatpush2.bf16.msra.mxu1 %v21510_v59  ;;  %11897 = vmatprep.subr.bf16.mxu0 %v21515_v4  ;;  %v21558_v59 = vld [vmem:[%s23500_s29 + $0xff8] ss:$40 sps:$4 sm:$0xff]   ;;  %v21563_v4 = vld [vmem:[%s23500_s29 + $0xaac] ss:$40 sps:$4 sm:$0xff]  }
 0x5e2   : > { %11938 = vmatprep.subr.bf16.mxu1 %v21518_v39  ;;  %v21566_v39 = vld [vmem:[%s23500_s29 + $0xfac] ss:$40 sps:$4 sm:$0xff]  }
 0x5e4   : > { %11898 = vmatpush2.bf16.msra.mxu0 %v21513_v7  ;;  %v21561_v7 = vld [vmem:[%s23500_s29 + $0xaa8] ss:$40 sps:$4 sm:$0xff]  }
 0x5e5   : > { %11939 = vmatpush2.bf16.msra.mxu1 %v21516_v8  ;;  %11899 = vmatprep.subr.bf16.mxu0 %v21521_v3  ;;  %v21564_v8 = vld [vmem:[%s23500_s29 + $0xfa8] ss:$40 sps:$4 sm:$0xff]   ;;  %v21569_v3 = vld [vmem:[%s23500_s29 + $0xa5c] ss:$40 sps:$4 sm:$0xff]  }
 0x5e6   : > { %11940 = vmatprep.subr.bf16.mxu1 %v21524_v10  ;;  %v21572_v10 = vld [vmem:[%s23500_s29 + $0xf5c] ss:$40 sps:$4 sm:$0xff]  }
 0x5e8   : > { %11900 = vmatpush2.bf16.msra.mxu0 %v21519_v15  ;;  %v21567_v15 = vld [vmem:[%s23500_s29 + $0xa58] ss:$40 sps:$4 sm:$0xff]  }
 0x5e9   : > { %11941 = vmatpush2.bf16.msra.mxu1 %v21522_v16  ;;  %11901 = vmatprep.subr.bf16.mxu0 %v21527_v17  ;;  %v21570_v16 = vld [vmem:[%s23500_s29 + $0xf58] ss:$40 sps:$4 sm:$0xff]   ;;  %v21575_v17 = vld [vmem:[%s23500_s29 + $0xa0c] ss:$40 sps:$4 sm:$0xff]  }
 0x5ea   : > { %11942 = vmatprep.subr.bf16.mxu1 %v21530_v24  ;;  %v21578_v24 = vld [vmem:[%s23500_s29 + $0xf0c] ss:$40 sps:$4 sm:$0xff]  }
 0x5ec   : > { %11902 = vmatpush2.bf16.msra.mxu0 %v21525_v9  ;;  %v21573_v9 = vld [vmem:[%s23500_s29 + $0xa08] ss:$40 sps:$4 sm:$0xff]  }
 0x5ed   : > { %11943 = vmatpush2.bf16.msra.mxu1 %v21528_v33  ;;  %11953 = vmatprep.subr.bf16.mxu0 %v21533_v11  ;;  %v21576_v33 = vld [vmem:[%s23500_s29 + $0xf08] ss:$40 sps:$4 sm:$0xff]   ;;  %v21581_v11 = vld [vmem:[%s23500_s29 + $0xebc] ss:$40 sps:$4 sm:$0xff]  }
 0x5ee   : > { %11994 = vmatprep.subr.bf16.mxu1 %v21536_v63  ;;  %v21584_v63 = vld [vmem:[%s23500_s29 + $0x13bc] ss:$40 sps:$4 sm:$0xff]  }
 0x5ef   : > { %v7747_v6 = vpop.f32.mrf.mxu0  ;;  %11904 = vmatmul.mubr.bf16.vlgmr.msra.gmra.mxu0 %v24720_v60 }
 0x5f0   : > { %v7788_v51 = vpop.f32.mrf.mxu1  ;;  %11945 = vmatmul.mubr.bf16.vlgmr.msra.gmra.mxu1 %v24725_v0  ;;  %11954 = vmatpush1.bf16.msra.mxu0 %v21531_v27  ;;  %v21579_v27 = vld [vmem:[%s23500_s29 + $0xeb8] ss:$40 sps:$4 sm:$0xff]  }
 0x5f1   : > { %11985 = vmatprep.mubr.bf16.mxu0 %v24730_v2  ;;  %11995 = vmatpush1.bf16.msra.mxu1 %v21534_v29  ;;  %v7749_v45 = vpop.f32.mrf.mxu0  ;;  %v7789_v42 = vadd.f32 %v7788_v51, %v7747_v6  ;;  %v21582_v29 = vld [vmem:[%s23500_s29 + $0x13b8] ss:$40 sps:$4 sm:$0xff]   ;;  %v21590_v6 = vld [vmem:[%s23500_s29 + $0x136c] ss:$40 sps:$4 sm:$0xff]   ;;  %v21588_v51 = vld [vmem:[%s23500_s29 + $0x1368] ss:$40 sps:$4 sm:$0xff]  }
 0x5f2   : > { %12026 = vmatprep.mubr.bf16.mxu1 %v24736_v54  ;;  %v7790_v19 = vpop.f32.mrf.mxu1  ;;  %11955 = vmatprep.subr.bf16.mxu0 %v21539_v26  ;;  %v21587_v26 = vld [vmem:[%s23500_s29 + $0xe6c] ss:$40 sps:$4 sm:$0xff]  }
 0x5f3   : > { %v7791_v44 = vadd.f32 %v7790_v19, %v7749_v45  ;;  %v7751_v56 = vpop.f32.mrf.mxu0  ;;  %11996 = vmatprep.subr.bf16.mxu1 %v21542_v28  ;;  %v21585_v28 = vld [vmem:[%s23500_s29 + $0xe68] ss:$40 sps:$4 sm:$0xff]   ;;  %v21596_v45 = vld [vmem:[%s23500_s29 + $0x131c] ss:$40 sps:$4 sm:$0xff]   ;;  %v21599_v19 = vld [vmem:[%s23500_s29 + $0xdcc] ss:$40 sps:$4 sm:$0xff]  }
 0x5f4   : > { %v7792_v58 = vpop.f32.mrf.mxu1  ;;  %11956 = vmatpush1.bf16.msra.mxu0 %v21537_v35  ;;  %v21593_v35 = vld [vmem:[%s23500_s29 + $0xe1c] ss:$40 sps:$4 sm:$0xff]  }
 0x5f5   : > { %v7839_v61 = vcombine.low %v7789_v42, %v7791_v44  ;;  %11997 = vmatpush1.bf16.msra.mxu1 %v21540_v41  ;;  %v7752_v14 = vpop.f32.mrf.mxu0  ;;  %11957 = vmatprep.subr.bf16.mxu0 %v21545_v37  ;;  %v21591_v41 = vld [vmem:[%s23500_s29 + $0xe18] ss:$40 sps:$4 sm:$0xff]   ;;  %v21597_v42 = vld [vmem:[%s23500_s29 + $0xdc8] ss:$40 sps:$4 sm:$0xff]   ;;  %v21605_v56 = vld [vmem:[%s23500_s29 + $0xd7c] ss:$40 sps:$4 sm:$0xff]  }
 0x5f6   : > { %v7793_v53 = vpop.f32.mrf.mxu1  ;;  %11998 = vmatprep.subr.bf16.mxu1 %v21548_v40  ;;  %v21594_v37 = vld [vmem:[%s23500_s29 + $0x1318] ss:$40 sps:$4 sm:$0xff]   ;;  %v21602_v40 = vld [vmem:[%s23500_s29 + $0x12cc] ss:$40 sps:$4 sm:$0xff]   ;;  %v21600_v44 = vld [vmem:[%s23500_s29 + $0x12c8] ss:$40 sps:$4 sm:$0xff]  }
 0x5f7   : > { %v7846_v43 = vrot.slane %v7839_v61, %v24654_v32  ;;  %v21608_v58 = vld [vmem:[%s23500_s29 + $0x127c] ss:$40 sps:$4 sm:$0xff]   ;;  %v21606_v61 = vld [vmem:[%s23500_s29 + $0x1278] ss:$40 sps:$4 sm:$0xff]   ;;  %v21611_v14 = vld [vmem:[%s23500_s29 + $0xd2c] ss:$40 sps:$4 sm:$0xff]  }
 0x5f8   : > { %11958 = vmatpush1.bf16.msra.mxu0 %v21543_v50  ;;  %v21603_v50 = vld [vmem:[%s23500_s29 + $0xd78] ss:$40 sps:$4 sm:$0xff]   ;;  %v21617_v53 = vld [vmem:[%s23500_s29 + $0xcdc] ss:$40 sps:$4 sm:$0xff]  }
 0x5f9   : > { %v7852_v57 = vadd.f32 %v7846_v43, %v5460_v62  ;;  %11999 = vmatpush1.bf16.msra.mxu1 %v21546_v52  ;;  %11959 = vmatprep.subr.bf16.mxu0 %v21551_v22  ;;  %v21614_v52 = vld [vmem:[%s23500_s29 + $0x122c] ss:$40 sps:$4 sm:$0xff]   ;;  %v21609_v22 = vld [vmem:[%s23500_s29 + $0xd28] ss:$40 sps:$4 sm:$0xff]   ;;  %v21615_v43 = vld [vmem:[%s23500_s29 + $0xcd8] ss:$40 sps:$4 sm:$0xff]  }
 0x5fa   : > { %12000 = vmatprep.subr.bf16.mxu1 %v21554_v36  ;;  %v21612_v62 = vld [vmem:[%s23500_s29 + $0x1228] ss:$40 sps:$4 sm:$0xff]   ;;  %v21620_v36 = vld [vmem:[%s23500_s29 + $0x11dc] ss:$40 sps:$4 sm:$0xff]  }
 0x5fb   : > { %7855 = vst [vmem:[#allocation2 + $0x10] sm:$0xf] %v7852_v57  ;;  %v21623_v57 = vld [vmem:[%s23500_s29 + $0xc8c] ss:$40 sps:$4 sm:$0xff]  }
 0x5fc   : > { %11960 = vmatpush1.bf16.msra.mxu0 %v21549_v47  ;;  %v21618_v47 = vld [vmem:[%s23500_s29 + $0x11d8] ss:$40 sps:$4 sm:$0xff]  }
 0x5fd   : > { %12001 = vmatpush1.bf16.msra.mxu1 %v21552_v5  ;;  %11961 = vmatprep.subr.bf16.mxu0 %v21557_v21  ;;  %v21626_v5 = vld [vmem:[%s23500_s29 + $0x118c] ss:$40 sps:$4 sm:$0xff]   ;;  %v21621_v21 = vld [vmem:[%s23500_s29 + $0xc88] ss:$40 sps:$4 sm:$0xff]  }
 0x5fe   : > { %12002 = vmatprep.subr.bf16.mxu1 %v21560_v1  ;;  %v21624_v1 = vld [vmem:[%s23500_s29 + $0x1188] ss:$40 sps:$4 sm:$0xff]  }
 0x600   : > { %11962 = vmatpush1.bf16.msra.mxu0 %v21555_v23  ;;  %v21629_v23 = vld [vmem:[%s23500_s29 + $0x244] ss:$40 sps:$4 sm:$0xff]  }
 0x601   : > { %12003 = vmatpush1.bf16.msra.mxu1 %v21558_v59  ;;  %11963 = vmatprep.subr.bf16.mxu0 %v21563_v4  ;;  %v21632_v59 = vld [vmem:[%s23500_s29 + $0x744] ss:$40 sps:$4 sm:$0xff]   ;;  %v21627_v4 = vld [vmem:[%s23500_s29 + $0x240] ss:$40 sps:$4 sm:$0xff]  }
 0x602   : > { %12004 = vmatprep.subr.bf16.mxu1 %v21566_v39  ;;  %v21630_v39 = vld [vmem:[%s23500_s29 + $0x740] ss:$40 sps:$4 sm:$0xff]  }
 0x604   : > { %11964 = vmatpush1.bf16.msra.mxu0 %v21561_v7  ;;  %v21635_v7 = vld [vmem:[%s23500_s29 + $0x1f4] ss:$40 sps:$4 sm:$0xff]  }
 0x605   : > { %12005 = vmatpush1.bf16.msra.mxu1 %v21564_v8  ;;  %11965 = vmatprep.subr.bf16.mxu0 %v21569_v3  ;;  %v21638_v3 = vld [vmem:[%s23500_s29 + $0x6f4] ss:$40 sps:$4 sm:$0xff]  }
 0x606   : > { %12006 = vmatprep.subr.bf16.mxu1 %v21572_v10 }
 0x608   : > { %11966 = vmatpush1.bf16.msra.mxu0 %v21567_v15  ;;  %v21633_v15 = vld [vmem:[%s23500_s29 + $0x1f0] ss:$40 sps:$4 sm:$0xff]  }
 0x609   : > { %12007 = vmatpush1.bf16.msra.mxu1 %v21570_v16  ;;  %11967 = vmatprep.subr.bf16.mxu0 %v21575_v17 }
 0x60a   : > { %12008 = vmatprep.subr.bf16.mxu1 %v21578_v24  ;;  %v21636_v24 = vld [vmem:[%s23500_s29 + $0x6f0] ss:$40 sps:$4 sm:$0xff]  }
 0x60c   : > { %11968 = vmatpush1.bf16.msra.mxu0 %v21573_v9  ;;  %v21641_v9 = vld [vmem:[%s23500_s29 + $0x1a4] ss:$40 sps:$4 sm:$0xff]  }
 0x60d   : > { %12009 = vmatpush1.bf16.msra.mxu1 %v21576_v33  ;;  %11969 = vmatprep.subr.bf16.mxu0 %v21581_v11  ;;  %v21644_v11 = vld [vmem:[%s23500_s29 + $0x6a4] ss:$40 sps:$4 sm:$0xff]  }
 0x60e   : > { %12010 = vmatprep.subr.bf16.mxu1 %v21584_v63 }
 0x610   : > { %11970 = vmatpush2.bf16.msra.mxu0 %v21579_v27 }
 0x611   : > { %12011 = vmatpush2.bf16.msra.mxu1 %v21582_v29  ;;  %11971 = vmatprep.subr.bf16.mxu0 %v21587_v26  ;;  %v21639_v26 = vld [vmem:[%s23500_s29 + $0x1a0] ss:$40 sps:$4 sm:$0xff]  }
 0x612   : > { %12012 = vmatprep.subr.bf16.mxu1 %v21590_v6 }
 0x614   : > { %11972 = vmatpush2.bf16.msra.mxu0 %v21585_v28  ;;  %v21642_v28 = vld [vmem:[%s23500_s29 + $0x6a0] ss:$40 sps:$4 sm:$0xff]  }
 0x615   : > { %12013 = vmatpush2.bf16.msra.mxu1 %v21588_v51  ;;  %11973 = vmatprep.subr.bf16.mxu0 %v21593_v35  ;;  %v21647_v51 = vld [vmem:[%s23500_s29 + $0x154] ss:$40 sps:$4 sm:$0xff]  }
 0x616   : > { %12014 = vmatprep.subr.bf16.mxu1 %v21596_v45  ;;  %v21650_v45 = vld [vmem:[%s23500_s29 + $0x654] ss:$40 sps:$4 sm:$0xff]  }
 0x618   : > { %11974 = vmatpush2.bf16.msra.mxu0 %v21591_v41  ;;  %v21645_v41 = vld [vmem:[%s23500_s29 + $0x150] ss:$40 sps:$4 sm:$0xff]  }
 0x619   : > { %12015 = vmatpush2.bf16.msra.mxu1 %v21594_v37  ;;  %11975 = vmatprep.subr.bf16.mxu0 %v21599_v19  ;;  %v21648_v37 = vld [vmem:[%s23500_s29 + $0x650] ss:$40 sps:$4 sm:$0xff]   ;;  %v21653_v19 = vld [vmem:[%s23500_s29 + $0x104] ss:$40 sps:$4 sm:$0xff]  }
 0x61a   : > { %12016 = vmatprep.subr.bf16.mxu1 %v21602_v40  ;;  %v21656_v40 = vld [vmem:[%s23500_s29 + $0x604] ss:$40 sps:$4 sm:$0xff]  }
 0x61c   : > { %11976 = vmatpush2.bf16.msra.mxu0 %v21597_v42  ;;  %v21651_v42 = vld [vmem:[%s23500_s29 + $0x100] ss:$40 sps:$4 sm:$0xff]  }
 0x61d   : > { %12017 = vmatpush2.bf16.msra.mxu1 %v21600_v44  ;;  %11977 = vmatprep.subr.bf16.mxu0 %v21605_v56  ;;  %v21654_v44 = vld [vmem:[%s23500_s29 + $0x600] ss:$40 sps:$4 sm:$0xff]   ;;  %v21659_v56 = vld [vmem:[%s23500_s29 + $0xb4] ss:$40 sps:$4 sm:$0xff]  }
 0x61e   : > { %12018 = vmatprep.subr.bf16.mxu1 %v21608_v58  ;;  %v21662_v58 = vld [vmem:[%s23500_s29 + $0x5b4] ss:$40 sps:$4 sm:$0xff]  }
 0x620   : > { %11978 = vmatpush2.bf16.msra.mxu0 %v21603_v50  ;;  %v21657_v50 = vld [vmem:[%s23500_s29 + $0xb0] ss:$40 sps:$4 sm:$0xff]  }
 0x621   : > { %12019 = vmatpush2.bf16.msra.mxu1 %v21606_v61  ;;  %11979 = vmatprep.subr.bf16.mxu0 %v21611_v14  ;;  %v21660_v61 = vld [vmem:[%s23500_s29 + $0x5b0] ss:$40 sps:$4 sm:$0xff]   ;;  %v21665_v14 = vld [vmem:[%s23500_s29 + $0x64] ss:$40 sps:$4 sm:$0xff]  }
 0x622   : > { %12020 = vmatprep.subr.bf16.mxu1 %v21614_v52  ;;  %v21668_v52 = vld [vmem:[%s23500_s29 + $0x564] ss:$40 sps:$4 sm:$0xff]  }
 0x624   : > { %11980 = vmatpush2.bf16.msra.mxu0 %v21609_v22  ;;  %v21663_v22 = vld [vmem:[%s23500_s29 + $0x60] ss:$40 sps:$4 sm:$0xff]  }
 0x625   : > { %12021 = vmatpush2.bf16.msra.mxu1 %v21612_v62  ;;  %11981 = vmatprep.subr.bf16.mxu0 %v21617_v53  ;;  %v21666_v62 = vld [vmem:[%s23500_s29 + $0x560] ss:$40 sps:$4 sm:$0xff]   ;;  %v21671_v53 = vld [vmem:[%s23500_s29 + $0x14] ss:$40 sps:$4 sm:$0xff]  }
 0x626   : > { %12022 = vmatprep.subr.bf16.mxu1 %v21620_v36  ;;  %v21674_v36 = vld [vmem:[%s23500_s29 + $0x514] ss:$40 sps:$4 sm:$0xff]  }
 0x628   : > { %11982 = vmatpush2.bf16.msra.mxu0 %v21615_v43  ;;  %v21669_v43 = vld [vmem:[%s23500_s29 + $0x10] ss:$40 sps:$4 sm:$0xff]  }
 0x629   : > { %12023 = vmatpush2.bf16.msra.mxu1 %v21618_v47  ;;  %11983 = vmatprep.subr.bf16.mxu0 %v21623_v57  ;;  %v21672_v47 = vld [vmem:[%s23500_s29 + $0x510] ss:$40 sps:$4 sm:$0xff]   ;;  %v21677_v57 = vld [vmem:[%s23500_s29 + $0x4c4] ss:$40 sps:$4 sm:$0xff]  }
 0x62a   : > { %12024 = vmatprep.subr.bf16.mxu1 %v21626_v5  ;;  %v21680_v5 = vld [vmem:[%s23500_s29 + $0x9c4] ss:$40 sps:$4 sm:$0xff]  }
 0x62c   : > { %11984 = vmatpush2.bf16.msra.mxu0 %v21621_v21  ;;  %v21675_v21 = vld [vmem:[%s23500_s29 + $0x4c0] ss:$40 sps:$4 sm:$0xff]  }
 0x62d   : > { %12025 = vmatpush2.bf16.msra.mxu1 %v21624_v1  ;;  %12035 = vmatprep.subr.bf16.mxu0 %v21629_v23  ;;  %v21678_v1 = vld [vmem:[%s23500_s29 + $0x9c0] ss:$40 sps:$4 sm:$0xff]   ;;  %v21683_v23 = vld [vmem:[%s23500_s29 + $0x474] ss:$40 sps:$4 sm:$0xff]  }
 0x62e   : > { %12076 = vmatprep.subr.bf16.mxu1 %v21632_v59  ;;  %v21686_v59 = vld [vmem:[%s23500_s29 + $0x974] ss:$40 sps:$4 sm:$0xff]  }
 0x62f   : > { %v11741_v8 = vpop.f32.mrf.mxu0  ;;  %11986 = vmatmul.mubr.bf16.vlgmr.msra.gmra.mxu0 %v24810_v49 }
 0x630   : > { %v11782_v10 = vpop.f32.mrf.mxu1  ;;  %12027 = vmatmul.mubr.bf16.vlgmr.msra.gmra.mxu1 %v24815_v46  ;;  %12036 = vmatpush1.bf16.msra.mxu0 %v21627_v4  ;;  %v21681_v4 = vld [vmem:[%s23500_s29 + $0x470] ss:$40 sps:$4 sm:$0xff]  }
 0x631   : > { %v24964_v16 = vadd.f32 %v11782_v10, %v11741_v8  ;;  %12067 = vmatprep.mubr.bf16.mxu0 %v24638_v12  ;;  %12077 = vmatpush1.bf16.msra.mxu1 %v21630_v39  ;;  %v11743_v17 = vpop.f32.mrf.mxu0  ;;  %v21684_v39 = vld [vmem:[%s23500_s29 + $0x970] ss:$40 sps:$4 sm:$0xff]   ;;  %v21692_v8 = vld [vmem:[%s23500_s29 + $0x924] ss:$40 sps:$4 sm:$0xff]   ;;  %v21690_v10 = vld [vmem:[%s23500_s29 + $0x920] ss:$40 sps:$4 sm:$0xff]  }
 0x632   : > { %12108 = vmatprep.mubr.bf16.mxu1 %v24644_v18  ;;  %v11784_v33 = vpop.f32.mrf.mxu1  ;;  %12037 = vmatprep.subr.bf16.mxu0 %v21635_v7  ;;  %v21689_v7 = vld [vmem:[%s23500_s29 + $0x424] ss:$40 sps:$4 sm:$0xff]  }
 0x633   : > { %v24971_v63 = vadd.f32 %v11784_v33, %v11743_v17  ;;  %v11745_v27 = vpop.f32.mrf.mxu0  ;;  %12078 = vmatprep.subr.bf16.mxu1 %v21638_v3  ;;  %v21687_v3 = vld [vmem:[%s23500_s29 + $0x420] ss:$40 sps:$4 sm:$0xff]   ;;  %v21698_v17 = vld [vmem:[%s23500_s29 + $0x8d4] ss:$40 sps:$4 sm:$0xff]   ;;  %v21701_v33 = vld [vmem:[%s23500_s29 + $0x384] ss:$40 sps:$4 sm:$0xff]  }
 0x634   : > { %v11786_v29 = vpop.f32.mrf.mxu1  ;;  %12038 = vmatpush1.bf16.msra.mxu0 %v21633_v15  ;;  %v21695_v15 = vld [vmem:[%s23500_s29 + $0x3d4] ss:$40 sps:$4 sm:$0xff]   ;;  %v21699_v27 = vld [vmem:[%s23500_s29 + $0x380] ss:$40 sps:$4 sm:$0xff]  }
 0x635   : > { %12079 = vmatpush1.bf16.msra.mxu1 %v21636_v24  ;;  %v11746_v6 = vpop.f32.mrf.mxu0  ;;  %12039 = vmatprep.subr.bf16.mxu0 %v21641_v9  ;;  %v21693_v24 = vld [vmem:[%s23500_s29 + $0x3d0] ss:$40 sps:$4 sm:$0xff]   ;;  %v21702_v29 = vld [vmem:[%s23500_s29 + $0x880] ss:$40 sps:$4 sm:$0xff]  }
 0x636   : > { %v11787_v35 = vpop.f32.mrf.mxu1  ;;  %12080 = vmatprep.subr.bf16.mxu1 %v21644_v11  ;;  %v21696_v9 = vld [vmem:[%s23500_s29 + $0x8d0] ss:$40 sps:$4 sm:$0xff]   ;;  %v21704_v11 = vld [vmem:[%s23500_s29 + $0x884] ss:$40 sps:$4 sm:$0xff]   ;;  %v21710_v6 = vld [vmem:[%s23500_s29 + $0x834] ss:$40 sps:$4 sm:$0xff]  }
 0x637   : > { %v21713_v35 = vld [vmem:[%s23500_s29 + $0x2e4] ss:$40 sps:$4 sm:$0xff]  }
 0x638   : > { %12040 = vmatpush1.bf16.msra.mxu0 %v21639_v26  ;;  %v21707_v26 = vld [vmem:[%s23500_s29 + $0x334] ss:$40 sps:$4 sm:$0xff]  }
 0x639   : > { %12081 = vmatpush1.bf16.msra.mxu1 %v21642_v28  ;;  %12041 = vmatprep.subr.bf16.mxu0 %v21647_v51  ;;  %v21705_v28 = vld [vmem:[%s23500_s29 + $0x330] ss:$40 sps:$4 sm:$0xff]  }
 0x63a   : > { %12082 = vmatprep.subr.bf16.mxu1 %v21650_v45  ;;  %v21708_v51 = vld [vmem:[%s23500_s29 + $0x830] ss:$40 sps:$4 sm:$0xff]   ;;  %v21716_v45 = vld [vmem:[%s23500_s29 + $0x7e4] ss:$40 sps:$4 sm:$0xff]  }
 0x63c   : > { %12042 = vmatpush1.bf16.msra.mxu0 %v21645_v41  ;;  %v21711_v41 = vld [vmem:[%s23500_s29 + $0x2e0] ss:$40 sps:$4 sm:$0xff]  }
 0x63d   : > { %12083 = vmatpush1.bf16.msra.mxu1 %v21648_v37  ;;  %12043 = vmatprep.subr.bf16.mxu0 %v21653_v19  ;;  %v21714_v37 = vld [vmem:[%s23500_s29 + $0x7e0] ss:$40 sps:$4 sm:$0xff]   ;;  %v21719_v19 = vld [vmem:[%s23500_s29 + $0x294] ss:$40 sps:$4 sm:$0xff]  }
 0x63e   : > { %12084 = vmatprep.subr.bf16.mxu1 %v21656_v40  ;;  %v21722_v40 = vld [vmem:[%s23500_s29 + $0x794] ss:$40 sps:$4 sm:$0xff]  }
 0x640   : > { %12044 = vmatpush1.bf16.msra.mxu0 %v21651_v42  ;;  %v21717_v42 = vld [vmem:[%s23500_s29 + $0x290] ss:$40 sps:$4 sm:$0xff]  }
 0x641   : > { %12085 = vmatpush1.bf16.msra.mxu1 %v21654_v44  ;;  %12045 = vmatprep.subr.bf16.mxu0 %v21659_v56  ;;  %v21720_v44 = vld [vmem:[%s23500_s29 + $0x790] ss:$40 sps:$4 sm:$0xff]   ;;  %v21725_v56 = vld [vmem:[%s23500_s29 + $0xc44] ss:$40 sps:$4 sm:$0xff]  }
 0x642   : > { %12086 = vmatprep.subr.bf16.mxu1 %v21662_v58  ;;  %v21728_v58 = vld [vmem:[%s23500_s29 + $0x1144] ss:$40 sps:$4 sm:$0xff]  }
 0x644   : > { %12046 = vmatpush1.bf16.msra.mxu0 %v21657_v50  ;;  %v21723_v50 = vld [vmem:[%s23500_s29 + $0xc40] ss:$40 sps:$4 sm:$0xff]  }
 0x645   : > { %12087 = vmatpush1.bf16.msra.mxu1 %v21660_v61  ;;  %12047 = vmatprep.subr.bf16.mxu0 %v21665_v14  ;;  %v21726_v61 = vld [vmem:[%s23500_s29 + $0x1140] ss:$40 sps:$4 sm:$0xff]   ;;  %v21731_v14 = vld [vmem:[%s23500_s29 + $0xbf4] ss:$40 sps:$4 sm:$0xff]  }
 0x646   : > { %12088 = vmatprep.subr.bf16.mxu1 %v21668_v52 }
 0x648   : > { %12048 = vmatpush1.bf16.msra.mxu0 %v21663_v22  ;;  %v21734_v22 = vld [vmem:[%s23500_s29 + $0x10f4] ss:$40 sps:$4 sm:$0xff]  }
 0x649   : > { %12089 = vmatpush1.bf16.msra.mxu1 %v21666_v62  ;;  %12049 = vmatprep.subr.bf16.mxu0 %v21671_v53 }
 0x64a   : > { %12090 = vmatprep.subr.bf16.mxu1 %v21674_v36  ;;  %v21729_v36 = vld [vmem:[%s23500_s29 + $0xbf0] ss:$40 sps:$4 sm:$0xff]  }
 0x64c   : > { %12050 = vmatpush1.bf16.msra.mxu0 %v21669_v43 }
 0x64d   : > { %12091 = vmatpush1.bf16.msra.mxu1 %v21672_v47  ;;  %12051 = vmatprep.subr.bf16.mxu0 %v21677_v57  ;;  %v21732_v47 = vld [vmem:[%s23500_s29 + $0x10f0] ss:$40 sps:$4 sm:$0xff]   ;;  %v21737_v57 = vld [vmem:[%s23500_s29 + $0xba4] ss:$40 sps:$4 sm:$0xff]  }
 0x64e   : > { %12092 = vmatprep.subr.bf16.mxu1 %v21680_v5 }
 0x650   : > { %12052 = vmatpush2.bf16.msra.mxu0 %v21675_v21 }
 0x651   : > { %12093 = vmatpush2.bf16.msra.mxu1 %v21678_v1  ;;  %12053 = vmatprep.subr.bf16.mxu0 %v21683_v23  ;;  %v21740_v1 = vld [vmem:[%s23500_s29 + $0x10a4] ss:$40 sps:$4 sm:$0xff]  }
 0x652   : > { %12094 = vmatprep.subr.bf16.mxu1 %v21686_v59 }
 0x654   : > { %12054 = vmatpush2.bf16.msra.mxu0 %v21681_v4 }
 0x655   : > { %12095 = vmatpush2.bf16.msra.mxu1 %v21684_v39  ;;  %12055 = vmatprep.subr.bf16.mxu0 %v21689_v7  ;;  %v21735_v39 = vld [vmem:[%s23500_s29 + $0xba0] ss:$40 sps:$4 sm:$0xff]  }
 0x656   : > { %12096 = vmatprep.subr.bf16.mxu1 %v21692_v8  ;;  %v21743_v8 = vld [vmem:[%s23500_s29 + $0xb54] ss:$40 sps:$4 sm:$0xff]  }
 0x658   : > { %12056 = vmatpush2.bf16.msra.mxu0 %v21687_v3 }
 0x659   : > { %12097 = vmatpush2.bf16.msra.mxu1 %v21690_v10  ;;  %12057 = vmatprep.subr.bf16.mxu0 %v21695_v15  ;;  %v21746_v15 = vld [vmem:[%s23500_s29 + $0x1054] ss:$40 sps:$4 sm:$0xff]  }
 0x65a   : > { %12098 = vmatprep.subr.bf16.mxu1 %v21698_v17  ;;  %v21741_v17 = vld [vmem:[%s23500_s29 + $0xb50] ss:$40 sps:$4 sm:$0xff]  }
 0x65c   : > { %12058 = vmatpush2.bf16.msra.mxu0 %v21693_v24  ;;  %v21744_v24 = vld [vmem:[%s23500_s29 + $0x1050] ss:$40 sps:$4 sm:$0xff]  }
 0x65d   : > { %12099 = vmatpush2.bf16.msra.mxu1 %v21696_v9  ;;  %12059 = vmatprep.subr.bf16.mxu0 %v21701_v33  ;;  %v21749_v9 = vld [vmem:[%s23500_s29 + $0xb04] ss:$40 sps:$4 sm:$0xff]  }
 0x65e   : > { %12100 = vmatprep.subr.bf16.mxu1 %v21704_v11  ;;  %v21752_v33 = vld [vmem:[%s23500_s29 + $0x1004] ss:$40 sps:$4 sm:$0xff]   ;;  %v21747_v11 = vld [vmem:[%s23500_s29 + $0xb00] ss:$40 sps:$4 sm:$0xff]  }
 0x660   : > { %12060 = vmatpush2.bf16.msra.mxu0 %v21699_v27  ;;  %v21750_v27 = vld [vmem:[%s23500_s29 + $0x1000] ss:$40 sps:$4 sm:$0xff]  }
 0x661   : > { %12101 = vmatpush2.bf16.msra.mxu1 %v21702_v29  ;;  %12061 = vmatprep.subr.bf16.mxu0 %v21707_v26  ;;  %v21755_v29 = vld [vmem:[%s23500_s29 + $0xab4] ss:$40 sps:$4 sm:$0xff]  }
 0x662   : > { %12102 = vmatprep.subr.bf16.mxu1 %v21710_v6  ;;  %v21758_v26 = vld [vmem:[%s23500_s29 + $0xfb4] ss:$40 sps:$4 sm:$0xff]   ;;  %v21753_v6 = vld [vmem:[%s23500_s29 + $0xab0] ss:$40 sps:$4 sm:$0xff]  }
 0x664   : > { %12062 = vmatpush2.bf16.msra.mxu0 %v21705_v28  ;;  %v21756_v28 = vld [vmem:[%s23500_s29 + $0xfb0] ss:$40 sps:$4 sm:$0xff]  }
 0x665   : > { %12103 = vmatpush2.bf16.msra.mxu1 %v21708_v51  ;;  %12063 = vmatprep.subr.bf16.mxu0 %v21713_v35  ;;  %v21761_v51 = vld [vmem:[%s23500_s29 + $0xa64] ss:$40 sps:$4 sm:$0xff]  }
 0x666   : > { %12104 = vmatprep.subr.bf16.mxu1 %v21716_v45  ;;  %v21764_v35 = vld [vmem:[%s23500_s29 + $0xf64] ss:$40 sps:$4 sm:$0xff]   ;;  %v21759_v45 = vld [vmem:[%s23500_s29 + $0xa60] ss:$40 sps:$4 sm:$0xff]  }
 0x668   : > { %12064 = vmatpush2.bf16.msra.mxu0 %v21711_v41  ;;  %v21762_v41 = vld [vmem:[%s23500_s29 + $0xf60] ss:$40 sps:$4 sm:$0xff]  }
 0x669   : > { %12105 = vmatpush2.bf16.msra.mxu1 %v21714_v37  ;;  %12065 = vmatprep.subr.bf16.mxu0 %v21719_v19  ;;  %v21767_v37 = vld [vmem:[%s23500_s29 + $0xa14] ss:$40 sps:$4 sm:$0xff]  }
 0x66a   : > { %12106 = vmatprep.subr.bf16.mxu1 %v21722_v40  ;;  %v21770_v19 = vld [vmem:[%s23500_s29 + $0xf14] ss:$40 sps:$4 sm:$0xff]   ;;  %v21765_v40 = vld [vmem:[%s23500_s29 + $0xa10] ss:$40 sps:$4 sm:$0xff]  }
 0x66c   : > { %12066 = vmatpush2.bf16.msra.mxu0 %v21717_v42  ;;  %v21768_v42 = vld [vmem:[%s23500_s29 + $0xf10] ss:$40 sps:$4 sm:$0xff]  }
 0x66d   : > { %12107 = vmatpush2.bf16.msra.mxu1 %v21720_v44  ;;  %12117 = vmatprep.subr.bf16.mxu0 %v21725_v56  ;;  %v21773_v44 = vld [vmem:[%s23500_s29 + $0xec4] ss:$40 sps:$4 sm:$0xff]  }
 0x66e   : > { %12158 = vmatprep.subr.bf16.mxu1 %v21728_v58  ;;  %v21776_v56 = vld [vmem:[%s23500_s29 + $0x13c4] ss:$40 sps:$4 sm:$0xff]   ;;  %v21771_v58 = vld [vmem:[%s23500_s29 + $0xec0] ss:$40 sps:$4 sm:$0xff]  }
 0x66f   : > { %v11823_v52 = vpop.f32.mrf.mxu0  ;;  %12068 = vmatmul.mubr.bf16.vlgmr.msra.gmra.mxu0 %v24720_v60 }
 0x670   : > { %v11824_v62 = vadd.f32 %v11823_v52, %v24964_v16  ;;  %v11864_v53 = vpop.f32.mrf.mxu1  ;;  %12109 = vmatmul.mubr.bf16.vlgmr.msra.gmra.mxu1 %v24725_v0  ;;  %12118 = vmatpush1.bf16.msra.mxu0 %v21723_v50  ;;  %v21774_v50 = vld [vmem:[%s23500_s29 + $0x13c0] ss:$40 sps:$4 sm:$0xff]   ;;  %v21777_v52 = vld [vmem:[%s23500_s29 + $0xe70] ss:$40 sps:$4 sm:$0xff]  }
 0x671   : > { %12149 = vmatprep.mubr.bf16.mxu0 %v24730_v2  ;;  %12159 = vmatpush1.bf16.msra.mxu1 %v21726_v61  ;;  %v11825_v43 = vpop.f32.mrf.mxu0  ;;  %v21779_v61 = vld [vmem:[%s23500_s29 + $0xe74] ss:$40 sps:$4 sm:$0xff]  }
 0x672   : > { %v25040_v5 = vadd.f32 %v11864_v53, %v11824_v62  ;;  %12190 = vmatprep.mubr.bf16.mxu1 %v24736_v54  ;;  %v11826_v16 = vadd.f32 %v11825_v43, %v24971_v63  ;;  %v11866_v21 = vpop.f32.mrf.mxu1  ;;  %12119 = vmatprep.subr.bf16.mxu0 %v21731_v14  ;;  %v21738_v63 = vld [vmem:[%s23500_s29 + $0x10a0] ss:$40 sps:$4 sm:$0xff]   ;;  %v21782_v14 = vld [vmem:[%s23500_s29 + $0x1374] ss:$40 sps:$4 sm:$0xff]   ;;  %v21785_v62 = vld [vmem:[%s23500_s29 + $0xe24] ss:$40 sps:$4 sm:$0xff]  }
 0x673   : > { %v11827_v23 = vpop.f32.mrf.mxu0  ;;  %12160 = vmatprep.subr.bf16.mxu1 %v21734_v22  ;;  %v21780_v22 = vld [vmem:[%s23500_s29 + $0x1370] ss:$40 sps:$4 sm:$0xff]   ;;  %v21788_v53 = vld [vmem:[%s23500_s29 + $0x1324] ss:$40 sps:$4 sm:$0xff]   ;;  %v21786_v43 = vld [vmem:[%s23500_s29 + $0x1320] ss:$40 sps:$4 sm:$0xff]  }
 0x674   : > { %v25045_v59 = vadd.f32 %v11866_v21, %v11826_v16  ;;  %v11868_v4 = vpop.f32.mrf.mxu1  ;;  %12120 = vmatpush1.bf16.msra.mxu0 %v21729_v36  ;;  %v21783_v36 = vld [vmem:[%s23500_s29 + $0xe20] ss:$40 sps:$4 sm:$0xff]   ;;  %v21789_v16 = vld [vmem:[%s23500_s29 + $0xdd0] ss:$40 sps:$4 sm:$0xff]   ;;  %v21800_v23 = vld [vmem:[%s23500_s29 + $0x1284] ss:$40 sps:$4 sm:$0xff]  }
 0x675   : > { %12161 = vmatpush1.bf16.msra.mxu1 %v21732_v47  ;;  %v11828_v7 = vpop.f32.mrf.mxu0  ;;  %12121 = vmatprep.subr.bf16.mxu0 %v21737_v57  ;;  %v21791_v47 = vld [vmem:[%s23500_s29 + $0xdd4] ss:$40 sps:$4 sm:$0xff]   ;;  %v21792_v21 = vld [vmem:[%s23500_s29 + $0x12d0] ss:$40 sps:$4 sm:$0xff]   ;;  %v21795_v4 = vld [vmem:[%s23500_s29 + $0xd80] ss:$40 sps:$4 sm:$0xff]  }
 0x676   : > { %v12537_v3 = vcombine.low %v25040_v5, %v25045_v59  ;;  %v11869_v10 = vpop.f32.mrf.mxu1  ;;  %12162 = vmatprep.subr.bf16.mxu1 %v21740_v1  ;;  %v21794_v57 = vld [vmem:[%s23500_s29 + $0x12d4] ss:$40 sps:$4 sm:$0xff]   ;;  %v21797_v1 = vld [vmem:[%s23500_s29 + $0xd84] ss:$40 sps:$4 sm:$0xff]   ;;  %v21939_v59 = vld [vmem:[%s23500_s29 + $0xb08] ss:$40 sps:$4 sm:$0xff]  }
 0x677   : > { %v21803_v7 = vld [vmem:[%s23500_s29 + $0xd34] ss:$40 sps:$4 sm:$0xff]   ;;  %v21804_v10 = vld [vmem:[%s23500_s29 + $0x1230] ss:$40 sps:$4 sm:$0xff]  }
 0x678   : > { %12122 = vmatpush1.bf16.msra.mxu0 %v21735_v39  ;;  %v21798_v39 = vld [vmem:[%s23500_s29 + $0x1280] ss:$40 sps:$4 sm:$0xff]  }
 0x679   : > { %12163 = vmatpush1.bf16.msra.mxu1 %v21738_v63  ;;  %12123 = vmatprep.subr.bf16.mxu0 %v21743_v8  ;;  %v21806_v63 = vld [vmem:[%s23500_s29 + $0x1234] ss:$40 sps:$4 sm:$0xff]   ;;  %v21801_v8 = vld [vmem:[%s23500_s29 + $0xd30] ss:$40 sps:$4 sm:$0xff]  }
 0x67a   : > { %12164 = vmatprep.subr.bf16.mxu1 %v21746_v15  ;;  %v21809_v15 = vld [vmem:[%s23500_s29 + $0xce4] ss:$40 sps:$4 sm:$0xff]  }
 0x67c   : > { %12124 = vmatpush1.bf16.msra.mxu0 %v21741_v17  ;;  %v21812_v17 = vld [vmem:[%s23500_s29 + $0x11e4] ss:$40 sps:$4 sm:$0xff]  }
 0x67d   : > { %12165 = vmatpush1.bf16.msra.mxu1 %v21744_v24  ;;  %12125 = vmatprep.subr.bf16.mxu0 %v21749_v9  ;;  %v21807_v24 = vld [vmem:[%s23500_s29 + $0xce0] ss:$40 sps:$4 sm:$0xff]  }
 0x67e   : > { %12166 = vmatprep.subr.bf16.mxu1 %v21752_v33  ;;  %v21810_v9 = vld [vmem:[%s23500_s29 + $0x11e0] ss:$40 sps:$4 sm:$0xff]   ;;  %v21815_v33 = vld [vmem:[%s23500_s29 + $0xc94] ss:$40 sps:$4 sm:$0xff]  }
 0x680   : > { %12126 = vmatpush1.bf16.msra.mxu0 %v21747_v11  ;;  %v21818_v11 = vld [vmem:[%s23500_s29 + $0x1194] ss:$40 sps:$4 sm:$0xff]  }
 0x681   : > { %12167 = vmatpush1.bf16.msra.mxu1 %v21750_v27  ;;  %12127 = vmatprep.subr.bf16.mxu0 %v21755_v29  ;;  %v21813_v27 = vld [vmem:[%s23500_s29 + $0xc90] ss:$40 sps:$4 sm:$0xff]  }
 0x682   : > { %12168 = vmatprep.subr.bf16.mxu1 %v21758_v26  ;;  %v21816_v29 = vld [vmem:[%s23500_s29 + $0x1190] ss:$40 sps:$4 sm:$0xff]   ;;  %v21821_v26 = vld [vmem:[%s23500_s29 + $0x24c] ss:$40 sps:$4 sm:$0xff]  }
 0x684   : > { %12128 = vmatpush1.bf16.msra.mxu0 %v21753_v6  ;;  %v21824_v6 = vld [vmem:[%s23500_s29 + $0x74c] ss:$40 sps:$4 sm:$0xff]  }
 0x685   : > { %12169 = vmatpush1.bf16.msra.mxu1 %v21756_v28  ;;  %12129 = vmatprep.subr.bf16.mxu0 %v21761_v51  ;;  %v21819_v28 = vld [vmem:[%s23500_s29 + $0x248] ss:$40 sps:$4 sm:$0xff]  }
 0x686   : > { %12170 = vmatprep.subr.bf16.mxu1 %v21764_v35  ;;  %v21822_v51 = vld [vmem:[%s23500_s29 + $0x748] ss:$40 sps:$4 sm:$0xff]   ;;  %v21827_v35 = vld [vmem:[%s23500_s29 + $0x1fc] ss:$40 sps:$4 sm:$0xff]  }
 0x688   : > { %12130 = vmatpush1.bf16.msra.mxu0 %v21759_v45 }
 0x689   : > { %12171 = vmatpush1.bf16.msra.mxu1 %v21762_v41  ;;  %12131 = vmatprep.subr.bf16.mxu0 %v21767_v37  ;;  %v21830_v41 = vld [vmem:[%s23500_s29 + $0x6fc] ss:$40 sps:$4 sm:$0xff]  }
 0x68a   : > { %12172 = vmatprep.subr.bf16.mxu1 %v21770_v19  ;;  %v21825_v19 = vld [vmem:[%s23500_s29 + $0x1f8] ss:$40 sps:$4 sm:$0xff]  }
 0x68c   : > { %12132 = vmatpush1.bf16.msra.mxu0 %v21765_v40 }
 0x68d   : > { %12173 = vmatpush1.bf16.msra.mxu1 %v21768_v42  ;;  %12133 = vmatprep.subr.bf16.mxu0 %v21773_v44  ;;  %v21828_v42 = vld [vmem:[%s23500_s29 + $0x6f8] ss:$40 sps:$4 sm:$0xff]   ;;  %v21833_v44 = vld [vmem:[%s23500_s29 + $0x1ac] ss:$40 sps:$4 sm:$0xff]  }
 0x68e   : > { %12174 = vmatprep.subr.bf16.mxu1 %v21776_v56 }
 0x690   : > { %12134 = vmatpush2.bf16.msra.mxu0 %v21771_v58  ;;  %v21836_v58 = vld [vmem:[%s23500_s29 + $0x6ac] ss:$40 sps:$4 sm:$0xff]  }
 0x691   : > { %12175 = vmatpush2.bf16.msra.mxu1 %v21774_v50  ;;  %12135 = vmatprep.subr.bf16.mxu0 %v21779_v61 }
 0x692   : > { %12176 = vmatprep.subr.bf16.mxu1 %v21782_v14  ;;  %v21831_v14 = vld [vmem:[%s23500_s29 + $0x1a8] ss:$40 sps:$4 sm:$0xff]  }
 0x694   : > { %12136 = vmatpush2.bf16.msra.mxu0 %v21777_v52 }
 0x695   : > { %12177 = vmatpush2.bf16.msra.mxu1 %v21780_v22  ;;  %12137 = vmatprep.subr.bf16.mxu0 %v21785_v62  ;;  %v21834_v22 = vld [vmem:[%s23500_s29 + $0x6a8] ss:$40 sps:$4 sm:$0xff]   ;;  %v21839_v62 = vld [vmem:[%s23500_s29 + $0x15c] ss:$40 sps:$4 sm:$0xff]  }
 0x696   : > { %12178 = vmatprep.subr.bf16.mxu1 %v21788_v53 }
 0x698   : > { %12138 = vmatpush2.bf16.msra.mxu0 %v21783_v36  ;;  %v21842_v36 = vld [vmem:[%s23500_s29 + $0x65c] ss:$40 sps:$4 sm:$0xff]  }
 0x699   : > { %12179 = vmatpush2.bf16.msra.mxu1 %v21786_v43  ;;  %12139 = vmatprep.subr.bf16.mxu0 %v21791_v47  ;;  %v21837_v43 = vld [vmem:[%s23500_s29 + $0x158] ss:$40 sps:$4 sm:$0xff]  }
 0x69a   : > { %12180 = vmatprep.subr.bf16.mxu1 %v21794_v57  ;;  %v21840_v47 = vld [vmem:[%s23500_s29 + $0x658] ss:$40 sps:$4 sm:$0xff]   ;;  %v21845_v57 = vld [vmem:[%s23500_s29 + $0x10c] ss:$40 sps:$4 sm:$0xff]  }
 0x69c   : > { %12140 = vmatpush2.bf16.msra.mxu0 %v21789_v16  ;;  %v21848_v16 = vld [vmem:[%s23500_s29 + $0x60c] ss:$40 sps:$4 sm:$0xff]  }
 0x69d   : > { %12181 = vmatpush2.bf16.msra.mxu1 %v21792_v21  ;;  %12141 = vmatprep.subr.bf16.mxu0 %v21797_v1  ;;  %v21843_v21 = vld [vmem:[%s23500_s29 + $0x108] ss:$40 sps:$4 sm:$0xff]  }
 0x69e   : > { %12182 = vmatprep.subr.bf16.mxu1 %v21800_v23  ;;  %v21846_v1 = vld [vmem:[%s23500_s29 + $0x608] ss:$40 sps:$4 sm:$0xff]   ;;  %v21851_v23 = vld [vmem:[%s23500_s29 + $0xbc] ss:$40 sps:$4 sm:$0xff]  }
 0x6a0   : > { %12142 = vmatpush2.bf16.msra.mxu0 %v21795_v4  ;;  %v21854_v4 = vld [vmem:[%s23500_s29 + $0x5bc] ss:$40 sps:$4 sm:$0xff]  }
 0x6a1   : > { %12183 = vmatpush2.bf16.msra.mxu1 %v21798_v39  ;;  %12143 = vmatprep.subr.bf16.mxu0 %v21803_v7  ;;  %v21849_v39 = vld [vmem:[%s23500_s29 + $0xb8] ss:$40 sps:$4 sm:$0xff]  }
 0x6a2   : > { %12184 = vmatprep.subr.bf16.mxu1 %v21806_v63  ;;  %v21852_v7 = vld [vmem:[%s23500_s29 + $0x5b8] ss:$40 sps:$4 sm:$0xff]   ;;  %v21857_v63 = vld [vmem:[%s23500_s29 + $0x6c] ss:$40 sps:$4 sm:$0xff]  }
 0x6a4   : > { %12144 = vmatpush2.bf16.msra.mxu0 %v21801_v8  ;;  %v21860_v8 = vld [vmem:[%s23500_s29 + $0x56c] ss:$40 sps:$4 sm:$0xff]  }
 0x6a5   : > { %12185 = vmatpush2.bf16.msra.mxu1 %v21804_v10  ;;  %12145 = vmatprep.subr.bf16.mxu0 %v21809_v15  ;;  %v21855_v10 = vld [vmem:[%s23500_s29 + $0x68] ss:$40 sps:$4 sm:$0xff]  }
 0x6a6   : > { %12186 = vmatprep.subr.bf16.mxu1 %v21812_v17  ;;  %v21858_v15 = vld [vmem:[%s23500_s29 + $0x568] ss:$40 sps:$4 sm:$0xff]   ;;  %v21863_v17 = vld [vmem:[%s23500_s29 + $0x1c] ss:$40 sps:$4 sm:$0xff]  }
 0x6a8   : > { %12146 = vmatpush2.bf16.msra.mxu0 %v21807_v24  ;;  %v21866_v24 = vld [vmem:[%s23500_s29 + $0x51c] ss:$40 sps:$4 sm:$0xff]  }
 0x6a9   : > { %12187 = vmatpush2.bf16.msra.mxu1 %v21810_v9  ;;  %12147 = vmatprep.subr.bf16.mxu0 %v21815_v33  ;;  %v21861_v9 = vld [vmem:[%s23500_s29 + $0x18] ss:$40 sps:$4 sm:$0xff]  }
 0x6aa   : > { %12188 = vmatprep.subr.bf16.mxu1 %v21818_v11  ;;  %v21864_v33 = vld [vmem:[%s23500_s29 + $0x518] ss:$40 sps:$4 sm:$0xff]   ;;  %v21869_v11 = vld [vmem:[%s23500_s29 + $0x4cc] ss:$40 sps:$4 sm:$0xff]  }
 0x6ac   : > { %12148 = vmatpush2.bf16.msra.mxu0 %v21813_v27  ;;  %v21872_v27 = vld [vmem:[%s23500_s29 + $0x9cc] ss:$40 sps:$4 sm:$0xff]  }
 0x6ad   : > { %12189 = vmatpush2.bf16.msra.mxu1 %v21816_v29  ;;  %12199 = vmatprep.subr.bf16.mxu0 %v21821_v26  ;;  %v21867_v29 = vld [vmem:[%s23500_s29 + $0x4c8] ss:$40 sps:$4 sm:$0xff]  }
 0x6ae   : > { %12240 = vmatprep.subr.bf16.mxu1 %v21824_v6  ;;  %v21870_v26 = vld [vmem:[%s23500_s29 + $0x9c8] ss:$40 sps:$4 sm:$0xff]   ;;  %v21875_v6 = vld [vmem:[%s23500_s29 + $0x47c] ss:$40 sps:$4 sm:$0xff]  }
 0x6af   : > { %v25108_v45 = vpop.f32.mrf.mxu0  ;;  %12150 = vmatmul.mubr.bf16.vlgmr.msra.gmra.mxu0 %v24810_v49 }
 0x6b0   : > { %v25112_v37 = vpop.f32.mrf.mxu1  ;;  %12191 = vmatmul.mubr.bf16.vlgmr.msra.gmra.mxu1 %v24815_v46  ;;  %12200 = vmatpush1.bf16.msra.mxu0 %v21819_v28  ;;  %v21878_v28 = vld [vmem:[%s23500_s29 + $0x97c] ss:$40 sps:$4 sm:$0xff]  }
 0x6b1   : > { %12231 = vmatprep.mubr.bf16.mxu0 %v24638_v12  ;;  %12241 = vmatpush1.bf16.msra.mxu1 %v21822_v51  ;;  %v25117_v40 = vpop.f32.mrf.mxu0  ;;  %v21873_v51 = vld [vmem:[%s23500_s29 + $0x478] ss:$40 sps:$4 sm:$0xff]  }
 0x6b2   : > { %12272 = vmatprep.mubr.bf16.mxu1 %v24644_v18  ;;  %v25122_v56 = vpop.f32.mrf.mxu1  ;;  %12201 = vmatprep.subr.bf16.mxu0 %v21827_v35  ;;  %v21876_v35 = vld [vmem:[%s23500_s29 + $0x978] ss:$40 sps:$4 sm:$0xff]  }
 0x6b3   : > { %v11909_v50 = vpop.f32.mrf.mxu0  ;;  %12242 = vmatprep.subr.bf16.mxu1 %v21830_v41  ;;  %v21881_v41 = vld [vmem:[%s23500_s29 + $0x42c] ss:$40 sps:$4 sm:$0xff]  }
 0x6b4   : > { %v11950_v61 = vpop.f32.mrf.mxu1  ;;  %12202 = vmatpush1.bf16.msra.mxu0 %v21825_v19  ;;  %v21884_v19 = vld [vmem:[%s23500_s29 + $0x92c] ss:$40 sps:$4 sm:$0xff]   ;;  %v21890_v50 = vld [vmem:[%s23500_s29 + $0x8dc] ss:$40 sps:$4 sm:$0xff]  }
 0x6b5   : > { %12243 = vmatpush1.bf16.msra.mxu1 %v21828_v42  ;;  %v11910_v52 = vpop.f32.mrf.mxu0  ;;  %12203 = vmatprep.subr.bf16.mxu0 %v21833_v44  ;;  %v21879_v42 = vld [vmem:[%s23500_s29 + $0x428] ss:$40 sps:$4 sm:$0xff]   ;;  %v21885_v61 = vld [vmem:[%s23500_s29 + $0x3d8] ss:$40 sps:$4 sm:$0xff]  }
 0x6b6   : > { %v11951_v53 = vpop.f32.mrf.mxu1  ;;  %12244 = vmatprep.subr.bf16.mxu1 %v21836_v58  ;;  %v21882_v44 = vld [vmem:[%s23500_s29 + $0x928] ss:$40 sps:$4 sm:$0xff]   ;;  %v21887_v58 = vld [vmem:[%s23500_s29 + $0x3dc] ss:$40 sps:$4 sm:$0xff]   ;;  %v21893_v52 = vld [vmem:[%s23500_s29 + $0x38c] ss:$40 sps:$4 sm:$0xff]  }
 0x6b7   : > { %v21894_v53 = vld [vmem:[%s23500_s29 + $0x888] ss:$40 sps:$4 sm:$0xff]  }
 0x6b8   : > { %12204 = vmatpush1.bf16.msra.mxu0 %v21831_v14  ;;  %v21888_v14 = vld [vmem:[%s23500_s29 + $0x8d8] ss:$40 sps:$4 sm:$0xff]  }
 0x6b9   : > { %12245 = vmatpush1.bf16.msra.mxu1 %v21834_v22  ;;  %12205 = vmatprep.subr.bf16.mxu0 %v21839_v62  ;;  %v21896_v22 = vld [vmem:[%s23500_s29 + $0x88c] ss:$40 sps:$4 sm:$0xff]   ;;  %v21891_v62 = vld [vmem:[%s23500_s29 + $0x388] ss:$40 sps:$4 sm:$0xff]  }
 0x6ba   : > { %12246 = vmatprep.subr.bf16.mxu1 %v21842_v36  ;;  %v21899_v36 = vld [vmem:[%s23500_s29 + $0x33c] ss:$40 sps:$4 sm:$0xff]  }
 0x6bc   : > { %12206 = vmatpush1.bf16.msra.mxu0 %v21837_v43  ;;  %v21902_v43 = vld [vmem:[%s23500_s29 + $0x83c] ss:$40 sps:$4 sm:$0xff]  }
 0x6bd   : > { %12247 = vmatpush1.bf16.msra.mxu1 %v21840_v47  ;;  %12207 = vmatprep.subr.bf16.mxu0 %v21845_v57  ;;  %v21897_v47 = vld [vmem:[%s23500_s29 + $0x338] ss:$40 sps:$4 sm:$0xff]  }
 0x6be   : > { %12248 = vmatprep.subr.bf16.mxu1 %v21848_v16  ;;  %v21900_v57 = vld [vmem:[%s23500_s29 + $0x838] ss:$40 sps:$4 sm:$0xff]   ;;  %v21905_v16 = vld [vmem:[%s23500_s29 + $0x2ec] ss:$40 sps:$4 sm:$0xff]  }
 0x6c0   : > { %12208 = vmatpush1.bf16.msra.mxu0 %v21843_v21  ;;  %v21908_v21 = vld [vmem:[%s23500_s29 + $0x7ec] ss:$40 sps:$4 sm:$0xff]  }
 0x6c1   : > { %12249 = vmatpush1.bf16.msra.mxu1 %v21846_v1  ;;  %12209 = vmatprep.subr.bf16.mxu0 %v21851_v23  ;;  %v21903_v1 = vld [vmem:[%s23500_s29 + $0x2e8] ss:$40 sps:$4 sm:$0xff]  }
 0x6c2   : > { %12250 = vmatprep.subr.bf16.mxu1 %v21854_v4  ;;  %v21906_v23 = vld [vmem:[%s23500_s29 + $0x7e8] ss:$40 sps:$4 sm:$0xff]   ;;  %v21911_v4 = vld [vmem:[%s23500_s29 + $0x29c] ss:$40 sps:$4 sm:$0xff]  }
 0x6c4   : > { %12210 = vmatpush1.bf16.msra.mxu0 %v21849_v39  ;;  %v21914_v39 = vld [vmem:[%s23500_s29 + $0x79c] ss:$40 sps:$4 sm:$0xff]  }
 0x6c5   : > { %12251 = vmatpush1.bf16.msra.mxu1 %v21852_v7  ;;  %12211 = vmatprep.subr.bf16.mxu0 %v21857_v63  ;;  %v21909_v7 = vld [vmem:[%s23500_s29 + $0x298] ss:$40 sps:$4 sm:$0xff]  }
 0x6c6   : > { %12252 = vmatprep.subr.bf16.mxu1 %v21860_v8  ;;  %v21912_v63 = vld [vmem:[%s23500_s29 + $0x798] ss:$40 sps:$4 sm:$0xff]   ;;  %v21917_v8 = vld [vmem:[%s23500_s29 + $0xc4c] ss:$40 sps:$4 sm:$0xff]  }
 0x6c8   : > { %12212 = vmatpush1.bf16.msra.mxu0 %v21855_v10  ;;  %v21920_v10 = vld [vmem:[%s23500_s29 + $0x114c] ss:$40 sps:$4 sm:$0xff]  }
 0x6c9   : > { %12253 = vmatpush1.bf16.msra.mxu1 %v21858_v15  ;;  %12213 = vmatprep.subr.bf16.mxu0 %v21863_v17  ;;  %v21915_v15 = vld [vmem:[%s23500_s29 + $0xc48] ss:$40 sps:$4 sm:$0xff]  }
 0x6ca   : > { %12254 = vmatprep.subr.bf16.mxu1 %v21866_v24  ;;  %v21918_v17 = vld [vmem:[%s23500_s29 + $0x1148] ss:$40 sps:$4 sm:$0xff]   ;;  %v11947_v24 = vadd.f32 %v25112_v37, %v25108_v45  ;;  %v21924_v37 = vld [vmem:[%s23500_s29 + $0x10f8] ss:$40 sps:$4 sm:$0xff]  }
 0x6cc   : > { %12214 = vmatpush1.bf16.msra.mxu0 %v21861_v9  ;;  %v21923_v9 = vld [vmem:[%s23500_s29 + $0xbfc] ss:$40 sps:$4 sm:$0xff]  }
 0x6cd   : > { %12255 = vmatpush1.bf16.msra.mxu1 %v21864_v33  ;;  %12215 = vmatprep.subr.bf16.mxu0 %v21869_v11  ;;  %v21926_v11 = vld [vmem:[%s23500_s29 + $0x10fc] ss:$40 sps:$4 sm:$0xff]  }
 0x6ce   : > { %12256 = vmatprep.subr.bf16.mxu1 %v21872_v27  ;;  %v11949_v27 = vadd.f32 %v25122_v56, %v25117_v40  ;;  %v21932_v40 = vld [vmem:[%s23500_s29 + $0x10ac] ss:$40 sps:$4 sm:$0xff]  }
 0x6d0   : > { %12216 = vmatpush2.bf16.msra.mxu0 %v21867_v29 }
 0x6d1   : > { %12257 = vmatpush2.bf16.msra.mxu1 %v21870_v26  ;;  %12217 = vmatprep.subr.bf16.mxu0 %v21875_v6  ;;  %v21921_v6 = vld [vmem:[%s23500_s29 + $0xbf8] ss:$40 sps:$4 sm:$0xff]  }
 0x6d2   : > { %12258 = vmatprep.subr.bf16.mxu1 %v21878_v28  ;;  %v21929_v28 = vld [vmem:[%s23500_s29 + $0xbac] ss:$40 sps:$4 sm:$0xff]  }
 0x6d4   : > { %12218 = vmatpush2.bf16.msra.mxu0 %v21873_v51 }
 0x6d5   : > { %12259 = vmatpush2.bf16.msra.mxu1 %v21876_v35  ;;  %12219 = vmatprep.subr.bf16.mxu0 %v21881_v41 }
 0x6d6   : > { %12260 = vmatprep.subr.bf16.mxu1 %v21884_v19 }
 0x6d8   : > { %12220 = vmatpush2.bf16.msra.mxu0 %v21879_v42 }
 0x6d9   : > { %12261 = vmatpush2.bf16.msra.mxu1 %v21882_v44  ;;  %12221 = vmatprep.subr.bf16.mxu0 %v21887_v58  ;;  %v21927_v44 = vld [vmem:[%s23500_s29 + $0xba8] ss:$40 sps:$4 sm:$0xff]  }
 0x6da   : > { %12262 = vmatprep.subr.bf16.mxu1 %v21890_v50  ;;  %v21930_v50 = vld [vmem:[%s23500_s29 + $0x10a8] ss:$40 sps:$4 sm:$0xff]  }
 0x6dc   : > { %12222 = vmatpush2.bf16.msra.mxu0 %v21885_v61  ;;  %v21935_v61 = vld [vmem:[%s23500_s29 + $0xb5c] ss:$40 sps:$4 sm:$0xff]  }
 0x6dd   : > { %12263 = vmatpush2.bf16.msra.mxu1 %v21888_v14  ;;  %12223 = vmatprep.subr.bf16.mxu0 %v21893_v52 }
 0x6de   : > { %12264 = vmatprep.subr.bf16.mxu1 %v21896_v22  ;;  %v21938_v22 = vld [vmem:[%s23500_s29 + $0x105c] ss:$40 sps:$4 sm:$0xff]  }
 0x6e0   : > { %12224 = vmatpush2.bf16.msra.mxu0 %v21891_v62  ;;  %v12545_v62 = vrot.slane %v12537_v3, %v24654_v32  ;;  %v21942_v3 = vld [vmem:[%s23500_s29 + $0x1008] ss:$40 sps:$4 sm:$0xff]  }
 0x6e1   : > { %12265 = vmatpush2.bf16.msra.mxu1 %v21894_v53  ;;  %12225 = vmatprep.subr.bf16.mxu0 %v21899_v36  ;;  %v21933_v36 = vld [vmem:[%s23500_s29 + $0xb58] ss:$40 sps:$4 sm:$0xff]  }
 0x6e2   : > { %12266 = vmatprep.subr.bf16.mxu1 %v21902_v43  ;;  %v7856_v43 = vld [vmem:[#allocation3] sm:$0xff] }
 0x6e4   : > { %12226 = vmatpush2.bf16.msra.mxu0 %v21897_v47  ;;  %v21936_v47 = vld [vmem:[%s23500_s29 + $0x1058] ss:$40 sps:$4 sm:$0xff]  }
 0x6e5   : > { %12267 = vmatpush2.bf16.msra.mxu1 %v21900_v57  ;;  %12227 = vmatprep.subr.bf16.mxu0 %v21905_v16  ;;  %v21941_v57 = vld [vmem:[%s23500_s29 + $0xb0c] ss:$40 sps:$4 sm:$0xff]  }
 0x6e6   : > { %12268 = vmatprep.subr.bf16.mxu1 %v21908_v21  ;;  %v21944_v21 = vld [vmem:[%s23500_s29 + $0x100c] ss:$40 sps:$4 sm:$0xff]  }
 0x6e8   : > { %12228 = vmatpush2.bf16.msra.mxu0 %v21903_v1  ;;  %v21947_v1 = vld [vmem:[%s23500_s29 + $0xabc] ss:$40 sps:$4 sm:$0xff]  }
 0x6e9   : > { %12269 = vmatpush2.bf16.msra.mxu1 %v21906_v23  ;;  %12229 = vmatprep.subr.bf16.mxu0 %v21911_v4  ;;  %v21950_v23 = vld [vmem:[%s23500_s29 + $0xfbc] ss:$40 sps:$4 sm:$0xff]   ;;  %v21945_v4 = vld [vmem:[%s23500_s29 + $0xab8] ss:$40 sps:$4 sm:$0xff]  }
 0x6ea   : > { %12270 = vmatprep.subr.bf16.mxu1 %v21914_v39  ;;  %v21948_v39 = vld [vmem:[%s23500_s29 + $0xfb8] ss:$40 sps:$4 sm:$0xff]  }
 0x6ec   : > { %12230 = vmatpush2.bf16.msra.mxu0 %v21909_v7  ;;  %v21953_v7 = vld [vmem:[%s23500_s29 + $0xa6c] ss:$40 sps:$4 sm:$0xff]  }
 0x6ed   : > { %12271 = vmatpush2.bf16.msra.mxu1 %v21912_v63  ;;  %12281 = vmatprep.subr.bf16.mxu0 %v21917_v8  ;;  %v21956_v63 = vld [vmem:[%s23500_s29 + $0xf6c] ss:$40 sps:$4 sm:$0xff]   ;;  %v21951_v8 = vld [vmem:[%s23500_s29 + $0xa68] ss:$40 sps:$4 sm:$0xff]  }
 0x6ee   : > { %12322 = vmatprep.subr.bf16.mxu1 %v21920_v10  ;;  %v21954_v10 = vld [vmem:[%s23500_s29 + $0xf68] ss:$40 sps:$4 sm:$0xff]  }
 0x6ef   : > { %v11987_v33 = vpop.f32.mrf.mxu0  ;;  %12232 = vmatmul.mubr.bf16.vlgmr.msra.gmra.mxu0 %v24720_v60 }
 0x6f0   : > { %v11988_v29 = vadd.f32 %v11987_v33, %v11947_v24  ;;  %v12028_v26 = vpop.f32.mrf.mxu1  ;;  %12273 = vmatmul.mubr.bf16.vlgmr.msra.gmra.mxu1 %v24725_v0  ;;  %12282 = vmatpush1.bf16.msra.mxu0 %v21915_v15  ;;  %v21959_v15 = vld [vmem:[%s23500_s29 + $0xa1c] ss:$40 sps:$4 sm:$0xff]   ;;  %v21957_v24 = vld [vmem:[%s23500_s29 + $0xa18] ss:$40 sps:$4 sm:$0xff]   ;;  %v21965_v33 = vld [vmem:[%s23500_s29 + $0xecc] ss:$40 sps:$4 sm:$0xff]  }
 0x6f1   : > { %12313 = vmatprep.mubr.bf16.mxu0 %v24730_v2  ;;  %12323 = vmatpush1.bf16.msra.mxu1 %v21918_v17  ;;  %v11989_v45 = vpop.f32.mrf.mxu0  ;;  %v21962_v17 = vld [vmem:[%s23500_s29 + $0xf1c] ss:$40 sps:$4 sm:$0xff]  }
 0x6f2   : > { %12354 = vmatprep.mubr.bf16.mxu1 %v24736_v54  ;;  %v11990_v51 = vadd.f32 %v11989_v45, %v11949_v27  ;;  %v12030_v35 = vpop.f32.mrf.mxu1  ;;  %12283 = vmatprep.subr.bf16.mxu0 %v21923_v9  ;;  %v12029_v41 = vadd.f32 %v12028_v26, %v11988_v29  ;;  %v21960_v9 = vld [vmem:[%s23500_s29 + $0xf18] ss:$40 sps:$4 sm:$0xff]   ;;  %v21963_v27 = vld [vmem:[%s23500_s29 + $0xec8] ss:$40 sps:$4 sm:$0xff]   ;;  %v21971_v26 = vld [vmem:[%s23500_s29 + $0xe7c] ss:$40 sps:$4 sm:$0xff]  }
 0x6f3   : > { %v11991_v56 = vpop.f32.mrf.mxu0  ;;  %12324 = vmatprep.subr.bf16.mxu1 %v21926_v11  ;;  %v21968_v11 = vld [vmem:[%s23500_s29 + $0x13cc] ss:$40 sps:$4 sm:$0xff]   ;;  %v21966_v29 = vld [vmem:[%s23500_s29 + $0x13c8] ss:$40 sps:$4 sm:$0xff]   ;;  %v21969_v45 = vld [vmem:[%s23500_s29 + $0xe78] ss:$40 sps:$4 sm:$0xff]  }
 0x6f4   : > { %v12031_v19 = vadd.f32 %v12030_v35, %v11990_v51  ;;  %v12032_v42 = vpop.f32.mrf.mxu1  ;;  %12284 = vmatpush1.bf16.msra.mxu0 %v21921_v6  ;;  %v21974_v6 = vld [vmem:[%s23500_s29 + $0x137c] ss:$40 sps:$4 sm:$0xff]   ;;  %v21980_v51 = vld [vmem:[%s23500_s29 + $0x132c] ss:$40 sps:$4 sm:$0xff]   ;;  %v21975_v35 = vld [vmem:[%s23500_s29 + $0xe28] ss:$40 sps:$4 sm:$0xff]  }
 0x6f5   : > { %12325 = vmatpush1.bf16.msra.mxu1 %v21924_v37  ;;  %v11992_v58 = vpop.f32.mrf.mxu0  ;;  %12285 = vmatprep.subr.bf16.mxu0 %v21929_v28  ;;  %v21972_v37 = vld [vmem:[%s23500_s29 + $0x1378] ss:$40 sps:$4 sm:$0xff]   ;;  %v21977_v28 = vld [vmem:[%s23500_s29 + $0xe2c] ss:$40 sps:$4 sm:$0xff]   ;;  %v21983_v56 = vld [vmem:[%s23500_s29 + $0xddc] ss:$40 sps:$4 sm:$0xff]  }
 0x6f6   : > { %v12538_v14 = vcombine.low %v12029_v41, %v12031_v19  ;;  %v12033_v52 = vpop.f32.mrf.mxu1  ;;  %12326 = vmatprep.subr.bf16.mxu1 %v21932_v40  ;;  %v21978_v40 = vld [vmem:[%s23500_s29 + $0x1328] ss:$40 sps:$4 sm:$0xff]   ;;  %v21986_v41 = vld [vmem:[%s23500_s29 + $0x12dc] ss:$40 sps:$4 sm:$0xff]   ;;  %v21981_v19 = vld [vmem:[%s23500_s29 + $0xdd8] ss:$40 sps:$4 sm:$0xff]  }
 0x6f7   : > { %v21984_v42 = vld [vmem:[%s23500_s29 + $0x12d8] ss:$40 sps:$4 sm:$0xff]   ;;  %v21992_v58 = vld [vmem:[%s23500_s29 + $0x128c] ss:$40 sps:$4 sm:$0xff]   ;;  %v21998_v52 = vld [vmem:[%s23500_s29 + $0x123c] ss:$40 sps:$4 sm:$0xff]  }
 0x6f8   : > { %v12552_v53 = vrot.slane %v12538_v14, %v24654_v32  ;;  %12286 = vmatpush1.bf16.msra.mxu0 %v21927_v44  ;;  %v21989_v44 = vld [vmem:[%s23500_s29 + $0xd8c] ss:$40 sps:$4 sm:$0xff]   ;;  %v21995_v14 = vld [vmem:[%s23500_s29 + $0xd3c] ss:$40 sps:$4 sm:$0xff]  }
 0x6f9   : > { %12327 = vmatpush1.bf16.msra.mxu1 %v21930_v50  ;;  %12287 = vmatprep.subr.bf16.mxu0 %v21935_v61  ;;  %v21987_v50 = vld [vmem:[%s23500_s29 + $0xd88] ss:$40 sps:$4 sm:$0xff]  }
 0x6fa   : > { %v12553_v16 = vcombine.low %v12545_v62, %v12552_v53  ;;  %12328 = vmatprep.subr.bf16.mxu1 %v21938_v22  ;;  %v21990_v61 = vld [vmem:[%s23500_s29 + $0x1288] ss:$40 sps:$4 sm:$0xff]   ;;  %v21993_v22 = vld [vmem:[%s23500_s29 + $0xd38] ss:$40 sps:$4 sm:$0xff]   ;;  %v22001_v53 = vld [vmem:[%s23500_s29 + $0xcec] ss:$40 sps:$4 sm:$0xff]  }
 0x6fb   : > { %v21996_v62 = vld [vmem:[%s23500_s29 + $0x1238] ss:$40 sps:$4 sm:$0xff]  }
 0x6fc   : > { %v12582_v5 = vadd.f32 %v12553_v16, %v7856_v43  ;;  %12288 = vmatpush1.bf16.msra.mxu0 %v21933_v36  ;;  %v22004_v36 = vld [vmem:[%s23500_s29 + $0x11ec] ss:$40 sps:$4 sm:$0xff]   ;;  %v21999_v43 = vld [vmem:[%s23500_s29 + $0xce8] ss:$40 sps:$4 sm:$0xff]   ;;  %v22010_v16 = vld [vmem:[%s23500_s29 + $0x119c] ss:$40 sps:$4 sm:$0xff]  }
 0x6fd   : > { %12329 = vmatpush1.bf16.msra.mxu1 %v21936_v47  ;;  %12289 = vmatprep.subr.bf16.mxu0 %v21941_v57  ;;  %v22002_v47 = vld [vmem:[%s23500_s29 + $0x11e8] ss:$40 sps:$4 sm:$0xff]   ;;  %v22007_v57 = vld [vmem:[%s23500_s29 + $0xc9c] ss:$40 sps:$4 sm:$0xff]  }
 0x6fe   : > { %12585 = vst [vmem:[#allocation3] sm:$0xff] %v12582_v5  ;;  %12330 = vmatprep.subr.bf16.mxu1 %v21944_v21  ;;  %v22005_v21 = vld [vmem:[%s23500_s29 + $0xc98] ss:$40 sps:$4 sm:$0xff]  }
 0x6ff   : > { %v22008_v5 = vld [vmem:[%s23500_s29 + $0x1198] ss:$40 sps:$4 sm:$0xff]  }
 0x700   : > { %12290 = vmatpush1.bf16.msra.mxu0 %v21939_v59  ;;  %v22013_v59 = vld [vmem:[%s23500_s29 + $0x254] ss:$40 sps:$4 sm:$0xff]  }
 0x701   : > { %12331 = vmatpush1.bf16.msra.mxu1 %v21942_v3  ;;  %12291 = vmatprep.subr.bf16.mxu0 %v21947_v1  ;;  %v22016_v3 = vld [vmem:[%s23500_s29 + $0x754] ss:$40 sps:$4 sm:$0xff]   ;;  %v22011_v1 = vld [vmem:[%s23500_s29 + $0x250] ss:$40 sps:$4 sm:$0xff]  }
 0x702   : > { %12332 = vmatprep.subr.bf16.mxu1 %v21950_v23  ;;  %v22014_v23 = vld [vmem:[%s23500_s29 + $0x750] ss:$40 sps:$4 sm:$0xff]  }
 0x704   : > { %12292 = vmatpush1.bf16.msra.mxu0 %v21945_v4  ;;  %v22019_v4 = vld [vmem:[%s23500_s29 + $0x204] ss:$40 sps:$4 sm:$0xff]  }
 0x705   : > { %12333 = vmatpush1.bf16.msra.mxu1 %v21948_v39  ;;  %12293 = vmatprep.subr.bf16.mxu0 %v21953_v7  ;;  %v22022_v7 = vld [vmem:[%s23500_s29 + $0x704] ss:$40 sps:$4 sm:$0xff]  }
 0x706   : > { %12334 = vmatprep.subr.bf16.mxu1 %v21956_v63 }
 0x708   : > { %12294 = vmatpush1.bf16.msra.mxu0 %v21951_v8  ;;  %v22017_v8 = vld [vmem:[%s23500_s29 + $0x200] ss:$40 sps:$4 sm:$0xff]  }
 0x709   : > { %12335 = vmatpush1.bf16.msra.mxu1 %v21954_v10  ;;  %12295 = vmatprep.subr.bf16.mxu0 %v21959_v15 }
 0x70a   : > { %12336 = vmatprep.subr.bf16.mxu1 %v21962_v17  ;;  %v22020_v17 = vld [vmem:[%s23500_s29 + $0x700] ss:$40 sps:$4 sm:$0xff]  }
 0x70c   : > { %12296 = vmatpush1.bf16.msra.mxu0 %v21957_v24  ;;  %v22025_v24 = vld [vmem:[%s23500_s29 + $0x1b4] ss:$40 sps:$4 sm:$0xff]  }
 0x70d   : > { %12337 = vmatpush1.bf16.msra.mxu1 %v21960_v9  ;;  %12297 = vmatprep.subr.bf16.mxu0 %v21965_v33  ;;  %v22028_v33 = vld [vmem:[%s23500_s29 + $0x6b4] ss:$40 sps:$4 sm:$0xff]  }
 0x70e   : > { %12338 = vmatprep.subr.bf16.mxu1 %v21968_v11 }
 0x710   : > { %12298 = vmatpush2.bf16.msra.mxu0 %v21963_v27 }
 0x711   : > { %12339 = vmatpush2.bf16.msra.mxu1 %v21966_v29  ;;  %12299 = vmatprep.subr.bf16.mxu0 %v21971_v26 }
 0x712   : > { %12340 = vmatprep.subr.bf16.mxu1 %v21974_v6  ;;  %v22031_v6 = vld [vmem:[%s23500_s29 + $0x164] ss:$40 sps:$4 sm:$0xff]  }
 0x714   : > { %12300 = vmatpush2.bf16.msra.mxu0 %v21969_v45 }
 0x715   : > { %12341 = vmatpush2.bf16.msra.mxu1 %v21972_v37  ;;  %12301 = vmatprep.subr.bf16.mxu0 %v21977_v28  ;;  %v22034_v37 = vld [vmem:[%s23500_s29 + $0x664] ss:$40 sps:$4 sm:$0xff]   ;;  %v22029_v28 = vld [vmem:[%s23500_s29 + $0x160] ss:$40 sps:$4 sm:$0xff]  }
 0x716   : > { %12342 = vmatprep.subr.bf16.mxu1 %v21980_v51  ;;  %v22032_v51 = vld [vmem:[%s23500_s29 + $0x660] ss:$40 sps:$4 sm:$0xff]  }
 0x718   : > { %12302 = vmatpush2.bf16.msra.mxu0 %v21975_v35  ;;  %v22037_v35 = vld [vmem:[%s23500_s29 + $0x114] ss:$40 sps:$4 sm:$0xff]  }
 0x719   : > { %12343 = vmatpush2.bf16.msra.mxu1 %v21978_v40  ;;  %12303 = vmatprep.subr.bf16.mxu0 %v21983_v56  ;;  %v22040_v40 = vld [vmem:[%s23500_s29 + $0x614] ss:$40 sps:$4 sm:$0xff]   ;;  %v22035_v56 = vld [vmem:[%s23500_s29 + $0x110] ss:$40 sps:$4 sm:$0xff]  }
 0x71a   : > { %12344 = vmatprep.subr.bf16.mxu1 %v21986_v41  ;;  %v22038_v41 = vld [vmem:[%s23500_s29 + $0x610] ss:$40 sps:$4 sm:$0xff]  }
 0x71c   : > { %12304 = vmatpush2.bf16.msra.mxu0 %v21981_v19  ;;  %v22043_v19 = vld [vmem:[%s23500_s29 + $0xc4] ss:$40 sps:$4 sm:$0xff]  }
 0x71d   : > { %12345 = vmatpush2.bf16.msra.mxu1 %v21984_v42  ;;  %12305 = vmatprep.subr.bf16.mxu0 %v21989_v44  ;;  %v22046_v42 = vld [vmem:[%s23500_s29 + $0x5c4] ss:$40 sps:$4 sm:$0xff]   ;;  %v22041_v44 = vld [vmem:[%s23500_s29 + $0xc0] ss:$40 sps:$4 sm:$0xff]  }
 0x71e   : > { %12346 = vmatprep.subr.bf16.mxu1 %v21992_v58  ;;  %v22044_v58 = vld [vmem:[%s23500_s29 + $0x5c0] ss:$40 sps:$4 sm:$0xff]  }
 0x720   : > { %12306 = vmatpush2.bf16.msra.mxu0 %v21987_v50  ;;  %v22049_v50 = vld [vmem:[%s23500_s29 + $0x74] ss:$40 sps:$4 sm:$0xff]  }
 0x721   : > { %12347 = vmatpush2.bf16.msra.mxu1 %v21990_v61  ;;  %12307 = vmatprep.subr.bf16.mxu0 %v21995_v14  ;;  %v22052_v61 = vld [vmem:[%s23500_s29 + $0x574] ss:$40 sps:$4 sm:$0xff]   ;;  %v22047_v14 = vld [vmem:[%s23500_s29 + $0x70] ss:$40 sps:$4 sm:$0xff]  }
 0x722   : > { %12348 = vmatprep.subr.bf16.mxu1 %v21998_v52  ;;  %v22050_v52 = vld [vmem:[%s23500_s29 + $0x570] ss:$40 sps:$4 sm:$0xff]  }
 0x724   : > { %12308 = vmatpush2.bf16.msra.mxu0 %v21993_v22  ;;  %v22055_v22 = vld [vmem:[%s23500_s29 + $0x24] ss:$40 sps:$4 sm:$0xff]  }
 0x725   : > { %12349 = vmatpush2.bf16.msra.mxu1 %v21996_v62  ;;  %12309 = vmatprep.subr.bf16.mxu0 %v22001_v53  ;;  %v22058_v62 = vld [vmem:[%s23500_s29 + $0x524] ss:$40 sps:$4 sm:$0xff]   ;;  %v22053_v53 = vld [vmem:[%s23500_s29 + $0x20] ss:$40 sps:$4 sm:$0xff]  }
 0x726   : > { %12350 = vmatprep.subr.bf16.mxu1 %v22004_v36  ;;  %v22056_v36 = vld [vmem:[%s23500_s29 + $0x520] ss:$40 sps:$4 sm:$0xff]  }
 0x728   : > { %12310 = vmatpush2.bf16.msra.mxu0 %v21999_v43  ;;  %v22061_v43 = vld [vmem:[%s23500_s29 + $0x4d4] ss:$40 sps:$4 sm:$0xff]  }
 0x729   : > { %12351 = vmatpush2.bf16.msra.mxu1 %v22002_v47  ;;  %12311 = vmatprep.subr.bf16.mxu0 %v22007_v57  ;;  %v22064_v47 = vld [vmem:[%s23500_s29 + $0x9d4] ss:$40 sps:$4 sm:$0xff]   ;;  %v22059_v57 = vld [vmem:[%s23500_s29 + $0x4d0] ss:$40 sps:$4 sm:$0xff]  }
 0x72a   : > { %12352 = vmatprep.subr.bf16.mxu1 %v22010_v16  ;;  %v22062_v16 = vld [vmem:[%s23500_s29 + $0x9d0] ss:$40 sps:$4 sm:$0xff]  }
 0x72c   : > { %12312 = vmatpush2.bf16.msra.mxu0 %v22005_v21  ;;  %v22067_v21 = vld [vmem:[%s23500_s29 + $0x484] ss:$40 sps:$4 sm:$0xff]  }
 0x72d   : > { %12353 = vmatpush2.bf16.msra.mxu1 %v22008_v5  ;;  %12363 = vmatprep.subr.bf16.mxu0 %v22013_v59  ;;  %v22070_v5 = vld [vmem:[%s23500_s29 + $0x984] ss:$40 sps:$4 sm:$0xff]   ;;  %v22065_v59 = vld [vmem:[%s23500_s29 + $0x480] ss:$40 sps:$4 sm:$0xff]  }
 0x72e   : > { %12404 = vmatprep.subr.bf16.mxu1 %v22016_v3  ;;  %v22068_v3 = vld [vmem:[%s23500_s29 + $0x980] ss:$40 sps:$4 sm:$0xff]  }
 0x72f   : > { %v12069_v39 = vpop.f32.mrf.mxu0  ;;  %12314 = vmatmul.mubr.bf16.vlgmr.msra.gmra.mxu0 %v24810_v49 }
 0x730   : > { %v12110_v63 = vpop.f32.mrf.mxu1  ;;  %12355 = vmatmul.mubr.bf16.vlgmr.msra.gmra.mxu1 %v24815_v46  ;;  %12364 = vmatpush1.bf16.msra.mxu0 %v22011_v1  ;;  %v22073_v1 = vld [vmem:[%s23500_s29 + $0x434] ss:$40 sps:$4 sm:$0xff]  }
 0x731   : > { %v25265_v10 = vadd.f32 %v12110_v63, %v12069_v39  ;;  %12395 = vmatprep.mubr.bf16.mxu0 %v24638_v12  ;;  %12405 = vmatpush1.bf16.msra.mxu1 %v22014_v23  ;;  %v12071_v15 = vpop.f32.mrf.mxu0  ;;  %v22023_v12 = vld [vmem:[%s23500_s29 + $0x1b0] ss:$40 sps:$4 sm:$0xff]   ;;  %v22076_v23 = vld [vmem:[%s23500_s29 + $0x934] ss:$40 sps:$4 sm:$0xff]   ;;  %v22082_v63 = vld [vmem:[%s23500_s29 + $0x8e4] ss:$40 sps:$4 sm:$0xff]  }
 0x732   : > { %12436 = vmatprep.mubr.bf16.mxu1 %v24644_v18  ;;  %v12112_v9 = vpop.f32.mrf.mxu1  ;;  %12365 = vmatprep.subr.bf16.mxu0 %v22019_v4  ;;  %v22026_v18 = vld [vmem:[%s23500_s29 + $0x6b0] ss:$40 sps:$4 sm:$0xff]  }
 0x733   : > { %v25272_v11 = vadd.f32 %v12112_v9, %v12071_v15  ;;  %v12073_v27 = vpop.f32.mrf.mxu0  ;;  %12406 = vmatprep.subr.bf16.mxu1 %v22022_v7  ;;  %v22071_v4 = vld [vmem:[%s23500_s29 + $0x430] ss:$40 sps:$4 sm:$0xff]   ;;  %v22079_v7 = vld [vmem:[%s23500_s29 + $0x3e4] ss:$40 sps:$4 sm:$0xff]   ;;  %v22080_v15 = vld [vmem:[%s23500_s29 + $0x8e0] ss:$40 sps:$4 sm:$0xff]  }
 0x734   : > { %v12114_v29 = vpop.f32.mrf.mxu1  ;;  %12366 = vmatpush1.bf16.msra.mxu0 %v22017_v8  ;;  %v22074_v39 = vld [vmem:[%s23500_s29 + $0x930] ss:$40 sps:$4 sm:$0xff]   ;;  %v22077_v8 = vld [vmem:[%s23500_s29 + $0x3e0] ss:$40 sps:$4 sm:$0xff]   ;;  %v22091_v27 = vld [vmem:[%s23500_s29 + $0x344] ss:$40 sps:$4 sm:$0xff]  }
 0x735   : > { %12407 = vmatpush1.bf16.msra.mxu1 %v22020_v17  ;;  %v12074_v26 = vpop.f32.mrf.mxu0  ;;  %12367 = vmatprep.subr.bf16.mxu0 %v22025_v24  ;;  %v22085_v17 = vld [vmem:[%s23500_s29 + $0x394] ss:$40 sps:$4 sm:$0xff]   ;;  %v22083_v9 = vld [vmem:[%s23500_s29 + $0x390] ss:$40 sps:$4 sm:$0xff]   ;;  %v22094_v29 = vld [vmem:[%s23500_s29 + $0x844] ss:$40 sps:$4 sm:$0xff]  }
 0x736   : > { %v12115_v45 = vpop.f32.mrf.mxu1  ;;  %12408 = vmatprep.subr.bf16.mxu1 %v22028_v33  ;;  %v22088_v24 = vld [vmem:[%s23500_s29 + $0x894] ss:$40 sps:$4 sm:$0xff]   ;;  %v22086_v33 = vld [vmem:[%s23500_s29 + $0x890] ss:$40 sps:$4 sm:$0xff]   ;;  %v22092_v26 = vld [vmem:[%s23500_s29 + $0x840] ss:$40 sps:$4 sm:$0xff]  }
 0x737   : > { %v22095_v45 = vld [vmem:[%s23500_s29 + $0x2f0] ss:$40 sps:$4 sm:$0xff]  }
 0x738   : > { %12368 = vmatpush1.bf16.msra.mxu0 %v22023_v12  ;;  %v22089_v12 = vld [vmem:[%s23500_s29 + $0x340] ss:$40 sps:$4 sm:$0xff]  }
 0x739   : > { %12409 = vmatpush1.bf16.msra.mxu1 %v22026_v18  ;;  %12369 = vmatprep.subr.bf16.mxu0 %v22031_v6  ;;  %v22097_v18 = vld [vmem:[%s23500_s29 + $0x2f4] ss:$40 sps:$4 sm:$0xff]  }
 0x73a   : > { %12410 = vmatprep.subr.bf16.mxu1 %v22034_v37  ;;  %v22100_v6 = vld [vmem:[%s23500_s29 + $0x7f4] ss:$40 sps:$4 sm:$0xff]   ;;  %v22098_v37 = vld [vmem:[%s23500_s29 + $0x7f0] ss:$40 sps:$4 sm:$0xff]  }
 0x73c   : > { %12370 = vmatpush1.bf16.msra.mxu0 %v22029_v28  ;;  %v22103_v28 = vld [vmem:[%s23500_s29 + $0x2a4] ss:$40 sps:$4 sm:$0xff]  }
 0x73d   : > { %12411 = vmatpush1.bf16.msra.mxu1 %v22032_v51  ;;  %12371 = vmatprep.subr.bf16.mxu0 %v22037_v35  ;;  %v22106_v51 = vld [vmem:[%s23500_s29 + $0x7a4] ss:$40 sps:$4 sm:$0xff]   ;;  %v22101_v35 = vld [vmem:[%s23500_s29 + $0x2a0] ss:$40 sps:$4 sm:$0xff]  }
 0x73e   : > { %12412 = vmatprep.subr.bf16.mxu1 %v22040_v40  ;;  %v22104_v40 = vld [vmem:[%s23500_s29 + $0x7a0] ss:$40 sps:$4 sm:$0xff]  }
 0x740   : > { %12372 = vmatpush1.bf16.msra.mxu0 %v22035_v56  ;;  %v22109_v56 = vld [vmem:[%s23500_s29 + $0xc54] ss:$40 sps:$4 sm:$0xff]  }
 0x741   : > { %12413 = vmatpush1.bf16.msra.mxu1 %v22038_v41  ;;  %12373 = vmatprep.subr.bf16.mxu0 %v22043_v19  ;;  %v22112_v41 = vld [vmem:[%s23500_s29 + $0x1154] ss:$40 sps:$4 sm:$0xff]   ;;  %v22107_v19 = vld [vmem:[%s23500_s29 + $0xc50] ss:$40 sps:$4 sm:$0xff]  }
 0x742   : > { %12414 = vmatprep.subr.bf16.mxu1 %v22046_v42  ;;  %v22110_v42 = vld [vmem:[%s23500_s29 + $0x1150] ss:$40 sps:$4 sm:$0xff]  }
 0x744   : > { %12374 = vmatpush1.bf16.msra.mxu0 %v22041_v44  ;;  %v22115_v44 = vld [vmem:[%s23500_s29 + $0xc04] ss:$40 sps:$4 sm:$0xff]  }
 0x745   : > { %12415 = vmatpush1.bf16.msra.mxu1 %v22044_v58  ;;  %12375 = vmatprep.subr.bf16.mxu0 %v22049_v50  ;;  %v22118_v50 = vld [vmem:[%s23500_s29 + $0x1104] ss:$40 sps:$4 sm:$0xff]  }
 0x746   : > { %12416 = vmatprep.subr.bf16.mxu1 %v22052_v61 }
 0x748   : > { %12376 = vmatpush1.bf16.msra.mxu0 %v22047_v14 }
 0x749   : > { %12417 = vmatpush1.bf16.msra.mxu1 %v22050_v52  ;;  %12377 = vmatprep.subr.bf16.mxu0 %v22055_v22  ;;  %v22113_v52 = vld [vmem:[%s23500_s29 + $0xc00] ss:$40 sps:$4 sm:$0xff]  }
 0x74a   : > { %12418 = vmatprep.subr.bf16.mxu1 %v22058_v62  ;;  %v22116_v62 = vld [vmem:[%s23500_s29 + $0x1100] ss:$40 sps:$4 sm:$0xff]  }
 0x74c   : > { %12378 = vmatpush1.bf16.msra.mxu0 %v22053_v53  ;;  %v22121_v53 = vld [vmem:[%s23500_s29 + $0xbb4] ss:$40 sps:$4 sm:$0xff]  }
 0x74d   : > { %12419 = vmatpush1.bf16.msra.mxu1 %v22056_v36  ;;  %12379 = vmatprep.subr.bf16.mxu0 %v22061_v43 }
 0x74e   : > { %12420 = vmatprep.subr.bf16.mxu1 %v22064_v47 }
 0x750   : > { %12380 = vmatpush2.bf16.msra.mxu0 %v22059_v57  ;;  %v22119_v57 = vld [vmem:[%s23500_s29 + $0xbb0] ss:$40 sps:$4 sm:$0xff]  }
 0x751   : > { %12421 = vmatpush2.bf16.msra.mxu1 %v22062_v16  ;;  %12381 = vmatprep.subr.bf16.mxu0 %v22067_v21 }
 0x752   : > { %12422 = vmatprep.subr.bf16.mxu1 %v22070_v5 }
 0x754   : > { %12382 = vmatpush2.bf16.msra.mxu0 %v22065_v59  ;;  %v22130_v59 = vld [vmem:[%s23500_s29 + $0x1064] ss:$40 sps:$4 sm:$0xff]  }
 0x755   : > { %12423 = vmatpush2.bf16.msra.mxu1 %v22068_v3  ;;  %12383 = vmatprep.subr.bf16.mxu0 %v22073_v1  ;;  %v22125_v3 = vld [vmem:[%s23500_s29 + $0xb60] ss:$40 sps:$4 sm:$0xff]  }
 0x756   : > { %12424 = vmatprep.subr.bf16.mxu1 %v22076_v23  ;;  %v22128_v1 = vld [vmem:[%s23500_s29 + $0x1060] ss:$40 sps:$4 sm:$0xff]   ;;  %v22133_v23 = vld [vmem:[%s23500_s29 + $0xb14] ss:$40 sps:$4 sm:$0xff]  }
 0x758   : > { %12384 = vmatpush2.bf16.msra.mxu0 %v22071_v4  ;;  %v22136_v4 = vld [vmem:[%s23500_s29 + $0x1014] ss:$40 sps:$4 sm:$0xff]  }
 0x759   : > { %12425 = vmatpush2.bf16.msra.mxu1 %v22074_v39  ;;  %12385 = vmatprep.subr.bf16.mxu0 %v22079_v7  ;;  %v22131_v39 = vld [vmem:[%s23500_s29 + $0xb10] ss:$40 sps:$4 sm:$0xff]  }
 0x75a   : > { %12426 = vmatprep.subr.bf16.mxu1 %v22082_v63  ;;  %v22134_v7 = vld [vmem:[%s23500_s29 + $0x1010] ss:$40 sps:$4 sm:$0xff]   ;;  %v22139_v63 = vld [vmem:[%s23500_s29 + $0xac4] ss:$40 sps:$4 sm:$0xff]  }
 0x75c   : > { %12386 = vmatpush2.bf16.msra.mxu0 %v22077_v8  ;;  %v22142_v8 = vld [vmem:[%s23500_s29 + $0xfc4] ss:$40 sps:$4 sm:$0xff]  }
 0x75d   : > { %12427 = vmatpush2.bf16.msra.mxu1 %v22080_v15  ;;  %12387 = vmatprep.subr.bf16.mxu0 %v22085_v17  ;;  %v22137_v15 = vld [vmem:[%s23500_s29 + $0xac0] ss:$40 sps:$4 sm:$0xff]  }
 0x75e   : > { %12428 = vmatprep.subr.bf16.mxu1 %v22088_v24  ;;  %v22140_v17 = vld [vmem:[%s23500_s29 + $0xfc0] ss:$40 sps:$4 sm:$0xff]   ;;  %v22145_v24 = vld [vmem:[%s23500_s29 + $0xa74] ss:$40 sps:$4 sm:$0xff]  }
 0x760   : > { %12388 = vmatpush2.bf16.msra.mxu0 %v22083_v9  ;;  %v22148_v9 = vld [vmem:[%s23500_s29 + $0xf74] ss:$40 sps:$4 sm:$0xff]  }
 0x761   : > { %12429 = vmatpush2.bf16.msra.mxu1 %v22086_v33  ;;  %12389 = vmatprep.subr.bf16.mxu0 %v22091_v27  ;;  %v22143_v33 = vld [vmem:[%s23500_s29 + $0xa70] ss:$40 sps:$4 sm:$0xff]  }
 0x762   : > { %12430 = vmatprep.subr.bf16.mxu1 %v22094_v29  ;;  %v22146_v27 = vld [vmem:[%s23500_s29 + $0xf70] ss:$40 sps:$4 sm:$0xff]   ;;  %v22151_v29 = vld [vmem:[%s23500_s29 + $0xa24] ss:$40 sps:$4 sm:$0xff]  }
 0x764   : > { %12390 = vmatpush2.bf16.msra.mxu0 %v22089_v12  ;;  %v22154_v12 = vld [vmem:[%s23500_s29 + $0xf24] ss:$40 sps:$4 sm:$0xff]  }
 0x765   : > { %12431 = vmatpush2.bf16.msra.mxu1 %v22092_v26  ;;  %12391 = vmatprep.subr.bf16.mxu0 %v22097_v18  ;;  %v22149_v26 = vld [vmem:[%s23500_s29 + $0xa20] ss:$40 sps:$4 sm:$0xff]  }
 0x766   : > { %12432 = vmatprep.subr.bf16.mxu1 %v22100_v6  ;;  %v22152_v18 = vld [vmem:[%s23500_s29 + $0xf20] ss:$40 sps:$4 sm:$0xff]   ;;  %v22157_v6 = vld [vmem:[%s23500_s29 + $0xed4] ss:$40 sps:$4 sm:$0xff]  }
 0x768   : > { %12392 = vmatpush2.bf16.msra.mxu0 %v22095_v45  ;;  %v22160_v45 = vld [vmem:[%s23500_s29 + $0x13d4] ss:$40 sps:$4 sm:$0xff]  }
 0x769   : > { %12433 = vmatpush2.bf16.msra.mxu1 %v22098_v37  ;;  %12393 = vmatprep.subr.bf16.mxu0 %v22103_v28  ;;  %v22155_v37 = vld [vmem:[%s23500_s29 + $0xed0] ss:$40 sps:$4 sm:$0xff]  }
 0x76a   : > { %12434 = vmatprep.subr.bf16.mxu1 %v22106_v51  ;;  %v22158_v28 = vld [vmem:[%s23500_s29 + $0x13d0] ss:$40 sps:$4 sm:$0xff]   ;;  %v22163_v51 = vld [vmem:[%s23500_s29 + $0xe84] ss:$40 sps:$4 sm:$0xff]  }
 0x76c   : > { %12394 = vmatpush2.bf16.msra.mxu0 %v22101_v35  ;;  %v22166_v35 = vld [vmem:[%s23500_s29 + $0x1384] ss:$40 sps:$4 sm:$0xff]  }
 0x76d   : > { %12435 = vmatpush2.bf16.msra.mxu1 %v22104_v40  ;;  %12445 = vmatprep.subr.bf16.mxu0 %v22109_v56  ;;  %v22161_v40 = vld [vmem:[%s23500_s29 + $0xe80] ss:$40 sps:$4 sm:$0xff]  }
 0x76e   : > { %12486 = vmatprep.subr.bf16.mxu1 %v22112_v41  ;;  %v22164_v56 = vld [vmem:[%s23500_s29 + $0x1380] ss:$40 sps:$4 sm:$0xff]   ;;  %v22169_v41 = vld [vmem:[%s23500_s29 + $0xe34] ss:$40 sps:$4 sm:$0xff]  }
 0x76f   : > { %v12151_v58 = vpop.f32.mrf.mxu0  ;;  %12396 = vmatmul.mubr.bf16.vlgmr.msra.gmra.mxu0 %v24720_v60 }
 0x770   : > { %v12152_v61 = vadd.f32 %v12151_v58, %v25265_v10  ;;  %v12192_v14 = vpop.f32.mrf.mxu1  ;;  %12437 = vmatmul.mubr.bf16.vlgmr.msra.gmra.mxu1 %v24725_v0  ;;  %12446 = vmatpush1.bf16.msra.mxu0 %v22107_v19  ;;  %v22124_v0 = vld [vmem:[%s23500_s29 + $0x10b4] ss:$40 sps:$4 sm:$0xff]   ;;  %v22175_v58 = vld [vmem:[%s23500_s29 + $0xde4] ss:$40 sps:$4 sm:$0xff]  }
 0x771   : > { %12477 = vmatprep.mubr.bf16.mxu0 %v24730_v2  ;;  %12487 = vmatpush1.bf16.msra.mxu1 %v22110_v42  ;;  %v12153_v22 = vpop.f32.mrf.mxu0  ;;  %v22172_v19 = vld [vmem:[%s23500_s29 + $0x1334] ss:$40 sps:$4 sm:$0xff]   ;;  %v22167_v42 = vld [vmem:[%s23500_s29 + $0xe30] ss:$40 sps:$4 sm:$0xff]  }
 0x772   : > { %v25341_v36 = vadd.f32 %v12192_v14, %v12152_v61  ;;  %12518 = vmatprep.mubr.bf16.mxu1 %v24736_v54  ;;  %v12154_v60 = vadd.f32 %v12153_v22, %v25272_v11  ;;  %v12194_v10 = vpop.f32.mrf.mxu1  ;;  %12447 = vmatprep.subr.bf16.mxu0 %v22115_v44  ;;  %v22122_v54 = vld [vmem:[%s23500_s29 + $0x10b0] ss:$40 sps:$4 sm:$0xff]   ;;  %v22127_v11 = vld [vmem:[%s23500_s29 + $0xb64] ss:$40 sps:$4 sm:$0xff]   ;;  %v22173_v61 = vld [vmem:[%s23500_s29 + $0xde0] ss:$40 sps:$4 sm:$0xff]  }
 0x773   : > { %v12155_v43 = vpop.f32.mrf.mxu0  ;;  %12488 = vmatprep.subr.bf16.mxu1 %v22118_v50  ;;  %v22170_v44 = vld [vmem:[%s23500_s29 + $0x1330] ss:$40 sps:$4 sm:$0xff]   ;;  %v22178_v50 = vld [vmem:[%s23500_s29 + $0x12e4] ss:$40 sps:$4 sm:$0xff]   ;;  %v22176_v14 = vld [vmem:[%s23500_s29 + $0x12e0] ss:$40 sps:$4 sm:$0xff]  }
 0x774   : > { %v25346_v2 = vadd.f32 %v12194_v10, %v12154_v60  ;;  %v12196_v47 = vpop.f32.mrf.mxu1  ;;  %12448 = vmatpush1.bf16.msra.mxu0 %v22113_v52  ;;  %v22181_v52 = vld [vmem:[%s23500_s29 + $0xd94] ss:$40 sps:$4 sm:$0xff]   ;;  %v22187_v60 = vld [vmem:[%s23500_s29 + $0xd44] ss:$40 sps:$4 sm:$0xff]   ;;  %v22188_v43 = vld [vmem:[%s23500_s29 + $0x1240] ss:$40 sps:$4 sm:$0xff]  }
 0x775   : > { %12489 = vmatpush1.bf16.msra.mxu1 %v22116_v62  ;;  %v12156_v16 = vpop.f32.mrf.mxu0  ;;  %12449 = vmatprep.subr.bf16.mxu0 %v22121_v53  ;;  %v22184_v22 = vld [vmem:[%s23500_s29 + $0x1294] ss:$40 sps:$4 sm:$0xff]   ;;  %v22179_v62 = vld [vmem:[%s23500_s29 + $0xd90] ss:$40 sps:$4 sm:$0xff]   ;;  %v22190_v10 = vld [vmem:[%s23500_s29 + $0x1244] ss:$40 sps:$4 sm:$0xff]  }
 0x776   : > { %v12554_v21 = vcombine.low %v25341_v36, %v25346_v2  ;;  %v12197_v5 = vpop.f32.mrf.mxu1  ;;  %12490 = vmatprep.subr.bf16.mxu1 %v22124_v0  ;;  %v22182_v53 = vld [vmem:[%s23500_s29 + $0x1290] ss:$40 sps:$4 sm:$0xff]   ;;  %v22185_v0 = vld [vmem:[%s23500_s29 + $0xd40] ss:$40 sps:$4 sm:$0xff]   ;;  %v22193_v47 = vld [vmem:[%s23500_s29 + $0xcf4] ss:$40 sps:$4 sm:$0xff]  }
 0x777   : > { %v22191_v16 = vld [vmem:[%s23500_s29 + $0xcf0] ss:$40 sps:$4 sm:$0xff]   ;;  %v22202_v5 = vld [vmem:[%s23500_s29 + $0x11a4] ss:$40 sps:$4 sm:$0xff]  }
 0x778   : > { %12450 = vmatpush1.bf16.msra.mxu0 %v22119_v57  ;;  %v22196_v57 = vld [vmem:[%s23500_s29 + $0x11f4] ss:$40 sps:$4 sm:$0xff]  }
 0x779   : > { %12491 = vmatpush1.bf16.msra.mxu1 %v22122_v54  ;;  %12451 = vmatprep.subr.bf16.mxu0 %v22127_v11  ;;  %v22194_v54 = vld [vmem:[%s23500_s29 + $0x11f0] ss:$40 sps:$4 sm:$0xff]   ;;  %v22199_v11 = vld [vmem:[%s23500_s29 + $0xca4] ss:$40 sps:$4 sm:$0xff]  }
 0x77a   : > { %12492 = vmatprep.subr.bf16.mxu1 %v22130_v59  ;;  %v22197_v59 = vld [vmem:[%s23500_s29 + $0xca0] ss:$40 sps:$4 sm:$0xff]  }
 0x77c   : > { %12452 = vmatpush1.bf16.msra.mxu0 %v22125_v3  ;;  %v22200_v3 = vld [vmem:[%s23500_s29 + $0x11a0] ss:$40 sps:$4 sm:$0xff]  }
 0x77d   : > { %12493 = vmatpush1.bf16.msra.mxu1 %v22128_v1  ;;  %12453 = vmatprep.subr.bf16.mxu0 %v22133_v23 }
 0x77e   : > { %12494 = vmatprep.subr.bf16.mxu1 %v22136_v4 }
 0x780   : > { %12454 = vmatpush1.bf16.msra.mxu0 %v22131_v39 }
 0x781   : > { %12495 = vmatpush1.bf16.msra.mxu1 %v22134_v7  ;;  %12455 = vmatprep.subr.bf16.mxu0 %v22139_v63 }
 0x782   : > { %12496 = vmatprep.subr.bf16.mxu1 %v22142_v8 }
 0x784   : > { %12456 = vmatpush1.bf16.msra.mxu0 %v22137_v15 }
 0x785   : > { %12497 = vmatpush1.bf16.msra.mxu1 %v22140_v17  ;;  %12457 = vmatprep.subr.bf16.mxu0 %v22145_v24 }
 0x786   : > { %12498 = vmatprep.subr.bf16.mxu1 %v22148_v9 }
 0x788   : > { %12458 = vmatpush1.bf16.msra.mxu0 %v22143_v33 }
 0x789   : > { %12499 = vmatpush1.bf16.msra.mxu1 %v22146_v27  ;;  %12459 = vmatprep.subr.bf16.mxu0 %v22151_v29 }
 0x78a   : > { %12500 = vmatprep.subr.bf16.mxu1 %v22154_v12 }
 0x78c   : > { %12460 = vmatpush1.bf16.msra.mxu0 %v22149_v26 }
 0x78d   : > { %12501 = vmatpush1.bf16.msra.mxu1 %v22152_v18  ;;  %12461 = vmatprep.subr.bf16.mxu0 %v22157_v6 }
 0x78e   : > { %12502 = vmatprep.subr.bf16.mxu1 %v22160_v45 }
 0x790   : > { %12462 = vmatpush2.bf16.msra.mxu0 %v22155_v37 }
 0x791   : > { %12503 = vmatpush2.bf16.msra.mxu1 %v22158_v28  ;;  %12463 = vmatprep.subr.bf16.mxu0 %v22163_v51  ;;  %v12562_v51 = vrot.slane %v12554_v21, %v24654_v32 }
 0x792   : > { %12504 = vmatprep.subr.bf16.mxu1 %v22166_v35 }
 0x794   : > { %12464 = vmatpush2.bf16.msra.mxu0 %v22161_v40  ;;  %v7857_v40 = vld [vmem:[#allocation3 + $0x8] sm:$0xff] }
 0x795   : > { %12505 = vmatpush2.bf16.msra.mxu1 %v22164_v56  ;;  %12465 = vmatprep.subr.bf16.mxu0 %v22169_v41 }
 0x796   : > { %12506 = vmatprep.subr.bf16.mxu1 %v22172_v19 }
 0x798   : > { %12466 = vmatpush2.bf16.msra.mxu0 %v22167_v42 }
 0x799   : > { %12507 = vmatpush2.bf16.msra.mxu1 %v22170_v44  ;;  %12467 = vmatprep.subr.bf16.mxu0 %v22175_v58 }
 0x79a   : > { %12508 = vmatprep.subr.bf16.mxu1 %v22178_v50 }
 0x79c   : > { %12468 = vmatpush2.bf16.msra.mxu0 %v22173_v61 }
 0x79d   : > { %12509 = vmatpush2.bf16.msra.mxu1 %v22176_v14  ;;  %12469 = vmatprep.subr.bf16.mxu0 %v22181_v52 }
 0x79e   : > { %12510 = vmatprep.subr.bf16.mxu1 %v22184_v22 }
 0x7a0   : > { %12470 = vmatpush2.bf16.msra.mxu0 %v22179_v62 }
 0x7a1   : > { %12511 = vmatpush2.bf16.msra.mxu1 %v22182_v53  ;;  %12471 = vmatprep.subr.bf16.mxu0 %v22187_v60 }
 0x7a2   : > { %12512 = vmatprep.subr.bf16.mxu1 %v22190_v10 }
 0x7a4   : > { %12472 = vmatpush2.bf16.msra.mxu0 %v22185_v0 }
 0x7a5   : > { %12513 = vmatpush2.bf16.msra.mxu1 %v22188_v43  ;;  %12473 = vmatprep.subr.bf16.mxu0 %v22193_v47 }
 0x7a6   : > { %12514 = vmatprep.subr.bf16.mxu1 %v22196_v57 }
 0x7a8   : > { %12474 = vmatpush2.bf16.msra.mxu0 %v22191_v16 }
 0x7a9   : > { %12515 = vmatpush2.bf16.msra.mxu1 %v22194_v54  ;;  %12475 = vmatprep.subr.bf16.mxu0 %v22199_v11 }
 0x7aa   : > { %12516 = vmatprep.subr.bf16.mxu1 %v22202_v5  ;;  %v7858_v5 = vld [vmem:[#allocation3 + $0x10] sm:$0xf] }
 0x7ac   : > { %12476 = vmatpush2.bf16.msra.mxu0 %v22197_v59 }
 0x7ad   : > { %12517 = vmatpush2.bf16.msra.mxu1 %v22200_v3 }
 0x7af   : > { %v12233_v1 = vpop.f32.mrf.mxu0  ;;  %12478 = vmatmul.mubr.bf16.vlgmr.msra.gmra.mxu0 %v24810_v49 }
 0x7b0   : > { %v12274_v23 = vpop.f32.mrf.mxu1  ;;  %12519 = vmatmul.mubr.bf16.vlgmr.msra.gmra.mxu1 %v24815_v46 }
 0x7b1   : > { %v12235_v4 = vpop.f32.mrf.mxu0  ;;  %v12275_v17 = vadd.f32 %v12274_v23, %v12233_v1 }
 0x7b2   : > { %v12276_v39 = vpop.f32.mrf.mxu1 }
 0x7b3   : > { %v12237_v7 = vpop.f32.mrf.mxu0  ;;  %v12277_v9 = vadd.f32 %v12276_v39, %v12235_v4 }
 0x7b4   : > { %v12278_v63 = vpop.f32.mrf.mxu1 }
 0x7b5   : > { %v12238_v8 = vpop.f32.mrf.mxu0 }
 0x7b6   : > { %v12279_v15 = vpop.f32.mrf.mxu1 }
 0x7ef   : > { %v12315_v24 = vpop.f32.mrf.mxu0 }
 0x7f0   : > { %v12316_v33 = vadd.f32 %v12315_v24, %v12275_v17  ;;  %v12356_v27 = vpop.f32.mrf.mxu1 }
 0x7f1   : > { %v12317_v29 = vpop.f32.mrf.mxu0 }
 0x7f2   : > { %v12318_v12 = vadd.f32 %v12317_v29, %v12277_v9  ;;  %v12358_v26 = vpop.f32.mrf.mxu1  ;;  %v12357_v6 = vadd.f32 %v12356_v27, %v12316_v33 }
 0x7f3   : > { %v12319_v18 = vpop.f32.mrf.mxu0 }
 0x7f4   : > { %v12359_v49 = vadd.f32 %v12358_v26, %v12318_v12  ;;  %v12360_v45 = vpop.f32.mrf.mxu1 }
 0x7f5   : > { %v12320_v37 = vpop.f32.mrf.mxu0 }
 0x7f6   : > { %v12555_v46 = vcombine.low %v12357_v6, %v12359_v49  ;;  %v12361_v28 = vpop.f32.mrf.mxu1 }
 0x7f8   : > { %v12569_v35 = vrot.slane %v12555_v46, %v24654_v32 }
 0x7fa   : > { %v12570_v56 = vcombine.low %v12562_v51, %v12569_v35 }
 0x7fc   : > { %v12583_v41 = vadd.f32 %v12570_v56, %v7857_v40 }
 0x7fe   : > { %12586 = vst [vmem:[#allocation3 + $0x8] sm:$0xff] %v12583_v41 }
 0x82f   : > { %v12397_v19 = vpop.f32.mrf.mxu0 }
 0x830   : > { %v12438_v42 = vpop.f32.mrf.mxu1 }
 0x831   : > { %v12399_v44 = vpop.f32.mrf.mxu0  ;;  %v12439_v22 = vadd.f32 %v12438_v42, %v12397_v19 }
 0x832   : > { %v12440_v58 = vpop.f32.mrf.mxu1 }
 0x833   : > { %v12401_v50 = vpop.f32.mrf.mxu0  ;;  %v12441_v53 = vadd.f32 %v12440_v58, %v12399_v44 }
 0x834   : > { %v12442_v61 = vpop.f32.mrf.mxu1 }
 0x835   : > { %v12402_v14 = vpop.f32.mrf.mxu0 }
 0x836   : > { %v12443_v52 = vpop.f32.mrf.mxu1 }
 0x86f   : > { %v12479_v62 = vpop.f32.mrf.mxu0 }
 0x870   : > { %v12480_v60 = vadd.f32 %v12479_v62, %v12439_v22  ;;  %v12520_v36 = vpop.f32.mrf.mxu1 }
 0x871   : > { %v12481_v2 = vpop.f32.mrf.mxu0 }
 0x872   : > { %v12482_v21 = vadd.f32 %v12481_v2, %v12441_v53  ;;  %v12522_v10 = vpop.f32.mrf.mxu1  ;;  %v12521_v43 = vadd.f32 %v12520_v36, %v12480_v60 }
 0x873   : > { %v12483_v0 = vpop.f32.mrf.mxu0 }
 0x874   : > { %v12523_v47 = vadd.f32 %v12522_v10, %v12482_v21  ;;  %v12524_v57 = vpop.f32.mrf.mxu1 }
 0x875   : > { %v12484_v16 = vpop.f32.mrf.mxu0 }
 0x876   : > { %v12571_v54 = vcombine.low %v12521_v43, %v12523_v47  ;;  %v12525_v11 = vpop.f32.mrf.mxu1 }
 0x878   : > { %v12578_v59 = vrot.slane %v12571_v54, %v24654_v32  ;;  %12591 = sbr.rel (%p19478_p6) target bundleno = 3986 (0xf92), region = 164 }
 0x87a   : > { %v12584_v3 = vadd.f32 %v12578_v59, %v7858_v5 }
 0x87c   : > { %12587 = vst [vmem:[#allocation3 + $0x10] sm:$0xf] %v12584_v3 }
 0x87d   : > { %v25413_v1 = vld [vmem:[#allocation2] sm:$0xff]  ;;  %v25415_v23 = vld [vmem:[#allocation2 + $0x8] sm:$0xff]  ;;  %vm12642_vm0 = vcmask 1041408   ;;  %v25417_v4 = vld [vmem:[#allocation3] sm:$0xff] }
 0x87e   : > { %v12600_v39 = vcombine.high %v25413_v1, %v25413_v1  ;;  %v12607_v7 = vrot.slane %v25413_v1, %v24654_v32  ;;  %v12617_v63 = vcombine.high %v25415_v23, %v25415_v23  ;;  %v12624_v8 = vrot.slane %v25415_v23, %v24654_v32  ;;  %v25427_v15 = vld [vmem:[#allocation3 + $0x8] sm:$0xff] }
 0x87f   : > { %v12750_v17 = vcombine.high %v25417_v4, %v25417_v4  ;;  %v12757_v24 = vrot.slane %v25417_v4, %v24654_v32  ;;  %v12767_v9 = vcombine.high %v25427_v15, %v25427_v15  ;;  %v12774_v33 = vrot.slane %v25427_v15, %v24654_v32 }
 0x880   : > { %v12614_v27 = vrot.slane %v12600_v39, %v24654_v32  ;;  %v12615_v29 = vcombine.high %v12607_v7, %v12607_v7  ;;  %v12631_v12 = vrot.slane %v12617_v63, %v24654_v32  ;;  %v12632_v26 = vcombine.high %v12624_v8, %v12624_v8  ;;  %v22210_v39 = vld [vmem:[#allocation20 + $0x78] sm:$0xff]  }
 0x881   : > { %v12643_v18 = vsel %vm12642_vm0, %v12607_v7, -inf  ;;  %v12647_v6 = vsel %vm12642_vm0, %v12624_v8, -inf  ;;  %v12764_v49 = vrot.slane %v12750_v17, %v24654_v32  ;;  %v12765_v45 = vcombine.high %v12757_v24, %v12757_v24  ;;  %v22211_v7 = vld [vmem:[#allocation20 + $0x38] sm:$0xff]   ;;  %v22214_v17 = vld [vmem:[#allocation20 + $0x70] sm:$0xff]   ;;  %20003 = vmatprep.subr.bf16.mxu0 %v22210_v39 }
 0x882   : > { %v12616_v37 = vcombine.high %v12614_v27, %v12614_v27  ;;  %v12633_v46 = vcombine.high %v12631_v12, %v12631_v12  ;;  %v12644_v28 = vsel %vm12642_vm0, %v12615_v29, -inf  ;;  %v12645_v51 = vsel %vm12642_vm0, %v12614_v27, -inf  ;;  %v22212_v63 = vld [vmem:[#allocation20 + $0xf8] sm:$0xff]   ;;  %20004 = vmatpush3.bf16.msra.mxu0 %v22211_v7 }
 0x883   : > { %v12648_v35 = vmax.f32 %v12643_v18, %v12647_v6  ;;  %v12649_v40 = vsel %vm12642_vm0, %v12632_v26, -inf  ;;  %v12651_v56 = vsel %vm12642_vm0, %v12631_v12, -inf  ;;  %v12766_v41 = vcombine.high %v12764_v49, %v12764_v49  ;;  %v22213_v8 = vld [vmem:[#allocation20 + $0xb8] sm:$0xff]   ;;  %20025 = vmatprep.subr.bf16.mxu1 %v22212_v63  ;;  %20005 = vmatprep.subr.bf16.mxu0 %v22214_v17 }
 0x884   : > { %v12646_v19 = vsel %vm12642_vm0, %v12616_v37, -inf  ;;  %v12650_v42 = vmax.f32 %v12644_v28, %v12649_v40  ;;  %v12652_v44 = vmax.f32 %v12645_v51, %v12651_v56  ;;  %v12653_v58 = vsel %vm12642_vm0, %v12633_v46, -inf  ;;  %20026 = vmatpush3.bf16.msra.mxu1 %v22213_v8 }
 0x885   : > { %v12654_v50 = vmax.f32 %v12646_v19, %v12653_v58  ;;  %v12781_v61 = vrot.slane %v12767_v9, %v24654_v32  ;;  %v12782_v14 = vcombine.high %v12774_v33, %v12774_v33  ;;  %v12792_v52 = vsel %vm12642_vm0, %v12757_v24, -inf  ;;  %v22215_v24 = vld [vmem:[#allocation20 + $0x30] sm:$0xff]  }
 0x886   : > { %v12655_v22 = vmax.f32 %v12648_v35, %v12650_v42  ;;  %v12793_v62 = vsel %vm12642_vm0, %v12765_v45, -inf  ;;  %v12794_v53 = vsel %vm12642_vm0, %v12764_v49, -inf  ;;  %v12795_v60 = vsel %vm12642_vm0, %v12766_v41, -inf  ;;  %v22216_v9 = vld [vmem:[#allocation20 + $0xf0] sm:$0xff]   ;;  %20006 = vmatpush3.bf16.msra.mxu0 %v22215_v24 }
 0x887   : > { %v12656_v36 = vmax.f32 %v12652_v44, %v12654_v50  ;;  %v12783_v2 = vcombine.high %v12781_v61, %v12781_v61  ;;  %v12796_v21 = vsel %vm12642_vm0, %v12774_v33, -inf  ;;  %v12798_v10 = vsel %vm12642_vm0, %v12782_v14, -inf  ;;  %v22217_v33 = vld [vmem:[#allocation20 + $0xb0] sm:$0xff]   ;;  %20027 = vmatprep.subr.bf16.mxu1 %v22216_v9 }
 0x888   : > { %v12797_v0 = vmax.f32 %v12792_v52, %v12796_v21  ;;  %v12799_v43 = vmax.f32 %v12793_v62, %v12798_v10  ;;  %v12800_v47 = vsel %vm12642_vm0, %v12781_v61, -inf  ;;  %20028 = vmatpush3.bf16.msra.mxu1 %v22217_v33  ;;  %v23015_v27 = vmov 269488144  }
 0x889   : > { %v12657_v57 = vmax.f32 %v12655_v22, %v12656_v36  ;;  %v12801_v16 = vmax.f32 %v12794_v53, %v12800_v47  ;;  %v12802_v54 = vsel %vm12642_vm0, %v12783_v2, -inf  ;;  %v12662_v29 = vunpack.c.l.s4 %v23015_v27 }
 0x88a   : > { %v12803_v11 = vmax.f32 %v12795_v60, %v12802_v54  ;;  %v12804_v5 = vmax.f32 %v12797_v0, %v12799_v43 }
 0x88b   : > { %12658 = vmax.xlane.f32.xlu0 %v12657_v57  ;;  %v12663_v12 = vunpack.c.0.s8 %v12662_v29 }
 0x88c   : > { %v12805_v59 = vmax.f32 %v12801_v16, %v12803_v11 }
 0x88d   : > { %v25458_v26 = vsub.s32 %v12663_v12, %v23563_v38 }
 0x88e   : > { %v12806_v3 = vmax.f32 %v12804_v5, %v12805_v59 }
 0x890   : > { %12807 = vmax.xlane.f32.xlu0 %v12806_v3 }
 0x914   : > { %v12659_v18 = vpop.xlane.xlu0 %12658 }
 0x915   : > { %v12667_v6 = vrot.slane %v12659_v18, %v25458_v26 }
 0x917   : > { %v12669_v49 = vsub.f32 %v25413_v1, %v12667_v6  ;;  %v12670_v45 = vsub.f32 %v25415_v23, %v12667_v6 }
 0x919   : > { %v12671_v37 = vmul.f32 1.442695, %v12669_v49  ;;  %v12673_v46 = vmul.f32 1.442695, %v12670_v45  ;;  %v12808_v28 = vpop.xlane.xlu0 %12807 }
 0x91a   : > { %v12816_v51 = vrot.slane %v12808_v28, %v25458_v26 }
 0x91b   : > { %22403 = vpow2.f32 %v12671_v37 }
 0x91c   : > { %22405 = vpow2.f32 %v12673_v46  ;;  %v12818_v35 = vsub.f32 %v25417_v4, %v12816_v51  ;;  %v12819_v40 = vsub.f32 %v25427_v15, %v12816_v51 }
 0x91e   : > { %v12820_v56 = vmul.f32 1.442695, %v12818_v35  ;;  %v12822_v41 = vmul.f32 1.442695, %v12819_v40 }
 0x920   : > { %22407 = vpow2.f32 %v12820_v56 }
 0x921   : > { %22409 = vpow2.f32 %v12822_v41 }
 0x928   : > { %v25466_v19 = vpop.eup %22403 }
 0x929   : > { %v25468_v1 = vpop.eup %22405  ;;  %v12677_v23 = vcombine.high %v25466_v19, %v25466_v19  ;;  %v12684_v42 = vrot.slane %v25466_v19, %v24654_v32 }
 0x92a   : > { %v12694_v4 = vcombine.high %v25468_v1, %v25468_v1  ;;  %v12701_v15 = vrot.slane %v25468_v1, %v24654_v32 }
 0x92b   : > { %v12691_v44 = vrot.slane %v12677_v23, %v24654_v32  ;;  %v12692_v58 = vcombine.high %v12684_v42, %v12684_v42  ;;  %v12719_v14 = vsel %vm12642_vm0, %v12684_v42, 0.0  ;;  %v22218_v42 = vld [vmem:[#allocation20 + $0x68] sm:$0xff]  }
 0x92c   : > { %v12708_v53 = vrot.slane %v12694_v4, %v24654_v32  ;;  %v12709_v21 = vcombine.high %v12701_v15, %v12701_v15  ;;  %v12726_v5 = vsel %vm12642_vm0, %v12701_v15, 0.0  ;;  %20007 = vmatprep.subr.bf16.mxu0 %v22218_v42  ;;  %v22221_v4 = vld [vmem:[#allocation20 + $0xa8] sm:$0xff]   ;;  %v22222_v15 = vld [vmem:[#allocation20 + $0x60] sm:$0xff]   ;;  %v22248_v42 = vld [vmem:[#allocation20 + $0x1f0] sm:$0xff]  }
 0x92d   : > { %v25479_v50 = vpop.eup %22407  ;;  %v12693_v61 = vcombine.high %v12691_v44, %v12691_v44  ;;  %v12720_v52 = vsel %vm12642_vm0, %v12692_v58, 0.0  ;;  %v12722_v60 = vsel %vm12642_vm0, %v12691_v44, 0.0  ;;  %v22219_v44 = vld [vmem:[#allocation20 + $0x28] sm:$0xff]  }
 0x92e   : > { %v25483_v22 = vpop.eup %22409  ;;  %v12721_v62 = vadd.f32 %v12720_v52, %v12719_v14  ;;  %v12826_v36 = vcombine.high %v25479_v50, %v25479_v50  ;;  %v12833_v2 = vrot.slane %v25479_v50, %v24654_v32  ;;  %v12710_v7 = vcombine.high %v12708_v53, %v12708_v53  ;;  %v22220_v58 = vld [vmem:[#allocation20 + $0xe8] sm:$0xff]   ;;  %20008 = vmatpush3.bf16.msra.mxu0 %v22219_v44  ;;  %v22224_v14 = vld [vmem:[#allocation20 + $0xe0] sm:$0xff]   ;;  %v22247_v44 = vld [vmem:[#allocation20 + $0x130] sm:$0xff]  }
 0x92f   : > { %v12724_v0 = vsel %vm12642_vm0, %v12693_v61, 0.0  ;;  %v12843_v43 = vcombine.high %v25483_v22, %v25483_v22  ;;  %v12850_v16 = vrot.slane %v25483_v22, %v24654_v32  ;;  %v12728_v17 = vsel %vm12642_vm0, %v12709_v21, 0.0  ;;  %20029 = vmatprep.subr.bf16.mxu1 %v22220_v58  ;;  %v22223_v61 = vld [vmem:[#allocation20 + $0x20] sm:$0xff]   ;;  %20009 = vmatprep.subr.bf16.mxu0 %v22222_v15  ;;  %v22232_v21 = vld [vmem:[#allocation20 + $0xd0] sm:$0xff]   ;;  %v22250_v58 = vld [vmem:[#allocation20 + $0x168] sm:$0xff]  }
 0x930   : > { %v12723_v10 = vadd.f32 %v12722_v60, %v12721_v62  ;;  %v12840_v47 = vrot.slane %v12826_v36, %v24654_v32  ;;  %v12841_v57 = vcombine.high %v12833_v2, %v12833_v2  ;;  %v12868_v54 = vsel %vm12642_vm0, %v12833_v2, 0.0  ;;  %20030 = vmatpush3.bf16.msra.mxu1 %v22221_v4  ;;  %v22225_v52 = vld [vmem:[#allocation20 + $0xa0] sm:$0xff]   ;;  %v22226_v62 = vld [vmem:[#allocation20 + $0x58] sm:$0xff]   ;;  %v22230_v2 = vld [vmem:[#allocation20 + $0x50] sm:$0xff]  }
 0x931   : > { %v12857_v24 = vrot.slane %v12843_v43, %v24654_v32  ;;  %v12858_v9 = vcombine.high %v12850_v16, %v12850_v16  ;;  %v12730_v12 = vsel %vm12642_vm0, %v12708_v53, 0.0  ;;  %v12875_v18 = vsel %vm12642_vm0, %v12850_v16, 0.0  ;;  %20031 = vmatprep.subr.bf16.mxu1 %v22224_v14  ;;  %v22227_v53 = vld [vmem:[#allocation20 + $0x18] sm:$0xff]   ;;  %v22233_v43 = vld [vmem:[#allocation20 + $0x90] sm:$0xff]   ;;  %v22238_v16 = vld [vmem:[#allocation20 + $0x40] sm:$0xff]  }
 0x932   : > { %v12725_v11 = vadd.f32 %v12724_v0, %v12723_v10  ;;  %v12842_v59 = vcombine.high %v12840_v47, %v12840_v47  ;;  %v12869_v3 = vsel %vm12642_vm0, %v12841_v57, 0.0  ;;  %v12871_v39 = vsel %vm12642_vm0, %v12840_v47, 0.0  ;;  %20010 = vmatpush3.bf16.msra.mxu0 %v22223_v61  ;;  %v22228_v60 = vld [vmem:[#allocation20 + $0xd8] sm:$0xff]   ;;  %v22231_v10 = vld [vmem:[#allocation20 + $0x10] sm:$0xff]   ;;  %v22234_v0 = vld [vmem:[#allocation20 + $0x48] sm:$0xff]  }
 0x933   : > { %v12870_v8 = vadd.f32 %v12869_v3, %v12868_v54  ;;  %v12732_v45 = vsel %vm12642_vm0, %v12710_v7, 0.0  ;;  %v12859_v37 = vcombine.high %v12857_v24, %v12857_v24  ;;  %v12877_v46 = vsel %vm12642_vm0, %v12858_v9, 0.0  ;;  %v22229_v36 = vld [vmem:[#allocation20 + $0x98] sm:$0xff]   ;;  %20011 = vmatprep.subr.bf16.mxu0 %v22226_v62  ;;  %v22236_v47 = vld [vmem:[#allocation20 + $0xc8] sm:$0xff]   ;;  %v22249_v4 = vld [vmem:[#allocation20 + $0x1b0] sm:$0xff]  }
 0x934   : > { %v12727_v63 = vadd.f32 %v12726_v5, %v12725_v11  ;;  %v12873_v33 = vsel %vm12642_vm0, %v12842_v59, 0.0  ;;  %v12879_v35 = vsel %vm12642_vm0, %v12857_v24, 0.0  ;;  %20032 = vmatpush3.bf16.msra.mxu1 %v22225_v52  ;;  %v22235_v57 = vld [vmem:[#allocation20 + $0x8] sm:$0xff]   ;;  %v22240_v11 = vld [vmem:[#allocation20 + $0xc0] sm:$0xff]   ;;  %v22242_v3 = vld [vmem:[#allocation20 + $0x178] sm:$0xff]  }
 0x935   : > { %v12872_v29 = vadd.f32 %v12871_v39, %v12870_v8  ;;  %v12881_v56 = vsel %vm12642_vm0, %v12859_v37, 0.0  ;;  %20033 = vmatprep.subr.bf16.mxu1 %v22228_v60  ;;  %v22237_v54 = vld [vmem:[#allocation20 + $0x88] sm:$0xff]   ;;  %v22239_v5 = vld [vmem:[#allocation20] sm:$0xff]   ;;  %v22244_v39 = vld [vmem:[#allocation20 + $0x1f8] sm:$0xff]  }
 0x936   : > { %v12729_v27 = vadd.f32 %v12728_v17, %v12727_v63  ;;  %20012 = vmatpush3.bf16.msra.mxu0 %v22227_v53  ;;  %v22241_v59 = vld [vmem:[#allocation20 + $0x80] sm:$0xff]   ;;  %v22243_v37 = vld [vmem:[#allocation20 + $0x138] sm:$0xff]   ;;  %v22252_v15 = vld [vmem:[#allocation20 + $0x1e8] sm:$0xff]  }
 0x937   : > { %v12874_v49 = vadd.f32 %v12873_v33, %v12872_v29  ;;  %20013 = vmatprep.subr.bf16.mxu0 %v22230_v2  ;;  %v22251_v61 = vld [vmem:[#allocation20 + $0x128] sm:$0xff]   ;;  %v22254_v14 = vld [vmem:[#allocation20 + $0x160] sm:$0xff]   ;;  %v22258_v60 = vld [vmem:[#allocation20 + $0x158] sm:$0xff]  }
 0x938   : > { %v12731_v6 = vadd.f32 %v12730_v12, %v12729_v27  ;;  %20034 = vmatpush3.bf16.msra.mxu1 %v22229_v36  ;;  %v22253_v52 = vld [vmem:[#allocation20 + $0x1a8] sm:$0xff]   ;;  %v22256_v62 = vld [vmem:[#allocation20 + $0x1e0] sm:$0xff]   ;;  %v22260_v2 = vld [vmem:[#allocation20 + $0x1d8] sm:$0xff]  }
 0x939   : > { %v12876_v51 = vadd.f32 %v12875_v18, %v12874_v49  ;;  %20035 = vmatprep.subr.bf16.mxu1 %v22232_v21  ;;  %v22255_v53 = vld [vmem:[#allocation20 + $0x120] sm:$0xff]   ;;  %v22259_v21 = vld [vmem:[#allocation20 + $0x118] sm:$0xff]  }
 0x93a   : > { %v12733_v28 = vadd.f32 %v12732_v45, %v12731_v6  ;;  %20014 = vmatpush3.bf16.msra.mxu0 %v22231_v10  ;;  %v22257_v36 = vld [vmem:[#allocation20 + $0x1a0] sm:$0xff]  }
 0x93b   : > { %v12878_v40 = vadd.f32 %v12877_v46, %v12876_v51  ;;  %20015 = vmatprep.subr.bf16.mxu0 %v22234_v0  ;;  %v22262_v0 = vld [vmem:[#allocation20 + $0x150] sm:$0xff]  }
 0x93c   : > { %12734 = vadd.xlane.f32.xlu1 %v12733_v28  ;;  %20036 = vmatpush3.bf16.msra.mxu1 %v22233_v43  ;;  %v22261_v43 = vld [vmem:[#allocation20 + $0x198] sm:$0xff]  }
 0x93d   : > { %v12880_v41 = vadd.f32 %v12879_v35, %v12878_v40  ;;  %20037 = vmatprep.subr.bf16.mxu1 %v22236_v47  ;;  %v22245_v40 = vld [vmem:[#allocation20 + $0x1b8] sm:$0xff]   ;;  %v22264_v47 = vld [vmem:[#allocation20 + $0x1d0] sm:$0xff]  }
 0x93e   : > { %20016 = vmatpush3.bf16.msra.mxu0 %v22235_v57  ;;  %v22263_v57 = vld [vmem:[#allocation20 + $0x110] sm:$0xff]  }
 0x93f   : > { %v12882_v23 = vadd.f32 %v12881_v56, %v12880_v41  ;;  %20017 = vmatprep.subr.bf16.mxu0 %v22238_v16  ;;  %v22246_v56 = vld [vmem:[#allocation20 + $0x170] sm:$0xff]  }
 0x940   : > { %20038 = vmatpush3.bf16.msra.mxu1 %v22237_v54  ;;  %v22266_v54 = vld [vmem:[#allocation20 + $0x148] sm:$0xff]  }
 0x941   : > { %12883 = vadd.xlane.f32.xlu1 %v12882_v23  ;;  %20039 = vmatprep.subr.bf16.mxu1 %v22240_v11  ;;  %v22265_v11 = vld [vmem:[#allocation20 + $0x190] sm:$0xff]  }
 0x942   : > { %20018 = vmatpush3.bf16.msra.mxu0 %v22239_v5  ;;  %v22268_v5 = vld [vmem:[#allocation20 + $0x1c8] sm:$0xff]  }
 0x943   : > { %20047 = vmatprep.subr.bf16.mxu0 %v22242_v3 }
 0x944   : > { %20040 = vmatpush3.bf16.msra.mxu1 %v22241_v59  ;;  %v22267_v59 = vld [vmem:[#allocation20 + $0x108] sm:$0xff]  }
 0x945   : > { %20069 = vmatprep.subr.bf16.mxu1 %v22244_v39  ;;  %v22270_v39 = vld [vmem:[#allocation20 + $0x140] sm:$0xff]  }
 0x9c5   : > { %v12735_v7 = vpop.xlane.xlu1 %12734 }
 0x9c6   : > { %v12743_v63 = vrot.slane %v12735_v7, %v25458_v26  ;;  %v22269_v7 = vld [vmem:[#allocation20 + $0x188] sm:$0xff]  }
 0x9c8   : > { %22411 = vrcp.f32 %v12743_v63 }
 0x9ca   : > { %v12884_v12 = vpop.xlane.xlu1 %12883 }
 0x9d5   : > { %v22412_v8 = vpop.eup %22411 }
 0x9d6   : > { %v12746_v17 = vmul.f32 %v22412_v8, %v25466_v19  ;;  %v12747_v24 = vmul.f32 %v22412_v8, %v25468_v1  ;;  %v12892_v19 = vrot.slane %v12884_v12, %v25458_v26  ;;  %v22272_v8 = vld [vmem:[#allocation20 + $0x1c0] sm:$0xff]  }
 0x9d7   : > { %v22275_v12 = vld [vmem:[#allocation23 + $0x38] sm:$0xff]  }
 0x9d8   : > { %v12906_v9 = vrot.slane %v12746_v17, %v24654_v32  ;;  %v12899_v33 = vcombine.high %v12746_v17, %v12746_v17  ;;  %v25515_v27 = vrot.slane %v12747_v24, %v24654_v32  ;;  %v12916_v29 = vcombine.high %v12747_v24, %v12747_v24  ;;  %v22274_v24 = vld [vmem:[#allocation23 + $0x78] sm:$0xff]  }
 0x9d9   : > { %22413 = vrcp.f32 %v12892_v19 }
 0x9da   : > { %v12914_v18 = vcombine.high %v12906_v9, %v12906_v9  ;;  %v12913_v6 = vrot.slane %v12899_v33, %v24654_v32  ;;  %v12931_v49 = vcombine.high %v25515_v27, %v25515_v27  ;;  %v25521_v45 = vrot.slane %v12916_v29, %v24654_v32  ;;  %v22276_v29 = vld [vmem:[#allocation23 + $0xf8] sm:$0xff]  }
 0x9db   : > { %v12941_v28 = vpack.c.bf16 %v12906_v9, %v12906_v9  ;;  %v22273_v9 = vld [vmem:[#allocation20 + $0x180] sm:$0xff]  }
 0x9dc   : > { %v12942_v1 = vpack.c.bf16 %v12914_v18, %v12914_v18  ;;  %v12915_v46 = vcombine.high %v12913_v6, %v12913_v6  ;;  %v12932_v51 = vcombine.high %v25521_v45, %v25521_v45  ;;  %v12946_v41 = vpack.c.bf16 %v12931_v49, %v12931_v49  ;;  %v22278_v49 = vld [vmem:[#allocation23 + $0x70] sm:$0xff]  }
 0x9dd   : > { %v12943_v23 = vpack.c.bf16 %v12913_v6, %v12913_v6  ;;  %v12945_v6 = vpack.c.bf16 %v25515_v27, %v25515_v27  ;;  %v22281_v27 = vld [vmem:[#allocation23 + $0xb0] sm:$0xff]  }
 0x9de   : > { %13500 = vmatprep.mubr.bf16.mxu0 %v12942_v1  ;;  %v12944_v35 = vpack.c.bf16 %v12915_v46, %v12915_v46  ;;  %v12948_v26 = vpack.c.bf16 %v12932_v51, %v12932_v51  ;;  %v22277_v1 = vld [vmem:[#allocation23 + $0xb8] sm:$0xff]   ;;  %v22280_v46 = vld [vmem:[#allocation23 + $0xf0] sm:$0xff]  }
 0x9df   : > { %13501 = vmatmul.mubr.bf16.vlgmr.msra.gmra.mxu0 %v12941_v28  ;;  %v22279_v51 = vld [vmem:[#allocation23 + $0x30] sm:$0xff]  }
 0x9e0   : > { %20048 = vmatpush3.bf16.msra.mxu0 %v22243_v37  ;;  %13540 = vmatprep.mubr.bf16.mxu1 %v12944_v35  ;;  %v12947_v37 = vpack.c.bf16 %v25521_v45, %v25521_v45  ;;  %v22282_v35 = vld [vmem:[#allocation23 + $0x68] sm:$0xff]  }
 0x9e1   : > { %13580 = vmatprep.mubr.bf16.mxu0 %v12946_v41  ;;  %13541 = vmatmul.mubr.bf16.vlgmr.msra.gmra.mxu1 %v12943_v23  ;;  %v22286_v41 = vld [vmem:[#allocation23 + $0x60] sm:$0xff]   ;;  %v22285_v45 = vld [vmem:[#allocation23 + $0xa8] sm:$0xff]  }
 0x9e2   : > { %20070 = vmatpush3.bf16.msra.mxu1 %v22245_v40  ;;  %20049 = vmatprep.subr.bf16.mxu0 %v22246_v56  ;;  %v22284_v40 = vld [vmem:[#allocation23 + $0xe8] sm:$0xff]   ;;  %v22288_v23 = vld [vmem:[#allocation23 + $0xe0] sm:$0xff]  }
 0x9e3   : > { %13620 = vmatprep.mubr.bf16.mxu1 %v12948_v26  ;;  %20071 = vmatprep.subr.bf16.mxu1 %v22248_v42  ;;  %v22283_v56 = vld [vmem:[#allocation23 + $0x28] sm:$0xff]   ;;  %v22287_v42 = vld [vmem:[#allocation23 + $0x20] sm:$0xff]  }
 0x9e4   : > { %20050 = vmatpush3.bf16.msra.mxu0 %v22247_v44  ;;  %v22290_v44 = vld [vmem:[#allocation23 + $0x58] sm:$0xff]   ;;  %v22289_v26 = vld [vmem:[#allocation23 + $0xa0] sm:$0xff]  }
 0x9e5   : > { %20051 = vmatprep.subr.bf16.mxu0 %v22250_v58  ;;  %v22292_v58 = vld [vmem:[#allocation23 + $0xd8] sm:$0xff]  }
 0x9e6   : > { %20072 = vmatpush3.bf16.msra.mxu1 %v22249_v4  ;;  %v25526_v10 = vpop.eup %22413  ;;  %v22291_v4 = vld [vmem:[#allocation23 + $0x18] sm:$0xff]  }
 0x9e7   : > { %20073 = vmatprep.subr.bf16.mxu1 %v22252_v15  ;;  %v12895_v16 = vmul.f32 %v25526_v10, %v25479_v50  ;;  %v22271_v50 = vld [vmem:[#allocation20 + $0x100] sm:$0xff]   ;;  %v22294_v15 = vld [vmem:[#allocation23 + $0x50] sm:$0xff]  }
 0x9e8   : > { %20052 = vmatpush3.bf16.msra.mxu0 %v22251_v61  ;;  %v22293_v61 = vld [vmem:[#allocation23 + $0x98] sm:$0xff]  }
 0x9e9   : > { %20053 = vmatprep.subr.bf16.mxu0 %v22254_v14  ;;  %v13630_v3 = vcombine.high %v12895_v16, %v12895_v16  ;;  %v25531_v63 = vrot.slane %v12895_v16, %v24654_v32  ;;  %v22296_v14 = vld [vmem:[#allocation23 + $0xd0] sm:$0xff]   ;;  %v22306_v16 = vld [vmem:[#allocation23 + $0x178] sm:$0xff]  }
 0x9ea   : > { %20074 = vmatpush3.bf16.msra.mxu1 %v22253_v52  ;;  %v22295_v52 = vld [vmem:[#allocation23 + $0x10] sm:$0xff]  }
 0x9eb   : > { %20075 = vmatprep.subr.bf16.mxu1 %v22256_v62  ;;  %v25534_v17 = vrot.slane %v13630_v3, %v24654_v32  ;;  %v13645_v33 = vcombine.high %v25531_v63, %v25531_v63  ;;  %v12896_v62 = vmul.f32 %v25526_v10, %v25483_v22  ;;  %v22303_v22 = vld [vmem:[#allocation23] sm:$0xff]  }
 0x9ec   : > { %20054 = vmatpush3.bf16.msra.mxu0 %v22255_v53  ;;  %v22298_v53 = vld [vmem:[#allocation23 + $0x48] sm:$0xff]  }
 0x9ed   : > { %20055 = vmatprep.subr.bf16.mxu0 %v22258_v60  ;;  %v13646_v18 = vcombine.high %v25534_v17, %v25534_v17  ;;  %v13673_v19 = vpack.c.bf16 %v13645_v33, %v13645_v33  ;;  %v22297_v60 = vld [vmem:[#allocation23 + $0x90] sm:$0xff]  }
 0x9ee   : > { %20076 = vmatpush3.bf16.msra.mxu1 %v22257_v36  ;;  %v22300_v36 = vld [vmem:[#allocation23 + $0xc8] sm:$0xff]  }
 0x9ef   : > { %20077 = vmatprep.subr.bf16.mxu1 %v22260_v2  ;;  %v13675_v28 = vpack.c.bf16 %v13646_v18, %v13646_v18  ;;  %v22299_v2 = vld [vmem:[#allocation23 + $0x8] sm:$0xff]  }
 0x9f0   : > { %20056 = vmatpush3.bf16.msra.mxu0 %v22259_v21  ;;  %v13647_v21 = vcombine.high %v12896_v62, %v12896_v62  ;;  %v22316_v18 = vld [vmem:[#allocation23 + $0x1e8] sm:$0xff]  }
 0x9f1   : > { %20057 = vmatprep.subr.bf16.mxu0 %v22262_v0  ;;  %v22302_v0 = vld [vmem:[#allocation23 + $0x40] sm:$0xff]  }
 0x9f2   : > { %20078 = vmatpush3.bf16.msra.mxu1 %v22261_v43  ;;  %v22301_v43 = vld [vmem:[#allocation23 + $0x88] sm:$0xff]   ;;  %v25550_v10 = vrot.slane %v13647_v21, %v24654_v32 }
 0x9f3   : > { %20079 = vmatprep.subr.bf16.mxu1 %v22264_v47  ;;  %v25547_v47 = vrot.slane %v12896_v62, %v24654_v32 }
 0x9f4   : > { %20058 = vmatpush3.bf16.msra.mxu0 %v22263_v57  ;;  %v22304_v57 = vld [vmem:[#allocation23 + $0xc0] sm:$0xff]   ;;  %v13663_v3 = vcombine.high %v25550_v10, %v25550_v10 }
 0x9f5   : > { %20059 = vmatprep.subr.bf16.mxu0 %v22266_v54  ;;  %v22305_v54 = vld [vmem:[#allocation23 + $0x80] sm:$0xff]  }
 0x9f6   : > { %20080 = vmatpush3.bf16.msra.mxu1 %v22265_v11  ;;  %v13662_v11 = vcombine.high %v25547_v47, %v25547_v47  ;;  %v13679_v33 = vpack.c.bf16 %v13663_v3, %v13663_v3 }
 0x9f7   : > { %20081 = vmatprep.subr.bf16.mxu1 %v22268_v5  ;;  %v22308_v5 = vld [vmem:[#allocation23 + $0x1f8] sm:$0xff]  }
 0x9f8   : > { %20060 = vmatpush3.bf16.msra.mxu0 %v22267_v59  ;;  %v22307_v59 = vld [vmem:[#allocation23 + $0x138] sm:$0xff]  }
 0x9f9   : > { %20061 = vmatprep.subr.bf16.mxu0 %v22270_v39  ;;  %v13672_v39 = vpack.c.bf16 %v25531_v63, %v25531_v63  ;;  %v22313_v63 = vld [vmem:[#allocation23 + $0x1b0] sm:$0xff]  }
 0x9fa   : > { %20082 = vmatpush3.bf16.msra.mxu1 %v22269_v7  ;;  %v22310_v7 = vld [vmem:[#allocation23 + $0x170] sm:$0xff]  }
 0x9fb   : > { %20083 = vmatprep.subr.bf16.mxu1 %v22272_v8  ;;  %v13677_v8 = vpack.c.bf16 %v13662_v11, %v13662_v11  ;;  %v14453_v11 = vld [vmem:[#allocation26 + $0x160] sm:$0xff] }
 0x9fc   : > { %20062 = vmatpush3.bf16.msra.mxu0 %v22271_v50  ;;  %v22309_v50 = vld [vmem:[#allocation23 + $0x1b8] sm:$0xff]  }
 0x9fd   : > { %20091 = vmatprep.subr.bf16.mxu0 %v22274_v24  ;;  %v13674_v24 = vpack.c.bf16 %v25534_v17, %v25534_v17  ;;  %v22317_v17 = vld [vmem:[#allocation23 + $0x1a8] sm:$0xff]  }
 0x9fe   : > { %20084 = vmatpush3.bf16.msra.mxu1 %v22273_v9  ;;  %v22312_v9 = vld [vmem:[#allocation23 + $0x1f0] sm:$0xff]  }
 0x9ff   : > { %13581 = vmatmul.mubr.bf16.vlgmr.msra.gmra.mxu0 %v12945_v6  ;;  %20113 = vmatprep.subr.bf16.mxu1 %v22276_v29  ;;  %v22311_v29 = vld [vmem:[#allocation23 + $0x130] sm:$0xff]   ;;  %v22315_v6 = vld [vmem:[#allocation23 + $0x128] sm:$0xff]  }
 0xa00   : > { %20092 = vmatpush3.bf16.msra.mxu0 %v22275_v12  ;;  %14231 = vmatprep.mubr.bf16.mxu0 %v13673_v19  ;;  %v22314_v12 = vld [vmem:[#allocation23 + $0x168] sm:$0xff]   ;;  %v22320_v19 = vld [vmem:[#allocation23 + $0x1e0] sm:$0xff]  }
 0xa01   : > { %13621 = vmatmul.mubr.bf16.vlgmr.msra.gmra.mxu1 %v12947_v37  ;;  %20093 = vmatprep.subr.bf16.mxu0 %v22278_v49  ;;  %v22318_v49 = vld [vmem:[#allocation23 + $0x160] sm:$0xff]   ;;  %v22322_v37 = vld [vmem:[#allocation23 + $0x158] sm:$0xff]  }
 0xa02   : > { %20114 = vmatpush3.bf16.msra.mxu1 %v22277_v1  ;;  %14271 = vmatprep.mubr.bf16.mxu1 %v13675_v28  ;;  %v22319_v1 = vld [vmem:[#allocation23 + $0x120] sm:$0xff]   ;;  %v22324_v28 = vld [vmem:[#allocation23 + $0x1d8] sm:$0xff]  }
 0xa03   : > { %20115 = vmatprep.subr.bf16.mxu1 %v22280_v46  ;;  %v22321_v46 = vld [vmem:[#allocation23 + $0x1a0] sm:$0xff]  }
 0xa04   : > { %20094 = vmatpush3.bf16.msra.mxu0 %v22279_v51  ;;  %v22323_v51 = vld [vmem:[#allocation23 + $0x118] sm:$0xff]  }
 0xa05   : > { %20095 = vmatprep.subr.bf16.mxu0 %v22282_v35  ;;  %v22326_v35 = vld [vmem:[#allocation23 + $0x150] sm:$0xff]  }
 0xa06   : > { %20116 = vmatpush3.bf16.msra.mxu1 %v22281_v27  ;;  %v22325_v27 = vld [vmem:[#allocation23 + $0x198] sm:$0xff]  }
 0xa07   : > { %20117 = vmatprep.subr.bf16.mxu1 %v22284_v40  ;;  %v22328_v40 = vld [vmem:[#allocation23 + $0x1d0] sm:$0xff]  }
 0xa08   : > { %20096 = vmatpush3.bf16.msra.mxu0 %v22283_v56  ;;  %v22327_v56 = vld [vmem:[#allocation23 + $0x110] sm:$0xff]  }
 0xa09   : > { %20097 = vmatprep.subr.bf16.mxu0 %v22286_v41  ;;  %v22330_v41 = vld [vmem:[#allocation23 + $0x148] sm:$0xff]  }
 0xa0a   : > { %20118 = vmatpush3.bf16.msra.mxu1 %v22285_v45  ;;  %v22329_v45 = vld [vmem:[#allocation23 + $0x190] sm:$0xff]  }
 0xa0b   : > { %20119 = vmatprep.subr.bf16.mxu1 %v22288_v23  ;;  %v22332_v23 = vld [vmem:[#allocation23 + $0x1c8] sm:$0xff]  }
 0xa0c   : > { %20098 = vmatpush3.bf16.msra.mxu0 %v22287_v42  ;;  %v22331_v42 = vld [vmem:[#allocation23 + $0x108] sm:$0xff]  }
 0xa0d   : > { %20099 = vmatprep.subr.bf16.mxu0 %v22290_v44  ;;  %v22334_v44 = vld [vmem:[#allocation23 + $0x140] sm:$0xff]  }
 0xa0e   : > { %20120 = vmatpush3.bf16.msra.mxu1 %v22289_v26  ;;  %v22333_v26 = vld [vmem:[#allocation23 + $0x188] sm:$0xff]  }
 0xa0f   : > { %20121 = vmatprep.subr.bf16.mxu1 %v22292_v58  ;;  %v14465_v58 = vld [vmem:[#allocation26 + $0x1c0] sm:$0xff] }
 0xa10   : > { %20100 = vmatpush3.bf16.msra.mxu0 %v22291_v4  ;;  %v14469_v4 = vld [vmem:[#allocation26 + $0x1e0] sm:$0xff] }
 0xa11   : > { %20101 = vmatprep.subr.bf16.mxu0 %v22294_v15  ;;  %v22336_v15 = vld [vmem:[#allocation23 + $0x1c0] sm:$0xff]   ;;  %v19667_v62 = vcombine.high %v14465_v58, %v14469_v4  ;;  %v19666_v21 = vcombine.low %v14465_v58, %v14469_v4 }
 0xa12   : > { %20122 = vmatpush3.bf16.msra.mxu1 %v22293_v61  ;;  %v22335_v61 = vld [vmem:[#allocation23 + $0x100] sm:$0xff]  }
 0xa13   : > { %20123 = vmatprep.subr.bf16.mxu1 %v22296_v14  ;;  %v14593_v14 = vld [vmem:[#allocation26 + $0x5c0] sm:$0xff] }
 0xa14   : > { %20102 = vmatpush3.bf16.msra.mxu0 %v22295_v52  ;;  %v14597_v52 = vld [vmem:[#allocation26 + $0x5e0] sm:$0xff] }
 0xa15   : > { %20103 = vmatprep.subr.bf16.mxu0 %v22298_v53  ;;  %v22337_v53 = vld [vmem:[#allocation23 + $0x180] sm:$0xff]  }
 0xa16   : > { %20124 = vmatpush3.bf16.msra.mxu1 %v22297_v60  ;;  %v14457_v60 = vld [vmem:[#allocation26 + $0x180] sm:$0xff] }
 0xa17   : > { %20125 = vmatprep.subr.bf16.mxu1 %v22300_v36  ;;  %v14461_v36 = vld [vmem:[#allocation26 + $0x1a0] sm:$0xff] }
 0xa18   : > { %20104 = vmatpush3.bf16.msra.mxu0 %v22299_v2  ;;  %v19795_v2 = vcombine.high %v14593_v14, %v14597_v52  ;;  %v19658_v3 = vcombine.low %v14457_v60, %v14461_v36  ;;  %v14417_v4 = vld [vmem:[#allocation26 + $0x40] sm:$0xff] }
 0xa19   : > { %20105 = vmatprep.subr.bf16.mxu0 %v22302_v0  ;;  %v14585_v0 = vld [vmem:[#allocation26 + $0x580] sm:$0xff] }
 0xa1a   : > { %20126 = vmatpush3.bf16.msra.mxu1 %v22301_v43  ;;  %v14589_v43 = vld [vmem:[#allocation26 + $0x5a0] sm:$0xff] }
 0xa1b   : > { %20127 = vmatprep.subr.bf16.mxu1 %v22304_v57  ;;  %v13676_v57 = vpack.c.bf16 %v25547_v47, %v25547_v47  ;;  %v19786_v47 = vcombine.low %v14585_v0, %v14589_v43 }
 0xa1c   : > { %20106 = vmatpush3.bf16.msra.mxu0 %v22303_v22  ;;  %v19659_v22 = vcombine.high %v14457_v60, %v14461_v36  ;;  %v14409_v36 = vld [vmem:[#allocation26] sm:$0xff] }
 0xa1d   : > { %20135 = vmatprep.subr.bf16.mxu0 %v22306_v16  ;;  %v19794_v16 = vcombine.low %v14593_v14, %v14597_v52  ;;  %v14545_v52 = vld [vmem:[#allocation26 + $0x440] sm:$0xff] }
 0xa1e   : > { %20128 = vmatpush3.bf16.msra.mxu1 %v22305_v54  ;;  %v14449_v54 = vld [vmem:[#allocation26 + $0x140] sm:$0xff] }
 0xa1f   : > { %14232 = vmatmul.mubr.bf16.vlgmr.msra.gmra.mxu0 %v13672_v39  ;;  %20157 = vmatprep.subr.bf16.mxu1 %v22308_v5  ;;  %v13678_v5 = vpack.c.bf16 %v25550_v10, %v25550_v10  ;;  %v14577_v39 = vld [vmem:[#allocation26 + $0x540] sm:$0xff] }
 0xa20   : > { %20136 = vmatpush3.bf16.msra.mxu0 %v22307_v59  ;;  %14311 = vmatprep.mubr.bf16.mxu0 %v13677_v8  ;;  %v19787_v59 = vcombine.high %v14585_v0, %v14589_v43  ;;  %v19651_v8 = vcombine.high %v14449_v54, %v14453_v11  ;;  %v14537_v43 = vld [vmem:[#allocation26 + $0x400] sm:$0xff] }
 0xa21   : > { %14272 = vmatmul.mubr.bf16.vlgmr.msra.gmra.mxu1 %v13674_v24  ;;  %20137 = vmatprep.subr.bf16.mxu0 %v22310_v7  ;;  %v14581_v7 = vld [vmem:[#allocation26 + $0x560] sm:$0xff] }
 0xa22   : > { %20158 = vmatpush3.bf16.msra.mxu1 %v22309_v50  ;;  %14351 = vmatprep.mubr.bf16.mxu1 %v13679_v33  ;;  %v14441_v50 = vld [vmem:[#allocation26 + $0x100] sm:$0xff]  ;;  %v19650_v33 = vcombine.low %v14449_v54, %v14453_v11 }
 0xa23   : > { %20159 = vmatprep.subr.bf16.mxu1 %v22312_v9  ;;  %v14445_v24 = vld [vmem:[#allocation26 + $0x120] sm:$0xff]  ;;  %v19779_v9 = vcombine.high %v14577_v39, %v14581_v7 }
 0xa24   : > { %20138 = vmatpush3.bf16.msra.mxu0 %v22311_v29  ;;  %v14569_v29 = vld [vmem:[#allocation26 + $0x500] sm:$0xff]  ;;  %v19643_v10 = vcombine.high %v14441_v50, %v14445_v24 }
 0xa25   : > { %20139 = vmatprep.subr.bf16.mxu0 %v22314_v12  ;;  %v14573_v12 = vld [vmem:[#allocation26 + $0x520] sm:$0xff] }
 0xa26   : > { %20160 = vmatpush3.bf16.msra.mxu1 %v22313_v63  ;;  %v14433_v63 = vld [vmem:[#allocation26 + $0xc0] sm:$0xff] }
 0xa27   : > { %20161 = vmatprep.subr.bf16.mxu1 %v22316_v18  ;;  %v19778_v18 = vcombine.low %v14577_v39, %v14581_v7  ;;  %v14529_v54 = vld [vmem:[#allocation26 + $0x3c0] sm:$0xff]  ;;  %v25564_v7 = vld [vmem:[#allocation26 + $0x1c8] sm:$0xff] }
 0xa28   : > { %20140 = vmatpush3.bf16.msra.mxu0 %v22315_v6  ;;  %v14437_v6 = vld [vmem:[#allocation26 + $0xe0] sm:$0xff] }
 0xa29   : > { %20141 = vmatprep.subr.bf16.mxu0 %v22318_v49  ;;  %v12594_v49 = vld [vmem:[#allocation2 + $0x10] sm:$0xf]  ;;  %v14533_v11 = vld [vmem:[#allocation26 + $0x3e0] sm:$0xff] }
 0xa2a   : > { %20162 = vmatpush3.bf16.msra.mxu1 %v22317_v17  ;;  %v12597_v17 = vld [vmem:[#allocation3 + $0x10] sm:$0xf]  ;;  %14360 = vst [vmem:[#allocation4 + $0x2] sm:$0x3] %v12594_v49  ;;  %v14661_v39 = vld [vmem:[#allocation26 + $0x7e0] sm:$0xff] }
 0xa2b   : > { %20163 = vmatprep.subr.bf16.mxu1 %v22320_v19  ;;  %v19771_v19 = vcombine.high %v14569_v29, %v14573_v12  ;;  %14359 = vst [vmem:[#allocation4] sm:$0x3] %v12597_v17 }
 0xa2c   : > { %20142 = vmatpush3.bf16.msra.mxu0 %v22319_v1  ;;  %v14362_v1 = vrot.slane %v12594_v49, 2  ;;  %v14513_v49 = vld [vmem:[#allocation26 + $0x340] sm:$0xff] }
 0xa2d   : > { %20143 = vmatprep.subr.bf16.mxu0 %v22322_v37  ;;  %v14365_v37 = vrot.slane %v12597_v17, 2  ;;  %v14517_v17 = vld [vmem:[#allocation26 + $0x360] sm:$0xff] }
 0xa2e   : > { %20164 = vmatpush3.bf16.msra.mxu1 %v22321_v46  ;;  %v19642_v46 = vcombine.low %v14441_v50, %v14445_v24 }
 0xa2f   : > { %20165 = vmatprep.subr.bf16.mxu1 %v22324_v28  ;;  %v14561_v28 = vld [vmem:[#allocation26 + $0x4c0] sm:$0xff] }
 0xa30   : > { %20144 = vmatpush3.bf16.msra.mxu0 %v22323_v51  ;;  %v14565_v51 = vld [vmem:[#allocation26 + $0x4e0] sm:$0xff] }
 0xa31   : > { %20145 = vmatprep.subr.bf16.mxu0 %v22326_v35  ;;  %v19635_v35 = vcombine.high %v14433_v63, %v14437_v6  ;;  %v19762_v58 = vcombine.low %v14561_v28, %v14565_v51 }
 0xa32   : > { %20166 = vmatpush3.bf16.msra.mxu1 %v22325_v27  ;;  %v14367_v27 = vadd.f32 %v14365_v37, %v14362_v1  ;;  %v14641_v37 = vld [vmem:[#allocation26 + $0x740] sm:$0xff] }
 0xa33   : > { %20167 = vmatprep.subr.bf16.mxu1 %v22328_v40  ;;  %v19770_v40 = vcombine.low %v14569_v29, %v14573_v12  ;;  %v19730_v12 = vcombine.low %v14529_v54, %v14533_v11 }
 0xa34   : > { %20146 = vmatpush3.bf16.msra.mxu0 %v22327_v56  ;;  %v14425_v56 = vld [vmem:[#allocation26 + $0x80] sm:$0xff]  ;;  %14368 = vst [vmem:[#allocation4 + $0x4] sm:$0x3] %v14367_v27 }
 0xa35   : > { %20147 = vmatprep.subr.bf16.mxu0 %v22330_v41  ;;  %v14429_v41 = vld [vmem:[#allocation26 + $0xa0] sm:$0xff] }
 0xa36   : > { %20168 = vmatpush3.bf16.msra.mxu1 %v22329_v45  ;;  %v19763_v45 = vcombine.high %v14561_v28, %v14565_v51  ;;  %v19626_v14 = vcombine.low %v14425_v56, %v14429_v41  ;;  %v19715_v28 = vcombine.high %v14513_v49, %v14517_v17  ;;  %v14509_v27 = vld [vmem:[#allocation26 + $0x320] sm:$0xff] }
 0xa37   : > { %20169 = vmatprep.subr.bf16.mxu1 %v22332_v23  ;;  %v19634_v23 = vcombine.low %v14433_v63, %v14437_v6  ;;  %v14653_v63 = vld [vmem:[#allocation26 + $0x7a0] sm:$0xff] }
 0xa38   : > { %20148 = vmatpush3.bf16.msra.mxu0 %v22331_v42  ;;  %v14553_v42 = vld [vmem:[#allocation26 + $0x480] sm:$0xff] }
 0xa39   : > { %20149 = vmatprep.subr.bf16.mxu0 %v22334_v44  ;;  %v14557_v44 = vld [vmem:[#allocation26 + $0x4a0] sm:$0xff] }
 0xa3a   : > { %20170 = vmatpush3.bf16.msra.mxu1 %v22333_v26  ;;  %v19627_v26 = vcombine.high %v14425_v56, %v14429_v41  ;;  %v19754_v60 = vcombine.low %v14553_v42, %v14557_v44  ;;  %v19714_v56 = vcombine.low %v14513_v49, %v14517_v17  ;;  %v14633_v41 = vld [vmem:[#allocation26 + $0x700] sm:$0xff] }
 0xa3b   : > { %20171 = vmatprep.subr.bf16.mxu1 %v22336_v15  ;;  %v14421_v15 = vld [vmem:[#allocation26 + $0x60] sm:$0xff] }
 0xa3c   : > { %20150 = vmatpush3.bf16.msra.mxu0 %v22335_v61  ;;  %v19755_v61 = vcombine.high %v14553_v42, %v14557_v44  ;;  %v19618_v0 = vcombine.low %v14417_v4, %v14421_v15  ;;  %v14497_v44 = vld [vmem:[#allocation26 + $0x2c0] sm:$0xff] }
 0xa3d   : > { %16371 = vmatprep.subr.bf16.mxu0 %v19667_v62  ;;  %v14549_v62 = vld [vmem:[#allocation26 + $0x460] sm:$0xff] }
 0xa3e   : > { %20172 = vmatpush3.bf16.msra.mxu1 %v22337_v53  ;;  %v19619_v53 = vcombine.high %v14417_v4, %v14421_v15  ;;  %v14625_v15 = vld [vmem:[#allocation26 + $0x6c0] sm:$0xff] }
 0xa3f   : > { %14312 = vmatmul.mubr.bf16.vlgmr.msra.gmra.mxu0 %v13676_v57  ;;  %16412 = vmatprep.subr.bf16.mxu1 %v19795_v2  ;;  %v14413_v2 = vld [vmem:[#allocation26 + $0x20] sm:$0xff] }
 0xa40   : > { %16372 = vmatpush1.bf16.msra.mxu0 %v19666_v21  ;;  %v19747_v21 = vcombine.high %v14545_v52, %v14549_v62  ;;  %v14541_v57 = vld [vmem:[#allocation26 + $0x420] sm:$0xff] }
 0xa41   : > { %14352 = vmatmul.mubr.bf16.vlgmr.msra.gmra.mxu1 %v13678_v5  ;;  %16373 = vmatprep.subr.bf16.mxu0 %v19659_v22  ;;  %v19611_v22 = vcombine.high %v14409_v36, %v14413_v2  ;;  %v19739_v5 = vcombine.high %v14537_v43, %v14541_v57  ;;  %v19738_v24 = vcombine.low %v14537_v43, %v14541_v57  ;;  %v14481_v57 = vld [vmem:[#allocation26 + $0x240] sm:$0xff] }
 0xa42   : > { %16413 = vmatpush1.bf16.msra.mxu1 %v19794_v16  ;;  %v19746_v16 = vcombine.low %v14545_v52, %v14549_v62  ;;  %v14489_v62 = vld [vmem:[#allocation26 + $0x280] sm:$0xff] }
 0xa43   : > { %16414 = vmatprep.subr.bf16.mxu1 %v19787_v59  ;;  %v14657_v59 = vld [vmem:[#allocation26 + $0x7c0] sm:$0xff] }
 0xa44   : > { %16374 = vmatpush1.bf16.msra.mxu0 %v19658_v3  ;;  %v19610_v3 = vcombine.low %v14409_v36, %v14413_v2  ;;  %v19859_v29 = vcombine.high %v14657_v59, %v14661_v39  ;;  %v19858_v6 = vcombine.low %v14657_v59, %v14661_v39  ;;  %v14617_v2 = vld [vmem:[#allocation26 + $0x680] sm:$0xff] }
 0xa45   : > { %16375 = vmatprep.subr.bf16.mxu0 %v19651_v8  ;;  %v25566_v8 = vld [vmem:[#allocation26 + $0x1e8] sm:$0xff]  ;;  %v14609_v59 = vld [vmem:[#allocation26 + $0x640] sm:$0xff] }
 0xa46   : > { %16415 = vmatpush1.bf16.msra.mxu1 %v19786_v47  ;;  %v19731_v47 = vcombine.high %v14529_v54, %v14533_v11  ;;  %v19668_v50 = vcombine.low %v25564_v7, %v25566_v8  ;;  %v25570_v54 = vld [vmem:[#allocation26 + $0x9c0] sm:$0xff] }
 0xa47   : > { %16416 = vmatprep.subr.bf16.mxu1 %v19779_v9  ;;  %v14521_v9 = vld [vmem:[#allocation26 + $0x380] sm:$0xff] }
 0xa48   : > { %16376 = vmatpush1.bf16.msra.mxu0 %v19650_v33  ;;  %v14525_v33 = vld [vmem:[#allocation26 + $0x3a0] sm:$0xff] }
 0xa49   : > { %16377 = vmatprep.subr.bf16.mxu0 %v19643_v10  ;;  %v14649_v10 = vld [vmem:[#allocation26 + $0x780] sm:$0xff]  ;;  %v19722_v1 = vcombine.low %v14521_v9, %v14525_v33 }
 0xa4a   : > { %16417 = vmatpush1.bf16.msra.mxu1 %v19778_v18  ;;  %v19723_v18 = vcombine.high %v14521_v9, %v14525_v33  ;;  %v19850_v51 = vcombine.low %v14649_v10, %v14653_v63  ;;  %v25572_v11 = vld [vmem:[#allocation26 + $0x9e0] sm:$0xff] }
 0xa4b   : > { %16418 = vmatprep.subr.bf16.mxu1 %v19771_v19  ;;  %v19851_v19 = vcombine.high %v14649_v10, %v14653_v63  ;;  %v19922_v39 = vcombine.low %v25570_v54, %v25572_v11  ;;  %v14473_v9 = vld [vmem:[#allocation26 + $0x200] sm:$0xff] }
 0xa4c   : > { %16378 = vmatpush1.bf16.msra.mxu0 %v19642_v46  ;;  %v14645_v46 = vld [vmem:[#allocation26 + $0x760] sm:$0xff] }
 0xa4d   : > { %16379 = vmatprep.subr.bf16.mxu0 %v19635_v35  ;;  %v14505_v35 = vld [vmem:[#allocation26 + $0x300] sm:$0xff]  ;;  %v19842_v42 = vcombine.low %v14641_v37, %v14645_v46 }
 0xa4e   : > { %16419 = vmatpush1.bf16.msra.mxu1 %v19770_v40  ;;  %v19843_v40 = vcombine.high %v14641_v37, %v14645_v46  ;;  %v19706_v4 = vcombine.low %v14505_v35, %v14509_v27  ;;  %v14477_v33 = vld [vmem:[#allocation26 + $0x220] sm:$0xff]  ;;  %v19669_v37 = vcombine.high %v25564_v7, %v25566_v8 }
 0xa4f   : > { %16420 = vmatprep.subr.bf16.mxu1 %v19763_v45  ;;  %v14637_v45 = vld [vmem:[#allocation26 + $0x720] sm:$0xff]  ;;  %v19674_v17 = vcombine.low %v14473_v9, %v14477_v33 }
 0xa50   : > { %16380 = vmatpush1.bf16.msra.mxu0 %v19634_v23  ;;  %v19707_v23 = vcombine.high %v14505_v35, %v14509_v27  ;;  %v19834_v52 = vcombine.low %v14633_v41, %v14637_v45  ;;  %v14601_v10 = vld [vmem:[#allocation26 + $0x600] sm:$0xff] }
 0xa51   : > { %16381 = vmatprep.subr.bf16.mxu0 %v19627_v26  ;;  %v14501_v26 = vld [vmem:[#allocation26 + $0x2e0] sm:$0xff] }
 0xa52   : > { %16421 = vmatpush1.bf16.msra.mxu1 %v19762_v58  ;;  %v19835_v58 = vcombine.high %v14633_v41, %v14637_v45  ;;  %v19698_v36 = vcombine.low %v14497_v44, %v14501_v26  ;;  %v14605_v63 = vld [vmem:[#allocation26 + $0x620] sm:$0xff] }
 0xa53   : > { %16422 = vmatprep.subr.bf16.mxu1 %v19755_v61  ;;  %v14629_v61 = vld [vmem:[#allocation26 + $0x6e0] sm:$0xff]  ;;  %v19803_v49 = vcombine.high %v14601_v10, %v14605_v63 }
 0xa54   : > { %16382 = vmatpush1.bf16.msra.mxu0 %v19626_v14  ;;  %v19699_v14 = vcombine.high %v14497_v44, %v14501_v26  ;;  %v19826_v43 = vcombine.low %v14625_v15, %v14629_v61  ;;  %v14689_v7 = vld [vmem:[#allocation26 + $0x8c0] sm:$0xff] }
 0xa55   : > { %16383 = vmatprep.subr.bf16.mxu0 %v19619_v53  ;;  %v14493_v53 = vld [vmem:[#allocation26 + $0x2a0] sm:$0xff] }
 0xa56   : > { %16423 = vmatpush1.bf16.msra.mxu1 %v19754_v60  ;;  %v19827_v60 = vcombine.high %v14625_v15, %v14629_v61  ;;  %v14693_v8 = vld [vmem:[#allocation26 + $0x8e0] sm:$0xff] }
 0xa57   : > { %16424 = vmatprep.subr.bf16.mxu1 %v19747_v21  ;;  %v14621_v21 = vld [vmem:[#allocation26 + $0x6a0] sm:$0xff] }
 0xa58   : > { %16384 = vmatpush1.bf16.msra.mxu0 %v19618_v0  ;;  %v19691_v0 = vcombine.high %v14489_v62, %v14493_v53 }
 0xa59   : > { %16385 = vmatprep.subr.bf16.mxu0 %v19611_v22  ;;  %v14485_v22 = vld [vmem:[#allocation26 + $0x260] sm:$0xff] }
 0xa5a   : > { %16425 = vmatpush1.bf16.msra.mxu1 %v19746_v16  ;;  %v19819_v16 = vcombine.high %v14617_v2, %v14621_v21 }
 0xa5b   : > { %16426 = vmatprep.subr.bf16.mxu1 %v19739_v5  ;;  %v19690_v5 = vcombine.low %v14489_v62, %v14493_v53 }
 0xa5c   : > { %16386 = vmatpush1.bf16.msra.mxu0 %v19610_v3  ;;  %v14613_v3 = vld [vmem:[#allocation26 + $0x660] sm:$0xff] }
 0xa5d   : > { %16387 = vmatprep.subr.bf16.mxu0 %v19731_v47  ;;  %v19683_v47 = vcombine.high %v14481_v57, %v14485_v22 }
 0xa5e   : > { %16427 = vmatpush1.bf16.msra.mxu1 %v19738_v24  ;;  %v19818_v24 = vcombine.low %v14617_v2, %v14621_v21 }
 0xa5f   : > { %16428 = vmatprep.subr.bf16.mxu1 %v19859_v29  ;;  %v19811_v29 = vcombine.high %v14609_v59, %v14613_v3 }
 0xa60   : > { %16388 = vmatpush2.bf16.msra.mxu0 %v19730_v12  ;;  %v19682_v12 = vcombine.low %v14481_v57, %v14485_v22 }
 0xa61   : > { %16389 = vmatprep.subr.bf16.mxu0 %v19723_v18  ;;  %v19675_v18 = vcombine.high %v14473_v9, %v14477_v33  ;;  %v14462_v9 = vld [vmem:[#allocation26 + $0x1a8] sm:$0xff] }
 0xa62   : > { %16429 = vmatpush2.bf16.msra.mxu1 %v19858_v6  ;;  %v19810_v6 = vcombine.low %v14609_v59, %v14613_v3  ;;  %v14717_v59 = vld [vmem:[#allocation26 + $0x9a0] sm:$0xff] }
 0xa63   : > { %16430 = vmatprep.subr.bf16.mxu1 %v19851_v19  ;;  %v19923_v19 = vcombine.high %v25570_v54, %v25572_v11  ;;  %v14442_v54 = vld [vmem:[#allocation26 + $0x108] sm:$0xff] }
 0xa64   : > { %16390 = vmatpush2.bf16.msra.mxu0 %v19722_v1  ;;  %v19802_v1 = vcombine.low %v14601_v10, %v14605_v63  ;;  %v14705_v10 = vld [vmem:[#allocation26 + $0x940] sm:$0xff]  ;;  %v14446_v11 = vld [vmem:[#allocation26 + $0x128] sm:$0xff] }
 0xa65   : > { %16391 = vmatprep.subr.bf16.mxu0 %v19715_v28  ;;  %v14709_v63 = vld [vmem:[#allocation26 + $0x960] sm:$0xff] }
 0xa66   : > { %16431 = vmatpush2.bf16.msra.mxu1 %v19850_v51 }
 0xa67   : > { %16432 = vmatprep.subr.bf16.mxu1 %v19843_v40 }
 0xa68   : > { %16392 = vmatpush2.bf16.msra.mxu0 %v19714_v56 }
 0xa69   : > { %16393 = vmatprep.subr.bf16.mxu0 %v19707_v23  ;;  %v19479_v23 = vld [vmem:[#allocation22] ss:$0 sm:$0xff] }
 0xa6a   : > { %16433 = vmatpush2.bf16.msra.mxu1 %v19842_v42 }
 0xa6b   : > { %16434 = vmatprep.subr.bf16.mxu1 %v19835_v58 }
 0xa6c   : > { %16394 = vmatpush2.bf16.msra.mxu0 %v19706_v4 }
 0xa6d   : > { %16395 = vmatprep.subr.bf16.mxu0 %v19699_v14 }
 0xa6e   : > { %16435 = vmatpush2.bf16.msra.mxu1 %v19834_v52 }
 0xa6f   : > { %16436 = vmatprep.subr.bf16.mxu1 %v19827_v60 }
 0xa70   : > { %16396 = vmatpush2.bf16.msra.mxu0 %v19698_v36 }
 0xa71   : > { %16397 = vmatprep.subr.bf16.mxu0 %v19691_v0 }
 0xa72   : > { %16437 = vmatpush2.bf16.msra.mxu1 %v19826_v43 }
 0xa73   : > { %16438 = vmatprep.subr.bf16.mxu1 %v19819_v16 }
 0xa74   : > { %16398 = vmatpush2.bf16.msra.mxu0 %v19690_v5  ;;  %v14713_v5 = vld [vmem:[#allocation26 + $0x980] sm:$0xff] }
 0xa75   : > { %16399 = vmatprep.subr.bf16.mxu0 %v19683_v47 }
 0xa76   : > { %16439 = vmatpush2.bf16.msra.mxu1 %v19818_v24  ;;  %v14458_v24 = vld [vmem:[#allocation26 + $0x188] sm:$0xff] }
 0xa77   : > { %16440 = vmatprep.subr.bf16.mxu1 %v19811_v29  ;;  %v19915_v29 = vcombine.high %v14713_v5, %v14717_v59 }
 0xa78   : > { %16400 = vmatpush2.bf16.msra.mxu0 %v19682_v12 }
 0xa79   : > { %16401 = vmatprep.subr.bf16.mxu0 %v19675_v18 }
 0xa7a   : > { %16441 = vmatpush2.bf16.msra.mxu1 %v19810_v6  ;;  %v14450_v6 = vld [vmem:[#allocation26 + $0x148] sm:$0xff] }
 0xa7b   : > { %16442 = vmatprep.subr.bf16.mxu1 %v19803_v49  ;;  %v14454_v49 = vld [vmem:[#allocation26 + $0x168] sm:$0xff] }
 0xa7c   : > { %16402 = vmatpush2.bf16.msra.mxu0 %v19674_v17  ;;  %v19914_v17 = vcombine.low %v14713_v5, %v14717_v59  ;;  %v14422_v5 = vld [vmem:[#allocation26 + $0x68] sm:$0xff] }
 0xa7d   : > { %16453 = vmatprep.subr.bf16.mxu0 %v19923_v19  ;;  %v19907_v19 = vcombine.high %v14705_v10, %v14709_v63 }
 0xa7e   : > { %16443 = vmatpush2.bf16.msra.mxu1 %v19802_v1  ;;  %v19660_v1 = vcombine.low %v14458_v24, %v14462_v9 }
 0xa7f   : > { %16494 = vmatprep.subr.bf16.mxu1 %v19669_v37  ;;  %v14697_v37 = vld [vmem:[#allocation26 + $0x900] sm:$0xff] }
 0xa9f   : > { %v20019_v46 = vpop.f32.mrf.mxu0 }
 0xaa1   : > { %v20020_v28 = vpop.f32.mrf.mxu0  ;;  %v20041_v51 = vpop.f32.mrf.mxu1 }
 0xaa2   : > { %v20021_v45 = vadd.f32 %v20020_v28, %v20019_v46  ;;  %v14701_v46 = vld [vmem:[#allocation26 + $0x920] sm:$0xff]  ;;  %v19653_v28 = vcombine.high %v14450_v6, %v14454_v49 }
 0xaa3   : > { %v20022_v35 = vpop.f32.mrf.mxu0  ;;  %v20042_v27 = vpop.f32.mrf.mxu1 }
 0xaa4   : > { %v13503_v42 = vadd.f32 %v20021_v45, %v19479_v23  ;;  %v20043_v44 = vadd.f32 %v20042_v27, %v20041_v51  ;;  %v23016_v51 = vmov 0   ;;  %v19899_v35 = vcombine.high %v14697_v37, %v14701_v46 }
 0xaa5   : > { %v20023_v40 = vpop.f32.mrf.mxu0  ;;  %v20044_v56 = vpop.f32.mrf.mxu1  ;;  %v19652_v27 = vcombine.low %v14450_v6, %v14454_v49  ;;  %v19898_v45 = vcombine.low %v14697_v37, %v14701_v46  ;;  %v14530_v46 = vld [vmem:[#allocation26 + $0x3c8] sm:$0xff] }
 0xaa6   : > { %v13543_v15 = vadd.f32 %v20043_v44, %v13503_v42  ;;  %v19645_v40 = vcombine.high %v14442_v54, %v14446_v11  ;;  %v14434_v56 = vld [vmem:[#allocation26 + $0xc8] sm:$0xff]  ;;  %v19891_v44 = vcombine.high %v14689_v7, %v14693_v8 }
 0xaa7   : > { %v20045_v41 = vpop.f32.mrf.mxu1 }
 0xaa8   : > { %v14438_v41 = vld [vmem:[#allocation26 + $0xe8] sm:$0xff] }
 0xabf   : > { %v20063_v26 = vpop.f32.mrf.mxu0 }
 0xac1   : > { %v20064_v58 = vpop.f32.mrf.mxu0  ;;  %v20085_v4 = vpop.f32.mrf.mxu1 }
 0xac2   : > { %v20065_v61 = vadd.f32 %v20064_v58, %v20063_v26  ;;  %v19644_v26 = vcombine.low %v14442_v54, %v14446_v11  ;;  %v14681_v58 = vld [vmem:[#allocation26 + $0x880] sm:$0xff] }
 0xac3   : > { %v20066_v14 = vpop.f32.mrf.mxu0  ;;  %v20086_v52 = vpop.f32.mrf.mxu1 }
 0xac4   : > { %v13583_v62 = vadd.f32 %v20065_v61, %v13543_v15  ;;  %v20087_v53 = vadd.f32 %v20086_v52, %v20085_v4  ;;  %v14685_v4 = vld [vmem:[#allocation26 + $0x8a0] sm:$0xff]  ;;  %v19637_v14 = vcombine.high %v14434_v56, %v14438_v41  ;;  %v14426_v52 = vld [vmem:[#allocation26 + $0x88] sm:$0xff] }
 0xac5   : > { %v20067_v60 = vpop.f32.mrf.mxu0  ;;  %v20088_v36 = vpop.f32.mrf.mxu1  ;;  %v19882_v59 = vcombine.low %v14681_v58, %v14685_v4 }
 0xac6   : > { %v13623_v2 = vadd.f32 %v20087_v53, %v13583_v62  ;;  %v14430_v62 = vld [vmem:[#allocation26 + $0xa8] sm:$0xff]  ;;  %v19890_v53 = vcombine.low %v14689_v7, %v14693_v8 }
 0xac7   : > { %v20089_v21 = vpop.f32.mrf.mxu1  ;;  %v14526_v7 = vld [vmem:[#allocation26 + $0x3a8] sm:$0xff] }
 0xac8   : > { %14369 = vst [vmem:[#allocation4 + $0x6] sm:$0x3] %v13623_v2  ;;  %v19883_v2 = vcombine.high %v14681_v58, %v14685_v4  ;;  %v19636_v21 = vcombine.low %v14434_v56, %v14438_v41  ;;  %v14514_v56 = vld [vmem:[#allocation26 + $0x348] sm:$0xff] }
 0xac9   : > { %v14518_v41 = vld [vmem:[#allocation26 + $0x368] sm:$0xff] }
 0xaca   : > { %v19717_v58 = vcombine.high %v14514_v56, %v14518_v41  ;;  %v14506_v4 = vld [vmem:[#allocation26 + $0x308] sm:$0xff] }
 0xacf   : > { %v14371_v0 = vld [vmem:[#allocation4] sm:$0xff] }
 0xad0   : > { %v14382_v43 = vrot.slane %v14371_v0, %v24654_v32  ;;  %v14375_v57 = vcombine.high %v14371_v0, %v14371_v0  ;;  %v14673_v0 = vld [vmem:[#allocation26 + $0x840] sm:$0xff] }
 0xad2   : > { %v14390_v22 = vcombine.high %v14382_v43, %v14382_v43  ;;  %v14389_v16 = vrot.slane %v14375_v57, %v24654_v32  ;;  %v25584_v33 = vpack.c.bf16 %v14382_v43, %v14382_v43  ;;  %v19661_v32 = vcombine.high %v14458_v24, %v14462_v9  ;;  %v14677_v43 = vld [vmem:[#allocation26 + $0x860] sm:$0xff] }
 0xad3   : > { %v19628_v24 = vcombine.low %v14426_v52, %v14430_v62  ;;  %v14665_v9 = vld [vmem:[#allocation26 + $0x800] sm:$0xff]  ;;  %v19874_v6 = vcombine.low %v14673_v0, %v14677_v43 }
 0xad4   : > { %v25582_v3 = vpack.c.bf16 %v14390_v22, %v14390_v22  ;;  %v14391_v47 = vcombine.high %v14389_v16, %v14389_v16  ;;  %v25590_v18 = vpack.c.bf16 %v14389_v16, %v14389_v16  ;;  %v19629_v22 = vcombine.high %v14426_v52, %v14430_v62  ;;  %v14418_v16 = vld [vmem:[#allocation26 + $0x48] sm:$0xff] }
 0xad5   : > { %v19716_v62 = vcombine.low %v14514_v56, %v14518_v41  ;;  %v14726_v56 = vld [vmem:[#allocation26 + $0x9e8] sm:$0xff] }
 0xad6   : > { %16403 = vmatprep.mubr.bf16.mxu0 %v25582_v3  ;;  %v25587_v12 = vpack.c.bf16 %v14391_v47, %v14391_v47  ;;  %v19875_v47 = vcombine.high %v14673_v0, %v14677_v43  ;;  %v14578_v41 = vld [vmem:[#allocation26 + $0x548] sm:$0xff] }
 0xad7   : > { %16404 = vmatmul.mubr.bf16.vlgmr.msra.gmra.mxu0 %v25584_v33 }
 0xad8   : > { %16444 = vmatprep.mubr.bf16.mxu1 %v25587_v12  ;;  %16454 = vmatpush1.bf16.msra.mxu0 %v19922_v39  ;;  %v19906_v39 = vcombine.low %v14705_v10, %v14709_v63  ;;  %v19621_v10 = vcombine.high %v14418_v16, %v14422_v5  ;;  %v14410_v63 = vld [vmem:[#allocation26 + $0x8] sm:$0xff] }
 0xad9   : > { %16445 = vmatmul.mubr.bf16.vlgmr.msra.gmra.mxu1 %v25590_v18  ;;  %16455 = vmatprep.subr.bf16.mxu0 %v19915_v29  ;;  %v14669_v29 = vld [vmem:[#allocation26 + $0x820] sm:$0xff] }
 0xada   : > { %16495 = vmatpush1.bf16.msra.mxu1 %v19668_v50  ;;  %16526 = vmatprep.mubr.bf16.mxu1 %v25582_v3  ;;  %v19867_v49 = vcombine.high %v14665_v9, %v14669_v29  ;;  %v19866_v54 = vcombine.low %v14665_v9, %v14669_v29 }
 0xadb   : > { %16496 = vmatprep.subr.bf16.mxu1 %v19661_v32  ;;  %16485 = vmatprep.mubr.bf16.mxu0 %v23016_v51  ;;  %v14414_v32 = vld [vmem:[#allocation26 + $0x28] sm:$0xff] }
 0xadc   : > { %16456 = vmatpush1.bf16.msra.mxu0 %v19914_v17  ;;  %v19620_v17 = vcombine.low %v14418_v16, %v14422_v5  ;;  %v19613_v37 = vcombine.high %v14410_v63, %v14414_v32 }
 0xadd   : > { %16457 = vmatprep.subr.bf16.mxu0 %v19907_v19  ;;  %v25610_v19 = vld [vmem:[#allocation26 + $0x5c8] sm:$0xff] }
 0xade   : > { %16497 = vmatpush1.bf16.msra.mxu1 %v19660_v1  ;;  %v25612_v1 = vld [vmem:[#allocation26 + $0x5e8] sm:$0xff] }
 0xadf   : > { %v25602_v50 = vpop.f32.mrf.mxu0  ;;  %16498 = vmatprep.subr.bf16.mxu1 %v19653_v28  ;;  %v14534_v28 = vld [vmem:[#allocation26 + $0x3e8] sm:$0xff]  ;;  %v19797_v11 = vcombine.high %v25610_v19, %v25612_v1 }
 0xae0   : > { %16458 = vmatpush1.bf16.msra.mxu0 %v19906_v39  ;;  %v19612_v39 = vcombine.low %v14410_v63, %v14414_v32  ;;  %v19732_v8 = vcombine.low %v14530_v46, %v14534_v28  ;;  %v14482_v32 = vld [vmem:[#allocation26 + $0x248] sm:$0xff] }
 0xae1   : > { %v25604_v23 = vpop.f32.mrf.mxu0  ;;  %v25606_v42 = vpop.f32.mrf.mxu1  ;;  %16459 = vmatprep.subr.bf16.mxu0 %v19899_v35  ;;  %v19733_v35 = vcombine.high %v14530_v46, %v14534_v28  ;;  %v14478_v46 = vld [vmem:[#allocation26 + $0x228] sm:$0xff] }
 0xae2   : > { %16499 = vmatpush1.bf16.msra.mxu1 %v19652_v27  ;;  %v14522_v27 = vld [vmem:[#allocation26 + $0x388] sm:$0xff] }
 0xae3   : > { %v20110_v15 = vpop.f32.mrf.mxu0  ;;  %v25608_v61 = vpop.f32.mrf.mxu1  ;;  %16500 = vmatprep.subr.bf16.mxu1 %v19645_v40  ;;  %v19725_v40 = vcombine.high %v14522_v27, %v14526_v7  ;;  %v14586_v28 = vld [vmem:[#allocation26 + $0x588] sm:$0xff] }
 0xae4   : > { %16460 = vmatpush1.bf16.msra.mxu0 %v19898_v45  ;;  %v20109_v45 = vadd.f32 %v25604_v23, %v25602_v50  ;;  %v14510_v15 = vld [vmem:[#allocation26 + $0x328] sm:$0xff]  ;;  %v20131_v52 = vadd.f32 %v25608_v61, %v25606_v42 }
 0xae5   : > { %v20111_v60 = vpop.f32.mrf.mxu0  ;;  %v20132_v36 = vpop.f32.mrf.mxu1  ;;  %16461 = vmatprep.subr.bf16.mxu0 %v19891_v44  ;;  %v19724_v44 = vcombine.low %v14522_v27, %v14526_v7  ;;  %v19708_v43 = vcombine.low %v14506_v4, %v14510_v15  ;;  %v14490_v42 = vld [vmem:[#allocation26 + $0x288] sm:$0xff] }
 0xae6   : > { %16501 = vmatpush1.bf16.msra.mxu1 %v19644_v26  ;;  %v19544_v26 = vld [vmem:[#allocation25] ss:$0 sm:$0xff]  ;;  %v19709_v60 = vcombine.high %v14506_v4, %v14510_v15  ;;  %v14498_v36 = vld [vmem:[#allocation26 + $0x2c8] sm:$0xff] }
 0xae7   : > { %v20133_v57 = vpop.f32.mrf.mxu1  ;;  %16502 = vmatprep.subr.bf16.mxu1 %v19637_v14  ;;  %v14234_v14 = vadd.f32 %v20109_v45, %v19544_v26  ;;  %v14494_v61 = vld [vmem:[#allocation26 + $0x2a8] sm:$0xff] }
 0xae8   : > { %16462 = vmatpush1.bf16.msra.mxu0 %v19890_v53  ;;  %v19693_v63 = vcombine.high %v14490_v42, %v14494_v61  ;;  %v14582_v45 = vld [vmem:[#allocation26 + $0x568] sm:$0xff] }
 0xae9   : > { %16463 = vmatprep.subr.bf16.mxu0 %v19883_v2  ;;  %v14502_v2 = vld [vmem:[#allocation26 + $0x2e8] sm:$0xff]  ;;  %v14274_v23 = vadd.f32 %v20131_v52, %v14234_v14 }
 0xaea   : > { %16503 = vmatpush1.bf16.msra.mxu1 %v19636_v21  ;;  %v19701_v16 = vcombine.high %v14498_v36, %v14502_v2  ;;  %v19700_v29 = vcombine.low %v14498_v36, %v14502_v2  ;;  %v14718_v4 = vld [vmem:[#allocation26 + $0x9a8] sm:$0xff] }
 0xaeb   : > { %16504 = vmatprep.subr.bf16.mxu1 %v19629_v22  ;;  %v14570_v15 = vld [vmem:[#allocation26 + $0x508] sm:$0xff] }
 0xaec   : > { %16464 = vmatpush1.bf16.msra.mxu0 %v19882_v59  ;;  %v14574_v14 = vld [vmem:[#allocation26 + $0x528] sm:$0xff] }
 0xaed   : > { %16465 = vmatprep.subr.bf16.mxu0 %v19875_v47  ;;  %v14706_v36 = vld [vmem:[#allocation26 + $0x948] sm:$0xff] }
 0xaee   : > { %16505 = vmatpush1.bf16.msra.mxu1 %v19628_v24  ;;  %v14710_v2 = vld [vmem:[#allocation26 + $0x968] sm:$0xff] }
 0xaef   : > { %16506 = vmatprep.subr.bf16.mxu1 %v19621_v10 }
 0xaf0   : > { %16466 = vmatpush1.bf16.msra.mxu0 %v19874_v6  ;;  %v14486_v6 = vld [vmem:[#allocation26 + $0x268] sm:$0xff] }
 0xaf1   : > { %16467 = vmatprep.subr.bf16.mxu0 %v19867_v49  ;;  %v19692_v49 = vcombine.low %v14490_v42, %v14494_v61  ;;  %v19908_v42 = vcombine.low %v14706_v36, %v14710_v2 }
 0xaf2   : > { %16507 = vmatpush1.bf16.msra.mxu1 %v19620_v17  ;;  %v19685_v17 = vcombine.high %v14482_v32, %v14486_v6 }
 0xaf3   : > { %16508 = vmatprep.subr.bf16.mxu1 %v19613_v37  ;;  %v14474_v37 = vld [vmem:[#allocation26 + $0x208] sm:$0xff] }
 0xaf4   : > { %16468 = vmatpush1.bf16.msra.mxu0 %v19866_v54  ;;  %v14590_v54 = vld [vmem:[#allocation26 + $0x5a8] sm:$0xff]  ;;  %v19677_v7 = vcombine.high %v14474_v37, %v14478_v46 }
 0xaf5   : > { %16535 = vmatprep.subr.bf16.mxu0 %v19797_v11  ;;  %v19684_v11 = vcombine.low %v14482_v32, %v14486_v6  ;;  %v19788_v26 = vcombine.low %v14586_v28, %v14590_v54 }
 0xaf6   : > { %16509 = vmatpush1.bf16.msra.mxu1 %v19612_v39  ;;  %v19796_v39 = vcombine.low %v25610_v19, %v25612_v1  ;;  %v19781_v19 = vcombine.high %v14578_v41, %v14582_v45  ;;  %v14714_v1 = vld [vmem:[#allocation26 + $0x988] sm:$0xff] }
 0xaf7   : > { %16510 = vmatprep.subr.bf16.mxu1 %v19733_v35 }
 0xafa   : > { %16511 = vmatpush2.bf16.msra.mxu1 %v19732_v8  ;;  %v19789_v8 = vcombine.high %v14586_v28, %v14590_v54  ;;  %v14538_v28 = vld [vmem:[#allocation26 + $0x408] sm:$0xff] }
 0xafb   : > { %16512 = vmatprep.subr.bf16.mxu1 %v19725_v40  ;;  %v14722_v40 = vld [vmem:[#allocation26 + $0x9c8] sm:$0xff] }
 0xafc   : > { %v19924_v52 = vcombine.low %v14722_v40, %v14726_v56  ;;  %v14542_v54 = vld [vmem:[#allocation26 + $0x428] sm:$0xff] }
 0xafe   : > { %16513 = vmatpush2.bf16.msra.mxu1 %v19724_v44  ;;  %v19676_v44 = vcombine.low %v14474_v37, %v14478_v46  ;;  %v14682_v37 = vld [vmem:[#allocation26 + $0x888] sm:$0xff] }
 0xaff   : > { %v20151_v53 = vpop.f32.mrf.mxu0  ;;  %16514 = vmatprep.subr.bf16.mxu1 %v19717_v58  ;;  %v19925_v58 = vcombine.high %v14722_v40, %v14726_v56  ;;  %v14686_v46 = vld [vmem:[#allocation26 + $0x8a8] sm:$0xff] }
 0xb00   : > { %v14678_v40 = vld [vmem:[#allocation26 + $0x868] sm:$0xff] }
 0xb01   : > { %v20152_v21 = vpop.f32.mrf.mxu0  ;;  %v20173_v50 = vpop.f32.mrf.mxu1  ;;  %v14658_v56 = vld [vmem:[#allocation26 + $0x7c8] sm:$0xff] }
 0xb02   : > { %v20153_v0 = vadd.f32 %v20152_v21, %v20151_v53  ;;  %16515 = vmatpush2.bf16.msra.mxu1 %v19716_v62  ;;  %v19780_v62 = vcombine.low %v14578_v41, %v14582_v45  ;;  %v19917_v53 = vcombine.high %v14714_v1, %v14718_v4  ;;  %v14562_v21 = vld [vmem:[#allocation26 + $0x4c8] sm:$0xff]  ;;  %v19884_v45 = vcombine.low %v14682_v37, %v14686_v46 }
 0xb03   : > { %v20154_v57 = vpop.f32.mrf.mxu0  ;;  %v20174_v22 = vpop.f32.mrf.mxu1  ;;  %16516 = vmatprep.subr.bf16.mxu1 %v19709_v60  ;;  %v19773_v60 = vcombine.high %v14570_v15, %v14574_v14  ;;  %v14662_v41 = vld [vmem:[#allocation26 + $0x7e8] sm:$0xff] }
 0xb04   : > { %v14314_v5 = vadd.f32 %v20153_v0, %v14274_v23  ;;  %v20175_v59 = vadd.f32 %v20174_v22, %v20173_v50  ;;  %v14566_v50 = vld [vmem:[#allocation26 + $0x4e8] sm:$0xff]  ;;  %v19916_v23 = vcombine.low %v14714_v1, %v14718_v4  ;;  %v19772_v0 = vcombine.low %v14570_v15, %v14574_v14 }
 0xb05   : > { %v20155_v47 = vpop.f32.mrf.mxu0  ;;  %v20176_v24 = vpop.f32.mrf.mxu1  ;;  %v19765_v57 = vcombine.high %v14562_v21, %v14566_v50  ;;  %v14698_v22 = vld [vmem:[#allocation26 + $0x908] sm:$0xff]  ;;  %v19764_v61 = vcombine.low %v14562_v21, %v14566_v50 }
 0xb06   : > { %v14354_v9 = vadd.f32 %v20175_v59, %v14314_v5  ;;  %16517 = vmatpush2.bf16.msra.mxu1 %v19708_v43  ;;  %v19909_v43 = vcombine.high %v14706_v36, %v14710_v2  ;;  %v14554_v5 = vld [vmem:[#allocation26 + $0x488] sm:$0xff]  ;;  %v14599_v36 = vld [vmem:[#allocation26 + $0x5f0] sm:$0xff] }
 0xb07   : > { %v20177_v10 = vpop.f32.mrf.mxu1  ;;  %16518 = vmatprep.subr.bf16.mxu1 %v19701_v16  ;;  %v14702_v16 = vld [vmem:[#allocation26 + $0x928] sm:$0xff] }
 0xb08   : > { %14370 = vst [vmem:[#allocation4 + $0x8] sm:$0x3] %v14354_v9  ;;  %v14558_v59 = vld [vmem:[#allocation26 + $0x4a8] sm:$0xff]  ;;  %v19901_v47 = vcombine.high %v14698_v22, %v14702_v16  ;;  %v19900_v32 = vcombine.low %v14698_v22, %v14702_v16  ;;  %v14591_v22 = vld [vmem:[#allocation26 + $0x5b0] sm:$0xff] }
 0xb09   : > { %v19757_v24 = vcombine.high %v14554_v5, %v14558_v59  ;;  %v14690_v9 = vld [vmem:[#allocation26 + $0x8c8] sm:$0xff]  ;;  %v19756_v6 = vcombine.low %v14554_v5, %v14558_v59 }
 0xb0a   : > { %16519 = vmatpush2.bf16.msra.mxu1 %v19700_v29  ;;  %v14694_v29 = vld [vmem:[#allocation26 + $0x8e8] sm:$0xff] }
 0xb0b   : > { %16520 = vmatprep.subr.bf16.mxu1 %v19693_v63  ;;  %v14546_v10 = vld [vmem:[#allocation26 + $0x448] sm:$0xff] }
 0xb0c   : > { %v14550_v63 = vld [vmem:[#allocation26 + $0x468] sm:$0xff] }
 0xb0d   : > { %v14670_v1 = vld [vmem:[#allocation26 + $0x828] sm:$0xff] }
 0xb0e   : > { %16521 = vmatpush2.bf16.msra.mxu1 %v19692_v49  ;;  %v19893_v49 = vcombine.high %v14690_v9, %v14694_v29  ;;  %v14650_v4 = vld [vmem:[#allocation26 + $0x788] sm:$0xff] }
 0xb0f   : > { %16522 = vmatprep.subr.bf16.mxu1 %v19685_v17  ;;  %v19609_v35 = vld.sshfl [vmem:[#allocation4 + $0x8] sm:$0x3 pattern:$0x76325410]  ;;  %v19749_v17 = vcombine.high %v14546_v10, %v14550_v63 }
 0xb10   : > { %v25622_v27 = vpack.c.bf16 %v19609_v35, %v19609_v35  ;;  %v19885_v35 = vcombine.high %v14682_v37, %v14686_v46  ;;  %v14654_v15 = vld [vmem:[#allocation26 + $0x7a8] sm:$0xff]  ;;  %v14575_v37 = vld [vmem:[#allocation26 + $0x530] sm:$0xff] }
 0xb11   : > { %v14642_v2 = vld [vmem:[#allocation26 + $0x748] sm:$0xff] }
 0xb12   : > { %16523 = vmatpush2.bf16.msra.mxu1 %v19684_v11  ;;  %16486 = vmatmul.mubr.bf16.vlgmr.msra.gmra.mxu0 %v25622_v27  ;;  %v19892_v11 = vcombine.low %v14690_v9, %v14694_v29  ;;  %v14646_v21 = vld [vmem:[#allocation26 + $0x768] sm:$0xff]  ;;  %v14583_v9 = vld [vmem:[#allocation26 + $0x570] sm:$0xff] }
 0xb13   : > { %16536 = vmatpush1.bf16.msra.mxu0 %v19796_v39  ;;  %16567 = vmatprep.mubr.bf16.mxu0 %v25587_v12  ;;  %v19748_v39 = vcombine.low %v14546_v10, %v14550_v63  ;;  %v14634_v16 = vld [vmem:[#allocation26 + $0x708] sm:$0xff] }
 0xb14   : > { %16524 = vmatprep.subr.bf16.mxu1 %v19677_v7  ;;  %16537 = vmatprep.subr.bf16.mxu0 %v19789_v8  ;;  %v19741_v7 = vcombine.high %v14538_v28, %v14542_v54  ;;  %v14674_v8 = vld [vmem:[#allocation26 + $0x848] sm:$0xff] }
 0xb15   : > { %v19876_v14 = vcombine.low %v14674_v8, %v14678_v40  ;;  %v14638_v5 = vld [vmem:[#allocation26 + $0x728] sm:$0xff] }
 0xb16   : > { %16525 = vmatpush2.bf16.msra.mxu1 %v19676_v44  ;;  %v19740_v44 = vcombine.low %v14538_v28, %v14542_v54  ;;  %v14626_v29 = vld [vmem:[#allocation26 + $0x6c8] sm:$0xff] }
 0xb17   : > { %16538 = vmatpush1.bf16.msra.mxu0 %v19788_v26  ;;  %16576 = vmatprep.subr.bf16.mxu1 %v19925_v58  ;;  %v19877_v26 = vcombine.high %v14674_v8, %v14678_v40  ;;  %v19861_v58 = vcombine.high %v14658_v56, %v14662_v41  ;;  %v14630_v10 = vld [vmem:[#allocation26 + $0x6e8] sm:$0xff]  ;;  %v14567_v8 = vld [vmem:[#allocation26 + $0x4f0] sm:$0xff] }
 0xb18   : > { %16539 = vmatprep.subr.bf16.mxu0 %v19781_v19  ;;  %v14666_v19 = vld [vmem:[#allocation26 + $0x808] sm:$0xff] }
 0xb19   : > { %16527 = vmatmul.mubr.bf16.vlgmr.msra.gmra.mxu1 %v25584_v33  ;;  %v19868_v50 = vcombine.low %v14666_v19, %v14670_v1  ;;  %v14618_v46 = vld [vmem:[#allocation26 + $0x688] sm:$0xff] }
 0xb1a   : > { %16577 = vmatpush1.bf16.msra.mxu1 %v19924_v52  ;;  %16608 = vmatprep.mubr.bf16.mxu1 %v23016_v51  ;;  %v19860_v52 = vcombine.low %v14658_v56, %v14662_v41  ;;  %v14622_v28 = vld [vmem:[#allocation26 + $0x6a8] sm:$0xff] }
 0xb1b   : > { %16540 = vmatpush1.bf16.msra.mxu0 %v19780_v62  ;;  %16578 = vmatprep.subr.bf16.mxu1 %v19917_v53  ;;  %v19869_v62 = vcombine.high %v14666_v19, %v14670_v1  ;;  %v19853_v53 = vcombine.high %v14650_v4, %v14654_v15  ;;  %v14610_v40 = vld [vmem:[#allocation26 + $0x648] sm:$0xff]  ;;  %v14559_v19 = vld [vmem:[#allocation26 + $0x4b0] sm:$0xff] }
 0xb1c   : > { %16541 = vmatprep.subr.bf16.mxu0 %v19773_v60  ;;  %v14595_v60 = vld [vmem:[#allocation26 + $0x5d0] sm:$0xff]  ;;  %v14614_v56 = vld [vmem:[#allocation26 + $0x668] sm:$0xff] }
 0xb1d   : > { %v19798_v59 = vcombine.low %v14595_v60, %v14599_v36  ;;  %v14602_v1 = vld [vmem:[#allocation26 + $0x608] sm:$0xff] }
 0xb1e   : > { %16579 = vmatpush1.bf16.msra.mxu1 %v19916_v23  ;;  %v19852_v23 = vcombine.low %v14650_v4, %v14654_v15  ;;  %v14606_v4 = vld [vmem:[#allocation26 + $0x628] sm:$0xff] }
 0xb1f   : > { %16542 = vmatpush1.bf16.msra.mxu0 %v19772_v0  ;;  %16580 = vmatprep.subr.bf16.mxu1 %v19909_v43  ;;  %v19799_v0 = vcombine.high %v14595_v60, %v14599_v36  ;;  %v19845_v43 = vcombine.high %v14642_v2, %v14646_v21  ;;  %v14551_v60 = vld [vmem:[#allocation26 + $0x470] sm:$0xff] }
 0xb20   : > { %16543 = vmatprep.subr.bf16.mxu0 %v19765_v57  ;;  %v14587_v57 = vld [vmem:[#allocation26 + $0x590] sm:$0xff] }
 0xb21   : > { %v19790_v63 = vcombine.low %v14587_v57, %v14591_v22  ;;  %v14467_v36 = vld [vmem:[#allocation26 + $0x1d0] sm:$0xff] }
 0xb22   : > { %16581 = vmatpush1.bf16.msra.mxu1 %v19908_v42  ;;  %v19844_v42 = vcombine.low %v14642_v2, %v14646_v21  ;;  %v14471_v2 = vld [vmem:[#allocation26 + $0x1f0] sm:$0xff] }
 0xb23   : > { %16544 = vmatpush1.bf16.msra.mxu0 %v19764_v61  ;;  %16582 = vmatprep.subr.bf16.mxu1 %v19901_v47  ;;  %v19791_v61 = vcombine.high %v14587_v57, %v14591_v22  ;;  %v19837_v47 = vcombine.high %v14634_v16, %v14638_v5  ;;  %v14543_v57 = vld [vmem:[#allocation26 + $0x430] sm:$0xff] }
 0xb24   : > { %16545 = vmatprep.subr.bf16.mxu0 %v19757_v24  ;;  %v14579_v24 = vld [vmem:[#allocation26 + $0x550] sm:$0xff] }
 0xb25   : > { %v19782_v54 = vcombine.low %v14579_v24, %v14583_v9  ;;  %v14459_v22 = vld [vmem:[#allocation26 + $0x190] sm:$0xff] }
 0xb26   : > { %16583 = vmatpush1.bf16.msra.mxu1 %v19900_v32  ;;  %v19836_v32 = vcombine.low %v14634_v16, %v14638_v5  ;;  %v14463_v16 = vld [vmem:[#allocation26 + $0x1b0] sm:$0xff] }
 0xb27   : > { %16546 = vmatpush1.bf16.msra.mxu0 %v19756_v6  ;;  %16584 = vmatprep.subr.bf16.mxu1 %v19893_v49  ;;  %v19783_v6 = vcombine.high %v14579_v24, %v14583_v9  ;;  %v19829_v49 = vcombine.high %v14626_v29, %v14630_v10  ;;  %v14663_v24 = vld [vmem:[#allocation26 + $0x7f0] sm:$0xff] }
 0xb28   : > { %16547 = vmatprep.subr.bf16.mxu0 %v19749_v17  ;;  %v14571_v17 = vld [vmem:[#allocation26 + $0x510] sm:$0xff] }
 0xb29   : > { %v19774_v41 = vcombine.low %v14571_v17, %v14575_v37  ;;  %v14451_v9 = vld [vmem:[#allocation26 + $0x150] sm:$0xff] }
 0xb2a   : > { %16585 = vmatpush1.bf16.msra.mxu1 %v19892_v11  ;;  %v19828_v11 = vcombine.low %v14626_v29, %v14630_v10  ;;  %v14455_v29 = vld [vmem:[#allocation26 + $0x170] sm:$0xff] }
 0xb2b   : > { %16548 = vmatpush1.bf16.msra.mxu0 %v19748_v39  ;;  %16586 = vmatprep.subr.bf16.mxu1 %v19885_v35  ;;  %v19775_v39 = vcombine.high %v14571_v17, %v14575_v37  ;;  %v19821_v35 = vcombine.high %v14618_v46, %v14622_v28  ;;  %v14655_v17 = vld [vmem:[#allocation26 + $0x7b0] sm:$0xff] }
 0xb2c   : > { %16549 = vmatprep.subr.bf16.mxu0 %v19741_v7  ;;  %v14563_v7 = vld [vmem:[#allocation26 + $0x4d0] sm:$0xff] }
 0xb2d   : > { %v19766_v15 = vcombine.low %v14563_v7, %v14567_v8  ;;  %v14443_v37 = vld [vmem:[#allocation26 + $0x110] sm:$0xff] }
 0xb2e   : > { %16587 = vmatpush1.bf16.msra.mxu1 %v19884_v45  ;;  %v19820_v45 = vcombine.low %v14618_v46, %v14622_v28  ;;  %v14447_v46 = vld [vmem:[#allocation26 + $0x130] sm:$0xff] }
 0xb2f   : > { %16550 = vmatpush1.bf16.msra.mxu0 %v19740_v44  ;;  %16588 = vmatprep.subr.bf16.mxu1 %v19877_v26  ;;  %v19767_v44 = vcombine.high %v14563_v7, %v14567_v8  ;;  %v19813_v26 = vcombine.high %v14610_v40, %v14614_v56  ;;  %v14647_v7 = vld [vmem:[#allocation26 + $0x770] sm:$0xff] }
 0xb30   : > { %16551 = vmatprep.subr.bf16.mxu0 %v19861_v58  ;;  %v14555_v58 = vld [vmem:[#allocation26 + $0x490] sm:$0xff] }
 0xb31   : > { %v19758_v21 = vcombine.low %v14555_v58, %v14559_v19  ;;  %v14435_v8 = vld [vmem:[#allocation26 + $0xd0] sm:$0xff] }
 0xb32   : > { %16589 = vmatpush1.bf16.msra.mxu1 %v19876_v14  ;;  %v19812_v14 = vcombine.low %v14610_v40, %v14614_v56  ;;  %v14439_v40 = vld [vmem:[#allocation26 + $0xf0] sm:$0xff] }
 0xb33   : > { %16552 = vmatpush2.bf16.msra.mxu0 %v19860_v52  ;;  %16590 = vmatprep.subr.bf16.mxu1 %v19869_v62  ;;  %v19759_v52 = vcombine.high %v14555_v58, %v14559_v19  ;;  %v19805_v62 = vcombine.high %v14602_v1, %v14606_v4  ;;  %v14639_v58 = vld [vmem:[#allocation26 + $0x730] sm:$0xff] }
 0xb34   : > { %16553 = vmatprep.subr.bf16.mxu0 %v19853_v53  ;;  %v14547_v53 = vld [vmem:[#allocation26 + $0x450] sm:$0xff] }
 0xb35   : > { %v19750_v5 = vcombine.low %v14547_v53, %v14551_v60  ;;  %v14427_v19 = vld [vmem:[#allocation26 + $0x90] sm:$0xff] }
 0xb36   : > { %16591 = vmatpush1.bf16.msra.mxu1 %v19868_v50  ;;  %v19804_v50 = vcombine.low %v14602_v1, %v14606_v4  ;;  %v14431_v1 = vld [vmem:[#allocation26 + $0xb0] sm:$0xff] }
 0xb37   : > { %16554 = vmatpush2.bf16.msra.mxu0 %v19852_v23  ;;  %16658 = vmatprep.subr.bf16.mxu1 %v19799_v0  ;;  %v19751_v23 = vcombine.high %v14547_v53, %v14551_v60  ;;  %v19671_v0 = vcombine.high %v14467_v36, %v14471_v2  ;;  %v14631_v53 = vld [vmem:[#allocation26 + $0x6f0] sm:$0xff] }
 0xb38   : > { %16555 = vmatprep.subr.bf16.mxu0 %v19845_v43  ;;  %v14539_v43 = vld [vmem:[#allocation26 + $0x410] sm:$0xff] }
 0xb39   : > { %16609 = vmatmul.mubr.bf16.vlgmr.msra.gmra.mxu1 %v25622_v27  ;;  %v19742_v10 = vcombine.low %v14539_v43, %v14543_v57  ;;  %v14419_v60 = vld [vmem:[#allocation26 + $0x50] sm:$0xff] }
 0xb3a   : > { %16659 = vmatpush1.bf16.msra.mxu1 %v19798_v59  ;;  %16690 = vmatprep.mubr.bf16.mxu1 %v25587_v12  ;;  %v19670_v59 = vcombine.low %v14467_v36, %v14471_v2  ;;  %v14423_v36 = vld [vmem:[#allocation26 + $0x70] sm:$0xff] }
 0xb3b   : > { %16556 = vmatpush2.bf16.msra.mxu0 %v19844_v42  ;;  %16660 = vmatprep.subr.bf16.mxu1 %v19791_v61  ;;  %v19743_v42 = vcombine.high %v14539_v43, %v14543_v57  ;;  %v19663_v61 = vcombine.high %v14459_v22, %v14463_v16  ;;  %v14623_v43 = vld [vmem:[#allocation26 + $0x6b0] sm:$0xff] }
 0xb3c   : > { %16557 = vmatprep.subr.bf16.mxu0 %v19837_v47  ;;  %v14659_v47 = vld [vmem:[#allocation26 + $0x7d0] sm:$0xff] }
 0xb3d   : > { %v19862_v28 = vcombine.low %v14659_v47, %v14663_v24  ;;  %v14411_v57 = vld [vmem:[#allocation26 + $0x10] sm:$0xff] }
 0xb3e   : > { %16661 = vmatpush1.bf16.msra.mxu1 %v19790_v63  ;;  %v19662_v63 = vcombine.low %v14459_v22, %v14463_v16  ;;  %v14415_v22 = vld [vmem:[#allocation26 + $0x30] sm:$0xff] }
 0xb3f   : > { %16558 = vmatpush2.bf16.msra.mxu0 %v19836_v32  ;;  %16662 = vmatprep.subr.bf16.mxu1 %v19783_v6  ;;  %v19863_v32 = vcombine.high %v14659_v47, %v14663_v24  ;;  %v19655_v6 = vcombine.high %v14451_v9, %v14455_v29  ;;  %v14615_v47 = vld [vmem:[#allocation26 + $0x670] sm:$0xff] }
 0xb40   : > { %16559 = vmatprep.subr.bf16.mxu0 %v19829_v49  ;;  %v14651_v49 = vld [vmem:[#allocation26 + $0x790] sm:$0xff] }
 0xb41   : > { %v19854_v56 = vcombine.low %v14651_v49, %v14655_v17  ;;  %v14531_v24 = vld [vmem:[#allocation26 + $0x3d0] sm:$0xff] }
 0xb42   : > { %16663 = vmatpush1.bf16.msra.mxu1 %v19782_v54  ;;  %v19654_v54 = vcombine.low %v14451_v9, %v14455_v29  ;;  %v14535_v9 = vld [vmem:[#allocation26 + $0x3f0] sm:$0xff] }
 0xb43   : > { %16560 = vmatpush2.bf16.msra.mxu0 %v19828_v11  ;;  %16664 = vmatprep.subr.bf16.mxu1 %v19775_v39  ;;  %v19855_v11 = vcombine.high %v14651_v49, %v14655_v17  ;;  %v19647_v39 = vcombine.high %v14443_v37, %v14447_v46  ;;  %v14607_v49 = vld [vmem:[#allocation26 + $0x630] sm:$0xff] }
 0xb44   : > { %16561 = vmatprep.subr.bf16.mxu0 %v19821_v35  ;;  %v14643_v35 = vld [vmem:[#allocation26 + $0x750] sm:$0xff] }
 0xb45   : > { %v19846_v4 = vcombine.low %v14643_v35, %v14647_v7  ;;  %v14523_v17 = vld [vmem:[#allocation26 + $0x390] sm:$0xff] }
 0xb46   : > { %16665 = vmatpush1.bf16.msra.mxu1 %v19774_v41  ;;  %v19646_v41 = vcombine.low %v14443_v37, %v14447_v46  ;;  %v14527_v37 = vld [vmem:[#allocation26 + $0x3b0] sm:$0xff] }
 0xb47   : > { %16562 = vmatpush2.bf16.msra.mxu0 %v19820_v45  ;;  %16666 = vmatprep.subr.bf16.mxu1 %v19767_v44  ;;  %v19847_v45 = vcombine.high %v14643_v35, %v14647_v7  ;;  %v19639_v44 = vcombine.high %v14435_v8, %v14439_v40  ;;  %v14472_v35 = vld [vmem:[#allocation26 + $0x1f8] sm:$0xff]  ;;  %v14515_v7 = vld [vmem:[#allocation26 + $0x350] sm:$0xff] }
 0xb48   : > { %16563 = vmatprep.subr.bf16.mxu0 %v19813_v26  ;;  %v14635_v26 = vld [vmem:[#allocation26 + $0x710] sm:$0xff] }
 0xb49   : > { %v19838_v2 = vcombine.low %v14635_v26, %v14639_v58 }
 0xb4a   : > { %16667 = vmatpush1.bf16.msra.mxu1 %v19766_v15  ;;  %v19638_v15 = vcombine.low %v14435_v8, %v14439_v40  ;;  %v14519_v8 = vld [vmem:[#allocation26 + $0x370] sm:$0xff] }
 0xb4b   : > { %16564 = vmatpush2.bf16.msra.mxu0 %v19812_v14  ;;  %16668 = vmatprep.subr.bf16.mxu1 %v19759_v52  ;;  %v19839_v14 = vcombine.high %v14635_v26, %v14639_v58  ;;  %v19631_v52 = vcombine.high %v14427_v19, %v14431_v1  ;;  %v14464_v26 = vld [vmem:[#allocation26 + $0x1b8] sm:$0xff]  ;;  %v14507_v58 = vld [vmem:[#allocation26 + $0x310] sm:$0xff] }
 0xb4c   : > { %16565 = vmatprep.subr.bf16.mxu0 %v19805_v62  ;;  %v14627_v62 = vld [vmem:[#allocation26 + $0x6d0] sm:$0xff] }
 0xb4d   : > { %v19830_v16 = vcombine.low %v14627_v62, %v14631_v53 }
 0xb4e   : > { %16669 = vmatpush1.bf16.msra.mxu1 %v19758_v21  ;;  %v19630_v21 = vcombine.low %v14427_v19, %v14431_v1  ;;  %v14511_v19 = vld [vmem:[#allocation26 + $0x330] sm:$0xff] }
 0xb4f   : > { %16566 = vmatpush2.bf16.msra.mxu0 %v19804_v50  ;;  %16670 = vmatprep.subr.bf16.mxu1 %v19751_v23  ;;  %v19831_v50 = vcombine.high %v14627_v62, %v14631_v53  ;;  %v19623_v23 = vcombine.high %v14419_v60, %v14423_v36  ;;  %v14456_v62 = vld [vmem:[#allocation26 + $0x178] sm:$0xff]  ;;  %v14499_v53 = vld [vmem:[#allocation26 + $0x2d0] sm:$0xff] }
 0xb50   : > { %16617 = vmatprep.subr.bf16.mxu0 %v19671_v0  ;;  %v14619_v0 = vld [vmem:[#allocation26 + $0x690] sm:$0xff] }
 0xb51   : > { %v19822_v29 = vcombine.low %v14619_v0, %v14623_v43 }
 0xb52   : > { %16568 = vmatmul.mubr.bf16.vlgmr.msra.gmra.mxu0 %v25590_v18  ;;  %16671 = vmatpush1.bf16.msra.mxu1 %v19750_v5  ;;  %v19622_v5 = vcombine.low %v14419_v60, %v14423_v36  ;;  %v14503_v60 = vld [vmem:[#allocation26 + $0x2f0] sm:$0xff] }
 0xb53   : > { %16618 = vmatpush1.bf16.msra.mxu0 %v19670_v59  ;;  %16649 = vmatprep.mubr.bf16.mxu0 %v25582_v3  ;;  %v19823_v59 = vcombine.high %v14619_v0, %v14623_v43  ;;  %v14448_v0 = vld [vmem:[#allocation26 + $0x138] sm:$0xff]  ;;  %v14491_v43 = vld [vmem:[#allocation26 + $0x290] sm:$0xff] }
 0xb54   : > { %16672 = vmatprep.subr.bf16.mxu1 %v19743_v42  ;;  %16619 = vmatprep.subr.bf16.mxu0 %v19663_v61  ;;  %v19615_v42 = vcombine.high %v14411_v57, %v14415_v22  ;;  %v14611_v61 = vld [vmem:[#allocation26 + $0x650] sm:$0xff] }
 0xb55   : > { %v19814_v46 = vcombine.low %v14611_v61, %v14615_v47 }
 0xb56   : > { %16673 = vmatpush1.bf16.msra.mxu1 %v19742_v10  ;;  %v19614_v10 = vcombine.low %v14411_v57, %v14415_v22  ;;  %v14495_v57 = vld [vmem:[#allocation26 + $0x2b0] sm:$0xff] }
 0xb57   : > { %16620 = vmatpush1.bf16.msra.mxu0 %v19662_v63  ;;  %16674 = vmatprep.subr.bf16.mxu1 %v19863_v32  ;;  %v19815_v63 = vcombine.high %v14611_v61, %v14615_v47  ;;  %v19735_v32 = vcombine.high %v14531_v24, %v14535_v9  ;;  %v14483_v61 = vld [vmem:[#allocation26 + $0x250] sm:$0xff] }
 0xb58   : > { %16621 = vmatprep.subr.bf16.mxu0 %v19655_v6  ;;  %v14603_v6 = vld [vmem:[#allocation26 + $0x610] sm:$0xff] }
 0xb59   : > { %v19806_v40 = vcombine.low %v14603_v6, %v14607_v49  ;;  %v14487_v47 = vld [vmem:[#allocation26 + $0x270] sm:$0xff] }
 0xb5a   : > { %16675 = vmatpush2.bf16.msra.mxu1 %v19862_v28  ;;  %v19734_v28 = vcombine.low %v14531_v24, %v14535_v9  ;;  %v19694_v9 = vcombine.low %v14491_v43, %v14495_v57 }
 0xb5b   : > { %16622 = vmatpush1.bf16.msra.mxu0 %v19654_v54  ;;  %16676 = vmatprep.subr.bf16.mxu1 %v19855_v11  ;;  %v19807_v54 = vcombine.high %v14603_v6, %v14607_v49  ;;  %v19727_v11 = vcombine.high %v14523_v17, %v14527_v37  ;;  %v14475_v6 = vld [vmem:[#allocation26 + $0x210] sm:$0xff] }
 0xb5c   : > { %16623 = vmatprep.subr.bf16.mxu0 %v19647_v39  ;;  %v14468_v39 = vld [vmem:[#allocation26 + $0x1d8] sm:$0xff]  ;;  %v14479_v49 = vld [vmem:[#allocation26 + $0x230] sm:$0xff] }
 0xb5d   : > { %v19672_v1 = vcombine.low %v14468_v39, %v14472_v35 }
 0xb5e   : > { %16677 = vmatpush2.bf16.msra.mxu1 %v19854_v56  ;;  %v19726_v56 = vcombine.low %v14523_v17, %v14527_v37  ;;  %v19686_v37 = vcombine.low %v14483_v61, %v14487_v47 }
 0xb5f   : > { %16624 = vmatpush1.bf16.msra.mxu0 %v19646_v41  ;;  %16678 = vmatprep.subr.bf16.mxu1 %v19847_v45  ;;  %v19673_v41 = vcombine.high %v14468_v39, %v14472_v35  ;;  %v19719_v45 = vcombine.high %v14515_v7, %v14519_v8  ;;  %v14723_v39 = vld [vmem:[#allocation26 + $0x9d0] sm:$0xff] }
 0xb60   : > { %16625 = vmatprep.subr.bf16.mxu0 %v19639_v44  ;;  %v14460_v44 = vld [vmem:[#allocation26 + $0x198] sm:$0xff]  ;;  %v14727_v35 = vld [vmem:[#allocation26 + $0x9f0] sm:$0xff] }
 0xb61   : > { %v19664_v36 = vcombine.low %v14460_v44, %v14464_v26 }
 0xb62   : > { %16679 = vmatpush2.bf16.msra.mxu1 %v19846_v4  ;;  %v19718_v4 = vcombine.low %v14515_v7, %v14519_v8  ;;  %v19678_v8 = vcombine.low %v14475_v6, %v14479_v49 }
 0xb63   : > { %16626 = vmatpush1.bf16.msra.mxu0 %v19638_v15  ;;  %16680 = vmatprep.subr.bf16.mxu1 %v19839_v14  ;;  %v19665_v15 = vcombine.high %v14460_v44, %v14464_v26  ;;  %v19711_v14 = vcombine.high %v14507_v58, %v14511_v19  ;;  %v14715_v44 = vld [vmem:[#allocation26 + $0x990] sm:$0xff] }
 0xb64   : > { %16627 = vmatprep.subr.bf16.mxu0 %v19631_v52  ;;  %v14452_v52 = vld [vmem:[#allocation26 + $0x158] sm:$0xff]  ;;  %v14719_v26 = vld [vmem:[#allocation26 + $0x9b0] sm:$0xff] }
 0xb65   : > { %v19656_v22 = vcombine.low %v14452_v52, %v14456_v62 }
 0xb66   : > { %16681 = vmatpush2.bf16.msra.mxu1 %v19838_v2  ;;  %v19710_v2 = vcombine.low %v14507_v58, %v14511_v19  ;;  %v19926_v19 = vcombine.low %v14723_v39, %v14727_v35 }
 0xb67   : > { %16628 = vmatpush1.bf16.msra.mxu0 %v19630_v21  ;;  %16682 = vmatprep.subr.bf16.mxu1 %v19831_v50  ;;  %v19657_v21 = vcombine.high %v14452_v52, %v14456_v62  ;;  %v19703_v50 = vcombine.high %v14499_v53, %v14503_v60  ;;  %v25634_v52 = vld [vmem:[#allocation28] sm:$0xff]  ;;  %v14707_v62 = vld [vmem:[#allocation26 + $0x950] sm:$0xff] }
 0xb68   : > { %16629 = vmatprep.subr.bf16.mxu0 %v19623_v23  ;;  %v14444_v23 = vld [vmem:[#allocation26 + $0x118] sm:$0xff] }
 0xb69   : > { %v19648_v24 = vcombine.low %v14444_v23, %v14448_v0 }
 0xb6a   : > { %16683 = vmatpush2.bf16.msra.mxu1 %v19830_v16  ;;  %v19702_v16 = vcombine.low %v14499_v53, %v14503_v60  ;;  %v14711_v53 = vld [vmem:[#allocation26 + $0x970] sm:$0xff] }
 0xb6b   : > { %16630 = vmatpush1.bf16.msra.mxu0 %v19622_v5  ;;  %16684 = vmatprep.subr.bf16.mxu1 %v19823_v59  ;;  %v19649_v5 = vcombine.high %v14444_v23, %v14448_v0  ;;  %v19695_v59 = vcombine.high %v14491_v43, %v14495_v57  ;;  %v14524_v23 = vld [vmem:[#allocation26 + $0x398] sm:$0xff]  ;;  %v14699_v43 = vld [vmem:[#allocation26 + $0x910] sm:$0xff] }
 0xb6c   : > { %16631 = vmatprep.subr.bf16.mxu0 %v19615_v42  ;;  %v14440_v42 = vld [vmem:[#allocation26 + $0xf8] sm:$0xff]  ;;  %v14703_v57 = vld [vmem:[#allocation26 + $0x930] sm:$0xff] }
 0xb6d   : > { %v14528_v0 = vld [vmem:[#allocation26 + $0x3b8] sm:$0xff] }
 0xb6e   : > { %16685 = vmatpush2.bf16.msra.mxu1 %v19822_v29 }
 0xb6f   : > { %16632 = vmatpush1.bf16.msra.mxu0 %v19614_v10  ;;  %16686 = vmatprep.subr.bf16.mxu1 %v19815_v63  ;;  %v19687_v10 = vcombine.high %v14483_v61, %v14487_v47  ;;  %v14428_v63 = vld [vmem:[#allocation26 + $0x98] sm:$0xff] }
 0xb70   : > { %16633 = vmatprep.subr.bf16.mxu0 %v19735_v32  ;;  %v14432_v32 = vld [vmem:[#allocation26 + $0xb8] sm:$0xff] }
 0xb71   : > { %v19632_v7 = vcombine.low %v14428_v63, %v14432_v32  ;;  %v14516_v61 = vld [vmem:[#allocation26 + $0x358] sm:$0xff] }
 0xb72   : > { %16687 = vmatpush2.bf16.msra.mxu1 %v19814_v46  ;;  %v19633_v46 = vcombine.high %v14428_v63, %v14432_v32  ;;  %v14520_v47 = vld [vmem:[#allocation26 + $0x378] sm:$0xff] }
 0xb73   : > { %16634 = vmatpush2.bf16.msra.mxu0 %v19734_v28  ;;  %16688 = vmatprep.subr.bf16.mxu1 %v19807_v54  ;;  %v19679_v28 = vcombine.high %v14475_v6, %v14479_v49  ;;  %v14420_v54 = vld [vmem:[#allocation26 + $0x58] sm:$0xff]  ;;  %v19728_v6 = vcombine.low %v14524_v23, %v14528_v0 }
 0xb74   : > { %16635 = vmatprep.subr.bf16.mxu0 %v19727_v11  ;;  %v14424_v11 = vld [vmem:[#allocation26 + $0x78] sm:$0xff] }
 0xb75   : > { %v19624_v58 = vcombine.low %v14420_v54, %v14424_v11 }
 0xb76   : > { %16689 = vmatpush2.bf16.msra.mxu1 %v19806_v40  ;;  %v19625_v40 = vcombine.high %v14420_v54, %v14424_v11  ;;  %v14508_v54 = vld [vmem:[#allocation26 + $0x318] sm:$0xff] }
 0xb77   : > { %16636 = vmatpush2.bf16.msra.mxu0 %v19726_v56  ;;  %16740 = vmatprep.subr.bf16.mxu1 %v19673_v41  ;;  %v19927_v56 = vcombine.high %v14723_v39, %v14727_v35  ;;  %v14412_v41 = vld [vmem:[#allocation26 + $0x18] sm:$0xff] }
 0xb78   : > { %16637 = vmatprep.subr.bf16.mxu0 %v19719_v45  ;;  %v14416_v45 = vld [vmem:[#allocation26 + $0x38] sm:$0xff] }
 0xb79   : > { %16691 = vmatmul.mubr.bf16.vlgmr.msra.gmra.mxu1 %v25590_v18  ;;  %v19616_v60 = vcombine.low %v14412_v41, %v14416_v45  ;;  %v14512_v11 = vld [vmem:[#allocation26 + $0x338] sm:$0xff] }
 0xb7a   : > { %16741 = vmatpush1.bf16.msra.mxu1 %v19672_v1  ;;  %16772 = vmatprep.mubr.bf16.mxu1 %v25582_v3  ;;  %v14436_v3 = vld [vmem:[#allocation26 + $0xd8] sm:$0xff]  ;;  %v19617_v1 = vcombine.high %v14412_v41, %v14416_v45  ;;  %v19713_v45 = vcombine.high %v14508_v54, %v14512_v11 }
 0xb7b   : > { %16638 = vmatpush2.bf16.msra.mxu0 %v19718_v4  ;;  %16742 = vmatprep.subr.bf16.mxu1 %v19665_v15  ;;  %v19641_v29 = vcombine.high %v14436_v3, %v14440_v42  ;;  %v19640_v17 = vcombine.low %v14436_v3, %v14440_v42  ;;  %v19919_v4 = vcombine.high %v14715_v44, %v14719_v26  ;;  %v14532_v15 = vld [vmem:[#allocation26 + $0x3d8] sm:$0xff] }
 0xb7c   : > { %16639 = vmatprep.subr.bf16.mxu0 %v19711_v14  ;;  %v14536_v14 = vld [vmem:[#allocation26 + $0x3f8] sm:$0xff]  ;;  %v19729_v3 = vcombine.high %v14524_v23, %v14528_v0 }
 0xb7e   : > { %16743 = vmatpush1.bf16.msra.mxu1 %v19664_v36  ;;  %v19918_v36 = vcombine.low %v14715_v44, %v14719_v26  ;;  %v14500_v26 = vld [vmem:[#allocation26 + $0x2d8] sm:$0xff] }
 0xb7f   : > { %16640 = vmatpush2.bf16.msra.mxu0 %v19710_v2  ;;  %16744 = vmatprep.subr.bf16.mxu1 %v19657_v21  ;;  %v19737_v2 = vcombine.high %v14532_v15, %v14536_v14  ;;  %v14734_v21 = vrot.slane %v25634_v52, %v23829_v48  ;;  %v19903_v48 = vcombine.high %v14699_v43, %v14703_v57 }
 0xb80   : > { %16641 = vmatprep.subr.bf16.mxu0 %v19703_v50  ;;  %v19911_v50 = vcombine.high %v14707_v62, %v14711_v53 }
 0xb82   : > { %16745 = vmatpush1.bf16.msra.mxu1 %v19656_v22  ;;  %v19736_v22 = vcombine.low %v14532_v15, %v14536_v14 }
 0xb83   : > { %16642 = vmatpush2.bf16.msra.mxu0 %v19702_v16  ;;  %16746 = vmatprep.subr.bf16.mxu1 %v19649_v5  ;;  %v14738_v16 = vrot.slane %v25634_v52, %v23836_v55 }
 0xb84   : > { %16643 = vmatprep.subr.bf16.mxu0 %v19695_v59  ;;  %v19910_v59 = vcombine.low %v14707_v62, %v14711_v53  ;;  %v14492_v53 = vld [vmem:[#allocation26 + $0x298] sm:$0xff] }
 0xb86   : > { %16747 = vmatpush1.bf16.msra.mxu1 %v19648_v24 }
 0xb87   : > { %16644 = vmatpush2.bf16.msra.mxu0 %v19694_v9  ;;  %16748 = vmatprep.subr.bf16.mxu1 %v19641_v29  ;;  %v14691_v29 = vld [vmem:[#allocation26 + $0x8d0] sm:$0xff] }
 0xb88   : > { %16645 = vmatprep.subr.bf16.mxu0 %v19687_v10  ;;  %v14695_v10 = vld [vmem:[#allocation26 + $0x8f0] sm:$0xff] }
 0xb89   : > { %v19894_v41 = vcombine.low %v14691_v29, %v14695_v10 }
 0xb8a   : > { %16749 = vmatpush1.bf16.msra.mxu1 %v19640_v17  ;;  %v19902_v17 = vcombine.low %v14699_v43, %v14703_v57  ;;  %v14484_v43 = vld [vmem:[#allocation26 + $0x258] sm:$0xff] }
 0xb8b   : > { %16646 = vmatpush2.bf16.msra.mxu0 %v19686_v37  ;;  %16750 = vmatprep.subr.bf16.mxu1 %v19633_v46  ;;  %v19721_v37 = vcombine.high %v14516_v61, %v14520_v47  ;;  %v14488_v57 = vld [vmem:[#allocation26 + $0x278] sm:$0xff] }
 0xb8c   : > { %16647 = vmatprep.subr.bf16.mxu0 %v19679_v28  ;;  %v19895_v28 = vcombine.high %v14691_v29, %v14695_v10 }
 0xb8e   : > { %16751 = vmatpush1.bf16.msra.mxu1 %v19632_v7  ;;  %v14683_v7 = vld [vmem:[#allocation26 + $0x890] sm:$0xff] }
 0xb8f   : > { %16648 = vmatpush2.bf16.msra.mxu0 %v19678_v8  ;;  %16752 = vmatprep.subr.bf16.mxu1 %v19625_v40  ;;  %v14687_v8 = vld [vmem:[#allocation26 + $0x8b0] sm:$0xff]  ;;  %v19720_v40 = vcombine.low %v14516_v61, %v14520_v47  ;;  %v14480_v61 = vld [vmem:[#allocation26 + $0x238] sm:$0xff] }
 0xb90   : > { %16699 = vmatprep.subr.bf16.mxu0 %v19927_v56  ;;  %v19887_v44 = vcombine.high %v14683_v7, %v14687_v8  ;;  %v19886_v15 = vcombine.low %v14683_v7, %v14687_v8  ;;  %v14588_v47 = vld [vmem:[#allocation26 + $0x598] sm:$0xff] }
 0xb91   : > { %v14572_v7 = vld [vmem:[#allocation26 + $0x518] sm:$0xff] }
 0xb92   : > { %16650 = vmatmul.mubr.bf16.vlgmr.msra.gmra.mxu0 %v25584_v33  ;;  %16753 = vmatpush1.bf16.msra.mxu1 %v19624_v58  ;;  %v14504_v58 = vld [vmem:[#allocation26 + $0x2f8] sm:$0xff] }
 0xb93   : > { %16700 = vmatpush1.bf16.msra.mxu0 %v19926_v19  ;;  %16754 = vmatprep.subr.bf16.mxu1 %v19617_v1  ;;  %v14675_v19 = vld [vmem:[#allocation26 + $0x850] sm:$0xff]  ;;  %v19705_v14 = vcombine.high %v14500_v26, %v14504_v58  ;;  %v14576_v8 = vld [vmem:[#allocation26 + $0x538] sm:$0xff] }
 0xb94   : > { %16701 = vmatprep.subr.bf16.mxu0 %v19919_v4  ;;  %16731 = vmatprep.mubr.bf16.mxu0 %v23016_v51  ;;  %v14679_v1 = vld [vmem:[#allocation26 + $0x870] sm:$0xff]  ;;  %v19712_v4 = vcombine.low %v14508_v54, %v14512_v11 }
 0xb95   : > { %v19879_v62 = vcombine.high %v14675_v19, %v14679_v1 }
 0xb96   : > { %16755 = vmatpush1.bf16.msra.mxu1 %v19616_v60  ;;  %v14496_v60 = vld [vmem:[#allocation26 + $0x2b8] sm:$0xff] }
 0xb97   : > { %16702 = vmatpush1.bf16.msra.mxu0 %v19918_v36  ;;  %v16405_v5 = vpop.f32.mrf.mxu0  ;;  %16756 = vmatprep.subr.bf16.mxu1 %v19737_v2  ;;  %v14667_v36 = vld [vmem:[#allocation26 + $0x810] sm:$0xff]  ;;  %v19697_v23 = vcombine.high %v14492_v53, %v14496_v60 }
 0xb98   : > { %v16406_v42 = vadd.f32 %v16405_v5, %v14734_v21  ;;  %16703 = vmatprep.subr.bf16.mxu0 %v19911_v50  ;;  %v14671_v2 = vld [vmem:[#allocation26 + $0x830] sm:$0xff]  ;;  %v19704_v21 = vcombine.low %v14500_v26, %v14504_v58  ;;  %v19878_v50 = vcombine.low %v14675_v19, %v14679_v1  ;;  %v19696_v5 = vcombine.low %v14492_v53, %v14496_v60  ;;  %v14712_v26 = vld [vmem:[#allocation26 + $0x978] sm:$0xff] }
 0xb99   : > { %v16407_v24 = vpop.f32.mrf.mxu0  ;;  %v16446_v9 = vpop.f32.mrf.mxu1  ;;  %v19871_v0 = vcombine.high %v14667_v36, %v14671_v2  ;;  %v14568_v58 = vld [vmem:[#allocation26 + $0x4f8] sm:$0xff]  ;;  %v19776_v1 = vcombine.low %v14572_v7, %v14576_v8 }
 0xb9a   : > { %v16408_v63 = vadd.f32 %v16407_v24, %v14738_v16  ;;  %v25642_v32 = vadd.f32 %v16446_v9, %v16406_v42  ;;  %16757 = vmatpush2.bf16.msra.mxu1 %v19736_v22  ;;  %v14596_v22 = vld [vmem:[#allocation26 + $0x5d8] sm:$0xff]  ;;  %v19688_v9 = vcombine.low %v14484_v43, %v14488_v57 }
 0xb9b   : > { %16704 = vmatpush1.bf16.msra.mxu0 %v19910_v59  ;;  %v16409_v55 = vpop.f32.mrf.mxu0  ;;  %v16448_v49 = vpop.f32.mrf.mxu1  ;;  %16758 = vmatprep.subr.bf16.mxu1 %v19729_v3  ;;  %v14600_v16 = vld [vmem:[#allocation26 + $0x5f8] sm:$0xff]  ;;  %v19870_v59 = vcombine.low %v14667_v36, %v14671_v2  ;;  %v19689_v3 = vcombine.high %v14484_v43, %v14488_v57 }
 0xb9c   : > { %v25644_v46 = vadd.f32 %v16448_v49, %v16408_v63  ;;  %16705 = vmatprep.subr.bf16.mxu0 %v19903_v48  ;;  %v19801_v42 = vcombine.high %v14596_v22, %v14600_v16  ;;  %v14476_v48 = vld [vmem:[#allocation26 + $0x218] sm:$0xff]  ;;  %v19800_v29 = vcombine.low %v14596_v22, %v14600_v16 }
 0xb9d   : > { %v16410_v39 = vpop.f32.mrf.mxu0  ;;  %v16450_v35 = vpop.f32.mrf.mxu1  ;;  %v14592_v24 = vld [vmem:[#allocation26 + $0x5b8] sm:$0xff]  ;;  %v19681_v10 = vcombine.high %v14476_v48, %v14480_v61 }
 0xb9e   : > { %16759 = vmatpush2.bf16.msra.mxu1 %v19728_v6  ;;  %v19793_v63 = vcombine.high %v14588_v47, %v14592_v24  ;;  %v14724_v6 = vld [vmem:[#allocation26 + $0x9d8] sm:$0xff] }
 0xb9f   : > { %16706 = vmatpush1.bf16.msra.mxu0 %v19902_v17  ;;  %v16451_v56 = vpop.f32.mrf.mxu1  ;;  %16760 = vmatprep.subr.bf16.mxu1 %v19721_v37  ;;  %v14728_v55 = vld [vmem:[#allocation26 + $0x9f8] sm:$0xff]  ;;  %v19680_v37 = vcombine.low %v14476_v48, %v14480_v61 }
 0xba0   : > { %16707 = vmatprep.subr.bf16.mxu0 %v19895_v28  ;;  %v14580_v49 = vld [vmem:[#allocation26 + $0x558] sm:$0xff]  ;;  %v19792_v28 = vcombine.low %v14588_v47, %v14592_v24  ;;  %v19929_v54 = vcombine.high %v14724_v6, %v14728_v55 }
 0xba1   : > { %v14584_v17 = vld [vmem:[#allocation26 + $0x578] sm:$0xff] }
 0xba2   : > { %16761 = vmatpush2.bf16.msra.mxu1 %v19720_v40  ;;  %v19785_v11 = vcombine.high %v14580_v49, %v14584_v17  ;;  %v14716_v39 = vld [vmem:[#allocation26 + $0x998] sm:$0xff]  ;;  %v19928_v40 = vcombine.low %v14724_v6, %v14728_v55  ;;  %v19784_v56 = vcombine.low %v14580_v49, %v14584_v17 }
 0xba3   : > { %16708 = vmatpush1.bf16.msra.mxu0 %v19894_v41  ;;  %16762 = vmatprep.subr.bf16.mxu1 %v19713_v45  ;;  %v14720_v35 = vld [vmem:[#allocation26 + $0x9b8] sm:$0xff]  ;;  %v19777_v45 = vcombine.high %v14572_v7, %v14576_v8 }
 0xba4   : > { %16709 = vmatprep.subr.bf16.mxu0 %v19887_v44  ;;  %v19921_v41 = vcombine.high %v14716_v39, %v14720_v35  ;;  %v14708_v44 = vld [vmem:[#allocation26 + $0x958] sm:$0xff]  ;;  %v19920_v19 = vcombine.low %v14716_v39, %v14720_v35 }
 0xba5   : > { %v14556_v53 = vld [vmem:[#allocation26 + $0x498] sm:$0xff]  ;;  %v19912_v36 = vcombine.low %v14708_v44, %v14712_v26 }
 0xba6   : > { %16763 = vmatpush2.bf16.msra.mxu1 %v19712_v4  ;;  %v19913_v4 = vcombine.high %v14708_v44, %v14712_v26  ;;  %v14560_v60 = vld [vmem:[#allocation26 + $0x4b8] sm:$0xff] }
 0xba7   : > { %16710 = vmatpush1.bf16.msra.mxu0 %v19886_v15  ;;  %16764 = vmatprep.subr.bf16.mxu1 %v19705_v14  ;;  %v14700_v14 = vld [vmem:[#allocation26 + $0x918] sm:$0xff]  ;;  %v19760_v57 = vcombine.low %v14556_v53, %v14560_v60 }
 0xba8   : > { %16711 = vmatprep.subr.bf16.mxu0 %v19879_v62  ;;  %v14704_v62 = vld [vmem:[#allocation26 + $0x938] sm:$0xff] }
 0xba9   : > { %v19905_v2 = vcombine.high %v14700_v14, %v14704_v62  ;;  %v19904_v43 = vcombine.low %v14700_v14, %v14704_v62 }
 0xbaa   : > { %16765 = vmatpush2.bf16.msra.mxu1 %v19704_v21  ;;  %v19761_v21 = vcombine.high %v14556_v53, %v14560_v60  ;;  %v14628_v60 = vld [vmem:[#allocation26 + $0x6d8] sm:$0xff] }
 0xbab   : > { %16712 = vmatpush1.bf16.msra.mxu0 %v19878_v50  ;;  %16766 = vmatprep.subr.bf16.mxu1 %v19697_v23  ;;  %v14692_v50 = vld [vmem:[#allocation26 + $0x8d8] sm:$0xff] }
 0xbac   : > { %16713 = vmatprep.subr.bf16.mxu0 %v19871_v0  ;;  %v14548_v23 = vld [vmem:[#allocation26 + $0x458] sm:$0xff] }
 0xbad   : > { %v14552_v0 = vld [vmem:[#allocation26 + $0x478] sm:$0xff] }
 0xbae   : > { %16767 = vmatpush2.bf16.msra.mxu1 %v19696_v5  ;;  %v19753_v16 = vcombine.high %v14548_v23, %v14552_v0  ;;  %v14684_v5 = vld [vmem:[#allocation26 + $0x898] sm:$0xff]  ;;  %v19752_v61 = vcombine.low %v14548_v23, %v14552_v0 }
 0xbaf   : > { %16714 = vmatpush1.bf16.msra.mxu0 %v19870_v59  ;;  %16768 = vmatprep.subr.bf16.mxu1 %v19689_v3  ;;  %v14688_v59 = vld [vmem:[#allocation26 + $0x8b8] sm:$0xff] }
 0xbb0   : > { %16781 = vmatprep.subr.bf16.mxu0 %v19801_v42  ;;  %v14540_v3 = vld [vmem:[#allocation26 + $0x418] sm:$0xff]  ;;  %v19889_v47 = vcombine.high %v14684_v5, %v14688_v59  ;;  %v19888_v6 = vcombine.low %v14684_v5, %v14688_v59 }
 0xbb1   : > { %v14544_v42 = vld [vmem:[#allocation26 + $0x438] sm:$0xff] }
 0xbb2   : > { %16732 = vmatmul.mubr.bf16.vlgmr.msra.gmra.mxu0 %v25622_v27  ;;  %16769 = vmatpush2.bf16.msra.mxu1 %v19688_v9  ;;  %v19745_v24 = vcombine.high %v14540_v3, %v14544_v42  ;;  %v14676_v9 = vld [vmem:[#allocation26 + $0x858] sm:$0xff]  ;;  %v19744_v55 = vcombine.low %v14540_v3, %v14544_v42 }
 0xbb3   : > { %16782 = vmatpush1.bf16.msra.mxu0 %v19800_v29  ;;  %16813 = vmatprep.mubr.bf16.mxu0 %v25587_v12  ;;  %v14564_v12 = vld [vmem:[#allocation26 + $0x4d8] sm:$0xff] }
 0xbb4   : > { %16770 = vmatprep.subr.bf16.mxu1 %v19681_v10  ;;  %16783 = vmatprep.subr.bf16.mxu0 %v19793_v63  ;;  %v19769_v15 = vcombine.high %v14564_v12, %v14568_v58  ;;  %v14680_v29 = vld [vmem:[#allocation26 + $0x878] sm:$0xff] }
 0xbb5   : > { %v14660_v10 = vld [vmem:[#allocation26 + $0x7d8] sm:$0xff]  ;;  %v19881_v49 = vcombine.high %v14676_v9, %v14680_v29  ;;  %v19880_v39 = vcombine.low %v14676_v9, %v14680_v29  ;;  %v14742_v29 = vrot.slane %v25634_v52, %v23911_v30  ;;  %v14750_v30 = vrot.slane %v25634_v52, %v3024_v13 }
 0xbb6   : > { %16771 = vmatpush2.bf16.msra.mxu1 %v19680_v37  ;;  %v14664_v63 = vld [vmem:[#allocation26 + $0x7f8] sm:$0xff] }
 0xbb7   : > { %16784 = vmatpush1.bf16.msra.mxu0 %v19792_v28  ;;  %16822 = vmatprep.subr.bf16.mxu1 %v19929_v54  ;;  %v19865_v17 = vcombine.high %v14660_v10, %v14664_v63  ;;  %v14668_v37 = vld [vmem:[#allocation26 + $0x818] sm:$0xff]  ;;  %v19864_v35 = vcombine.low %v14660_v10, %v14664_v63  ;;  %v14746_v10 = vrot.slane %v25634_v52, %v23994_v25 }
 0xbb8   : > { %16785 = vmatprep.subr.bf16.mxu0 %v19785_v11  ;;  %v14672_v28 = vld [vmem:[#allocation26 + $0x838] sm:$0xff]  ;;  %v14754_v25 = vrot.slane %v25634_v52, %v3028_v20 }
 0xbb9   : > { %16773 = vmatmul.mubr.bf16.vlgmr.msra.gmra.mxu1 %v25584_v33  ;;  %v19768_v33 = vcombine.low %v14564_v12, %v14568_v58  ;;  %v14652_v54 = vld [vmem:[#allocation26 + $0x798] sm:$0xff]  ;;  %v19873_v7 = vcombine.high %v14668_v37, %v14672_v28 }
 0xbba   : > { %16823 = vmatpush1.bf16.msra.mxu1 %v19928_v40  ;;  %16854 = vmatprep.mubr.bf16.mxu1 %v23016_v51  ;;  %v14696_v51 = vld [vmem:[#allocation26 + $0x8f8] sm:$0xff] }
 0xbbb   : > { %16786 = vmatpush1.bf16.msra.mxu0 %v19784_v56  ;;  %16824 = vmatprep.subr.bf16.mxu1 %v19921_v41  ;;  %v19897_v22 = vcombine.high %v14692_v50, %v14696_v51  ;;  %v19896_v48 = vcombine.low %v14692_v50, %v14696_v51  ;;  %v14656_v11 = vld [vmem:[#allocation26 + $0x7b8] sm:$0xff] }
 0xbbc   : > { %16787 = vmatprep.subr.bf16.mxu0 %v19777_v45  ;;  %v19857_v8 = vcombine.high %v14652_v54, %v14656_v11  ;;  %v14644_v40 = vld [vmem:[#allocation26 + $0x758] sm:$0xff]  ;;  %v19872_v45 = vcombine.low %v14668_v37, %v14672_v28  ;;  %v19856_v26 = vcombine.low %v14652_v54, %v14656_v11 }
 0xbbd   : > { %v14648_v56 = vld [vmem:[#allocation26 + $0x778] sm:$0xff] }
 0xbbe   : > { %16825 = vmatpush1.bf16.msra.mxu1 %v19920_v19  ;;  %v19849_v58 = vcombine.high %v14644_v40, %v14648_v56  ;;  %v19848_v14 = vcombine.low %v14644_v40, %v14648_v56  ;;  %v14620_v50 = vld [vmem:[#allocation26 + $0x698] sm:$0xff] }
 0xbbf   : > { %16788 = vmatpush1.bf16.msra.mxu0 %v19776_v1  ;;  %16826 = vmatprep.subr.bf16.mxu1 %v19913_v4  ;;  %v14636_v1 = vld [vmem:[#allocation26 + $0x718] sm:$0xff] }
 0xbc0   : > { %16789 = vmatprep.subr.bf16.mxu0 %v19769_v15  ;;  %v14640_v4 = vld [vmem:[#allocation26 + $0x738] sm:$0xff] }
 0xbc1   : > { %v19841_v53 = vcombine.high %v14636_v1, %v14640_v4  ;;  %v14624_v51 = vld [vmem:[#allocation26 + $0x6b8] sm:$0xff] }
 0xbc2   : > { %16827 = vmatpush1.bf16.msra.mxu1 %v19912_v36  ;;  %v14632_v36 = vld [vmem:[#allocation26 + $0x6f8] sm:$0xff] }
 0xbc3   : > { %16790 = vmatpush1.bf16.msra.mxu0 %v19768_v33  ;;  %16828 = vmatprep.subr.bf16.mxu1 %v19905_v2  ;;  %v19840_v2 = vcombine.low %v14636_v1, %v14640_v4  ;;  %v19832_v0 = vcombine.low %v14628_v60, %v14632_v36  ;;  %v14604_v5 = vld [vmem:[#allocation26 + $0x618] sm:$0xff] }
 0xbc4   : > { %16791 = vmatprep.subr.bf16.mxu0 %v19761_v21  ;;  %v14608_v59 = vld [vmem:[#allocation26 + $0x638] sm:$0xff] }
 0xbc5   : > { %v19809_v42 = vcombine.high %v14604_v5, %v14608_v59 }
 0xbc6   : > { %16829 = vmatpush1.bf16.msra.mxu1 %v19904_v43  ;;  %v19825_v43 = vcombine.high %v14620_v50, %v14624_v51 }
 0xbc7   : > { %16792 = vmatpush1.bf16.msra.mxu0 %v19760_v57  ;;  %16830 = vmatprep.subr.bf16.mxu1 %v19897_v22  ;;  %v14612_v57 = vld [vmem:[#allocation26 + $0x658] sm:$0xff] }
 0xbc8   : > { %16793 = vmatprep.subr.bf16.mxu0 %v19753_v16  ;;  %v14616_v22 = vld [vmem:[#allocation26 + $0x678] sm:$0xff]  ;;  %v19824_v16 = vcombine.low %v14620_v50, %v14624_v51  ;;  %v14758_v50 = vrot.slane %v25634_v52, %v3032_v31  ;;  %v14762_v51 = vrot.slane %v25634_v52, %v3036_v34 }
 0xbc9   : > { %v19816_v3 = vcombine.low %v14612_v57, %v14616_v22 }
 0xbca   : > { %16831 = vmatpush1.bf16.msra.mxu1 %v19896_v48  ;;  %v19808_v48 = vcombine.low %v14604_v5, %v14608_v59 }
 0xbcb   : > { %16794 = vmatpush1.bf16.msra.mxu0 %v19752_v61  ;;  %16832 = vmatprep.subr.bf16.mxu1 %v19889_v47 }
 0xbcc   : > { %16795 = vmatprep.subr.bf16.mxu0 %v19745_v24 }
 0xbce   : > { %16833 = vmatpush1.bf16.msra.mxu1 %v19888_v6 }
 0xbcf   : > { %16796 = vmatpush1.bf16.msra.mxu0 %v19744_v55  ;;  %16834 = vmatprep.subr.bf16.mxu1 %v19881_v49 }
 0xbd0   : > { %16797 = vmatprep.subr.bf16.mxu0 %v19865_v17 }
 0xbd2   : > { %16835 = vmatpush1.bf16.msra.mxu1 %v19880_v39  ;;  %v16487_v41 = vpop.f32.mrf.mxu0 }
 0xbd3   : > { %v25651_v44 = vadd.f32 %v16487_v41, %v25642_v32  ;;  %16798 = vmatpush2.bf16.msra.mxu0 %v19864_v35  ;;  %16836 = vmatprep.subr.bf16.mxu1 %v19873_v7 }
 0xbd4   : > { %v16489_v12 = vpop.f32.mrf.mxu0  ;;  %16799 = vmatprep.subr.bf16.mxu0 %v19857_v8 }
 0xbd5   : > { %v25654_v19 = vadd.f32 %v16489_v12, %v25644_v46  ;;  %v19833_v46 = vcombine.high %v14628_v60, %v14632_v36 }
 0xbd6   : > { %16837 = vmatpush1.bf16.msra.mxu1 %v19872_v45  ;;  %v16491_v15 = vpop.f32.mrf.mxu0 }
 0xbd7   : > { %16800 = vmatpush2.bf16.msra.mxu0 %v19856_v26 }
 0xbd8   : > { %v16492_v62 = vpop.f32.mrf.mxu0  ;;  %16801 = vmatprep.subr.bf16.mxu0 %v19849_v58 }
 0xbd9   : > { %v16528_v32 = vpop.f32.mrf.mxu1  ;;  %16855 = vmatmul.mubr.bf16.vlgmr.msra.gmra.mxu1 %v25622_v27  ;;  %v19817_v27 = vcombine.high %v14612_v57, %v14616_v22 }
 0xbda   : > { %v16529_v63 = vadd.f32 %v16528_v32, %v14742_v29 }
 0xbdb   : > { %v16530_v33 = vpop.f32.mrf.mxu1  ;;  %16802 = vmatpush2.bf16.msra.mxu0 %v19848_v14 }
 0xbdc   : > { %16803 = vmatprep.subr.bf16.mxu0 %v19841_v53  ;;  %v16531_v55 = vadd.f32 %v16530_v33, %v14746_v10 }
 0xbdd   : > { %v16532_v21 = vpop.f32.mrf.mxu1 }
 0xbdf   : > { %v16533_v23 = vpop.f32.mrf.mxu1  ;;  %16804 = vmatpush2.bf16.msra.mxu0 %v19840_v2 }
 0xbe0   : > { %16805 = vmatprep.subr.bf16.mxu0 %v19833_v46 }
 0xbe3   : > { %16806 = vmatpush2.bf16.msra.mxu0 %v19832_v0 }
 0xbe4   : > { %16807 = vmatprep.subr.bf16.mxu0 %v19825_v43 }
 0xbe7   : > { %16808 = vmatpush2.bf16.msra.mxu0 %v19824_v16 }
 0xbe8   : > { %16809 = vmatprep.subr.bf16.mxu0 %v19817_v27 }
 0xbeb   : > { %16810 = vmatpush2.bf16.msra.mxu0 %v19816_v3  ;;  %v16864_v3 = vsel %vm12642_vm0, %v25654_v19, -inf }
 0xbec   : > { %16811 = vmatprep.subr.bf16.mxu0 %v19809_v42 }
 0xbef   : > { %16812 = vmatpush2.bf16.msra.mxu0 %v19808_v48  ;;  %v16863_v48 = vsel %vm12642_vm0, %v25651_v44, -inf }
 0xbf2   : > { %16814 = vmatmul.mubr.bf16.vlgmr.msra.gmra.mxu0 %v25590_v18 }
 0xbf9   : > { %v16610_v61 = vpop.f32.mrf.mxu1 }
 0xbfb   : > { %v16612_v47 = vpop.f32.mrf.mxu1 }
 0xbfd   : > { %v16614_v24 = vpop.f32.mrf.mxu1 }
 0xbff   : > { %v16615_v9 = vpop.f32.mrf.mxu1 }
 0xc12   : > { %v16569_v6 = vpop.f32.mrf.mxu0 }
 0xc13   : > { %v16570_v49 = vadd.f32 %v16569_v6, %v16529_v63 }
 0xc14   : > { %v16571_v17 = vpop.f32.mrf.mxu0 }
 0xc15   : > { %v25662_v37 = vadd.f32 %v16610_v61, %v16570_v49  ;;  %v16572_v28 = vadd.f32 %v16571_v17, %v16531_v55  ;;  %v22339_v49 = vld [vmem:[#allocation29 + $0x78] sm:$0xff]  }
 0xc16   : > { %v16573_v54 = vpop.f32.mrf.mxu0  ;;  %v22340_v17 = vld [vmem:[#allocation29 + $0xf8] sm:$0xff]   ;;  %20179 = vmatprep.subr.bf16.mxu0 %v22339_v49  ;;  %v22363_v49 = vld [vmem:[#allocation29 + $0x48] sm:$0xff]  }
 0xc17   : > { %v25664_v18 = vadd.f32 %v16612_v47, %v16572_v28  ;;  %v16865_v61 = vsel %vm12642_vm0, %v25662_v37, -inf  ;;  %v22341_v28 = vld [vmem:[#allocation29 + $0x38] sm:$0xff]   ;;  %20201 = vmatprep.subr.bf16.mxu1 %v22340_v17  ;;  %v22364_v17 = vld [vmem:[#allocation29 + $0xc8] sm:$0xff]  }
 0xc18   : > { %v16574_v11 = vpop.f32.mrf.mxu0  ;;  %v22342_v54 = vld [vmem:[#allocation29 + $0xb8] sm:$0xff]   ;;  %20180 = vmatpush3.bf16.msra.mxu0 %v22341_v28  ;;  %v22365_v28 = vld [vmem:[#allocation29 + $0x8] sm:$0xff]  }
 0xc19   : > { %v16866_v47 = vsel %vm12642_vm0, %v25664_v18, -inf  ;;  %v22343_v11 = vld [vmem:[#allocation29 + $0x70] sm:$0xff]   ;;  %20202 = vmatpush3.bf16.msra.mxu1 %v22342_v54  ;;  %v22366_v54 = vld [vmem:[#allocation29 + $0x88] sm:$0xff]  }
 0xc1a   : > { %20181 = vmatprep.subr.bf16.mxu0 %v22343_v11  ;;  %v22367_v11 = vld [vmem:[#allocation29 + $0x40] sm:$0xff]  }
 0xc39   : > { %v16692_v39 = vpop.f32.mrf.mxu1 }
 0xc3b   : > { %v16694_v35 = vpop.f32.mrf.mxu1 }
 0xc3d   : > { %v16696_v7 = vpop.f32.mrf.mxu1 }
 0xc3e   : > { %v22346_v7 = vld [vmem:[#allocation29 + $0xb0] sm:$0xff]  }
 0xc3f   : > { %v16697_v8 = vpop.f32.mrf.mxu1 }
 0xc40   : > { %v22347_v8 = vld [vmem:[#allocation29 + $0x68] sm:$0xff]  }
 0xc52   : > { %v16651_v40 = vpop.f32.mrf.mxu0 }
 0xc53   : > { %v16652_v56 = vadd.f32 %v16651_v40, %v14750_v30  ;;  %v22348_v30 = vld [vmem:[#allocation29 + $0xe8] sm:$0xff]  }
 0xc54   : > { %v16653_v41 = vpop.f32.mrf.mxu0  ;;  %v22350_v40 = vld [vmem:[#allocation29 + $0xa8] sm:$0xff]  }
 0xc55   : > { %v16654_v45 = vadd.f32 %v16653_v41, %v14754_v25  ;;  %v16693_v26 = vadd.f32 %v16692_v39, %v16652_v56  ;;  %v22344_v39 = vld [vmem:[#allocation29 + $0xf0] sm:$0xff]   ;;  %v22349_v25 = vld [vmem:[#allocation29 + $0x28] sm:$0xff]   ;;  %v22351_v56 = vld [vmem:[#allocation29 + $0x60] sm:$0xff]  }
 0xc56   : > { %v16655_v12 = vpop.f32.mrf.mxu0  ;;  %20203 = vmatprep.subr.bf16.mxu1 %v22344_v39  ;;  %v22352_v41 = vld [vmem:[#allocation29 + $0xe0] sm:$0xff]  }
 0xc57   : > { %v16695_v58 = vadd.f32 %v16694_v35, %v16654_v45  ;;  %v22345_v35 = vld [vmem:[#allocation29 + $0x30] sm:$0xff]   ;;  %20204 = vmatpush3.bf16.msra.mxu1 %v22346_v7  ;;  %v22353_v45 = vld [vmem:[#allocation29 + $0x20] sm:$0xff]  }
 0xc58   : > { %v16656_v1 = vpop.f32.mrf.mxu0  ;;  %20182 = vmatpush3.bf16.msra.mxu0 %v22345_v35  ;;  %20205 = vmatprep.subr.bf16.mxu1 %v22348_v30  ;;  %v22368_v39 = vld [vmem:[#allocation29 + $0xc0] sm:$0xff]   ;;  %v22372_v30 = vld [vmem:[#allocation29 + $0x1f8] sm:$0xff]  }
 0xc59   : > { %20183 = vmatprep.subr.bf16.mxu0 %v22347_v8  ;;  %v22369_v35 = vld [vmem:[#allocation29] sm:$0xff]   ;;  %v22371_v8 = vld [vmem:[#allocation29 + $0x178] sm:$0xff]  }
 0xc5a   : > { %v22370_v7 = vld [vmem:[#allocation29 + $0x80] sm:$0xff]  }
 0xc5b   : > { %20206 = vmatpush3.bf16.msra.mxu1 %v22350_v40 }
 0xc5c   : > { %20184 = vmatpush3.bf16.msra.mxu0 %v22349_v25  ;;  %20207 = vmatprep.subr.bf16.mxu1 %v22352_v41 }
 0xc5d   : > { %20185 = vmatprep.subr.bf16.mxu0 %v22351_v56 }
 0xc60   : > { %20186 = vmatpush3.bf16.msra.mxu0 %v22353_v45 }
 0xc72   : > { %v16733_v4 = vpop.f32.mrf.mxu0 }
 0xc73   : > { %v25672_v15 = vadd.f32 %v16733_v4, %v16693_v26  ;;  %v22354_v26 = vld [vmem:[#allocation29 + $0xa0] sm:$0xff]  }
 0xc74   : > { %v16735_v14 = vpop.f32.mrf.mxu0  ;;  %20208 = vmatpush3.bf16.msra.mxu1 %v22354_v26 }
 0xc75   : > { %v25674_v62 = vadd.f32 %v16735_v14, %v16695_v58  ;;  %v16867_v38 = vsel %vm12642_vm0, %v25672_v15, -inf }
 0xc76   : > { %v16737_v53 = vpop.f32.mrf.mxu0  ;;  %v16868_v9 = vmax.f32 %v16863_v48, %v16867_v38 }
 0xc77   : > { %v16869_v16 = vsel %vm12642_vm0, %v25674_v62, -inf }
 0xc78   : > { %v16738_v13 = vpop.f32.mrf.mxu0  ;;  %v16870_v52 = vmax.f32 %v16864_v3, %v16869_v16 }
 0xc79   : > { %v16774_v32 = vpop.f32.mrf.mxu1 }
 0xc7a   : > { %v16775_v23 = vadd.f32 %v16774_v32, %v14758_v50  ;;  %v16875_v63 = vmax.f32 %v16868_v9, %v16870_v52  ;;  %v22357_v9 = vld [vmem:[#allocation29 + $0x18] sm:$0xff]  }
 0xc7b   : > { %v16776_v60 = vpop.f32.mrf.mxu1 }
 0xc7c   : > { %v16777_v43 = vadd.f32 %v16776_v60, %v14762_v51 }
 0xc7d   : > { %v16778_v36 = vpop.f32.mrf.mxu1 }
 0xc7f   : > { %v16779_v20 = vpop.f32.mrf.mxu1 }
 0xc99   : > { %v16856_v33 = vpop.f32.mrf.mxu1 }
 0xc9b   : > { %v16858_v2 = vpop.f32.mrf.mxu1 }
 0xc9d   : > { %v16860_v46 = vpop.f32.mrf.mxu1 }
 0xc9f   : > { %v16861_v21 = vpop.f32.mrf.mxu1 }
 0xcb2   : > { %v16815_v0 = vpop.f32.mrf.mxu0 }
 0xcb3   : > { %v16816_v57 = vadd.f32 %v16815_v0, %v16775_v23 }
 0xcb4   : > { %v16817_v22 = vpop.f32.mrf.mxu0 }
 0xcb5   : > { %v25684_v27 = vadd.f32 %v16856_v33, %v16816_v57  ;;  %v16818_v5 = vadd.f32 %v16817_v22, %v16777_v43 }
 0xcb6   : > { %v16819_v59 = vpop.f32.mrf.mxu0 }
 0xcb7   : > { %v16871_v31 = vsel %vm12642_vm0, %v25684_v27, -inf  ;;  %v25692_v34 = vadd.f32 %v16858_v2, %v16818_v5 }
 0xcb8   : > { %v16820_v42 = vpop.f32.mrf.mxu0  ;;  %v16872_v29 = vmax.f32 %v16865_v61, %v16871_v31 }
 0xcb9   : > { %v16873_v24 = vsel %vm12642_vm0, %v25692_v34, -inf }
 0xcba   : > { %v16874_v10 = vmax.f32 %v16866_v47, %v16873_v24  ;;  %v22355_v47 = vld [vmem:[#allocation29 + $0x58] sm:$0xff]  }
 0xcbb   : > { %v22356_v24 = vld [vmem:[#allocation29 + $0xd8] sm:$0xff]   ;;  %20187 = vmatprep.subr.bf16.mxu0 %v22355_v47 }
 0xcbc   : > { %v16876_v6 = vmax.f32 %v16872_v29, %v16874_v10  ;;  %v22358_v29 = vld [vmem:[#allocation29 + $0x98] sm:$0xff]   ;;  %v22359_v10 = vld [vmem:[#allocation29 + $0x50] sm:$0xff]   ;;  %20209 = vmatprep.subr.bf16.mxu1 %v22356_v24  ;;  %20188 = vmatpush3.bf16.msra.mxu0 %v22357_v9 }
 0xcbd   : > { %20210 = vmatpush3.bf16.msra.mxu1 %v22358_v29  ;;  %20189 = vmatprep.subr.bf16.mxu0 %v22359_v10 }
 0xcbe   : > { %v16877_v55 = vmax.f32 %v16875_v63, %v16876_v6  ;;  %v22360_v63 = vld [vmem:[#allocation29 + $0xd0] sm:$0xff]  }
 0xcbf   : > { %v22361_v6 = vld [vmem:[#allocation29 + $0x10] sm:$0xff]   ;;  %20211 = vmatprep.subr.bf16.mxu1 %v22360_v63 }
 0xcc0   : > { %16878 = vmax.xlane.f32.xlu0 %v16877_v55  ;;  %v22362_v55 = vld [vmem:[#allocation29 + $0x90] sm:$0xff]   ;;  %20190 = vmatpush3.bf16.msra.mxu0 %v22361_v6 }
 0xcc1   : > { %20212 = vmatpush3.bf16.msra.mxu1 %v22362_v55  ;;  %20191 = vmatprep.subr.bf16.mxu0 %v22363_v49 }
 0xcc2   : > { %20213 = vmatprep.subr.bf16.mxu1 %v22364_v17 }
 0xcc4   : > { %20192 = vmatpush3.bf16.msra.mxu0 %v22365_v28 }
 0xcc5   : > { %20214 = vmatpush3.bf16.msra.mxu1 %v22366_v54  ;;  %20193 = vmatprep.subr.bf16.mxu0 %v22367_v11 }
 0xcc6   : > { %20215 = vmatprep.subr.bf16.mxu1 %v22368_v39  ;;  %v19930_v39 = vld [vmem:[#allocation31] ss:$0 sm:$0xff] }
 0xcc8   : > { %20194 = vmatpush3.bf16.msra.mxu0 %v22369_v35 }
 0xcc9   : > { %20216 = vmatpush3.bf16.msra.mxu1 %v22370_v7  ;;  %20223 = vmatprep.subr.bf16.mxu0 %v22371_v8 }
 0xcca   : > { %20245 = vmatprep.subr.bf16.mxu1 %v22372_v30 }
 0xd49   : > { %v16879_v12 = vpop.xlane.xlu0 %16878 }
 0xd4a   : > { %v16880_v58 = vsub.f32 %v25651_v44, %v16879_v12  ;;  %v16881_v1 = vsub.f32 %v25654_v19, %v16879_v12  ;;  %v16882_v4 = vsub.f32 %v25662_v37, %v16879_v12  ;;  %v16883_v14 = vsub.f32 %v25664_v18, %v16879_v12 }
 0xd4b   : > { %v16884_v53 = vsub.f32 %v25672_v15, %v16879_v12  ;;  %v16885_v36 = vsub.f32 %v25674_v62, %v16879_v12  ;;  %v16886_v2 = vsub.f32 %v25684_v27, %v16879_v12  ;;  %v16887_v19 = vsub.f32 %v25692_v34, %v16879_v12 }
 0xd4c   : > { %v16888_v13 = vmul.f32 1.442695, %v16880_v58  ;;  %v16890_v32 = vmul.f32 1.442695, %v16881_v1  ;;  %v16892_v60 = vmul.f32 1.442695, %v16882_v4 }
 0xd4d   : > { %v16894_v20 = vmul.f32 1.442695, %v16883_v14  ;;  %v16896_v33 = vmul.f32 1.442695, %v16884_v53  ;;  %v16898_v44 = vmul.f32 1.442695, %v16885_v36 }
 0xd4e   : > { %22415 = vpow2.f32 %v16888_v13  ;;  %v16900_v37 = vmul.f32 1.442695, %v16886_v2  ;;  %v16902_v18 = vmul.f32 1.442695, %v16887_v19  ;;  %v22373_v13 = vld [vmem:[#allocation29 + $0x138] sm:$0xff]   ;;  %v22376_v36 = vld [vmem:[#allocation29 + $0x1f0] sm:$0xff]  }
 0xd4f   : > { %22417 = vpow2.f32 %v16890_v32  ;;  %v22374_v32 = vld [vmem:[#allocation29 + $0x1b8] sm:$0xff]   ;;  %v22377_v2 = vld [vmem:[#allocation29 + $0x130] sm:$0xff]   ;;  %v22379_v19 = vld [vmem:[#allocation29 + $0x168] sm:$0xff]  }
 0xd50   : > { %22419 = vpow2.f32 %v16892_v60  ;;  %v22375_v60 = vld [vmem:[#allocation29 + $0x170] sm:$0xff]  }
 0xd51   : > { %22421 = vpow2.f32 %v16894_v20 }
 0xd52   : > { %22423 = vpow2.f32 %v16896_v33 }
 0xd53   : > { %22425 = vpow2.f32 %v16898_v44  ;;  %v22378_v44 = vld [vmem:[#allocation29 + $0x1b0] sm:$0xff]  }
 0xd54   : > { %22427 = vpow2.f32 %v16900_v37  ;;  %v22380_v37 = vld [vmem:[#allocation29 + $0x1e8] sm:$0xff]  }
 0xd55   : > { %22429 = vpow2.f32 %v16902_v18  ;;  %v22381_v18 = vld [vmem:[#allocation29 + $0x128] sm:$0xff]  }
 0xd5b   : > { %v25710_v15 = vpop.eup %22415 }
 0xd5c   : > { %v22418_v62 = vpop.eup %22417  ;;  %v16904_v46 = vsel %vm12642_vm0, %v25710_v15, 0.0 }
 0xd5d   : > { %v25714_v21 = vpop.eup %22419  ;;  %v16905_v50 = vsel %vm12642_vm0, %v22418_v62, 0.0 }
 0xd5e   : > { %v22422_v51 = vpop.eup %22421  ;;  %v16906_v23 = vadd.f32 %v16905_v50, %v16904_v46  ;;  %v16907_v0 = vsel %vm12642_vm0, %v25714_v21, 0.0  ;;  %v22384_v46 = vld [vmem:[#allocation29 + $0x1e0] sm:$0xff]  }
 0xd5f   : > { %v25719_v43 = vpop.eup %22423  ;;  %v16909_v22 = vsel %vm12642_vm0, %v22422_v51, 0.0  ;;  %v22386_v50 = vld [vmem:[#allocation29 + $0x1a0] sm:$0xff]  }
 0xd60   : > { %v16908_v57 = vadd.f32 %v16907_v0, %v16906_v23  ;;  %v22426_v16 = vpop.eup %22425  ;;  %v16911_v5 = vsel %vm12642_vm0, %v25719_v43, 0.0  ;;  %v22388_v23 = vld [vmem:[#allocation29 + $0x1d8] sm:$0xff]  }
 0xd61   : > { %v25724_v59 = vpop.eup %22427  ;;  %v16913_v38 = vsel %vm12642_vm0, %v22426_v16, 0.0  ;;  %v22389_v0 = vld [vmem:[#allocation29 + $0x118] sm:$0xff]  }
 0xd62   : > { %v16910_v27 = vadd.f32 %v16909_v22, %v16908_v57  ;;  %v22430_v31 = vpop.eup %22429  ;;  %v16915_v52 = vsel %vm12642_vm0, %v25724_v59, 0.0  ;;  %v22390_v57 = vld [vmem:[#allocation29 + $0x198] sm:$0xff]   ;;  %v22391_v22 = vld [vmem:[#allocation29 + $0x150] sm:$0xff]  }
 0xd63   : > { %v16917_v48 = vsel %vm12642_vm0, %v22430_v31, 0.0 }
 0xd64   : > { %v16912_v3 = vadd.f32 %v16911_v5, %v16910_v27  ;;  %v22393_v27 = vld [vmem:[#allocation29 + $0x110] sm:$0xff]  }
 0xd65   : > { %v22394_v5 = vld [vmem:[#allocation29 + $0x190] sm:$0xff]  }
 0xd66   : > { %v16914_v34 = vadd.f32 %v16913_v38, %v16912_v3  ;;  %v22395_v3 = vld [vmem:[#allocation29 + $0x148] sm:$0xff]  }
 0xd67   : > { %v22396_v38 = vld [vmem:[#allocation29 + $0x1c8] sm:$0xff]  }
 0xd68   : > { %v16916_v42 = vadd.f32 %v16915_v52, %v16914_v34  ;;  %v22398_v34 = vld [vmem:[#allocation29 + $0x188] sm:$0xff]   ;;  %v22399_v52 = vld [vmem:[#allocation29 + $0x140] sm:$0xff]  }
 0xd6a   : > { %v16918_v61 = vadd.f32 %v16917_v48, %v16916_v42  ;;  %v22400_v42 = vld [vmem:[#allocation29 + $0x1c0] sm:$0xff]  }
 0xd6b   : > { %v22401_v48 = vld [vmem:[#allocation29 + $0x100] sm:$0xff]  }
 0xd6c   : > { %16919 = vadd.xlane.f32.xlu1 %v16918_v61  ;;  %v22402_v61 = vld [vmem:[#allocation29 + $0x180] sm:$0xff]  }
 0xdf5   : > { %v16920_v25 = vpop.xlane.xlu1 %16919 }
 0xdf6   : > { %22431 = vrcp.f32 %v16920_v25 }
 0xe03   : > { %v25730_v40 = vpop.eup %22431 }
 0xe04   : > { %v16923_v56 = vmul.f32 %v25730_v40, %v22418_v62  ;;  %v16925_v41 = vmul.f32 %v25730_v40, %v22422_v51  ;;  %v16922_v45 = vmul.f32 %v25730_v40, %v25710_v15  ;;  %v16924_v26 = vmul.f32 %v25730_v40, %v25714_v21  ;;  %v22382_v15 = vld [vmem:[#allocation29 + $0x1a8] sm:$0xff]   ;;  %v22383_v62 = vld [vmem:[#allocation29 + $0x160] sm:$0xff]   ;;  %v22387_v51 = vld [vmem:[#allocation29 + $0x158] sm:$0xff]  }
 0xe05   : > { %v16927_v12 = vmul.f32 %v25730_v40, %v22426_v16  ;;  %v16929_v58 = vmul.f32 %v25730_v40, %v22430_v31  ;;  %v22385_v21 = vld [vmem:[#allocation29 + $0x120] sm:$0xff]   ;;  %v22392_v16 = vld [vmem:[#allocation29 + $0x1d0] sm:$0xff]   ;;  %v22397_v31 = vld [vmem:[#allocation29 + $0x108] sm:$0xff]   ;;  %v16926_v47 = vmul.f32 %v25730_v40, %v25719_v43  ;;  %v16928_v24 = vmul.f32 %v25730_v40, %v25724_v59 }
 0xe06   : > { %v16931_v1 = vpack.c.bf16 %v16923_v56, %v16923_v56  ;;  %v16933_v4 = vpack.c.bf16 %v16925_v41, %v16925_v41  ;;  %v16930_v14 = vpack.c.bf16 %v16922_v45, %v16922_v45  ;;  %v16932_v53 = vpack.c.bf16 %v16924_v26, %v16924_v26 }
 0xe07   : > { %v16935_v20 = vpack.c.bf16 %v16927_v12, %v16927_v12  ;;  %v16937_v33 = vpack.c.bf16 %v16929_v58, %v16929_v58  ;;  %v16934_v9 = vpack.c.bf16 %v16926_v47, %v16926_v47  ;;  %v16936_v29 = vpack.c.bf16 %v16928_v24, %v16928_v24 }
 0xe08   : > { %17489 = vmatprep.mubr.bf16.mxu0 %v16931_v1  ;;  %17529 = vmatprep.mubr.bf16.mxu1 %v16933_v4 }
 0xe09   : > { %17490 = vmatmul.mubr.bf16.vlgmr.msra.gmra.mxu0 %v16930_v14  ;;  %17530 = vmatmul.mubr.bf16.vlgmr.msra.gmra.mxu1 %v16932_v53 }
 0xe0a   : > { %20224 = vmatpush3.bf16.msra.mxu0 %v22373_v13  ;;  %20246 = vmatpush3.bf16.msra.mxu1 %v22374_v32 }
 0xe0b   : > { %17569 = vmatprep.mubr.bf16.mxu0 %v16935_v20  ;;  %17609 = vmatprep.mubr.bf16.mxu1 %v16937_v33 }
 0xe0c   : > { %20225 = vmatprep.subr.bf16.mxu0 %v22375_v60  ;;  %20247 = vmatprep.subr.bf16.mxu1 %v22376_v36 }
 0xe0e   : > { %20226 = vmatpush3.bf16.msra.mxu0 %v22377_v2  ;;  %20248 = vmatpush3.bf16.msra.mxu1 %v22378_v44 }
 0xe0f   : > { %20227 = vmatprep.subr.bf16.mxu0 %v22379_v19  ;;  %20249 = vmatprep.subr.bf16.mxu1 %v22380_v37 }
 0xe12   : > { %20228 = vmatpush3.bf16.msra.mxu0 %v22381_v18  ;;  %20250 = vmatpush3.bf16.msra.mxu1 %v22382_v15 }
 0xe13   : > { %20229 = vmatprep.subr.bf16.mxu0 %v22383_v62  ;;  %20251 = vmatprep.subr.bf16.mxu1 %v22384_v46 }
 0xe16   : > { %20230 = vmatpush3.bf16.msra.mxu0 %v22385_v21  ;;  %20252 = vmatpush3.bf16.msra.mxu1 %v22386_v50 }
 0xe17   : > { %20231 = vmatprep.subr.bf16.mxu0 %v22387_v51  ;;  %20253 = vmatprep.subr.bf16.mxu1 %v22388_v23 }
 0xe1a   : > { %20232 = vmatpush3.bf16.msra.mxu0 %v22389_v0  ;;  %20254 = vmatpush3.bf16.msra.mxu1 %v22390_v57 }
 0xe1b   : > { %20233 = vmatprep.subr.bf16.mxu0 %v22391_v22  ;;  %20255 = vmatprep.subr.bf16.mxu1 %v22392_v16 }
 0xe1e   : > { %20234 = vmatpush3.bf16.msra.mxu0 %v22393_v27  ;;  %20256 = vmatpush3.bf16.msra.mxu1 %v22394_v5 }
 0xe1f   : > { %20235 = vmatprep.subr.bf16.mxu0 %v22395_v3  ;;  %20257 = vmatprep.subr.bf16.mxu1 %v22396_v38 }
 0xe22   : > { %20236 = vmatpush3.bf16.msra.mxu0 %v22397_v31  ;;  %20258 = vmatpush3.bf16.msra.mxu1 %v22398_v34 }
 0xe23   : > { %20237 = vmatprep.subr.bf16.mxu0 %v22399_v52  ;;  %20259 = vmatprep.subr.bf16.mxu1 %v22400_v42 }
 0xe26   : > { %20238 = vmatpush3.bf16.msra.mxu0 %v22401_v48  ;;  %20260 = vmatpush3.bf16.msra.mxu1 %v22402_v61 }
 0xe29   : > { %17570 = vmatmul.mubr.bf16.vlgmr.msra.gmra.mxu0 %v16934_v9  ;;  %17610 = vmatmul.mubr.bf16.vlgmr.msra.gmra.mxu1 %v16936_v29 }
 0xec9   : > { %v20195_v10 = vpop.f32.mrf.mxu0  ;;  %v20217_v63 = vpop.f32.mrf.mxu1 }
 0xecb   : > { %v20196_v6 = vpop.f32.mrf.mxu0  ;;  %v20218_v55 = vpop.f32.mrf.mxu1 }
 0xecc   : > { %v20197_v11 = vadd.f32 %v20196_v6, %v20195_v10  ;;  %v20219_v59 = vadd.f32 %v20218_v55, %v20217_v63 }
 0xecd   : > { %v20198_v49 = vpop.f32.mrf.mxu0  ;;  %v20220_v17 = vpop.f32.mrf.mxu1 }
 0xece   : > { %v17492_v43 = vadd.f32 %v20197_v11, %v19930_v39 }
 0xecf   : > { %v20199_v28 = vpop.f32.mrf.mxu0  ;;  %v20221_v54 = vpop.f32.mrf.mxu1 }
 0xed0   : > { %v17532_v25 = vadd.f32 %v20219_v59, %v17492_v43 }
 0xee9   : > { %v20239_v35 = vpop.f32.mrf.mxu0  ;;  %v20261_v7 = vpop.f32.mrf.mxu1 }
 0xeeb   : > { %v20240_v8 = vpop.f32.mrf.mxu0  ;;  %v20262_v30 = vpop.f32.mrf.mxu1 }
 0xeec   : > { %v20241_v40 = vadd.f32 %v20240_v8, %v20239_v35  ;;  %v20263_v26 = vadd.f32 %v20262_v30, %v20261_v7 }
 0xeed   : > { %v20242_v56 = vpop.f32.mrf.mxu0  ;;  %v20264_v41 = vpop.f32.mrf.mxu1 }
 0xeee   : > { %v17572_v45 = vadd.f32 %v20241_v40, %v17532_v25 }
 0xeef   : > { %v20243_v12 = vpop.f32.mrf.mxu0  ;;  %v20265_v58 = vpop.f32.mrf.mxu1 }
 0xef0   : > { %v17612_v1 = vadd.f32 %v20263_v26, %v17572_v45 }
 0xef2   : > { %v17617_v4 = vmul.f32 %v17612_v1, %v17612_v1 }
 0xef4   : > { %v17618_v14 = vsel %vm12642_vm0, %v17617_v4, 0.0 }
 0xef5   : > { %17619 = vadd.xlane.f32.xlu0 %v17618_v14 }
 0xf7e   : > { %v17620_v53 = vpop.xlane.xlu0 %17619 }
 0xf7f   : > { %v17621_v13 = vmax.f32 %v17620_v53, 1e-24 }
 0xf81   : > { %22433 = vrsqrt.f32 %v17621_v13 }
 0xf8e   : > { %v22434_v32 = vpop.eup %22433 }
 0xf8f   : > { %v17623_v60 = vmul.f32 %v22434_v32, %v17612_v1 }
 0xf91   : > { %17624 = vst [vmem:[#allocation32] sm:$0x3] %v17623_v60 }
 0xf92 PF: > { %s25888_s19 = sld [smem:[#allocation45_spill]]  ;;  %s23017_s24 = smov [#allocation32]  }
 0xf93   : > { %s17632_s15 = sshll.u32 %s23017_s24, 4  ;;  %s17633_s15 = int_to_ptr.vmem [resolvable:$true] %s17632_s15 }
 0xf94   : > { %s22889_s13 = scalar_lea.vmem %s17633_s15, 32  ;;  %p22896_p10 = scmp.lt.s32.totalorder %s17633_s15, %s17633_s15 }
 0xf95   : > { %p22890_p9 = scmp.ne.s32.totalorder %s17633_s15, %s22889_s13  ;;  %p22897_p0 = scmp.lt.s32.totalorder %s22889_s13, %s22889_s13 }
 0xf97   : > { %p22898_p5 = por %p22897_p0, %p22896_p10 }
 0xf98   : > { %p20413_p7 = scmp.eq.s32.totalorder %s25888_s19, 3 }
 0xf9a   : > { %p22891_p2 = pnand %p22890_p9, %p20413_p7 }
 0xf9c   : > { %p22892_p11 = pneg %p22891_p2 }
 0xf9e   : > { %p22899_p12 = pnand %p22898_p5, %p22892_p11 }
 0xfa0   : > { %22902 = shalt.err (!%p22899_p12)
}
 0xfa1   : > { %s25889_s4 = sld [smem:[#allocation60_spill]] }
 0xfa7   : > { %20334 = dma.vmem_to_hbm [thread:$0]  (%p20413_p7), %s17633_s15, 32, %s25889_s4, [#allocation7]  }
 0xfa8   : > { %22966 = dma.done.wait (%p20413_p7), [#allocation7], 32  }
 0xfa9   : > { %22968 = vsyncadd (%p20413_p7), [#allocation7], 4294967264 }
 0xfaa PF: > { %s25890_s27 = sld [smem:[#allocation47_spill]] }
 0xfab   : > { %s25891_s24 = sld [smem:[#allocation43_spill]] }
 0xfac   : > { %s25892_s25 = sld [smem:[#allocation44_spill]] }
 0xfad   : > { %s25893_s26 = sld [smem:[#allocation48_spill]] }
 0xfb0   : > { %p40_p8 = scmp.ge.s32.totalorder %s25890_s27, 6  }
 0xfb2   :  { %42 = sbr.rel (!%p40_p8) target bundleno = 26 (0x1a), region = 237 }
 0xfb7   :  { %17645 = vsyncpa [#allocation6], 1 }
 0xfb8   :  { %17647 = vsyncpa [#allocation6 + $0x1], 1 }
 0xfb9   :  { %17648 = vsyncpa [#allocation9], 1 }
 0xfba   :  { %17650 = vsyncpa [#allocation9 + $0x1], 1 }
 0xfbb   :  { %17651 = vsyncpa [#allocation12], 1 }
 0xfbc   :  { %17653 = vsyncpa [#allocation12 + $0x1], 1 }
 0xfbd   :  { %17654 = vsyncpa [#allocation15], 1 }
 0xfbe   :  { %17656 = vsyncpa [#allocation15 + $0x1], 1 }
 0xfbf   :  { %17657 = vsyncpa [#allocation18], 1 }
 0xfc0   :  { %17658 = vsyncpa [#allocation21], 1 }
 0xfc1   :  { %17659 = vsyncpa [#allocation24], 1 }
 0xfc2   :  { %17660 = vsyncpa [#allocation27], 1 }
 0xfc3   :  { %17661 = vsyncpa [#allocation30], 1 }
 0xfc4   :  { %17662 = vsyncpa [#allocation7], 1 }
 0xfc5   :  { %17664 = vsyncpa [#allocation7 + $0x1], 1 }

</bundles_post_ra>
